<compile_context>
chip_gen: v7x
topology: tpu7x:2x2x1
jax: 0.10.0
libtpu: 0.0.40
codegen_flags: <defaults>
</compile_context>

<pallas_src>
import math
from functools import partial

import jax
import jax.numpy as jnp
from jax.experimental import pallas as pl
from jax.experimental.pallas import tpu as pltpu

C_IN = 1026
C_HID1 = 1026
C_HID2 = 100
LOG_2 = math.log(2.0)


def _mine3_tile_kernel(x_ref, w1_ref, b1_ref, w2_ref, b2_ref, w3_ref, b3_ref,
                       out_ref, *, n_half, t_hw, hw):
    """One (sample n, hw-tile t) block, channel-major layout."""
    n_id = pl.program_id(0)
    t_id = pl.program_id(1)

    # x tile straight from the NCHW tensor viewed as (N, C, H*W); cast to bf16
    # here so no extra HBM pre-pass is needed in the wrapper.
    x_bf = x_ref[...].astype(jnp.bfloat16)                        # (C_IN, T_HW)

    # fc1 (1x1 conv == channel matmul): PyTorch (out, in) weight layout means
    # no transpose anywhere.  bf16 MXU inputs, f32 accumulation; bias + ReLU +
    # bf16 downcast fused into one epilogue expression.
    h1 = jnp.dot(w1_ref[...], x_bf, preferred_element_type=jnp.float32)
    h1 = jnp.maximum(h1 + b1_ref[...], 0.0).astype(jnp.bfloat16)   # (C_HID1, T_HW)

    # fc2 + ReLU (keep f32 after the accumulate).
    h2 = jnp.dot(w2_ref[...], h1, preferred_element_type=jnp.float32)
    h2 = jnp.maximum(h2 + b2_ref[...], 0.0)                        # (C_HID2, T_HW)

    # fc3 (K=100, out=1): VPU multiply + cross-sublane reduce, not an MXU pass.
    out_row = jnp.sum(h2 * w3_ref[...], axis=0, keepdims=True) + b3_ref[...]  # (1, T_HW)

    # Numerically stable softplus(-o) = max(-o, 0) + log1p(exp(-|o|)).
    sp = jnp.maximum(-out_row, 0.0) + jnp.log1p(jnp.exp(-jnp.abs(out_row)))
    logterm = LOG_2 - sp

    if hw % t_hw != 0:
        # Partial final hw-tile: mask out-of-range columns before the sums
        # (padded columns are not neutral because biases propagate).
        col = t_id * t_hw + jax.lax.broadcasted_iota(jnp.int32, (1, t_hw), 1)
        valid = col < hw
        logterm = jnp.where(valid, logterm, 0.0)
        out_row = jnp.where(valid, out_row, 0.0)

    s_logterm = jnp.sum(logterm)
    s_out = jnp.sum(out_row)

    # difference = [ sum_all(log2 - softplus(-o)) - sum_neg(o) ] / half_count.
    # A "neg" tile (sample index >= N/2) additionally subtracts its raw sum.
    is_neg = n_id >= n_half
    contrib = s_logterm - jnp.where(is_neg, s_out, jnp.float32(0.0))

    # Single lane-dense (8,128) store per grid step; wrapper reads [..., 0, 0].
    out_ref[0, 0] = jnp.full((8, 128), contrib, jnp.float32)


def _choose_t_hw(hw, cap=1024):
    """Lane-tile width: full extent when it fits (always legal, no masking);
    otherwise a fixed 128-multiple, with the last partial block masked."""
    return hw if hw <= cap else cap


def mine3_forward_jsd(x_nchw, w1, b1, w2, b2, w3, b3):
    """Forward pass of Mine3 with measure='JSD'.

    x_nchw : (N, 1026, H, W) float32
    w1     : (1026, 1026) float32  -- PyTorch Conv2d (out, in) layout
    b1     : (1026,)
    w2     : (100, 1026)
    b2     : (100,)
    w3     : (1, 100)
    b3     : (1,)
    Returns (loss, measure_est) == (-difference, 0.5 * difference).
    """
    n, c, h, w = x_nchw.shape
    assert c == C_IN and n % 2 == 0
    hw = h * w
    n_half = n // 2
    half_count = n_half * hw

    # Free view: NCHW is contiguous, so merging H and W is a bitcast reshape.
    # No wrapper-side cast or transpose -> the kernel is the only HBM pass.
    x3 = x_nchw.reshape(n, C_IN, hw)

    w1_bf = w1.astype(jnp.bfloat16)                           # (1026, 1026)
    w2_bf = w2.astype(jnp.bfloat16)                           # (100, 1026)
    b1_col = b1.reshape(C_HID1, 1).astype(jnp.float32)
    b2_col = b2.reshape(C_HID2, 1).astype(jnp.float32)
    w3_col = w3.reshape(C_HID2, 1).astype(jnp.float32)
    b3_sc = b3.reshape(1, 1).astype(jnp.float32)

    t_hw = _choose_t_hw(hw)
    grid_hw = pl.cdiv(hw, t_hw)

    resident = lambda i, j: (0, 0)   # weights/biases stay in VMEM across the grid

    flops = 2 * n * hw * (C_IN * C_HID1 + C_HID1 * C_HID2 + C_HID2)
    bytes_accessed = (n * C_IN * hw * 4                       # x (f32, read once)
                      + (C_IN * C_HID1 + C_HID1 * C_HID2) * 2  # bf16 weights
                      + n * grid_hw * 8 * 128 * 4)             # partial sums

    kernel = partial(_mine3_tile_kernel, n_half=n_half, t_hw=t_hw, hw=hw)

    parts = pl.pallas_call(
        kernel,
        out_shape=jax.ShapeDtypeStruct((n, grid_hw, 8, 128), jnp.float32),
        grid=(n, grid_hw),
        in_specs=[
            pl.BlockSpec((None, C_IN, t_hw), lambda i, j: (i, 0, j)),  # x tile
            pl.BlockSpec((C_HID1, C_IN), resident),                    # w1 (bf16)
            pl.BlockSpec((C_HID1, 1), resident),                       # b1
            pl.BlockSpec((C_HID2, C_HID1), resident),                  # w2 (bf16)
            pl.BlockSpec((C_HID2, 1), resident),                       # b2
            pl.BlockSpec((C_HID2, 1), resident),                       # w3 column
            pl.BlockSpec((1, 1), resident),                            # b3
        ],
        out_specs=pl.BlockSpec((1, 1, 8, 128), lambda i, j: (i, j, 0, 0)),
        compiler_params=pltpu.CompilerParams(
            dimension_semantics=("parallel", "parallel"),
            vmem_limit_bytes=48 * 1024 * 1024,   # < v7x's 64 MiB physical VMEM
        ),
        cost_estimate=pl.CostEstimate(
            flops=int(flops),
            transcendentals=2 * n * hw,
            bytes_accessed=int(bytes_accessed),
        ),
    )(x3, w1_bf, b1_col, w2_bf, b2_col, w3_col, b3_sc)

    contrib_total = jnp.sum(parts[:, :, 0, 0])
    difference = contrib_total / jnp.float32(half_count)
    return -difference, 0.5 * difference


def init_params(key):
    """Deterministic synthetic parameters in PyTorch Conv2d layouts."""
    ks = jax.random.split(key, 6)

    def uinit(k, fan_in, shape):
        bound = 1.0 / math.sqrt(fan_in)
        return jax.random.uniform(k, shape, jnp.float32, -bound, bound)

    w1 = uinit(ks[0], C_IN, (C_HID1, C_IN))      # (out, in)
    b1 = uinit(ks[1], C_IN, (C_HID1,))
    w2 = uinit(ks[2], C_HID1, (C_HID2, C_HID1))
    b2 = uinit(ks[3], C_HID1, (C_HID2,))
    w3 = uinit(ks[4], C_HID2, (1, C_HID2))
    b3 = uinit(ks[5], C_HID2, (1,))
    return w1, b1, w2, b2, w3, b3


if __name__ == "__main__":
    key = jax.random.PRNGKey(0)
    pkey, xkey = jax.random.split(key)

    # Small batch/spatial dims; channel dims are fixed by the module (1026/100/1).
    N, H, W = 4, 2, 2
    x = jax.random.normal(xkey, (N, C_IN, H, W), jnp.float32)

    params = init_params(pkey)
    loss, est = jax.jit(mine3_forward_jsd)(x, *params)
    jax.block_until_ready((loss, est))
    print("KERNEL_OK")
</pallas_src>

<mosaic_0001>
module attributes {stable_mosaic.version = 11 : i64} {
  func.func @_mine3_tile_kernel(%arg0: i32, %arg1: i32, %arg2: memref<1x1026x4xf32, #tpu.memory_space<vmem>>, %arg3: memref<1026x1026xbf16, #tpu.memory_space<vmem>>, %arg4: memref<1026x1xf32, #tpu.memory_space<vmem>>, %arg5: memref<100x1026xbf16, #tpu.memory_space<vmem>>, %arg6: memref<100x1xf32, #tpu.memory_space<vmem>>, %arg7: memref<100x1xf32, #tpu.memory_space<vmem>>, %arg8: memref<1x1xf32, #tpu.memory_space<vmem>>, %arg9: memref<1x1x8x128xf32, #tpu.memory_space<vmem>>) attributes {dimension_semantics = [#tpu.dimension_semantics<parallel>, #tpu.dimension_semantics<parallel>], iteration_bounds = array<i64: 4, 1>, scalar_prefetch = 0 : i64, scratch_operands = 0 : i64, tpu.core_type = #tpu.core_type<tc>, window_params = [{transform_indices = @transform_0, window_bounds = array<i64: 1, 1026, 4>}, {pipeline_mode = #tpu.pipeline_mode<synchronous>, transform_indices = @transform_1, window_bounds = array<i64: 1026, 1026>}, {pipeline_mode = #tpu.pipeline_mode<synchronous>, transform_indices = @transform_2, window_bounds = array<i64: 1026, 1>}, {pipeline_mode = #tpu.pipeline_mode<synchronous>, transform_indices = @transform_3, window_bounds = array<i64: 100, 1026>}, {pipeline_mode = #tpu.pipeline_mode<synchronous>, transform_indices = @transform_4, window_bounds = array<i64: 100, 1>}, {pipeline_mode = #tpu.pipeline_mode<synchronous>, transform_indices = @transform_5, window_bounds = array<i64: 100, 1>}, {pipeline_mode = #tpu.pipeline_mode<synchronous>, transform_indices = @transform_6, window_bounds = array<i64: 1, 1>}, {transform_indices = @transform_7, window_bounds = array<i64: 1, 1, 8, 128>}]} {
    %c0 = arith.constant 0 : index
    %c0_0 = arith.constant 0 : index
    %c0_1 = arith.constant 0 : index
    %0 = vector.load %arg2[%c0, %c0_0, %c0_1] : memref<1x1026x4xf32, #tpu.memory_space<vmem>>, vector<1x1026x4xf32>
    %1 = vector.shape_cast %0 : vector<1x1026x4xf32> to vector<1026x4xf32>
    %2 = arith.truncf %1 : vector<1026x4xf32> to vector<1026x4xbf16>
    %c0_2 = arith.constant 0 : index
    %c0_3 = arith.constant 0 : index
    %3 = vector.load %arg3[%c0_2, %c0_3] : memref<1026x1026xbf16, #tpu.memory_space<vmem>>, vector<1026x1026xbf16>
    %cst = arith.constant dense<0.000000e+00> : vector<1026x4xf32>
    %4 = tpu.matmul %3, %2, %cst {dimension_numbers = #tpu.dot_dimension_numbers<[1], [0], [0], [1], [0, 0, 1, 1], [], []>} : vector<1026x1026xbf16>, vector<1026x4xbf16>, vector<1026x4xf32> -> vector<1026x4xf32>
    %c0_4 = arith.constant 0 : index
    %c0_5 = arith.constant 0 : index
    %5 = vector.load %arg4[%c0_4, %c0_5] : memref<1026x1xf32, #tpu.memory_space<vmem>>, vector<1026x1xf32>
    %6 = vector.broadcast %5 : vector<1026x1xf32> to vector<1026x4xf32>
    %7 = arith.addf %4, %6 : vector<1026x4xf32>
    %cst_6 = arith.constant 0.000000e+00 : f32
    %8 = vector.broadcast %cst_6 : f32 to vector<1026x4xf32>
    %9 = arith.maximumf %7, %8 : vector<1026x4xf32>
    %10 = arith.truncf %9 : vector<1026x4xf32> to vector<1026x4xbf16>
    %c0_7 = arith.constant 0 : index
    %c0_8 = arith.constant 0 : index
    %11 = vector.load %arg5[%c0_7, %c0_8] : memref<100x1026xbf16, #tpu.memory_space<vmem>>, vector<100x1026xbf16>
    %cst_9 = arith.constant dense<0.000000e+00> : vector<100x4xf32>
    %12 = tpu.matmul %11, %10, %cst_9 {dimension_numbers = #tpu.dot_dimension_numbers<[1], [0], [0], [1], [0, 0, 1, 1], [], []>} : vector<100x1026xbf16>, vector<1026x4xbf16>, vector<100x4xf32> -> vector<100x4xf32>
    %c0_10 = arith.constant 0 : index
    %c0_11 = arith.constant 0 : index
    %13 = vector.load %arg6[%c0_10, %c0_11] : memref<100x1xf32, #tpu.memory_space<vmem>>, vector<100x1xf32>
    %14 = vector.broadcast %13 : vector<100x1xf32> to vector<100x4xf32>
    %15 = arith.addf %12, %14 : vector<100x4xf32>
    %cst_12 = arith.constant 0.000000e+00 : f32
    %16 = vector.broadcast %cst_12 : f32 to vector<100x4xf32>
    %17 = arith.maximumf %15, %16 : vector<100x4xf32>
    %c0_13 = arith.constant 0 : index
    %c0_14 = arith.constant 0 : index
    %18 = vector.load %arg7[%c0_13, %c0_14] : memref<100x1xf32, #tpu.memory_space<vmem>>, vector<100x1xf32>
    %19 = vector.broadcast %18 : vector<100x1xf32> to vector<100x4xf32>
    %20 = arith.mulf %17, %19 : vector<100x4xf32>
    %cst_15 = arith.constant dense<0.000000e+00> : vector<4xf32>
    %21 = vector.multi_reduction <add>, %20, %cst_15 [0] : vector<100x4xf32> to vector<4xf32>
    %22 = vector.shape_cast %21 : vector<4xf32> to vector<1x4xf32>
    %c0_16 = arith.constant 0 : index
    %c0_17 = arith.constant 0 : index
    %23 = vector.load %arg8[%c0_16, %c0_17] : memref<1x1xf32, #tpu.memory_space<vmem>>, vector<1x1xf32>
    %24 = vector.broadcast %23 : vector<1x1xf32> to vector<1x4xf32>
    %25 = arith.addf %22, %24 : vector<1x4xf32>
    %cst_18 = arith.constant 0.000000e+00 : f32
    %26 = vector.broadcast %cst_18 : f32 to vector<1x4xf32>
    %27 = arith.subf %26, %25 : vector<1x4xf32>
    %cst_19 = arith.constant 0.000000e+00 : f32
    %28 = vector.broadcast %cst_19 : f32 to vector<1x4xf32>
    %29 = arith.maximumf %27, %28 : vector<1x4xf32>
    %30 = math.absf %25 : vector<1x4xf32>
    %cst_20 = arith.constant 0.000000e+00 : f32
    %31 = vector.broadcast %cst_20 : f32 to vector<1x4xf32>
    %32 = arith.subf %31, %30 : vector<1x4xf32>
    %33 = math.exp %32 : vector<1x4xf32>
    %34 = math.log1p %33 : vector<1x4xf32>
    %35 = arith.addf %29, %34 : vector<1x4xf32>
    %cst_21 = arith.constant 0.693147182 : f32
    %36 = vector.broadcast %cst_21 : f32 to vector<1x4xf32>
    %37 = arith.subf %36, %35 : vector<1x4xf32>
    %38 = vector.shape_cast %37 : vector<1x4xf32> to vector<1x1x4xf32>
    %cst_22 = arith.constant dense<0.000000e+00> : vector<1xf32>
    %39 = vector.multi_reduction <add>, %38, %cst_22 [1, 2] : vector<1x1x4xf32> to vector<1xf32>
    %40 = vector.shape_cast %39 : vector<1xf32> to vector<1x1x1xf32>
    %41 = vector.extract %40[0, 0, 0] : f32 from vector<1x1x1xf32>
    %42 = vector.shape_cast %25 : vector<1x4xf32> to vector<1x1x4xf32>
    %cst_23 = arith.constant dense<0.000000e+00> : vector<1xf32>
    %43 = vector.multi_reduction <add>, %42, %cst_23 [1, 2] : vector<1x1x4xf32> to vector<1xf32>
    %44 = vector.shape_cast %43 : vector<1xf32> to vector<1x1x1xf32>
    %45 = vector.extract %44[0, 0, 0] : f32 from vector<1x1x1xf32>
    %c2_i32 = arith.constant 2 : i32
    %46 = arith.cmpi sge, %arg0, %c2_i32 : i32
    %cst_24 = arith.constant 0.000000e+00 : f32
    %47 = arith.select %46, %45, %cst_24 : f32
    %48 = arith.subf %41, %47 : f32
    %49 = vector.broadcast %48 : f32 to vector<8x128xf32>
    %c0_25 = arith.constant 0 : index
    %c0_26 = arith.constant 0 : index
    %c0_27 = arith.constant 0 : index
    %c0_28 = arith.constant 0 : index
    %50 = vector.load %arg9[%c0_25, %c0_26, %c0_27, %c0_28] : memref<1x1x8x128xf32, #tpu.memory_space<vmem>>, vector<1x1x8x128xf32>
    %51 = vector.shape_cast %50 : vector<1x1x8x128xf32> to vector<8x128xf32>
    %52 = vector.shape_cast %49 : vector<8x128xf32> to vector<1x1x8x128xf32>
    tpu.vector_store %arg9[%c0_25, %c0_26, %c0_27, %c0_28], %52 {strides = array<i32>} : memref<1x1x8x128xf32, #tpu.memory_space<vmem>>, vector<1x1x8x128xf32>,
    return
  }
  func.func @transform_0(%arg0: i32, %arg1: i32) -> (i32, i32, i32) {
    %c0_i32 = arith.constant 0 : i32
    %c0_i32_0 = arith.constant 0 : i32
    return %arg0, %c0_i32, %arg1 : i32, i32, i32
  }
  func.func @transform_1(%arg0: i32, %arg1: i32) -> (i32, i32) {
    %c0_i32 = arith.constant 0 : i32
    %c0_i32_0 = arith.constant 0 : i32
    %c0_i32_1 = arith.constant 0 : i32
    return %c0_i32, %c0_i32_0 : i32, i32
  }
  func.func @transform_2(%arg0: i32, %arg1: i32) -> (i32, i32) {
    %c0_i32 = arith.constant 0 : i32
    %c0_i32_0 = arith.constant 0 : i32
    %c0_i32_1 = arith.constant 0 : i32
    return %c0_i32, %c0_i32_0 : i32, i32
  }
  func.func @transform_3(%arg0: i32, %arg1: i32) -> (i32, i32) {
    %c0_i32 = arith.constant 0 : i32
    %c0_i32_0 = arith.constant 0 : i32
    %c0_i32_1 = arith.constant 0 : i32
    return %c0_i32, %c0_i32_0 : i32, i32
  }
  func.func @transform_4(%arg0: i32, %arg1: i32) -> (i32, i32) {
    %c0_i32 = arith.constant 0 : i32
    %c0_i32_0 = arith.constant 0 : i32
    %c0_i32_1 = arith.constant 0 : i32
    return %c0_i32, %c0_i32_0 : i32, i32
  }
  func.func @transform_5(%arg0: i32, %arg1: i32) -> (i32, i32) {
    %c0_i32 = arith.constant 0 : i32
    %c0_i32_0 = arith.constant 0 : i32
    %c0_i32_1 = arith.constant 0 : i32
    return %c0_i32, %c0_i32_0 : i32, i32
  }
  func.func @transform_6(%arg0: i32, %arg1: i32) -> (i32, i32) {
    %c0_i32 = arith.constant 0 : i32
    %c0_i32_0 = arith.constant 0 : i32
    %c0_i32_1 = arith.constant 0 : i32
    return %c0_i32, %c0_i32_0 : i32, i32
  }
  func.func @transform_7(%arg0: i32, %arg1: i32) -> (i32, i32, i32, i32) {
    %c0_i32 = arith.constant 0 : i32
    %c0_i32_0 = arith.constant 0 : i32
    %c0_i32_1 = arith.constant 0 : i32
    return %arg0, %arg1, %c0_i32, %c0_i32_0 : i32, i32, i32, i32
  }
}

</mosaic_0001>

<bundles_post_ra>
// kernel: mine3_forward_jsd.1
= control target key start
LH: loop header
LB: loop body
LE: loop exit
PB: predicated region body
PF: predicated region fallthrough
CT: control target
= control target key end

     0   :  { %s12594_s26 = smov 0   ;;  %s12596_s27 = smov 0   ;;  %s16483_s0 = inlined_call_operand.vmem [shape: f32[4,1026,4], index: 0, kind: input, shape index: {}]   ;;  %s16484_s1 = inlined_call_operand.vmem [shape: bf16[1026,1026], index: 1, kind: input, shape index: {}]   ;;  %s16485_s2 = inlined_call_operand.vmem [shape: f32[1026,1], index: 2, kind: input, shape index: {}]   ;;  %s16486_s3 = inlined_call_operand.vmem [shape: bf16[100,1026], index: 3, kind: input, shape index: {}]   ;;  %s16487_s4 = inlined_call_operand.vmem [shape: f32[100,1], index: 4, kind: input, shape index: {}]   ;;  %s16488_s5 = inlined_call_operand.vmem [shape: f32[100,1], index: 5, kind: input, shape index: {}]   ;;  %s16489_s6 = inlined_call_operand.<no memory space> [shape: f32[1,1], index: 6, kind: input, shape index: {}]   ;;  %s16490_s7 = inlined_call_operand.vmem [shape: f32[4,1,8,128], index: 7, kind: output, shape index: {}]  }
   0x1   :  { %v12_v0 = vstv %s16489_s6  ;;  %s12598_s28 = smov 0  }
   0x2   :  { %13 = vst [vmem:[#allocation2] sm:$0x1] %v12_v0 }
   0x3 LB: > { %s31_s6 = sadd.s32 1, %s12542_s27  ;;  %p9169_p0 = scmp.ge.s32.totalorder %s12546_s28, 1  ;;  %s12546_s28 = sphi %s12598_s28, %s19_s28   ;;  %s12542_s27 = sphi %s12596_s27, %s16781_s27   ;;  %s12538_s26 = sphi %s12594_s26, %s16780_s26  }
   0x4   : > { %p33_p1 = scmp.ge.s32.totalorder %s31_s6, 4  ;;  %p258_p2 = scmp.lt.s32.totalorder %s12546_s28, 5 }
   0x6   : > { %s16783_s6 = smov (%p33_p1, %s31_s6), 0  ;;  %p259_p3 = pnand %p9169_p0, %p258_p2 }
   0x8   : > { %262 = sbr.rel (%p259_p3) target bundleno = 2324 (0x914), region = 48 }
   0xf   : > { %p295_p4 = scmp.lt.s32.totalorder %s12538_s26, 3  ;;  %v12548_v1 = vmov 0   ;;  %v11594_v2 = vld [vmem:[%s16484_s1 + $0x4] ss:$36 sps:$4 sm:$0xff]   ;;  %v11597_v3 = vld [vmem:[%s16484_s1 + $0x14] ss:$36 sps:$4 sm:$0xff]  }
  0x10   : > { %5035 = vmatprep.subr.bf16.mxu1 %v12548_v1  ;;  %6139 = vmatprep.subr.bf16.mxu0 %v12548_v1  ;;  %vm5031_vm0 = vcmask 1040384   ;;  %vm12550_vm1 = vmmov 0   ;;  %vm4835_vm2 = vcmask 15360   ;;  %vm9001_vm3 = vcmask 31744   ;;  %p9083_p5 = scmp.ge.s32.totalorder %s12538_s26, 2 }
  0x11   : > { %s12621_s8 = scalar_select %p295_p4, %s12538_s26, 3  ;;  %11591 = vset.pattern.permute.xlu1 %v12548_v1  ;;  %11590 = vset.pattern.permute.xlu0 %v12548_v1  ;;  %vm9025_vm4 = vcmask 27648   ;;  %vm9062_vm5 = vcmask 24576  }
  0x12   : > { %5067 = vmatprep.mubr.bf16.mxu1 %v11594_v2  ;;  %6171 = vmatprep.mubr.bf16.mxu0 %v11597_v3 }
  0x13   : > { %s11558_s11 = smul.u32 1032, %s12621_s8  ;;  %s9171_s10 = sshll.u32 %s12621_s8, 3 }
  0x14   : > { %s309_s15 = scalar_lea.vmem %s16490_s7, %s9171_s10 }
  0x15   : > { %s12632_s14 = scalar_lea.vmem %s16483_s0, %s11558_s11 }
  0x16   : > { %v311_v4 = vld [vmem:[%s12632_s14] sm:$0xff]  ;;  %v312_v5 = vld [vmem:[%s12632_s14 + $0x8] sm:$0xff]  ;;  %v313_v9 = vld [vmem:[%s12632_s14 + $0x10] sm:$0xff] }
  0x17   : > { %v375_v6 = vld [vmem:[%s12632_s14 + $0x200] sm:$0xff]  ;;  %v440_v7 = vpack.c.bf16 %v312_v5, %v311_v4  ;;  %v376_v8 = vld [vmem:[%s12632_s14 + $0x208] sm:$0xff]  ;;  %v314_v10 = vld [vmem:[%s12632_s14 + $0x18] sm:$0xff] }
  0x18   : > { %v12640_v11 = vpack.c.bf16 %v376_v8, %v375_v6  ;;  %v377_v12 = vld [vmem:[%s12632_s14 + $0x210] sm:$0xff]  ;;  %v378_v13 = vld [vmem:[%s12632_s14 + $0x218] sm:$0xff]  ;;  %v441_v14 = vpack.c.bf16 %v314_v10, %v313_v9  ;;  %v315_v16 = vld [vmem:[%s12632_s14 + $0x20] sm:$0xff] }
  0x19   : > { %5036 = vmatpush1.bf16.msra.mxu1 %v440_v7  ;;  %v12646_v15 = vpack.c.bf16 %v378_v13, %v377_v12  ;;  %v316_v17 = vld [vmem:[%s12632_s14 + $0x28] sm:$0xff]  ;;  %v379_v18 = vld [vmem:[%s12632_s14 + $0x220] sm:$0xff]  ;;  %v317_v22 = vld [vmem:[%s12632_s14 + $0x30] sm:$0xff] }
  0x1a   : > { %6140 = vmatpush1.bf16.msra.mxu0 %v12640_v11  ;;  %5037 = vmatprep.subr.bf16.mxu1 %v12548_v1  ;;  %v380_v19 = vld [vmem:[%s12632_s14 + $0x228] sm:$0xff]  ;;  %v442_v20 = vpack.c.bf16 %v316_v17, %v315_v16  ;;  %v318_v23 = vld [vmem:[%s12632_s14 + $0x38] sm:$0xff]  ;;  %v381_v24 = vld [vmem:[%s12632_s14 + $0x230] sm:$0xff] }
  0x1b   : > { %6141 = vmatprep.subr.bf16.mxu0 %v12548_v1  ;;  %v12655_v21 = vpack.c.bf16 %v380_v19, %v379_v18  ;;  %v382_v25 = vld [vmem:[%s12632_s14 + $0x238] sm:$0xff]  ;;  %v443_v26 = vpack.c.bf16 %v318_v23, %v317_v22  ;;  %v319_v28 = vld [vmem:[%s12632_s14 + $0x40] sm:$0xff]  ;;  %v320_v29 = vld [vmem:[%s12632_s14 + $0x48] sm:$0xff] }
  0x1c   : > { %v12664_v27 = vpack.c.bf16 %v382_v25, %v381_v24  ;;  %v383_v30 = vld [vmem:[%s12632_s14 + $0x240] sm:$0xff]  ;;  %v384_v31 = vld [vmem:[%s12632_s14 + $0x248] sm:$0xff]  ;;  %v444_v32 = vpack.c.bf16 %v320_v29, %v319_v28  ;;  %v321_v34 = vld [vmem:[%s12632_s14 + $0x50] sm:$0xff] }
  0x1d   : > { %5038 = vmatpush1.bf16.msra.mxu1 %v441_v14  ;;  %v12673_v33 = vpack.c.bf16 %v384_v31, %v383_v30  ;;  %v322_v35 = vld [vmem:[%s12632_s14 + $0x58] sm:$0xff]  ;;  %v385_v36 = vld [vmem:[%s12632_s14 + $0x250] sm:$0xff]  ;;  %v323_v40 = vld [vmem:[%s12632_s14 + $0x60] sm:$0xff] }
  0x1e   : > { %6142 = vmatpush1.bf16.msra.mxu0 %v12646_v15  ;;  %5039 = vmatprep.subr.bf16.mxu1 %v12548_v1  ;;  %v386_v37 = vld [vmem:[%s12632_s14 + $0x258] sm:$0xff]  ;;  %v445_v38 = vpack.c.bf16 %v322_v35, %v321_v34  ;;  %v324_v41 = vld [vmem:[%s12632_s14 + $0x68] sm:$0xff]  ;;  %v387_v42 = vld [vmem:[%s12632_s14 + $0x260] sm:$0xff] }
  0x1f   : > { %6143 = vmatprep.subr.bf16.mxu0 %v12548_v1  ;;  %v12682_v39 = vpack.c.bf16 %v386_v37, %v385_v36  ;;  %v388_v43 = vld [vmem:[%s12632_s14 + $0x268] sm:$0xff]  ;;  %v446_v44 = vpack.c.bf16 %v324_v41, %v323_v40  ;;  %v325_v45 = vld [vmem:[%s12632_s14 + $0x70] sm:$0xff]  ;;  %v326_v47 = vld [vmem:[%s12632_s14 + $0x78] sm:$0xff] }
  0x20   : > { %v12692_v46 = vpack.c.bf16 %v388_v43, %v387_v42  ;;  %v389_v48 = vld [vmem:[%s12632_s14 + $0x270] sm:$0xff]  ;;  %v390_v49 = vld [vmem:[%s12632_s14 + $0x278] sm:$0xff]  ;;  %v447_v50 = vpack.c.bf16 %v326_v47, %v325_v45  ;;  %v327_v52 = vld [vmem:[%s12632_s14 + $0x80] sm:$0xff] }
  0x21   : > { %5040 = vmatpush1.bf16.msra.mxu1 %v442_v20  ;;  %v12700_v51 = vpack.c.bf16 %v390_v49, %v389_v48  ;;  %v328_v53 = vld [vmem:[%s12632_s14 + $0x88] sm:$0xff]  ;;  %v391_v54 = vld [vmem:[%s12632_s14 + $0x280] sm:$0xff]  ;;  %v329_v57 = vld [vmem:[%s12632_s14 + $0x90] sm:$0xff] }
  0x22   : > { %6144 = vmatpush1.bf16.msra.mxu0 %v12655_v21  ;;  %5041 = vmatprep.subr.bf16.mxu1 %v12548_v1  ;;  %v392_v55 = vld [vmem:[%s12632_s14 + $0x288] sm:$0xff]  ;;  %v448_v56 = vpack.c.bf16 %v328_v53, %v327_v52  ;;  %v330_v59 = vld [vmem:[%s12632_s14 + $0x98] sm:$0xff]  ;;  %v393_v60 = vld [vmem:[%s12632_s14 + $0x290] sm:$0xff] }
  0x23   : > { %6145 = vmatprep.subr.bf16.mxu0 %v12548_v1  ;;  %v12710_v58 = vpack.c.bf16 %v392_v55, %v391_v54  ;;  %v394_v61 = vld [vmem:[%s12632_s14 + $0x298] sm:$0xff]  ;;  %v449_v62 = vpack.c.bf16 %v330_v59, %v329_v57  ;;  %v331_v63 = vld [vmem:[%s12632_s14 + $0xa0] sm:$0xff]  ;;  %v332_v2 = vld [vmem:[%s12632_s14 + $0xa8] sm:$0xff] }
  0x24   : > { %v12719_v0 = vpack.c.bf16 %v394_v61, %v393_v60  ;;  %v395_v3 = vld [vmem:[%s12632_s14 + $0x2a0] sm:$0xff]  ;;  %v396_v4 = vld [vmem:[%s12632_s14 + $0x2a8] sm:$0xff]  ;;  %v450_v5 = vpack.c.bf16 %v332_v2, %v331_v63  ;;  %v333_v6 = vld [vmem:[%s12632_s14 + $0xb0] sm:$0xff] }
  0x25   : > { %5042 = vmatpush1.bf16.msra.mxu1 %v443_v26  ;;  %v334_v7 = vld [vmem:[%s12632_s14 + $0xb8] sm:$0xff]  ;;  %v12729_v8 = vpack.c.bf16 %v396_v4, %v395_v3  ;;  %v397_v9 = vld [vmem:[%s12632_s14 + $0x2b0] sm:$0xff]  ;;  %v335_v13 = vld [vmem:[%s12632_s14 + $0xc0] sm:$0xff] }
  0x26   : > { %6146 = vmatpush1.bf16.msra.mxu0 %v12664_v27  ;;  %5043 = vmatprep.subr.bf16.mxu1 %v12548_v1  ;;  %v398_v10 = vld [vmem:[%s12632_s14 + $0x2b8] sm:$0xff]  ;;  %v451_v12 = vpack.c.bf16 %v334_v7, %v333_v6  ;;  %v336_v16 = vld [vmem:[%s12632_s14 + $0xc8] sm:$0xff]  ;;  %v399_v17 = vld [vmem:[%s12632_s14 + $0x2c0] sm:$0xff] }
  0x27   : > { %6147 = vmatprep.subr.bf16.mxu0 %v12548_v1  ;;  %v12737_v14 = vpack.c.bf16 %v398_v10, %v397_v9  ;;  %v400_v18 = vld [vmem:[%s12632_s14 + $0x2c8] sm:$0xff]  ;;  %v452_v19 = vpack.c.bf16 %v336_v16, %v335_v13  ;;  %v337_v22 = vld [vmem:[%s12632_s14 + $0xd0] sm:$0xff]  ;;  %v338_v23 = vld [vmem:[%s12632_s14 + $0xd8] sm:$0xff] }
  0x28   : > { %v12745_v20 = vpack.c.bf16 %v400_v18, %v399_v17  ;;  %v401_v24 = vld [vmem:[%s12632_s14 + $0x2d0] sm:$0xff]  ;;  %v402_v25 = vld [vmem:[%s12632_s14 + $0x2d8] sm:$0xff]  ;;  %v453_v26 = vpack.c.bf16 %v338_v23, %v337_v22  ;;  %v339_v28 = vld [vmem:[%s12632_s14 + $0xe0] sm:$0xff] }
  0x29   : > { %5044 = vmatpush1.bf16.msra.mxu1 %v444_v32  ;;  %v12755_v29 = vpack.c.bf16 %v402_v25, %v401_v24  ;;  %v340_v30 = vld [vmem:[%s12632_s14 + $0xe8] sm:$0xff]  ;;  %v403_v31 = vld [vmem:[%s12632_s14 + $0x2e0] sm:$0xff]  ;;  %v341_v35 = vld [vmem:[%s12632_s14 + $0xf0] sm:$0xff] }
  0x2a   : > { %6148 = vmatpush1.bf16.msra.mxu0 %v12673_v33  ;;  %5045 = vmatprep.subr.bf16.mxu1 %v12548_v1  ;;  %v404_v32 = vld [vmem:[%s12632_s14 + $0x2e8] sm:$0xff]  ;;  %v454_v34 = vpack.c.bf16 %v340_v30, %v339_v28  ;;  %v342_v37 = vld [vmem:[%s12632_s14 + $0xf8] sm:$0xff]  ;;  %v11592_v43 = vld [vmem:[%s16484_s1] ss:$36 sps:$4 sm:$0xff]  }
  0x2b   : > { %6149 = vmatprep.subr.bf16.mxu0 %v12548_v1  ;;  %v12764_v36 = vpack.c.bf16 %v404_v32, %v403_v31  ;;  %v406_v40 = vld [vmem:[%s12632_s14 + $0x2f8] sm:$0xff]  ;;  %v455_v41 = vpack.c.bf16 %v342_v37, %v341_v35  ;;  %v11595_v45 = vld [vmem:[%s16484_s1 + $0x10] ss:$36 sps:$4 sm:$0xff]   ;;  %v408_v47 = vld [vmem:[%s12632_s14 + $0x308] sm:$0xff] }
  0x2c   : > { %v11598_v48 = vld [vmem:[%s16484_s1 + $0x4c] ss:$36 sps:$4 sm:$0xff]   ;;  %v11600_v49 = vld [vmem:[%s16484_s1 + $0x5c] ss:$36 sps:$4 sm:$0xff]   ;;  %v11604_v60 = vld [vmem:[%s16484_s1 + $0x94] ss:$36 sps:$4 sm:$0xff]  }
  0x2d   : > { %5046 = vmatpush1.bf16.msra.mxu1 %v445_v38  ;;  %v405_v38 = vld [vmem:[%s12632_s14 + $0x2f0] sm:$0xff]  ;;  %v410_v53 = vld [vmem:[%s12632_s14 + $0x318] sm:$0xff]  ;;  %v11602_v54 = vld [vmem:[%s16484_s1 + $0x48] ss:$36 sps:$4 sm:$0xff]  }
  0x2e   : > { %6150 = vmatpush1.bf16.msra.mxu0 %v12682_v39  ;;  %5047 = vmatprep.subr.bf16.mxu1 %v12548_v1  ;;  %v12772_v42 = vpack.c.bf16 %v406_v40, %v405_v38  ;;  %v412_v57 = vld [vmem:[%s12632_s14 + $0x328] sm:$0xff]  ;;  %v11603_v59 = vld [vmem:[%s16484_s1 + $0x58] ss:$36 sps:$4 sm:$0xff]   ;;  %v415_v3 = vld [vmem:[%s12632_s14 + $0x340] sm:$0xff] }
  0x2f   : > { %6151 = vmatprep.subr.bf16.mxu0 %v12548_v1  ;;  %v11606_v61 = vld [vmem:[%s16484_s1 + $0xa4] ss:$36 sps:$4 sm:$0xff]   ;;  %v414_v2 = vld [vmem:[%s12632_s14 + $0x338] sm:$0xff]  ;;  %v11608_v4 = vld [vmem:[%s16484_s1 + $0x90] ss:$36 sps:$4 sm:$0xff]  }
  0x30   : > { %v416_v6 = vld [vmem:[%s12632_s14 + $0x348] sm:$0xff]  ;;  %v11609_v7 = vld [vmem:[%s16484_s1 + $0xa0] ss:$36 sps:$4 sm:$0xff]   ;;  %v418_v16 = vld [vmem:[%s12632_s14 + $0x358] sm:$0xff] }
  0x31   : > { %5048 = vmatpush1.bf16.msra.mxu1 %v446_v44  ;;  %v407_v44 = vld [vmem:[%s12632_s14 + $0x300] sm:$0xff]  ;;  %v11612_v10 = vld [vmem:[%s16484_s1 + $0xec] ss:$36 sps:$4 sm:$0xff]   ;;  %v492_v13 = vpack.c.bf16 %v416_v6, %v415_v3  ;;  %v11614_v17 = vld [vmem:[%s16484_s1 + $0xd8] ss:$36 sps:$4 sm:$0xff]  }
  0x32   : > { %6152 = vmatpush1.bf16.msra.mxu0 %v12692_v46  ;;  %5049 = vmatprep.subr.bf16.mxu1 %v12548_v1  ;;  %v488_v52 = vpack.c.bf16 %v408_v47, %v407_v44  ;;  %v11610_v9 = vld [vmem:[%s16484_s1 + $0xdc] ss:$36 sps:$4 sm:$0xff]   ;;  %v11616_v22 = vld [vmem:[%s16484_s1 + $0x124] ss:$36 sps:$4 sm:$0xff]   ;;  %v11618_v23 = vld [vmem:[%s16484_s1 + $0x134] ss:$36 sps:$4 sm:$0xff]  }
  0x33   : > { %6153 = vmatprep.subr.bf16.mxu0 %v12548_v1  ;;  %v419_v24 = vld [vmem:[%s12632_s14 + $0x360] sm:$0xff]  ;;  %v420_v25 = vld [vmem:[%s12632_s14 + $0x368] sm:$0xff]  ;;  %v11621_v30 = vld [vmem:[%s16484_s1 + $0x130] ss:$36 sps:$4 sm:$0xff]  }
  0x34   : > { %v494_v28 = vpack.c.bf16 %v420_v25, %v419_v24  ;;  %v11622_v31 = vld [vmem:[%s16484_s1 + $0x16c] ss:$36 sps:$4 sm:$0xff]   ;;  %v11624_v32 = vld [vmem:[%s16484_s1 + $0x17c] ss:$36 sps:$4 sm:$0xff]   ;;  %v11628_v37 = vld [vmem:[%s16484_s1 + $0x1b4] ss:$36 sps:$4 sm:$0xff]  }
  0x35   : > { %5050 = vmatpush1.bf16.msra.mxu1 %v447_v50  ;;  %v409_v50 = vld [vmem:[%s12632_s14 + $0x310] sm:$0xff]  ;;  %v11627_v35 = vld [vmem:[%s16484_s1 + $0x178] ss:$36 sps:$4 sm:$0xff]   ;;  %v11630_v38 = vld [vmem:[%s16484_s1 + $0x1c4] ss:$36 sps:$4 sm:$0xff]  }
  0x36   : > { %6154 = vmatpush1.bf16.msra.mxu0 %v12700_v51  ;;  %5051 = vmatprep.subr.bf16.mxu1 %v12548_v1  ;;  %v489_v55 = vpack.c.bf16 %v410_v53, %v409_v50  ;;  %v11632_v40 = vld [vmem:[%s16484_s1 + $0x1b0] ss:$36 sps:$4 sm:$0xff]   ;;  %v422_v47 = vld [vmem:[%s12632_s14 + $0x378] sm:$0xff]  ;;  %v11639_v50 = vld [vmem:[%s16484_s1 + $0x208] ss:$36 sps:$4 sm:$0xff]  }
  0x37   : > { %6155 = vmatprep.subr.bf16.mxu0 %v12548_v1  ;;  %v11636_v44 = vld [vmem:[%s16484_s1 + $0x20c] ss:$36 sps:$4 sm:$0xff]   ;;  %v11642_v53 = vld [vmem:[%s16484_s1 + $0x254] ss:$36 sps:$4 sm:$0xff]   ;;  %v11658_v6 = vld [vmem:[%s16484_s1 + $0x31c] ss:$36 sps:$4 sm:$0xff]  }
  0x38   : > { %v11656_v3 = vld [vmem:[%s16484_s1 + $0x2d0] ss:$36 sps:$4 sm:$0xff]   ;;  %v11674_v24 = vld [vmem:[%s16484_s1 + $0x3a8] ss:$36 sps:$4 sm:$0xff]  }
  0x39   : > { %5052 = vmatpush1.bf16.msra.mxu1 %v448_v56  ;;  %v411_v56 = vld [vmem:[%s12632_s14 + $0x320] sm:$0xff] }
  0x3a   : > { %6156 = vmatpush1.bf16.msra.mxu0 %v12710_v58  ;;  %5053 = vmatprep.subr.bf16.mxu1 %v12548_v1  ;;  %v490_v63 = vpack.c.bf16 %v412_v57, %v411_v56  ;;  %v11646_v56 = vld [vmem:[%s16484_s1 + $0x28c] ss:$36 sps:$4 sm:$0xff]   ;;  %v11648_v57 = vld [vmem:[%s16484_s1 + $0x29c] ss:$36 sps:$4 sm:$0xff]  }
  0x3b   : > { %6157 = vmatprep.subr.bf16.mxu0 %v12548_v1 }
  0x3d   : > { %5054 = vmatpush1.bf16.msra.mxu1 %v449_v62  ;;  %v413_v62 = vld [vmem:[%s12632_s14 + $0x330] sm:$0xff] }
  0x3e   : > { %6158 = vmatpush1.bf16.msra.mxu0 %v12719_v0  ;;  %5055 = vmatprep.subr.bf16.mxu1 %v12548_v1 }
  0x3f   : > { %6159 = vmatprep.subr.bf16.mxu0 %v12548_v1 }
  0x41   : > { %5056 = vmatpush1.bf16.msra.mxu1 %v450_v5  ;;  %v491_v5 = vpack.c.bf16 %v414_v2, %v413_v62  ;;  %v11654_v62 = vld [vmem:[%s16484_s1 + $0x2e4] ss:$36 sps:$4 sm:$0xff]  }
  0x42   : > { %6160 = vmatpush1.bf16.msra.mxu0 %v12729_v8  ;;  %5057 = vmatprep.subr.bf16.mxu1 %v12548_v1  ;;  %v424_v2 = vld [vmem:[%s12632_s14 + $0x388] sm:$0xff] }
  0x43   : > { %6161 = vmatprep.subr.bf16.mxu0 %v12548_v1 }
  0x45   : > { %5058 = vmatpush1.bf16.msra.mxu1 %v451_v12  ;;  %v417_v12 = vld [vmem:[%s12632_s14 + $0x350] sm:$0xff] }
  0x46   : > { %6162 = vmatpush1.bf16.msra.mxu0 %v12737_v14  ;;  %5059 = vmatprep.subr.bf16.mxu1 %v12548_v1  ;;  %v493_v18 = vpack.c.bf16 %v418_v16, %v417_v12  ;;  %v11664_v12 = vld [vmem:[%s16484_s1 + $0x364] ss:$36 sps:$4 sm:$0xff]  }
  0x47   : > { %6163 = vmatprep.subr.bf16.mxu0 %v12548_v1  ;;  %v11668_v16 = vld [vmem:[%s16484_s1 + $0x360] ss:$36 sps:$4 sm:$0xff]  }
  0x49   : > { %5060 = vmatpush1.bf16.msra.mxu1 %v452_v19  ;;  %v11615_v19 = vld [vmem:[%s16484_s1 + $0xe8] ss:$36 sps:$4 sm:$0xff]  }
  0x4a   : > { %6164 = vmatpush1.bf16.msra.mxu0 %v12745_v20  ;;  %5061 = vmatprep.subr.bf16.mxu1 %v12548_v1 }
  0x4b   : > { %6165 = vmatprep.subr.bf16.mxu0 %v12548_v1 }
  0x4d   : > { %5062 = vmatpush1.bf16.msra.mxu1 %v453_v26  ;;  %v11620_v26 = vld [vmem:[%s16484_s1 + $0x120] ss:$36 sps:$4 sm:$0xff]  }
  0x4e   : > { %6166 = vmatpush1.bf16.msra.mxu0 %v12755_v29  ;;  %5063 = vmatprep.subr.bf16.mxu1 %v12548_v1 }
  0x4f   : > { %6167 = vmatprep.subr.bf16.mxu0 %v12548_v1 }
  0x51   : > { %5064 = vmatpush1.bf16.msra.mxu1 %v454_v34  ;;  %v11626_v34 = vld [vmem:[%s16484_s1 + $0x168] ss:$36 sps:$4 sm:$0xff]  }
  0x52   : > { %6168 = vmatpush1.bf16.msra.mxu0 %v12764_v36  ;;  %5065 = vmatprep.subr.bf16.mxu1 %v12548_v1 }
  0x53   : > { %6169 = vmatprep.subr.bf16.mxu0 %v12548_v1 }
  0x55   : > { %5066 = vmatpush1.bf16.msra.mxu1 %v455_v41  ;;  %v11633_v41 = vld [vmem:[%s16484_s1 + $0x1c0] ss:$36 sps:$4 sm:$0xff]  }
  0x56   : > { %6170 = vmatpush1.bf16.msra.mxu0 %v12772_v42  ;;  %5587 = vmatprep.subr.bf16.mxu1 %v12548_v1 }
  0x57   : > { %6691 = vmatprep.subr.bf16.mxu0 %v12548_v1 }
  0x58   : > { %5068 = vmatmul.mubr.bf16.vlgmr.msra.gmra.mrb[0].mxu1 %v11592_v43  ;;  %v11634_v43 = vld [vmem:[%s16484_s1 + $0x1fc] ss:$36 sps:$4 sm:$0xff]  }
  0x59   : > { %6172 = vmatmul.mubr.bf16.vlgmr.msra.gmra.mrb[0].mxu0 %v11595_v45  ;;  %5075 = vmatprep.mubr.bf16.mxu1 %v11598_v48  ;;  %v421_v45 = vld [vmem:[%s12632_s14 + $0x370] sm:$0xff]  ;;  %v11638_v48 = vld [vmem:[%s16484_s1 + $0x1f8] ss:$36 sps:$4 sm:$0xff]  }
  0x5a   : > { %6692 = vmatpush1.bf16.msra.mxu0 %v488_v52  ;;  %6179 = vmatprep.mubr.bf16.mxu0 %v11600_v49  ;;  %v495_v49 = vpack.c.bf16 %v422_v47, %v421_v45  ;;  %v11640_v52 = vld [vmem:[%s16484_s1 + $0x244] ss:$36 sps:$4 sm:$0xff]  }
  0x5b   : > { %6693 = vmatprep.subr.bf16.mxu0 %v12548_v1  ;;  %v11692_v45 = vld [vmem:[%s16484_s1 + $0x480] ss:$36 sps:$4 sm:$0xff]  }
  0x5e   : > { %6694 = vmatpush1.bf16.msra.mxu0 %v489_v55  ;;  %v11645_v55 = vld [vmem:[%s16484_s1 + $0x250] ss:$36 sps:$4 sm:$0xff]  }
  0x5f   : > { %6695 = vmatprep.subr.bf16.mxu0 %v12548_v1 }
  0x60   : > { %5076 = vmatmul.mubr.bf16.gmra.mrb[4].mxu1 %v11602_v54  ;;  %v11644_v54 = vld [vmem:[%s16484_s1 + $0x240] ss:$36 sps:$4 sm:$0xff]  }
  0x61   : > { %6180 = vmatmul.mubr.bf16.gmra.mrb[4].mxu0 %v11603_v59  ;;  %5083 = vmatprep.mubr.bf16.mxu1 %v11604_v60  ;;  %v11650_v59 = vld [vmem:[%s16484_s1 + $0x288] ss:$36 sps:$4 sm:$0xff]   ;;  %v11651_v60 = vld [vmem:[%s16484_s1 + $0x298] ss:$36 sps:$4 sm:$0xff]  }
  0x62   : > { %6187 = vmatprep.mubr.bf16.mxu0 %v11606_v61  ;;  %6696 = vmatpush1.bf16.msra.mxu0 %v490_v63  ;;  %v11652_v61 = vld [vmem:[%s16484_s1 + $0x2d4] ss:$36 sps:$4 sm:$0xff]   ;;  %v423_v63 = vld [vmem:[%s12632_s14 + $0x380] sm:$0xff] }
  0x63   : > { %6697 = vmatprep.subr.bf16.mxu0 %v12548_v1 }
  0x66   : > { %6698 = vmatpush1.bf16.msra.mxu0 %v491_v5  ;;  %v11657_v5 = vld [vmem:[%s16484_s1 + $0x2e0] ss:$36 sps:$4 sm:$0xff]  }
  0x67   : > { %6699 = vmatprep.subr.bf16.mxu0 %v12548_v1 }
  0x68   : > { %5084 = vmatmul.mubr.bf16.gmra.mrb[8].mxu1 %v11608_v4  ;;  %v496_v4 = vpack.c.bf16 %v424_v2, %v423_v63  ;;  %v430_v63 = vld [vmem:[%s12632_s14 + $0x3b8] sm:$0xff]  ;;  %v11711_v2 = vld [vmem:[%s16484_s1 + $0x568] ss:$36 sps:$4 sm:$0xff]  }
  0x69   : > { %6188 = vmatmul.mubr.bf16.gmra.mrb[8].mxu0 %v11609_v7  ;;  %5091 = vmatprep.mubr.bf16.mxu1 %v11610_v9  ;;  %v11660_v7 = vld [vmem:[%s16484_s1 + $0x32c] ss:$36 sps:$4 sm:$0xff]   ;;  %v11662_v9 = vld [vmem:[%s16484_s1 + $0x318] ss:$36 sps:$4 sm:$0xff]  }
  0x6a   : > { %6195 = vmatprep.mubr.bf16.mxu0 %v11612_v10  ;;  %6700 = vmatpush1.bf16.msra.mxu0 %v492_v13  ;;  %v11663_v10 = vld [vmem:[%s16484_s1 + $0x328] ss:$36 sps:$4 sm:$0xff]   ;;  %v11666_v13 = vld [vmem:[%s16484_s1 + $0x374] ss:$36 sps:$4 sm:$0xff]  }
  0x6b   : > { %6701 = vmatprep.subr.bf16.mxu0 %v12548_v1 }
  0x6e   : > { %6702 = vmatpush1.bf16.msra.mxu0 %v493_v18  ;;  %v11670_v18 = vld [vmem:[%s16484_s1 + $0x3ac] ss:$36 sps:$4 sm:$0xff]  }
  0x6f   : > { %6703 = vmatprep.subr.bf16.mxu0 %v12548_v1 }
  0x70   : > { %5092 = vmatmul.mubr.bf16.gmra.mrb[12].mxu1 %v11614_v17  ;;  %v11669_v17 = vld [vmem:[%s16484_s1 + $0x370] ss:$36 sps:$4 sm:$0xff]  }
  0x71   : > { %6196 = vmatmul.mubr.bf16.gmra.mrb[12].mxu0 %v11615_v19  ;;  %5099 = vmatprep.mubr.bf16.mxu1 %v11616_v22  ;;  %v11672_v19 = vld [vmem:[%s16484_s1 + $0x3bc] ss:$36 sps:$4 sm:$0xff]   ;;  %v425_v22 = vld [vmem:[%s12632_s14 + $0x390] sm:$0xff] }
  0x72   : > { %6203 = vmatprep.mubr.bf16.mxu0 %v11618_v23  ;;  %6704 = vmatpush1.bf16.msra.mxu0 %v494_v28  ;;  %v426_v23 = vld [vmem:[%s12632_s14 + $0x398] sm:$0xff] }
  0x73   : > { %6705 = vmatprep.subr.bf16.mxu0 %v12548_v1  ;;  %v497_v25 = vpack.c.bf16 %v426_v23, %v425_v22  ;;  %v11676_v28 = vld [vmem:[%s16484_s1 + $0x3f4] ss:$36 sps:$4 sm:$0xff]   ;;  %v11726_v22 = vld [vmem:[%s16484_s1 + $0x644] ss:$36 sps:$4 sm:$0xff]  }
  0x74   : > { %v11728_v23 = vld [vmem:[%s16484_s1 + $0x630] ss:$36 sps:$4 sm:$0xff]  }
  0x76   : > { %6706 = vmatpush1.bf16.msra.mxu0 %v495_v49  ;;  %v11694_v49 = vld [vmem:[%s16484_s1 + $0x4cc] ss:$36 sps:$4 sm:$0xff]  }
  0x77   : > { %6707 = vmatprep.subr.bf16.mxu0 %v12548_v1 }
  0x78   : > { %5100 = vmatmul.mubr.bf16.gmra.mrb[16].mxu1 %v11620_v26  ;;  %v11675_v26 = vld [vmem:[%s16484_s1 + $0x3b8] ss:$36 sps:$4 sm:$0xff]  }
  0x79   : > { %6204 = vmatmul.mubr.bf16.gmra.mrb[16].mxu0 %v11621_v30  ;;  %5107 = vmatprep.mubr.bf16.mxu1 %v11622_v31  ;;  %v11678_v30 = vld [vmem:[%s16484_s1 + $0x404] ss:$36 sps:$4 sm:$0xff]   ;;  %v11680_v31 = vld [vmem:[%s16484_s1 + $0x3f0] ss:$36 sps:$4 sm:$0xff]  }
  0x7a   : > { %6211 = vmatprep.mubr.bf16.mxu0 %v11624_v32  ;;  %6708 = vmatpush1.bf16.msra.mxu0 %v496_v4  ;;  %v11681_v32 = vld [vmem:[%s16484_s1 + $0x400] ss:$36 sps:$4 sm:$0xff]  }
  0x7b   : > { %6709 = vmatprep.subr.bf16.mxu0 %v12548_v1 }
  0x7e   : > { %6710 = vmatpush1.bf16.msra.mxu0 %v497_v25  ;;  %v11730_v25 = vld [vmem:[%s16484_s1 + $0x67c] ss:$36 sps:$4 sm:$0xff]  }
  0x7f   : > { %6711 = vmatprep.subr.bf16.mxu0 %v12548_v1 }
  0x80   : > { %5108 = vmatmul.mubr.bf16.gmra.mrb[20].mxu1 %v11626_v34  ;;  %v11682_v34 = vld [vmem:[%s16484_s1 + $0x43c] ss:$36 sps:$4 sm:$0xff]  }
  0x81   : > { %6212 = vmatmul.mubr.bf16.gmra.mrb[20].mxu0 %v11627_v35  ;;  %5115 = vmatprep.mubr.bf16.mxu1 %v11628_v37  ;;  %v11684_v35 = vld [vmem:[%s16484_s1 + $0x44c] ss:$36 sps:$4 sm:$0xff]   ;;  %v11686_v37 = vld [vmem:[%s16484_s1 + $0x438] ss:$36 sps:$4 sm:$0xff]  }
  0x82   : > { %6219 = vmatprep.mubr.bf16.mxu0 %v11630_v38  ;;  %v11687_v38 = vld [vmem:[%s16484_s1 + $0x448] ss:$36 sps:$4 sm:$0xff]  }
  0x88   : > { %5116 = vmatmul.mubr.bf16.gmra.mrb[24].mxu1 %v11632_v40  ;;  %v11688_v40 = vld [vmem:[%s16484_s1 + $0x484] ss:$36 sps:$4 sm:$0xff]  }
  0x89   : > { %6220 = vmatmul.mubr.bf16.gmra.mrb[24].mxu0 %v11633_v41  ;;  %5123 = vmatprep.mubr.bf16.mxu1 %v11634_v43  ;;  %v11690_v41 = vld [vmem:[%s16484_s1 + $0x494] ss:$36 sps:$4 sm:$0xff]   ;;  %v427_v43 = vld [vmem:[%s12632_s14 + $0x3a0] sm:$0xff] }
  0x8a   : > { %6227 = vmatprep.mubr.bf16.mxu0 %v11636_v44  ;;  %v428_v44 = vld [vmem:[%s12632_s14 + $0x3a8] sm:$0xff] }
  0x8b   : > { %v498_v47 = vpack.c.bf16 %v428_v44, %v427_v43  ;;  %v11741_v44 = vld [vmem:[%s16484_s1 + $0x6d0] ss:$36 sps:$4 sm:$0xff]  }
  0x8d   : > { %6712 = vmatpush1.bf16.msra.mxu0 %v498_v47  ;;  %v11744_v47 = vld [vmem:[%s16484_s1 + $0x71c] ss:$36 sps:$4 sm:$0xff]  }
  0x8e   : > { %6713 = vmatprep.subr.bf16.mxu0 %v12548_v1 }
  0x90   : > { %5124 = vmatmul.mubr.bf16.gmra.mrb[28].mxu1 %v11638_v48  ;;  %v11693_v48 = vld [vmem:[%s16484_s1 + $0x490] ss:$36 sps:$4 sm:$0xff]  }
  0x91   : > { %6228 = vmatmul.mubr.bf16.gmra.mrb[28].mxu0 %v11639_v50  ;;  %5131 = vmatprep.mubr.bf16.mxu1 %v11640_v52  ;;  %v11696_v50 = vld [vmem:[%s16484_s1 + $0x4dc] ss:$36 sps:$4 sm:$0xff]   ;;  %v11698_v52 = vld [vmem:[%s16484_s1 + $0x4c8] ss:$36 sps:$4 sm:$0xff]  }
  0x92   : > { %6235 = vmatprep.mubr.bf16.mxu0 %v11642_v53  ;;  %v11699_v53 = vld [vmem:[%s16484_s1 + $0x4d8] ss:$36 sps:$4 sm:$0xff]  }
  0x98   : > { %5132 = vmatmul.mubr.bf16.gmra.mrb[32].mxu1 %v11644_v54  ;;  %v11700_v54 = vld [vmem:[%s16484_s1 + $0x514] ss:$36 sps:$4 sm:$0xff]  }
  0x99   : > { %6236 = vmatmul.mubr.bf16.gmra.mrb[32].mxu0 %v11645_v55  ;;  %5139 = vmatprep.mubr.bf16.mxu1 %v11646_v56  ;;  %v11702_v55 = vld [vmem:[%s16484_s1 + $0x524] ss:$36 sps:$4 sm:$0xff]   ;;  %v11704_v56 = vld [vmem:[%s16484_s1 + $0x510] ss:$36 sps:$4 sm:$0xff]  }
  0x9a   : > { %6243 = vmatprep.mubr.bf16.mxu0 %v11648_v57  ;;  %v11705_v57 = vld [vmem:[%s16484_s1 + $0x520] ss:$36 sps:$4 sm:$0xff]  }
  0xa0   : > { %5140 = vmatmul.mubr.bf16.gmra.mrb[36].mxu1 %v11650_v59  ;;  %v11706_v59 = vld [vmem:[%s16484_s1 + $0x55c] ss:$36 sps:$4 sm:$0xff]  }
  0xa1   : > { %6244 = vmatmul.mubr.bf16.gmra.mrb[36].mxu0 %v11651_v60  ;;  %5147 = vmatprep.mubr.bf16.mxu1 %v11652_v61  ;;  %v11708_v60 = vld [vmem:[%s16484_s1 + $0x56c] ss:$36 sps:$4 sm:$0xff]   ;;  %v11710_v61 = vld [vmem:[%s16484_s1 + $0x558] ss:$36 sps:$4 sm:$0xff]  }
  0xa2   : > { %6251 = vmatprep.mubr.bf16.mxu0 %v11654_v62  ;;  %v429_v62 = vld [vmem:[%s12632_s14 + $0x3b0] sm:$0xff] }
  0xa3   : > { %v499_v4 = vpack.c.bf16 %v430_v63, %v429_v62  ;;  %v11759_v62 = vld [vmem:[%s16484_s1 + $0x7a8] ss:$36 sps:$4 sm:$0xff]  }
  0xa4   : > { %v11760_v63 = vld [vmem:[%s16484_s1 + $0x7e4] ss:$36 sps:$4 sm:$0xff]  }
  0xa5   : > { %6714 = vmatpush1.bf16.msra.mxu0 %v499_v4  ;;  %v348_v4 = vld [vmem:[%s12632_s14 + $0x128] sm:$0xff] }
  0xa6   : > { %6715 = vmatprep.subr.bf16.mxu0 %v12548_v1 }
  0xa8   : > { %5148 = vmatmul.mubr.bf16.gmra.mrb[40].mxu1 %v11656_v3  ;;  %v11712_v3 = vld [vmem:[%s16484_s1 + $0x5a4] ss:$36 sps:$4 sm:$0xff]  }
  0xa9   : > { %6252 = vmatmul.mubr.bf16.gmra.mrb[40].mxu0 %v11657_v5  ;;  %5155 = vmatprep.mubr.bf16.mxu1 %v11658_v6  ;;  %v11714_v5 = vld [vmem:[%s16484_s1 + $0x5b4] ss:$36 sps:$4 sm:$0xff]   ;;  %v343_v6 = vld [vmem:[%s12632_s14 + $0x100] sm:$0xff] }
  0xaa   : > { %6259 = vmatprep.mubr.bf16.mxu0 %v11660_v7  ;;  %v344_v7 = vld [vmem:[%s12632_s14 + $0x108] sm:$0xff] }
  0xb0   : > { %5156 = vmatmul.mubr.bf16.gmra.mrb[44].mxu1 %v11662_v9  ;;  %v11716_v9 = vld [vmem:[%s16484_s1 + $0x5a0] ss:$36 sps:$4 sm:$0xff]  }
  0xb1   : > { %6260 = vmatmul.mubr.bf16.gmra.mrb[44].mxu0 %v11663_v10  ;;  %5163 = vmatprep.mubr.bf16.mxu1 %v11664_v12  ;;  %v456_v10 = vpack.c.bf16 %v344_v7, %v343_v6  ;;  %v11717_v12 = vld [vmem:[%s16484_s1 + $0x5b0] ss:$36 sps:$4 sm:$0xff]  }
  0xb2   : > { %6267 = vmatprep.mubr.bf16.mxu0 %v11666_v13  ;;  %v11718_v13 = vld [vmem:[%s16484_s1 + $0x5ec] ss:$36 sps:$4 sm:$0xff]  }
  0xb3   : > { %5588 = vmatpush1.bf16.msra.mxu1 %v456_v10  ;;  %v11765_v7 = vld [vmem:[%s16484_s1 + $0x7f0] ss:$36 sps:$4 sm:$0xff]   ;;  %v11768_v10 = vld [vmem:[%s16484_s1 + $0x83c] ss:$36 sps:$4 sm:$0xff]  }
  0xb4   : > { %5589 = vmatprep.subr.bf16.mxu1 %v12548_v1 }
  0xb8   : > { %5164 = vmatmul.mubr.bf16.gmra.mrb[48].mxu1 %v11668_v16  ;;  %v11720_v16 = vld [vmem:[%s16484_s1 + $0x5fc] ss:$36 sps:$4 sm:$0xff]  }
  0xb9   : > { %6268 = vmatmul.mubr.bf16.gmra.mrb[48].mxu0 %v11669_v17  ;;  %5171 = vmatprep.mubr.bf16.mxu1 %v11670_v18  ;;  %v11722_v17 = vld [vmem:[%s16484_s1 + $0x5e8] ss:$36 sps:$4 sm:$0xff]   ;;  %v11723_v18 = vld [vmem:[%s16484_s1 + $0x5f8] ss:$36 sps:$4 sm:$0xff]  }
  0xba   : > { %6275 = vmatprep.mubr.bf16.mxu0 %v11672_v19  ;;  %v11724_v19 = vld [vmem:[%s16484_s1 + $0x634] ss:$36 sps:$4 sm:$0xff]  }
  0xc0   : > { %5172 = vmatmul.mubr.bf16.gmra.mrb[52].mxu1 %v11674_v24  ;;  %v11729_v24 = vld [vmem:[%s16484_s1 + $0x640] ss:$36 sps:$4 sm:$0xff]  }
  0xc1   : > { %6276 = vmatmul.mubr.bf16.gmra.mrb[52].mxu0 %v11675_v26  ;;  %5179 = vmatprep.mubr.bf16.mxu1 %v11676_v28  ;;  %v11732_v26 = vld [vmem:[%s16484_s1 + $0x68c] ss:$36 sps:$4 sm:$0xff]   ;;  %v431_v28 = vld [vmem:[%s12632_s14 + $0x3c0] sm:$0xff] }
  0xc2   : > { %6283 = vmatprep.mubr.bf16.mxu0 %v11678_v30  ;;  %v432_v30 = vld [vmem:[%s12632_s14 + $0x3c8] sm:$0xff] }
  0xc8   : > { %5180 = vmatmul.mubr.bf16.gmra.mrb[56].mxu1 %v11680_v31  ;;  %v11734_v31 = vld [vmem:[%s16484_s1 + $0x678] ss:$36 sps:$4 sm:$0xff]  }
  0xc9   : > { %6284 = vmatmul.mubr.bf16.gmra.mrb[56].mxu0 %v11681_v32  ;;  %5187 = vmatprep.mubr.bf16.mxu1 %v11682_v34  ;;  %v500_v32 = vpack.c.bf16 %v432_v30, %v431_v28  ;;  %v11735_v34 = vld [vmem:[%s16484_s1 + $0x688] ss:$36 sps:$4 sm:$0xff]   ;;  %v11782_v28 = vld [vmem:[%s16484_s1 + $0x8b8] ss:$36 sps:$4 sm:$0xff]  }
  0xca   : > { %6291 = vmatprep.mubr.bf16.mxu0 %v11684_v35  ;;  %v11736_v35 = vld [vmem:[%s16484_s1 + $0x6c4] ss:$36 sps:$4 sm:$0xff]  }
  0xcb   : > { %6716 = vmatpush1.bf16.msra.mxu0 %v500_v32  ;;  %v11783_v30 = vld [vmem:[%s16484_s1 + $0x8c8] ss:$36 sps:$4 sm:$0xff]   ;;  %v11786_v32 = vld [vmem:[%s16484_s1 + $0x914] ss:$36 sps:$4 sm:$0xff]  }
  0xcc   : > { %6717 = vmatprep.subr.bf16.mxu0 %v12548_v1 }
  0xd0   : > { %5188 = vmatmul.mubr.bf16.gmra.mrb[60].mxu1 %v11686_v37  ;;  %v11738_v37 = vld [vmem:[%s16484_s1 + $0x6d4] ss:$36 sps:$4 sm:$0xff]  }
  0xd1   : > { %6292 = vmatmul.mubr.bf16.gmra.mrb[60].mxu0 %v11687_v38  ;;  %5195 = vmatprep.mubr.bf16.mxu1 %v11688_v40  ;;  %v345_v38 = vld [vmem:[%s12632_s14 + $0x110] sm:$0xff]  ;;  %v346_v40 = vld [vmem:[%s12632_s14 + $0x118] sm:$0xff] }
  0xd2   : > { %6299 = vmatprep.mubr.bf16.mxu0 %v11690_v41  ;;  %v11740_v41 = vld [vmem:[%s16484_s1 + $0x6c0] ss:$36 sps:$4 sm:$0xff]   ;;  %v457_v43 = vpack.c.bf16 %v346_v40, %v345_v38 }
  0xd3   : > { %v11788_v38 = vld [vmem:[%s16484_s1 + $0x900] ss:$36 sps:$4 sm:$0xff]  }
  0xd4   : > { %5590 = vmatpush1.bf16.msra.mxu1 %v457_v43  ;;  %v11789_v43 = vld [vmem:[%s16484_s1 + $0x910] ss:$36 sps:$4 sm:$0xff]  }
  0xd5   : > { %5591 = vmatprep.subr.bf16.mxu1 %v12548_v1 }
  0xd8   : > { %5196 = vmatmul.mubr.bf16.gmra.mrb[64].mxu1 %v11692_v45  ;;  %v11742_v45 = vld [vmem:[%s16484_s1 + $0x70c] ss:$36 sps:$4 sm:$0xff]  }
  0xd9   : > { %6300 = vmatmul.mubr.bf16.gmra.mrb[64].mxu0 %v11693_v48  ;;  %5203 = vmatprep.mubr.bf16.mxu1 %v11694_v49  ;;  %v11746_v48 = vld [vmem:[%s16484_s1 + $0x708] ss:$36 sps:$4 sm:$0xff]   ;;  %v11747_v49 = vld [vmem:[%s16484_s1 + $0x718] ss:$36 sps:$4 sm:$0xff]  }
  0xda   : > { %6307 = vmatprep.mubr.bf16.mxu0 %v11696_v50  ;;  %v11748_v50 = vld [vmem:[%s16484_s1 + $0x754] ss:$36 sps:$4 sm:$0xff]  }
  0xe0   : > { %5204 = vmatmul.mubr.bf16.gmra.mrb[68].mxu1 %v11698_v52  ;;  %v11750_v52 = vld [vmem:[%s16484_s1 + $0x764] ss:$36 sps:$4 sm:$0xff]  }
  0xe1   : > { %6308 = vmatmul.mubr.bf16.gmra.mrb[68].mxu0 %v11699_v53  ;;  %5211 = vmatprep.mubr.bf16.mxu1 %v11700_v54  ;;  %v433_v53 = vld [vmem:[%s12632_s14 + $0x3d0] sm:$0xff]  ;;  %v434_v54 = vld [vmem:[%s12632_s14 + $0x3d8] sm:$0xff] }
  0xe2   : > { %6315 = vmatprep.mubr.bf16.mxu0 %v11702_v55  ;;  %v11752_v55 = vld [vmem:[%s16484_s1 + $0x750] ss:$36 sps:$4 sm:$0xff]  }
  0xe8   : > { %5212 = vmatmul.mubr.bf16.gmra.mrb[72].mxu1 %v11704_v56  ;;  %v501_v56 = vpack.c.bf16 %v434_v54, %v433_v53  ;;  %v11800_v53 = vld [vmem:[%s16484_s1 + $0x990] ss:$36 sps:$4 sm:$0xff]   ;;  %v11801_v54 = vld [vmem:[%s16484_s1 + $0x9a0] ss:$36 sps:$4 sm:$0xff]  }
  0xe9   : > { %6316 = vmatmul.mubr.bf16.gmra.mrb[72].mxu0 %v11705_v57  ;;  %5219 = vmatprep.mubr.bf16.mxu1 %v11706_v59  ;;  %v11753_v57 = vld [vmem:[%s16484_s1 + $0x760] ss:$36 sps:$4 sm:$0xff]  }
  0xea   : > { %6323 = vmatprep.mubr.bf16.mxu0 %v11708_v60  ;;  %v11754_v59 = vld [vmem:[%s16484_s1 + $0x79c] ss:$36 sps:$4 sm:$0xff]   ;;  %v11756_v60 = vld [vmem:[%s16484_s1 + $0x7ac] ss:$36 sps:$4 sm:$0xff]   ;;  %6718 = vmatpush1.bf16.msra.mxu0 %v501_v56 }
  0xeb   : > { %6719 = vmatprep.subr.bf16.mxu0 %v12548_v1  ;;  %v11804_v56 = vld [vmem:[%s16484_s1 + $0x9ec] ss:$36 sps:$4 sm:$0xff]  }
  0xf0   : > { %5220 = vmatmul.mubr.bf16.gmra.mrb[76].mxu1 %v11710_v61  ;;  %v11758_v61 = vld [vmem:[%s16484_s1 + $0x798] ss:$36 sps:$4 sm:$0xff]  }
  0xf1   : > { %6324 = vmatmul.mubr.bf16.gmra.mrb[76].mxu0 %v11711_v2  ;;  %5227 = vmatprep.mubr.bf16.mxu1 %v11712_v3  ;;  %v11762_v2 = vld [vmem:[%s16484_s1 + $0x7f4] ss:$36 sps:$4 sm:$0xff]   ;;  %v347_v3 = vld [vmem:[%s12632_s14 + $0x120] sm:$0xff] }
  0xf2   : > { %6331 = vmatprep.mubr.bf16.mxu0 %v11714_v5  ;;  %v11764_v5 = vld [vmem:[%s16484_s1 + $0x7e0] ss:$36 sps:$4 sm:$0xff]   ;;  %v458_v6 = vpack.c.bf16 %v348_v4, %v347_v3 }
  0xf3   : > { %v11812_v4 = vld [vmem:[%s16484_s1 + $0xa20] ss:$36 sps:$4 sm:$0xff]  }
  0xf4   : > { %5592 = vmatpush1.bf16.msra.mxu1 %v458_v6  ;;  %v11814_v6 = vld [vmem:[%s16484_s1 + $0xa6c] ss:$36 sps:$4 sm:$0xff]  }
  0xf5   : > { %5593 = vmatprep.subr.bf16.mxu1 %v12548_v1 }
  0xf8   : > { %5228 = vmatmul.mubr.bf16.gmra.mrb[80].mxu1 %v11716_v9  ;;  %v11766_v9 = vld [vmem:[%s16484_s1 + $0x82c] ss:$36 sps:$4 sm:$0xff]  }
  0xf9   : > { %6332 = vmatmul.mubr.bf16.gmra.mrb[80].mxu0 %v11717_v12  ;;  %5235 = vmatprep.mubr.bf16.mxu1 %v11718_v13  ;;  %v435_v12 = vld [vmem:[%s12632_s14 + $0x3e0] sm:$0xff]  ;;  %v436_v13 = vld [vmem:[%s12632_s14 + $0x3e8] sm:$0xff] }
  0xfa   : > { %6339 = vmatprep.mubr.bf16.mxu0 %v11720_v16  ;;  %v11770_v16 = vld [vmem:[%s16484_s1 + $0x828] ss:$36 sps:$4 sm:$0xff]  }
 0x100   : > { %5236 = vmatmul.mubr.bf16.gmra.mrb[84].mxu1 %v11722_v17  ;;  %v502_v17 = vpack.c.bf16 %v436_v13, %v435_v12  ;;  %v11820_v12 = vld [vmem:[%s16484_s1 + $0xab4] ss:$36 sps:$4 sm:$0xff]   ;;  %v11822_v13 = vld [vmem:[%s16484_s1 + $0xac4] ss:$36 sps:$4 sm:$0xff]  }
 0x101   : > { %6340 = vmatmul.mubr.bf16.gmra.mrb[84].mxu0 %v11723_v18  ;;  %5243 = vmatprep.mubr.bf16.mxu1 %v11724_v19  ;;  %v11771_v18 = vld [vmem:[%s16484_s1 + $0x838] ss:$36 sps:$4 sm:$0xff]  }
 0x102   : > { %6347 = vmatprep.mubr.bf16.mxu0 %v11726_v22  ;;  %v11772_v19 = vld [vmem:[%s16484_s1 + $0x874] ss:$36 sps:$4 sm:$0xff]   ;;  %v11774_v22 = vld [vmem:[%s16484_s1 + $0x884] ss:$36 sps:$4 sm:$0xff]   ;;  %6720 = vmatpush1.bf16.msra.mxu0 %v502_v17 }
 0x103   : > { %6721 = vmatprep.subr.bf16.mxu0 %v12548_v1  ;;  %v11825_v17 = vld [vmem:[%s16484_s1 + $0xac0] ss:$36 sps:$4 sm:$0xff]  }
 0x108   : > { %5244 = vmatmul.mubr.bf16.gmra.mrb[88].mxu1 %v11728_v23  ;;  %v11776_v23 = vld [vmem:[%s16484_s1 + $0x870] ss:$36 sps:$4 sm:$0xff]  }
 0x109   : > { %6348 = vmatmul.mubr.bf16.gmra.mrb[88].mxu0 %v11729_v24  ;;  %5251 = vmatprep.mubr.bf16.mxu1 %v11730_v25  ;;  %v11777_v24 = vld [vmem:[%s16484_s1 + $0x880] ss:$36 sps:$4 sm:$0xff]  }
 0x10a   : > { %6355 = vmatprep.mubr.bf16.mxu0 %v11732_v26  ;;  %v11778_v25 = vld [vmem:[%s16484_s1 + $0x8bc] ss:$36 sps:$4 sm:$0xff]   ;;  %v11780_v26 = vld [vmem:[%s16484_s1 + $0x8cc] ss:$36 sps:$4 sm:$0xff]  }
 0x110   : > { %5252 = vmatmul.mubr.bf16.gmra.mrb[92].mxu1 %v11734_v31  ;;  %v11784_v31 = vld [vmem:[%s16484_s1 + $0x904] ss:$36 sps:$4 sm:$0xff]  }
 0x111   : > { %6356 = vmatmul.mubr.bf16.gmra.mrb[92].mxu0 %v11735_v34  ;;  %5259 = vmatprep.mubr.bf16.mxu1 %v11736_v35  ;;  %v437_v34 = vld [vmem:[%s12632_s14 + $0x3f0] sm:$0xff]  ;;  %v438_v35 = vld [vmem:[%s12632_s14 + $0x3f8] sm:$0xff] }
 0x112   : > { %6363 = vmatprep.mubr.bf16.mxu0 %v11738_v37  ;;  %v349_v37 = vld [vmem:[%s12632_s14 + $0x130] sm:$0xff]  ;;  %v503_v40 = vpack.c.bf16 %v438_v35, %v437_v34  ;;  %v11840_v35 = vld [vmem:[%s16484_s1 + $0xb9c] ss:$36 sps:$4 sm:$0xff]  }
 0x113   : > { %v11838_v34 = vld [vmem:[%s16484_s1 + $0xb8c] ss:$36 sps:$4 sm:$0xff]  }
 0x114   : > { %6722 = vmatpush1.bf16.msra.mxu0 %v503_v40  ;;  %v11844_v40 = vld [vmem:[%s16484_s1 + $0xbd4] ss:$36 sps:$4 sm:$0xff]  }
 0x118   : > { %5260 = vmatmul.mubr.bf16.gmra.mrb[96].mxu1 %v11740_v41  ;;  %v350_v41 = vld [vmem:[%s12632_s14 + $0x138] sm:$0xff] }
 0x119   : > { %6364 = vmatmul.mubr.bf16.gmra.mrb[96].mxu0 %v11741_v44  ;;  %5267 = vmatprep.mubr.bf16.mxu1 %v11742_v45  ;;  %v11790_v44 = vld [vmem:[%s16484_s1 + $0x94c] ss:$36 sps:$4 sm:$0xff]   ;;  %v459_v45 = vpack.c.bf16 %v350_v41, %v349_v37  ;;  %v11846_v41 = vld [vmem:[%s16484_s1 + $0xbe4] ss:$36 sps:$4 sm:$0xff]  }
 0x11a   : > { %6371 = vmatprep.mubr.bf16.mxu0 %v11744_v47  ;;  %v11792_v47 = vld [vmem:[%s16484_s1 + $0x95c] ss:$36 sps:$4 sm:$0xff]   ;;  %v11842_v37 = vld [vmem:[%s16484_s1 + $0xb88] ss:$36 sps:$4 sm:$0xff]  }
 0x11b   : > { %5594 = vmatpush1.bf16.msra.mxu1 %v459_v45  ;;  %v11850_v45 = vld [vmem:[%s16484_s1 + $0xc1c] ss:$36 sps:$4 sm:$0xff]  }
 0x11c   : > { %5595 = vmatprep.subr.bf16.mxu1 %v12548_v1 }
 0x120   : > { %5268 = vmatmul.mubr.bf16.gmra.mrb[100].mxu1 %v11746_v48  ;;  %v11794_v48 = vld [vmem:[%s16484_s1 + $0x948] ss:$36 sps:$4 sm:$0xff]  }
 0x121   : > { %6372 = vmatmul.mubr.bf16.gmra.mrb[100].mxu0 %v11747_v49  ;;  %5275 = vmatprep.mubr.bf16.mxu1 %v11748_v50  ;;  %v11795_v49 = vld [vmem:[%s16484_s1 + $0x958] ss:$36 sps:$4 sm:$0xff]  }
 0x122   : > { %6379 = vmatprep.mubr.bf16.mxu0 %v11750_v52  ;;  %v11796_v50 = vld [vmem:[%s16484_s1 + $0x994] ss:$36 sps:$4 sm:$0xff]   ;;  %v11798_v52 = vld [vmem:[%s16484_s1 + $0x9a4] ss:$36 sps:$4 sm:$0xff]  }
 0x128   : > { %5276 = vmatmul.mubr.bf16.gmra.mrb[104].mxu1 %v11752_v55  ;;  %v11802_v55 = vld [vmem:[%s16484_s1 + $0x9dc] ss:$36 sps:$4 sm:$0xff]  }
 0x129   : > { %6380 = vmatmul.mubr.bf16.gmra.mrb[104].mxu0 %v11753_v57  ;;  %5283 = vmatprep.mubr.bf16.mxu1 %v11754_v59  ;;  %v16491_v57 = vmov 0.0   ;;  %v11806_v59 = vld [vmem:[%s16484_s1 + $0x9d8] ss:$36 sps:$4 sm:$0xff]  }
 0x12a   : > { %6387 = vmatprep.mubr.bf16.mxu0 %v11756_v60  ;;  %10200 = vmatprep.subr.bf16.mxu0 %v16491_v57  ;;  %v11807_v60 = vld [vmem:[%s16484_s1 + $0x9e8] ss:$36 sps:$4 sm:$0xff]  }
 0x130   : > { %5284 = vmatmul.mubr.bf16.gmra.mrb[108].mxu1 %v11758_v61  ;;  %v11808_v61 = vld [vmem:[%s16484_s1 + $0xa24] ss:$36 sps:$4 sm:$0xff]  }
 0x131   : > { %6388 = vmatmul.mubr.bf16.gmra.mrb[108].mxu0 %v11759_v62  ;;  %5291 = vmatprep.mubr.bf16.mxu1 %v11760_v63  ;;  %v11810_v62 = vld [vmem:[%s16484_s1 + $0xa34] ss:$36 sps:$4 sm:$0xff]   ;;  %v351_v63 = vld [vmem:[%s12632_s14 + $0x140] sm:$0xff] }
 0x132   : > { %6395 = vmatprep.mubr.bf16.mxu0 %v11762_v2  ;;  %v352_v2 = vld [vmem:[%s12632_s14 + $0x148] sm:$0xff] }
 0x133   : > { %v460_v3 = vpack.c.bf16 %v352_v2, %v351_v63  ;;  %v358_v63 = vld [vmem:[%s12632_s14 + $0x178] sm:$0xff] }
 0x135   : > { %5596 = vmatpush1.bf16.msra.mxu1 %v460_v3  ;;  %v11866_v3 = vld [vmem:[%s16484_s1 + $0xca8] ss:$36 sps:$4 sm:$0xff]  }
 0x136   : > { %5597 = vmatprep.subr.bf16.mxu1 %v12548_v1 }
 0x138   : > { %5292 = vmatmul.mubr.bf16.gmra.mrb[112].mxu1 %v11764_v5  ;;  %v11813_v5 = vld [vmem:[%s16484_s1 + $0xa30] ss:$36 sps:$4 sm:$0xff]  }
 0x139   : > { %6396 = vmatmul.mubr.bf16.gmra.mrb[112].mxu0 %v11765_v7  ;;  %5299 = vmatprep.mubr.bf16.mxu1 %v11766_v9  ;;  %v11816_v7 = vld [vmem:[%s16484_s1 + $0xa7c] ss:$36 sps:$4 sm:$0xff]   ;;  %v11818_v9 = vld [vmem:[%s16484_s1 + $0xa68] ss:$36 sps:$4 sm:$0xff]  }
 0x13a   : > { %6403 = vmatprep.mubr.bf16.mxu0 %v11768_v10  ;;  %v11819_v10 = vld [vmem:[%s16484_s1 + $0xa78] ss:$36 sps:$4 sm:$0xff]  }
 0x140   : > { %5300 = vmatmul.mubr.bf16.gmra.mrb[116].mxu1 %v11770_v16  ;;  %v11824_v16 = vld [vmem:[%s16484_s1 + $0xab0] ss:$36 sps:$4 sm:$0xff]  }
 0x141   : > { %6404 = vmatmul.mubr.bf16.gmra.mrb[116].mxu0 %v11771_v18  ;;  %5307 = vmatprep.mubr.bf16.mxu1 %v11772_v19  ;;  %v11826_v18 = vld [vmem:[%s16484_s1 + $0xafc] ss:$36 sps:$4 sm:$0xff]   ;;  %v11828_v19 = vld [vmem:[%s16484_s1 + $0xb0c] ss:$36 sps:$4 sm:$0xff]  }
 0x142   : > { %6411 = vmatprep.mubr.bf16.mxu0 %v11774_v22  ;;  %v11830_v22 = vld [vmem:[%s16484_s1 + $0xaf8] ss:$36 sps:$4 sm:$0xff]  }
 0x148   : > { %5308 = vmatmul.mubr.bf16.gmra.mrb[120].mxu1 %v11776_v23  ;;  %v11831_v23 = vld [vmem:[%s16484_s1 + $0xb08] ss:$36 sps:$4 sm:$0xff]  }
 0x149   : > { %6412 = vmatmul.mubr.bf16.gmra.mrb[120].mxu0 %v11777_v24  ;;  %5315 = vmatprep.mubr.bf16.mxu1 %v11778_v25  ;;  %v11832_v24 = vld [vmem:[%s16484_s1 + $0xb44] ss:$36 sps:$4 sm:$0xff]   ;;  %v11834_v25 = vld [vmem:[%s16484_s1 + $0xb54] ss:$36 sps:$4 sm:$0xff]  }
 0x14a   : > { %6419 = vmatprep.mubr.bf16.mxu0 %v11780_v26  ;;  %v353_v26 = vld [vmem:[%s12632_s14 + $0x150] sm:$0xff] }
 0x150   : > { %5316 = vmatmul.mubr.bf16.gmra.mrb[124].mxu1 %v11782_v28  ;;  %v354_v28 = vld [vmem:[%s12632_s14 + $0x158] sm:$0xff] }
 0x151   : > { %6420 = vmatmul.mubr.bf16.gmra.mrb[124].mxu0 %v11783_v30  ;;  %5323 = vmatprep.mubr.bf16.mxu1 %v11784_v31  ;;  %v461_v30 = vpack.c.bf16 %v354_v28, %v353_v26  ;;  %v11836_v31 = vld [vmem:[%s16484_s1 + $0xb40] ss:$36 sps:$4 sm:$0xff]   ;;  %v11876_v26 = vld [vmem:[%s16484_s1 + $0xd4c] ss:$36 sps:$4 sm:$0xff]  }
 0x152   : > { %6427 = vmatprep.mubr.bf16.mxu0 %v11786_v32  ;;  %v11837_v32 = vld [vmem:[%s16484_s1 + $0xb50] ss:$36 sps:$4 sm:$0xff]   ;;  %v363_v28 = vld [vmem:[%s12632_s14 + $0x1a0] sm:$0xff] }
 0x153   : > { %5598 = vmatpush1.bf16.msra.mxu1 %v461_v30  ;;  %v364_v30 = vld [vmem:[%s12632_s14 + $0x1a8] sm:$0xff] }
 0x154   : > { %5599 = vmatprep.subr.bf16.mxu1 %v12548_v1 }
 0x158   : > { %5324 = vmatmul.mubr.bf16.gmra.mrb[128].mxu1 %v11788_v38  ;;  %v11843_v38 = vld [vmem:[%s16484_s1 + $0xb98] ss:$36 sps:$4 sm:$0xff]  }
 0x159   : > { %6428 = vmatmul.mubr.bf16.gmra.mrb[128].mxu0 %v11789_v43  ;;  %5331 = vmatprep.mubr.bf16.mxu1 %v11790_v44  ;;  %v11848_v43 = vld [vmem:[%s16484_s1 + $0xbd0] ss:$36 sps:$4 sm:$0xff]   ;;  %v11849_v44 = vld [vmem:[%s16484_s1 + $0xbe0] ss:$36 sps:$4 sm:$0xff]  }
 0x15a   : > { %6435 = vmatprep.mubr.bf16.mxu0 %v11792_v47  ;;  %v11852_v47 = vld [vmem:[%s16484_s1 + $0xc2c] ss:$36 sps:$4 sm:$0xff]  }
 0x160   : > { %5332 = vmatmul.mubr.bf16.gmra.mrb[132].mxu1 %v11794_v48  ;;  %v11854_v48 = vld [vmem:[%s16484_s1 + $0xc18] ss:$36 sps:$4 sm:$0xff]  }
 0x161   : > { %6436 = vmatmul.mubr.bf16.gmra.mrb[132].mxu0 %v11795_v49  ;;  %5339 = vmatprep.mubr.bf16.mxu1 %v11796_v50  ;;  %v11855_v49 = vld [vmem:[%s16484_s1 + $0xc28] ss:$36 sps:$4 sm:$0xff]  }
 0x162   : > { %6443 = vmatprep.mubr.bf16.mxu0 %v11798_v52  ;;  %v11856_v50 = vld [vmem:[%s16484_s1 + $0xc64] ss:$36 sps:$4 sm:$0xff]   ;;  %v11858_v52 = vld [vmem:[%s16484_s1 + $0xc74] ss:$36 sps:$4 sm:$0xff]  }
 0x168   : > { %5340 = vmatmul.mubr.bf16.gmra.mrb[136].mxu1 %v11800_v53  ;;  %v355_v53 = vld [vmem:[%s12632_s14 + $0x160] sm:$0xff] }
 0x169   : > { %6444 = vmatmul.mubr.bf16.gmra.mrb[136].mxu0 %v11801_v54  ;;  %5347 = vmatprep.mubr.bf16.mxu1 %v11802_v55  ;;  %v356_v54 = vld [vmem:[%s12632_s14 + $0x168] sm:$0xff] }
 0x16a   : > { %6451 = vmatprep.mubr.bf16.mxu0 %v11804_v56  ;;  %v462_v55 = vpack.c.bf16 %v356_v54, %v355_v53  ;;  %v11860_v56 = vld [vmem:[%s16484_s1 + $0xc60] ss:$36 sps:$4 sm:$0xff]   ;;  %v1171_v53 = vld [vmem:[%s16485_s2 + $0xa8] sm:$0xff]  ;;  %v369_v54 = vld [vmem:[%s12632_s14 + $0x1d0] sm:$0xff] }
 0x16c   : > { %5600 = vmatpush1.bf16.msra.mxu1 %v462_v55  ;;  %v370_v55 = vld [vmem:[%s12632_s14 + $0x1d8] sm:$0xff] }
 0x16d   : > { %5601 = vmatprep.subr.bf16.mxu1 %v12548_v1 }
 0x170   : > { %5348 = vmatmul.mubr.bf16.gmra.mrb[140].mxu1 %v11806_v59  ;;  %v11861_v59 = vld [vmem:[%s16484_s1 + $0xc70] ss:$36 sps:$4 sm:$0xff]  }
 0x171   : > { %6452 = vmatmul.mubr.bf16.gmra.mrb[140].mxu0 %v11807_v60  ;;  %5355 = vmatprep.mubr.bf16.mxu1 %v11808_v61  ;;  %v11862_v60 = vld [vmem:[%s16484_s1 + $0xcac] ss:$36 sps:$4 sm:$0xff]   ;;  %v11864_v61 = vld [vmem:[%s16484_s1 + $0xcbc] ss:$36 sps:$4 sm:$0xff]  }
 0x172   : > { %6459 = vmatprep.mubr.bf16.mxu0 %v11810_v62  ;;  %v357_v62 = vld [vmem:[%s12632_s14 + $0x170] sm:$0xff] }
 0x173   : > { %v463_v2 = vpack.c.bf16 %v358_v63, %v357_v62  ;;  %v11885_v62 = vld [vmem:[%s16484_s1 + $0xd90] ss:$36 sps:$4 sm:$0xff]  }
 0x174   : > { %v11886_v63 = vld [vmem:[%s16484_s1 + $0xdcc] ss:$36 sps:$4 sm:$0xff]  }
 0x175   : > { %5602 = vmatpush1.bf16.msra.mxu1 %v463_v2  ;;  %v11888_v2 = vld [vmem:[%s16484_s1 + $0xddc] ss:$36 sps:$4 sm:$0xff]  }
 0x176   : > { %5603 = vmatprep.subr.bf16.mxu1 %v12548_v1 }
 0x178   : > { %5356 = vmatmul.mubr.bf16.gmra.mrb[144].mxu1 %v11812_v4  ;;  %v11867_v4 = vld [vmem:[%s16484_s1 + $0xcb8] ss:$36 sps:$4 sm:$0xff]  }
 0x179   : > { %6460 = vmatmul.mubr.bf16.gmra.mrb[144].mxu0 %v11813_v5  ;;  %5363 = vmatprep.mubr.bf16.mxu1 %v11814_v6  ;;  %v11868_v5 = vld [vmem:[%s16484_s1 + $0xcf4] ss:$36 sps:$4 sm:$0xff]   ;;  %v11870_v6 = vld [vmem:[%s16484_s1 + $0xd04] ss:$36 sps:$4 sm:$0xff]  }
 0x17a   : > { %6467 = vmatprep.mubr.bf16.mxu0 %v11816_v7  ;;  %v359_v7 = vld [vmem:[%s12632_s14 + $0x180] sm:$0xff] }
 0x180   : > { %5364 = vmatmul.mubr.bf16.gmra.mrb[148].mxu1 %v11818_v9  ;;  %v360_v9 = vld [vmem:[%s12632_s14 + $0x188] sm:$0xff] }
 0x181   : > { %6468 = vmatmul.mubr.bf16.gmra.mrb[148].mxu0 %v11819_v10  ;;  %5371 = vmatprep.mubr.bf16.mxu1 %v11820_v12  ;;  %v464_v10 = vpack.c.bf16 %v360_v9, %v359_v7  ;;  %v1166_v12 = vld [vmem:[%s16485_s2 + $0x80] sm:$0xff]  ;;  %v1173_v7 = vld [vmem:[%s16485_s2 + $0xb8] sm:$0xff]  ;;  %v373_v9 = vld [vmem:[%s12632_s14 + $0x1f0] sm:$0xff] }
 0x182   : > { %6475 = vmatprep.mubr.bf16.mxu0 %v11822_v13  ;;  %v1150_v13 = vld [vmem:[%s16485_s2] sm:$0xff]  ;;  %1361 = vperm.xlu0 %11590, %v1166_v12  }
 0x183   : > { %5604 = vmatpush1.bf16.msra.mxu1 %v464_v10  ;;  %1281 = vperm.xlu1 %11591, %v1150_v13   ;;  %v374_v10 = vld [vmem:[%s12632_s14 + $0x1f8] sm:$0xff]  ;;  %v11890_v13 = vld [vmem:[%s16484_s1 + $0xdc8] ss:$36 sps:$4 sm:$0xff]  }
 0x184   : > { %5605 = vmatprep.subr.bf16.mxu1 %v12548_v1  ;;  %v471_v12 = vpack.c.bf16 %v374_v10, %v373_v9  ;;  %v11920_v9 = vld [vmem:[%s16484_s1 + $0xf30] ss:$36 sps:$4 sm:$0xff]   ;;  %v1182_v10 = vld [vmem:[%s16485_s2 + $0x100] sm:$0xff] }
 0x188   : > { %5372 = vmatmul.mubr.bf16.gmra.mrb[152].mxu1 %v11824_v16  ;;  %v361_v16 = vld [vmem:[%s12632_s14 + $0x190] sm:$0xff] }
 0x189   : > { %6476 = vmatmul.mubr.bf16.gmra.mrb[152].mxu0 %v11825_v17  ;;  %5379 = vmatprep.mubr.bf16.mxu1 %v11826_v18  ;;  %v362_v17 = vld [vmem:[%s12632_s14 + $0x198] sm:$0xff] }
 0x18a   : > { %6483 = vmatprep.mubr.bf16.mxu0 %v11828_v19  ;;  %v465_v18 = vpack.c.bf16 %v362_v17, %v361_v16  ;;  %v11872_v19 = vld [vmem:[%s16484_s1 + $0xcf0] ss:$36 sps:$4 sm:$0xff]   ;;  %v1157_v17 = vld [vmem:[%s16485_s2 + $0x38] sm:$0xff] }
 0x18b   : > { %v1156_v16 = vld [vmem:[%s16485_s2 + $0x30] sm:$0xff] }
 0x18c   : > { %5606 = vmatpush1.bf16.msra.mxu1 %v465_v18  ;;  %v11891_v18 = vld [vmem:[%s16484_s1 + $0xdd8] ss:$36 sps:$4 sm:$0xff]  }
 0x18d   : > { %5607 = vmatprep.subr.bf16.mxu1 %v12548_v1 }
 0x190   : > { %5380 = vmatmul.mubr.bf16.gmra.mrb[156].mxu1 %v11830_v22  ;;  %v1167_v22 = vld [vmem:[%s16485_s2 + $0x88] sm:$0xff] }
 0x191   : > { %6484 = vmatmul.mubr.bf16.gmra.mrb[156].mxu0 %v11831_v23  ;;  %5387 = vmatprep.mubr.bf16.mxu1 %v11832_v24  ;;  %v1151_v23 = vld [vmem:[%s16485_s2 + $0x8] sm:$0xff]  ;;  %v11873_v24 = vld [vmem:[%s16484_s1 + $0xd00] ss:$36 sps:$4 sm:$0xff]  }
 0x192   : > { %6491 = vmatprep.mubr.bf16.mxu0 %v11834_v25  ;;  %v11874_v25 = vld [vmem:[%s16484_s1 + $0xd3c] ss:$36 sps:$4 sm:$0xff]   ;;  %1366 = vperm.xlu0 %11590, %v1167_v22  }
 0x193   : > { %1286 = vperm.xlu1 %11591, %v1151_v23   ;;  %v11896_v22 = vld [vmem:[%s16484_s1 + $0x1c] ss:$36 sps:$4 sm:$0xff]  }
 0x194   : > { %v439_v23 = vld [vmem:[%s12632_s14 + $0x400] sm:$0x3] }
 0x198   : > { %5388 = vmatmul.mubr.bf16.gmra.mrb[160].mxu1 %v11836_v31  ;;  %v466_v31 = vpack.c.bf16 %v364_v30, %v363_v28  ;;  %v11897_v28 = vld [vmem:[%s16484_s1 + $0xe10] ss:$36 sps:$4 sm:$0xff]   ;;  %v1158_v30 = vld [vmem:[%s16485_s2 + $0x40] sm:$0xff] }
 0x199   : > { %6492 = vmatmul.mubr.bf16.gmra.mrb[160].mxu0 %v11837_v32  ;;  %5395 = vmatprep.mubr.bf16.mxu1 %v11838_v34  ;;  %v1168_v32 = vld [vmem:[%s16485_s2 + $0x90] sm:$0xff]  ;;  %v1169_v34 = vld [vmem:[%s16485_s2 + $0x98] sm:$0xff] }
 0x19a   : > { %6499 = vmatprep.mubr.bf16.mxu0 %v11840_v35  ;;  %v365_v35 = vld [vmem:[%s12632_s14 + $0x1b0] sm:$0xff]  ;;  %5608 = vmatpush1.bf16.msra.mxu1 %v466_v31  ;;  %v1159_v31 = vld [vmem:[%s16485_s2 + $0x48] sm:$0xff] }
 0x19b   : > { %1371 = vperm.xlu0 %11590, %v1168_v32   ;;  %1376 = vperm.xlu1 %11591, %v1169_v34   ;;  %v11894_v32 = vld [vmem:[%s16484_s1 + $0x18] ss:$36 sps:$4 sm:$0xff]  }
 0x19c   : > { %5609 = vmatprep.subr.bf16.mxu1 %v12548_v1  ;;  %v11898_v34 = vld [vmem:[%s16484_s1 + $0xe5c] ss:$36 sps:$4 sm:$0xff]  }
 0x1a0   : > { %5396 = vmatmul.mubr.bf16.gmra.mrb[164].mxu1 %v11842_v37  ;;  %v366_v37 = vld [vmem:[%s12632_s14 + $0x1b8] sm:$0xff] }
 0x1a1   : > { %6500 = vmatmul.mubr.bf16.gmra.mrb[164].mxu0 %v11843_v38  ;;  %5403 = vmatprep.mubr.bf16.mxu1 %v11844_v40  ;;  %v467_v38 = vpack.c.bf16 %v366_v37, %v365_v35  ;;  %v11878_v40 = vld [vmem:[%s16484_s1 + $0xd38] ss:$36 sps:$4 sm:$0xff]   ;;  %v11900_v35 = vld [vmem:[%s16484_s1 + $0x64] ss:$36 sps:$4 sm:$0xff]  }
 0x1a2   : > { %6507 = vmatprep.mubr.bf16.mxu0 %v11846_v41  ;;  %v1152_v41 = vld [vmem:[%s16485_s2 + $0x10] sm:$0xff] }
 0x1a3   : > { %5610 = vmatpush1.bf16.msra.mxu1 %v467_v38  ;;  %1291 = vperm.xlu0 %11590, %v1152_v41   ;;  %v1176_v38 = vld [vmem:[%s16485_s2 + $0xd0] sm:$0xff]  ;;  %v11902_v41 = vld [vmem:[%s16484_s1 + $0xe58] ss:$36 sps:$4 sm:$0xff]  }
 0x1a4   : > { %5611 = vmatprep.subr.bf16.mxu1 %v12548_v1 }
 0x1a8   : > { %5404 = vmatmul.mubr.bf16.gmra.mrb[168].mxu1 %v11848_v43  ;;  %v1153_v43 = vld [vmem:[%s16485_s2 + $0x18] sm:$0xff] }
 0x1a9   : > { %6508 = vmatmul.mubr.bf16.gmra.mrb[168].mxu0 %v11849_v44  ;;  %5411 = vmatprep.mubr.bf16.mxu1 %v11850_v45  ;;  %v11879_v44 = vld [vmem:[%s16484_s1 + $0xd48] ss:$36 sps:$4 sm:$0xff]  }
 0x1aa   : > { %6515 = vmatprep.mubr.bf16.mxu0 %v11852_v47  ;;  %v11880_v45 = vld [vmem:[%s16484_s1 + $0xd84] ss:$36 sps:$4 sm:$0xff]   ;;  %v11882_v47 = vld [vmem:[%s16484_s1 + $0xd94] ss:$36 sps:$4 sm:$0xff]   ;;  %1296 = vperm.xlu1 %11591, %v1153_v43  }
 0x1ab   : > { %v1160_v43 = vld [vmem:[%s16485_s2 + $0x50] sm:$0xff] }
 0x1ae   : > { %1386 = vperm.xlu1 %11591, %v1171_v53   ;;  %v1162_v53 = vld [vmem:[%s16485_s2 + $0x60] sm:$0xff] }
 0x1b0   : > { %5412 = vmatmul.mubr.bf16.gmra.mrb[172].mxu1 %v11854_v48  ;;  %v367_v48 = vld [vmem:[%s12632_s14 + $0x1c0] sm:$0xff] }
 0x1b1   : > { %6516 = vmatmul.mubr.bf16.gmra.mrb[172].mxu0 %v11855_v49  ;;  %5419 = vmatprep.mubr.bf16.mxu1 %v11856_v50  ;;  %v368_v49 = vld [vmem:[%s12632_s14 + $0x1c8] sm:$0xff] }
 0x1b2   : > { %6523 = vmatprep.mubr.bf16.mxu0 %v11858_v52  ;;  %v468_v50 = vpack.c.bf16 %v368_v49, %v367_v48  ;;  %v1170_v52 = vld [vmem:[%s16485_s2 + $0xa0] sm:$0xff]  ;;  %v11906_v48 = vld [vmem:[%s16484_s1 + $0xac] ss:$36 sps:$4 sm:$0xff]  }
 0x1b3   : > { %1381 = vperm.xlu0 %11590, %v1170_v52   ;;  %v1178_v49 = vld [vmem:[%s16485_s2 + $0xe0] sm:$0xff] }
 0x1b4   : > { %5612 = vmatpush1.bf16.msra.mxu1 %v468_v50  ;;  %v1179_v50 = vld [vmem:[%s16485_s2 + $0xe8] sm:$0xff]  ;;  %v11908_v52 = vld [vmem:[%s16484_s1 + $0xea0] ss:$36 sps:$4 sm:$0xff]  }
 0x1b5   : > { %5613 = vmatprep.subr.bf16.mxu1 %v12548_v1 }
 0x1b8   : > { %5420 = vmatmul.mubr.bf16.gmra.mrb[176].mxu1 %v11860_v56  ;;  %v11884_v56 = vld [vmem:[%s16484_s1 + $0xd80] ss:$36 sps:$4 sm:$0xff]  }
 0x1b9   : > { %6524 = vmatmul.mubr.bf16.gmra.mrb[176].mxu0 %v11861_v59  ;;  %5427 = vmatprep.mubr.bf16.mxu1 %v11862_v60  ;;  %v469_v59 = vpack.c.bf16 %v370_v55, %v369_v54  ;;  %v1154_v60 = vld [vmem:[%s16485_s2 + $0x20] sm:$0xff]  ;;  %v1163_v54 = vld [vmem:[%s16485_s2 + $0x68] sm:$0xff] }
 0x1ba   : > { %6531 = vmatprep.mubr.bf16.mxu0 %v11864_v61  ;;  %v1155_v61 = vld [vmem:[%s16485_s2 + $0x28] sm:$0xff]  ;;  %1301 = vperm.xlu0 %11590, %v1154_v60   ;;  %v1180_v60 = vld [vmem:[%s16485_s2 + $0xf0] sm:$0xff] }
 0x1bb   : > { %5614 = vmatpush1.bf16.msra.mxu1 %v469_v59  ;;  %1306 = vperm.xlu1 %11591, %v1155_v61   ;;  %v11909_v55 = vld [vmem:[%s16484_s1 + $0xa8] ss:$36 sps:$4 sm:$0xff]   ;;  %v11912_v59 = vld [vmem:[%s16484_s1 + $0xf4] ss:$36 sps:$4 sm:$0xff]  }
 0x1bc   : > { %5615 = vmatprep.subr.bf16.mxu1 %v12548_v1  ;;  %v1181_v61 = vld [vmem:[%s16485_s2 + $0xf8] sm:$0xff] }
 0x1bf   : > { %1396 = vperm.xlu1 %11591, %v1173_v7   ;;  %v1199_v7 = vld [vmem:[%s16485_s2 + $0x188] sm:$0xff] }
 0x1c0   : > { %5428 = vmatmul.mubr.bf16.gmra.mrb[180].mxu1 %v11866_v3  ;;  %v371_v3 = vld [vmem:[%s12632_s14 + $0x1e0] sm:$0xff] }
 0x1c1   : > { %6532 = vmatmul.mubr.bf16.gmra.mrb[180].mxu0 %v11867_v4  ;;  %5435 = vmatprep.mubr.bf16.mxu1 %v11868_v5  ;;  %v372_v4 = vld [vmem:[%s12632_s14 + $0x1e8] sm:$0xff] }
 0x1c2   : > { %6539 = vmatprep.mubr.bf16.mxu0 %v11870_v6  ;;  %v470_v5 = vpack.c.bf16 %v372_v4, %v371_v3  ;;  %v1172_v6 = vld [vmem:[%s16485_s2 + $0xb0] sm:$0xff] }
 0x1c3   : > { %1391 = vperm.xlu0 %11590, %v1172_v6   ;;  %1316 = vperm.xlu1 %11591, %v1157_v17   ;;  %v11915_v3 = vld [vmem:[%s16484_s1 + $0xf0] ss:$36 sps:$4 sm:$0xff]   ;;  %v1198_v6 = vld [vmem:[%s16485_s2 + $0x180] sm:$0xff] }
 0x1c4   : > { %5616 = vmatpush1.bf16.msra.mxu1 %v470_v5  ;;  %v11916_v4 = vld [vmem:[%s16484_s1 + $0xf34] ss:$36 sps:$4 sm:$0xff]   ;;  %v11918_v5 = vld [vmem:[%s16484_s1 + $0x13c] ss:$36 sps:$4 sm:$0xff]   ;;  %v11924_v17 = vld [vmem:[%s16484_s1 + $0x184] ss:$36 sps:$4 sm:$0xff]  }
 0x1c5   : > { %5617 = vmatprep.subr.bf16.mxu1 %v12548_v1 }
 0x1c7   : > { %1311 = vperm.xlu0 %11590, %v1156_v16   ;;  %v11922_v16 = vld [vmem:[%s16484_s1 + $0xf7c] ss:$36 sps:$4 sm:$0xff]  }
 0x1c8   : > { %5436 = vmatmul.mubr.bf16.gmra.mrb[184].mxu1 %v11872_v19  ;;  %v11892_v19 = vld [vmem:[%s16484_s1 + $0xe14] ss:$36 sps:$4 sm:$0xff]  }
 0x1c9   : > { %6540 = vmatmul.mubr.bf16.gmra.mrb[184].mxu0 %v11873_v24  ;;  %5443 = vmatprep.mubr.bf16.mxu1 %v11874_v25  ;;  %v1174_v24 = vld [vmem:[%s16485_s2 + $0xc0] sm:$0xff]  ;;  %v1175_v25 = vld [vmem:[%s16485_s2 + $0xc8] sm:$0xff] }
 0x1ca   : > { %6547 = vmatprep.mubr.bf16.mxu0 %v11876_v26  ;;  %5618 = vmatpush1.bf16.msra.mxu1 %v471_v12  ;;  %v504_v26 = vpack.c.bf16 %v439_v23, %v439_v23  ;;  %v1183_v12 = vld [vmem:[%s16485_s2 + $0x108] sm:$0xff]  ;;  %v1184_v23 = vld [vmem:[%s16485_s2 + $0x110] sm:$0xff] }
 0x1cb   : > { %10492 = vmatprep.subr.bf16.mxu1 %v12548_v1  ;;  %1401 = vperm.xlu0 %11590, %v1174_v24   ;;  %v1185_v24 = vld [vmem:[%s16485_s2 + $0x118] sm:$0xff] }
 0x1cc   : > { %1406 = vperm.xlu1 %11591, %v1175_v25   ;;  %v5033_v37 = vsel %vm5031_vm0, %v504_v26, 0  ;;  %v11927_v25 = vld [vmem:[%s16484_s1 + $0x180] ss:$36 sps:$4 sm:$0xff]  }
 0x1cd   : > { %v11928_v26 = vld [vmem:[%s16484_s1 + $0xfc4] ss:$36 sps:$4 sm:$0xff]  }
 0x1cf   : > { %1321 = vperm.xlu0 %11590, %v1158_v30   ;;  %v1202_v30 = vld [vmem:[%s16485_s2 + $0x1a0] sm:$0xff] }
 0x1d0   : > { %5444 = vmatmul.mubr.bf16.gmra.mrb[188].mxu1 %v11878_v40  ;;  %1326 = vperm.xlu1 %11591, %v1159_v31   ;;  %v1177_v40 = vld [vmem:[%s16485_s2 + $0xd8] sm:$0xff]  ;;  %v1203_v31 = vld [vmem:[%s16485_s2 + $0x1a8] sm:$0xff] }
 0x1d1   : > { %6548 = vmatmul.mubr.bf16.gmra.mrb[188].mxu0 %v11879_v44  ;;  %5451 = vmatprep.mubr.bf16.mxu1 %v11880_v45  ;;  %v1161_v44 = vld [vmem:[%s16485_s2 + $0x58] sm:$0xff]  ;;  %v11903_v45 = vld [vmem:[%s16484_s1 + $0x60] ss:$36 sps:$4 sm:$0xff]  }
 0x1d2   : > { %6555 = vmatprep.mubr.bf16.mxu0 %v11882_v47  ;;  %v11904_v47 = vld [vmem:[%s16484_s1 + $0xea4] ss:$36 sps:$4 sm:$0xff]  }
 0x1d3   : > { %1411 = vperm.xlu0 %11590, %v1176_v38   ;;  %v11934_v38 = vld [vmem:[%s16484_s1 + $0x100c] ss:$36 sps:$4 sm:$0xff]  }
 0x1d4   : > { %1416 = vperm.xlu1 %11591, %v1177_v40   ;;  %v11936_v40 = vld [vmem:[%s16484_s1 + $0x214] ss:$36 sps:$4 sm:$0xff]  }
 0x1d7   : > { %1331 = vperm.xlu0 %11590, %v1160_v43   ;;  %v1205_v43 = vld [vmem:[%s16485_s2 + $0x1b8] sm:$0xff] }
 0x1d8   : > { %5452 = vmatmul.mubr.bf16.gmra.mrb[192].mxu1 %v11884_v56  ;;  %1336 = vperm.xlu1 %11591, %v1161_v44   ;;  %v11910_v56 = vld [vmem:[%s16484_s1 + $0xeec] ss:$36 sps:$4 sm:$0xff]  }
 0x1d9   : > { %6556 = vmatmul.mubr.bf16.gmra.mrb[192].mxu0 %v11885_v62  ;;  %5459 = vmatprep.mubr.bf16.mxu1 %v11886_v63  ;;  %v11914_v62 = vld [vmem:[%s16484_s1 + $0xee8] ss:$36 sps:$4 sm:$0xff]   ;;  %v1164_v63 = vld [vmem:[%s16485_s2 + $0x70] sm:$0xff] }
 0x1da   : > { %6563 = vmatprep.mubr.bf16.mxu0 %v11888_v2  ;;  %v1165_v2 = vld [vmem:[%s16485_s2 + $0x78] sm:$0xff]  ;;  %v11938_v44 = vld [vmem:[%s16484_s1 + $0x1008] ss:$36 sps:$4 sm:$0xff]  }
 0x1db   : > { %1421 = vperm.xlu0 %11590, %v1178_v49   ;;  %v11940_v49 = vld [vmem:[%s16484_s1 + $0x1054] ss:$36 sps:$4 sm:$0xff]  }
 0x1dc   : > { %1426 = vperm.xlu1 %11591, %v1179_v50   ;;  %v11942_v50 = vld [vmem:[%s16484_s1 + $0x25c] ss:$36 sps:$4 sm:$0xff]  }
 0x1df   : > { %1341 = vperm.xlu0 %11590, %v1162_v53   ;;  %v1207_v53 = vld [vmem:[%s16485_s2 + $0x1c8] sm:$0xff] }
 0x1e0   : > { %5460 = vmatmul.mubr.bf16.gmra.mrb[196].mxu1 %v11890_v13  ;;  %1346 = vperm.xlu1 %11591, %v1163_v54   ;;  %v11921_v13 = vld [vmem:[%s16484_s1 + $0x138] ss:$36 sps:$4 sm:$0xff]   ;;  %v11944_v54 = vld [vmem:[%s16484_s1 + $0x1050] ss:$36 sps:$4 sm:$0xff]  }
 0x1e1   : > { %6564 = vmatmul.mubr.bf16.gmra.mrb[196].mxu0 %v11891_v18  ;;  %5467 = vmatprep.mubr.bf16.mxu1 %v11892_v19  ;;  %v1200_v18 = vld [vmem:[%s16485_s2 + $0x190] sm:$0xff]  ;;  %v1201_v19 = vld [vmem:[%s16485_s2 + $0x198] sm:$0xff] }
 0x1e2   : > { %6723 = vmatprep.mubr.bf16.mxu0 %v11896_v22  ;;  %v11926_v22 = vld [vmem:[%s16484_s1 + $0xf78] ss:$36 sps:$4 sm:$0xff]  }
 0x1e3   : > { %1431 = vperm.xlu0 %11590, %v1180_v60   ;;  %v11946_v60 = vld [vmem:[%s16484_s1 + $0x109c] ss:$36 sps:$4 sm:$0xff]  }
 0x1e4   : > { %1436 = vperm.xlu1 %11591, %v1181_v61   ;;  %v11948_v61 = vld [vmem:[%s16484_s1 + $0x2a4] ss:$36 sps:$4 sm:$0xff]  }
 0x1e7   : > { %1351 = vperm.xlu0 %11590, %v1164_v63   ;;  %v1209_v63 = vld [vmem:[%s16485_s2 + $0x1d8] sm:$0xff] }
 0x1e8   : > { %5468 = vmatmul.mubr.bf16.gmra.mrb[200].mxu1 %v11897_v28  ;;  %1356 = vperm.xlu1 %11591, %v1165_v2   ;;  %v11930_v28 = vld [vmem:[%s16484_s1 + $0x1cc] ss:$36 sps:$4 sm:$0xff]   ;;  %v11950_v2 = vld [vmem:[%s16484_s1 + $0x1098] ss:$36 sps:$4 sm:$0xff]  }
 0x1e9   : > { %6724 = vmatmul.mubr.bf16.vlgmr.msra.gmra.mrb[0].mxu0 %v11894_v32  ;;  %5475 = vmatprep.mubr.bf16.mxu1 %v11898_v34  ;;  %v11932_v32 = vld [vmem:[%s16484_s1 + $0xfc0] ss:$36 sps:$4 sm:$0xff]  }
 0x1ea   : > { %10201 = vmatpush3.bf16.msra.mxu0 %v5033_v37  ;;  %6731 = vmatprep.mubr.bf16.mxu0 %v11900_v35  ;;  %v1186_v34 = vld [vmem:[%s16485_s2 + $0x120] sm:$0xff]  ;;  %v1187_v35 = vld [vmem:[%s16485_s2 + $0x128] sm:$0xff] }
 0x1eb   : > { %1521 = vperm.xlu0 %11590, %v1198_v6   ;;  %v11933_v37 = vld [vmem:[%s16484_s1 + $0x1c8] ss:$36 sps:$4 sm:$0xff]  }
 0x1ec   : > { %1526 = vperm.xlu1 %11591, %v1199_v7   ;;  %v11952_v6 = vld [vmem:[%s16484_s1 + $0x10e4] ss:$36 sps:$4 sm:$0xff]   ;;  %v11954_v7 = vld [vmem:[%s16484_s1 + $0x2ec] ss:$36 sps:$4 sm:$0xff]  }
 0x1ef   : > { %1441 = vperm.xlu0 %11590, %v1182_v10   ;;  %v1211_v10 = vld [vmem:[%s16485_s2 + $0x1e8] sm:$0xff] }
 0x1f0   : > { %5476 = vmatmul.mubr.bf16.gmra.mrb[204].mxu1 %v11902_v41  ;;  %1446 = vperm.xlu1 %11591, %v1183_v12   ;;  %v1204_v41 = vld [vmem:[%s16485_s2 + $0x1b0] sm:$0xff]  ;;  %v11956_v12 = vld [vmem:[%s16484_s1 + $0x10e0] ss:$36 sps:$4 sm:$0xff]  }
 0x1f1   : > { %6732 = vmatmul.mubr.bf16.gmra.mrb[4].mxu0 %v11903_v45  ;;  %5483 = vmatprep.mubr.bf16.mxu1 %v11904_v47  ;;  %v1188_v45 = vld [vmem:[%s16485_s2 + $0x130] sm:$0xff]  ;;  %v1189_v47 = vld [vmem:[%s16485_s2 + $0x138] sm:$0xff] }
 0x1f2   : > { %6739 = vmatprep.mubr.bf16.mxu0 %v11906_v48  ;;  %v11939_v48 = vld [vmem:[%s16484_s1 + $0x210] ss:$36 sps:$4 sm:$0xff]  }
 0x1f3   : > { %1531 = vperm.xlu0 %11590, %v1200_v18   ;;  %v11958_v18 = vld [vmem:[%s16484_s1 + $0x112c] ss:$36 sps:$4 sm:$0xff]  }
 0x1f4   : > { %1536 = vperm.xlu1 %11591, %v1201_v19   ;;  %v11960_v19 = vld [vmem:[%s16484_s1 + $0x334] ss:$36 sps:$4 sm:$0xff]  }
 0x1f7   : > { %1451 = vperm.xlu0 %11590, %v1184_v23   ;;  %v1213_v23 = vld [vmem:[%s16485_s2 + $0x1f8] sm:$0xff] }
 0x1f8   : > { %5484 = vmatmul.mubr.bf16.gmra.mrb[208].mxu1 %v11908_v52  ;;  %1456 = vperm.xlu1 %11591, %v1185_v24   ;;  %v1206_v52 = vld [vmem:[%s16485_s2 + $0x1c0] sm:$0xff]  ;;  %v11962_v24 = vld [vmem:[%s16484_s1 + $0x1128] ss:$36 sps:$4 sm:$0xff]  }
 0x1f9   : > { %6740 = vmatmul.mubr.bf16.gmra.mrb[8].mxu0 %v11909_v55  ;;  %5491 = vmatprep.mubr.bf16.mxu1 %v11910_v56  ;;  %v1190_v55 = vld [vmem:[%s16485_s2 + $0x140] sm:$0xff]  ;;  %v1191_v56 = vld [vmem:[%s16485_s2 + $0x148] sm:$0xff] }
 0x1fa   : > { %6747 = vmatprep.mubr.bf16.mxu0 %v11912_v59  ;;  %v11945_v59 = vld [vmem:[%s16484_s1 + $0x258] ss:$36 sps:$4 sm:$0xff]  }
 0x1fb   : > { %1541 = vperm.xlu0 %11590, %v1202_v30   ;;  %v11964_v30 = vld [vmem:[%s16484_s1 + $0x1174] ss:$36 sps:$4 sm:$0xff]  }
 0x1fc   : > { %1546 = vperm.xlu1 %11591, %v1203_v31   ;;  %v11966_v31 = vld [vmem:[%s16484_s1 + $0x37c] ss:$36 sps:$4 sm:$0xff]  }
 0x1ff   : > { %1461 = vperm.xlu0 %11590, %v1186_v34   ;;  %v1231_v34 = vld [vmem:[%s16485_s2 + $0x288] sm:$0xff] }
 0x200   : > { %5492 = vmatmul.mubr.bf16.gmra.mrb[212].mxu1 %v11914_v62  ;;  %1466 = vperm.xlu1 %11591, %v1187_v35   ;;  %v1208_v62 = vld [vmem:[%s16485_s2 + $0x1d0] sm:$0xff] }
 0x201   : > { %6748 = vmatmul.mubr.bf16.gmra.mrb[12].mxu0 %v11915_v3  ;;  %5499 = vmatprep.mubr.bf16.mxu1 %v11916_v4  ;;  %v1192_v3 = vld [vmem:[%s16485_s2 + $0x150] sm:$0xff]  ;;  %v1193_v4 = vld [vmem:[%s16485_s2 + $0x158] sm:$0xff] }
 0x202   : > { %6755 = vmatprep.mubr.bf16.mxu0 %v11918_v5  ;;  %v11951_v5 = vld [vmem:[%s16484_s1 + $0x2a0] ss:$36 sps:$4 sm:$0xff]   ;;  %v11968_v35 = vld [vmem:[%s16484_s1 + $0x1170] ss:$36 sps:$4 sm:$0xff]  }
 0x203   : > { %1551 = vperm.xlu0 %11590, %v1204_v41   ;;  %v11970_v41 = vld [vmem:[%s16484_s1 + $0x11bc] ss:$36 sps:$4 sm:$0xff]  }
 0x204   : > { %1556 = vperm.xlu1 %11591, %v1205_v43   ;;  %v11972_v43 = vld [vmem:[%s16484_s1 + $0x3c4] ss:$36 sps:$4 sm:$0xff]  }
 0x207   : > { %1471 = vperm.xlu0 %11590, %v1188_v45   ;;  %v1233_v45 = vld [vmem:[%s16485_s2 + $0x298] sm:$0xff] }
 0x208   : > { %5500 = vmatmul.mubr.bf16.gmra.mrb[216].mxu1 %v11920_v9  ;;  %1476 = vperm.xlu1 %11591, %v1189_v47   ;;  %v1210_v9 = vld [vmem:[%s16485_s2 + $0x1e0] sm:$0xff] }
 0x209   : > { %6756 = vmatmul.mubr.bf16.gmra.mrb[16].mxu0 %v11921_v13  ;;  %5507 = vmatprep.mubr.bf16.mxu1 %v11922_v16  ;;  %v1194_v13 = vld [vmem:[%s16485_s2 + $0x160] sm:$0xff]  ;;  %v1195_v16 = vld [vmem:[%s16485_s2 + $0x168] sm:$0xff] }
 0x20a   : > { %6763 = vmatprep.mubr.bf16.mxu0 %v11924_v17  ;;  %v11957_v17 = vld [vmem:[%s16484_s1 + $0x2e8] ss:$36 sps:$4 sm:$0xff]   ;;  %v1145_v47 = vld [vmem:[%s16484_s1 + $0x1200] sm:$0x11] }
 0x20b   : > { %1561 = vperm.xlu0 %11590, %v1206_v52   ;;  %v11975_v52 = vld [vmem:[%s16484_s1 + $0x3c0] ss:$36 sps:$4 sm:$0xff]  }
 0x20c   : > { %1566 = vperm.xlu1 %11591, %v1207_v53   ;;  %v9749_v53 = vcombine.high %v1145_v47, %v1145_v47 }
 0x20f   : > { %1481 = vperm.xlu0 %11590, %v1190_v55   ;;  %v1234_v55 = vld [vmem:[%s16485_s2 + $0x2a0] sm:$0xff] }
 0x210   : > { %5508 = vmatmul.mubr.bf16.gmra.mrb[220].mxu1 %v11926_v22  ;;  %1486 = vperm.xlu1 %11591, %v1191_v56   ;;  %v1212_v22 = vld [vmem:[%s16485_s2 + $0x1f0] sm:$0xff]  ;;  %v1235_v56 = vld [vmem:[%s16485_s2 + $0x2a8] sm:$0xff] }
 0x211   : > { %6764 = vmatmul.mubr.bf16.gmra.mrb[20].mxu0 %v11927_v25  ;;  %5515 = vmatprep.mubr.bf16.mxu1 %v11928_v26  ;;  %v1196_v25 = vld [vmem:[%s16485_s2 + $0x170] sm:$0xff]  ;;  %v1197_v26 = vld [vmem:[%s16485_s2 + $0x178] sm:$0xff] }
 0x212   : > { %6771 = vmatprep.mubr.bf16.mxu0 %v11930_v28  ;;  %v11963_v28 = vld [vmem:[%s16484_s1 + $0x330] ss:$36 sps:$4 sm:$0xff]  }
 0x213   : > { %1571 = vperm.xlu0 %11590, %v1208_v62   ;;  %v1218_v62 = vld [vmem:[%s16485_s2 + $0x220] sm:$0xff] }
 0x214   : > { %1576 = vperm.xlu1 %11591, %v1209_v63   ;;  %v1219_v63 = vld [vmem:[%s16485_s2 + $0x228] sm:$0xff] }
 0x217   : > { %1491 = vperm.xlu0 %11590, %v1192_v3   ;;  %v11980_v3 = vld [vmem:[%s16484_s1 + $0x408] ss:$36 sps:$4 sm:$0xff]  }
 0x218   : > { %5516 = vmatmul.mubr.bf16.gmra.mrb[224].mxu1 %v11932_v32  ;;  %1496 = vperm.xlu1 %11591, %v1193_v4   ;;  %v1230_v32 = vld [vmem:[%s16485_s2 + $0x280] sm:$0xff]  ;;  %v11983_v4 = vld [vmem:[%s16484_s1 + $0xc] ss:$36 sps:$4 sm:$0xff]  }
 0x219   : > { %6772 = vmatmul.mubr.bf16.gmra.mrb[24].mxu0 %v11933_v37  ;;  %5523 = vmatprep.mubr.bf16.mxu1 %v11934_v38  ;;  %v1214_v37 = vld [vmem:[%s16485_s2 + $0x200] sm:$0xff]  ;;  %v1215_v38 = vld [vmem:[%s16485_s2 + $0x208] sm:$0xff] }
 0x21a   : > { %6779 = vmatprep.mubr.bf16.mxu0 %v11936_v40  ;;  %v11969_v40 = vld [vmem:[%s16484_s1 + $0x378] ss:$36 sps:$4 sm:$0xff]  }
 0x21b   : > { %1581 = vperm.xlu0 %11590, %v1210_v9   ;;  %v1237_v9 = vld [vmem:[%s16485_s2 + $0x2b8] sm:$0xff] }
 0x21c   : > { %1586 = vperm.xlu1 %11591, %v1211_v10   ;;  %v11981_v10 = vld [vmem:[%s16484_s1 + $0x8] ss:$36 sps:$4 sm:$0xff]  }
 0x21f   : > { %1501 = vperm.xlu0 %11590, %v1194_v13   ;;  %v1221_v13 = vld [vmem:[%s16485_s2 + $0x238] sm:$0xff] }
 0x220   : > { %5524 = vmatmul.mubr.bf16.gmra.mrb[228].mxu1 %v11938_v44  ;;  %1506 = vperm.xlu1 %11591, %v1195_v16   ;;  %v1232_v44 = vld [vmem:[%s16485_s2 + $0x290] sm:$0xff] }
 0x221   : > { %6780 = vmatmul.mubr.bf16.gmra.mrb[28].mxu0 %v11939_v48  ;;  %5531 = vmatprep.mubr.bf16.mxu1 %v11940_v49  ;;  %v11974_v48 = vld [vmem:[%s16484_s1 + $0x11b8] ss:$36 sps:$4 sm:$0xff]   ;;  %v1216_v49 = vld [vmem:[%s16485_s2 + $0x210] sm:$0xff] }
 0x222   : > { %6787 = vmatprep.mubr.bf16.mxu0 %v11942_v50  ;;  %v1217_v50 = vld [vmem:[%s16485_s2 + $0x218] sm:$0xff]  ;;  %v11986_v16 = vld [vmem:[%s16484_s1 + $0x450] ss:$36 sps:$4 sm:$0xff]  }
 0x223   : > { %1591 = vperm.xlu0 %11590, %v1212_v22   ;;  %v1239_v22 = vld [vmem:[%s16485_s2 + $0x2c8] sm:$0xff] }
 0x224   : > { %1596 = vperm.xlu1 %11591, %v1213_v23   ;;  %v11991_v23 = vld [vmem:[%s16484_s1 + $0x50] ss:$36 sps:$4 sm:$0xff]  }
 0x227   : > { %1511 = vperm.xlu0 %11590, %v1196_v25   ;;  %v1223_v25 = vld [vmem:[%s16485_s2 + $0x248] sm:$0xff] }
 0x228   : > { %5532 = vmatmul.mubr.bf16.gmra.mrb[232].mxu1 %v11944_v54  ;;  %1516 = vperm.xlu1 %11591, %v1197_v26   ;;  %v11978_v54 = vld [vmem:[%s16484_s1 + $0x40c] ss:$36 sps:$4 sm:$0xff]   ;;  %v11993_v26 = vld [vmem:[%s16484_s1 + $0x9c] ss:$36 sps:$4 sm:$0xff]  }
 0x229   : > { %6788 = vmatmul.mubr.bf16.gmra.mrb[32].mxu0 %v11945_v59  ;;  %5539 = vmatprep.mubr.bf16.mxu1 %v11946_v60 }
 0x22a   : > { %6795 = vmatprep.mubr.bf16.mxu0 %v11948_v61  ;;  %v9748_v61 = vcombine.low %v1145_v47, %v1145_v47  ;;  %v12025_v47 = vld [vmem:[%s16484_s1 + $0x64c] ss:$36 sps:$4 sm:$0xff]  }
 0x22b   : > { %1681 = vperm.xlu0 %11590, %v1230_v32   ;;  %v11998_v32 = vld [vmem:[%s16484_s1 + $0x4e0] ss:$36 sps:$4 sm:$0xff]  }
 0x22c   : > { %1686 = vperm.xlu1 %11591, %v1231_v34   ;;  %v11999_v34 = vld [vmem:[%s16484_s1 + $0xe4] ss:$36 sps:$4 sm:$0xff]  }
 0x22f   : > { %1601 = vperm.xlu0 %11590, %v1214_v37   ;;  %v12004_v37 = vld [vmem:[%s16484_s1 + $0x528] ss:$36 sps:$4 sm:$0xff]  }
 0x230   : > { %5540 = vmatmul.mubr.bf16.gmra.mrb[236].mxu1 %v11950_v2  ;;  %1606 = vperm.xlu1 %11591, %v1215_v38   ;;  %v12007_v38 = vld [vmem:[%s16484_s1 + $0x574] ss:$36 sps:$4 sm:$0xff]  }
 0x231   : > { %6796 = vmatmul.mubr.bf16.gmra.mrb[36].mxu0 %v11951_v5  ;;  %5547 = vmatprep.mubr.bf16.mxu1 %v11952_v6  ;;  %v11984_v6 = vld [vmem:[%s16484_s1 + $0x454] ss:$36 sps:$4 sm:$0xff]  }
 0x232   : > { %6803 = vmatprep.mubr.bf16.mxu0 %v11954_v7  ;;  %v1236_v7 = vld [vmem:[%s16485_s2 + $0x2b0] sm:$0xff] }
 0x233   : > { %1691 = vperm.xlu0 %11590, %v1232_v44   ;;  %v12019_v44 = vld [vmem:[%s16484_s1 + $0x604] ss:$36 sps:$4 sm:$0xff]  }
 0x234   : > { %1696 = vperm.xlu1 %11591, %v1233_v45   ;;  %v12022_v45 = vld [vmem:[%s16484_s1 + $0x600] ss:$36 sps:$4 sm:$0xff]  }
 0x237   : > { %1611 = vperm.xlu0 %11590, %v1216_v49   ;;  %v12031_v49 = vld [vmem:[%s16484_s1 + $0x694] ss:$36 sps:$4 sm:$0xff]  }
 0x238   : > { %5548 = vmatmul.mubr.bf16.gmra.mrb[240].mxu1 %v11956_v12  ;;  %1616 = vperm.xlu1 %11591, %v1217_v50   ;;  %v1220_v12 = vld [vmem:[%s16485_s2 + $0x230] sm:$0xff] }
 0x239   : > { %6804 = vmatmul.mubr.bf16.gmra.mrb[40].mxu0 %v11957_v17  ;;  %5555 = vmatprep.mubr.bf16.mxu1 %v11958_v18  ;;  %v11987_v17 = vld [vmem:[%s16484_s1 + $0x54] ss:$36 sps:$4 sm:$0xff]   ;;  %v11989_v18 = vld [vmem:[%s16484_s1 + $0x49c] ss:$36 sps:$4 sm:$0xff]  }
 0x23a   : > { %6811 = vmatprep.mubr.bf16.mxu0 %v11960_v19  ;;  %v1238_v19 = vld [vmem:[%s16485_s2 + $0x2c0] sm:$0xff]  ;;  %v12034_v50 = vld [vmem:[%s16484_s1 + $0x690] ss:$36 sps:$4 sm:$0xff]  }
 0x23b   : > { %1701 = vperm.xlu0 %11590, %v1234_v55   ;;  %v12046_v55 = vld [vmem:[%s16484_s1 + $0x720] ss:$36 sps:$4 sm:$0xff]  }
 0x23c   : > { %1706 = vperm.xlu1 %11591, %v1235_v56   ;;  %v12047_v56 = vld [vmem:[%s16484_s1 + $0x324] ss:$36 sps:$4 sm:$0xff]  }
 0x23f   : > { %1621 = vperm.xlu0 %11590, %v1218_v62   ;;  %v12052_v62 = vld [vmem:[%s16484_s1 + $0x768] ss:$36 sps:$4 sm:$0xff]  }
 0x240   : > { %5556 = vmatmul.mubr.bf16.gmra.mrb[244].mxu1 %v11962_v24  ;;  %1626 = vperm.xlu1 %11591, %v1219_v63   ;;  %v1222_v24 = vld [vmem:[%s16485_s2 + $0x240] sm:$0xff]  ;;  %v12053_v63 = vld [vmem:[%s16484_s1 + $0x36c] ss:$36 sps:$4 sm:$0xff]  }
 0x241   : > { %6812 = vmatmul.mubr.bf16.gmra.mrb[44].mxu0 %v11963_v28  ;;  %5563 = vmatprep.mubr.bf16.mxu1 %v11964_v30  ;;  %v11995_v28 = vld [vmem:[%s16484_s1 + $0x4e4] ss:$36 sps:$4 sm:$0xff]   ;;  %v1224_v30 = vld [vmem:[%s16485_s2 + $0x250] sm:$0xff] }
 0x242   : > { %6819 = vmatprep.mubr.bf16.mxu0 %v11966_v31  ;;  %v1225_v31 = vld [vmem:[%s16485_s2 + $0x258] sm:$0xff] }
 0x243   : > { %1711 = vperm.xlu0 %11590, %v1236_v7   ;;  %v12061_v7 = vld [vmem:[%s16484_s1 + $0x7fc] ss:$36 sps:$4 sm:$0xff]  }
 0x244   : > { %1716 = vperm.xlu1 %11591, %v1237_v9   ;;  %v12063_v9 = vld [vmem:[%s16484_s1 + $0x3b0] ss:$36 sps:$4 sm:$0xff]  }
 0x247   : > { %1631 = vperm.xlu0 %11590, %v1220_v12   ;;  %v12065_v12 = vld [vmem:[%s16484_s1 + $0x3fc] ss:$36 sps:$4 sm:$0xff]  }
 0x248   : > { %5564 = vmatmul.mubr.bf16.gmra.mrb[248].mxu1 %v11968_v35  ;;  %1636 = vperm.xlu1 %11591, %v1221_v13   ;;  %v12003_v35 = vld [vmem:[%s16484_s1 + $0xe0] ss:$36 sps:$4 sm:$0xff]  }
 0x249   : > { %6820 = vmatmul.mubr.bf16.gmra.mrb[48].mxu0 %v11969_v40  ;;  %5571 = vmatprep.mubr.bf16.mxu1 %v11970_v41  ;;  %v12010_v40 = vld [vmem:[%s16484_s1 + $0x570] ss:$36 sps:$4 sm:$0xff]   ;;  %v12013_v41 = vld [vmem:[%s16484_s1 + $0x5bc] ss:$36 sps:$4 sm:$0xff]   ;;  %v12067_v13 = vld [vmem:[%s16484_s1 + $0x844] ss:$36 sps:$4 sm:$0xff]  }
 0x24a   : > { %6827 = vmatprep.mubr.bf16.mxu0 %v11972_v43  ;;  %v12016_v43 = vld [vmem:[%s16484_s1 + $0x5b8] ss:$36 sps:$4 sm:$0xff]  }
 0x24b   : > { %1721 = vperm.xlu0 %11590, %v1238_v19   ;;  %v12073_v19 = vld [vmem:[%s16484_s1 + $0x88c] ss:$36 sps:$4 sm:$0xff]  }
 0x24c   : > { %1726 = vperm.xlu1 %11591, %v1239_v22   ;;  %v12075_v22 = vld [vmem:[%s16484_s1 + $0x440] ss:$36 sps:$4 sm:$0xff]  }
 0x24f   : > { %1641 = vperm.xlu0 %11590, %v1222_v24   ;;  %v12077_v24 = vld [vmem:[%s16484_s1 + $0x48c] ss:$36 sps:$4 sm:$0xff]  }
 0x250   : > { %5572 = vmatmul.mubr.bf16.gmra.mrb[252].mxu1 %v11974_v48  ;;  %1646 = vperm.xlu1 %11591, %v1223_v25   ;;  %v12028_v48 = vld [vmem:[%s16484_s1 + $0x648] ss:$36 sps:$4 sm:$0xff]   ;;  %v12079_v25 = vld [vmem:[%s16484_s1 + $0x8d4] ss:$36 sps:$4 sm:$0xff]  }
 0x251   : > { %6828 = vmatmul.mubr.bf16.gmra.mrb[52].mxu0 %v11975_v52  ;;  %5579 = vmatprep.mubr.bf16.mxu1 %v9749_v53  ;;  %v12037_v52 = vld [vmem:[%s16484_s1 + $0x6dc] ss:$36 sps:$4 sm:$0xff]  }
 0x252   : > { %6835 = vmatprep.mubr.bf16.mxu0 %v11978_v54  ;;  %v12041_v53 = vld [vmem:[%s16484_s1 + $0x2dc] ss:$36 sps:$4 sm:$0xff]  }
 0x253   : > { %v13866_v59 = vpop.f32.mrb[148].mxu1  ;;  %1651 = vperm.xlu0 %11590, %v1224_v30   ;;  %v12045_v54 = vld [vmem:[%s16484_s1 + $0x2d8] ss:$36 sps:$4 sm:$0xff]  }
 0x254   : > { %v5367_v60 = vpop.f32.mrb[149].mxu1  ;;  %1656 = vperm.xlu1 %11591, %v1225_v31   ;;  %v12085_v30 = vld [vmem:[%s16484_s1 + $0x91c] ss:$36 sps:$4 sm:$0xff]   ;;  %v12087_v31 = vld [vmem:[%s16484_s1 + $0x4d0] ss:$36 sps:$4 sm:$0xff]  }
 0x255   : > { %v13874_v2 = vpop.f32.mrb[150].mxu1  ;;  %v12049_v60 = vld [vmem:[%s16484_s1 + $0x76c] ss:$36 sps:$4 sm:$0xff]  }
 0x256   : > { %v5370_v5 = vpop.f32.mrb[151].mxu1 }
 0x257   : > { %v12058_v5 = vld [vmem:[%s16484_s1 + $0x7b0] ss:$36 sps:$4 sm:$0xff]  }
 0x258   : > { %5580 = vmatmul.mubr.bf16.gmra.mrb[148].mxu1 %v9748_v61  ;;  %v12051_v61 = vld [vmem:[%s16484_s1 + $0x320] ss:$36 sps:$4 sm:$0xff]  }
 0x259   : > { %6836 = vmatmul.mubr.bf16.gmra.mrb[56].mxu0 %v11980_v3  ;;  %5619 = vmatprep.mubr.bf16.mxu1 %v11983_v4  ;;  %v12055_v3 = vld [vmem:[%s16484_s1 + $0x7b4] ss:$36 sps:$4 sm:$0xff]   ;;  %v12057_v4 = vld [vmem:[%s16484_s1 + $0x368] ss:$36 sps:$4 sm:$0xff]  }
 0x25a   : > { %6843 = vmatprep.mubr.bf16.mxu0 %v11984_v6  ;;  %v12059_v6 = vld [vmem:[%s16484_s1 + $0x3b4] ss:$36 sps:$4 sm:$0xff]  }
 0x260   : > { %5620 = vmatmul.mubr.bf16.vlgmr.msra.gmra.mrb[0].mxu1 %v11981_v10  ;;  %v12064_v10 = vld [vmem:[%s16484_s1 + $0x7f8] ss:$36 sps:$4 sm:$0xff]  }
 0x261   : > { %6844 = vmatmul.mubr.bf16.gmra.mrb[60].mxu0 %v11986_v16  ;;  %5627 = vmatprep.mubr.bf16.mxu1 %v11987_v17  ;;  %v12069_v16 = vld [vmem:[%s16484_s1 + $0x3f8] ss:$36 sps:$4 sm:$0xff]   ;;  %v12070_v17 = vld [vmem:[%s16484_s1 + $0x840] ss:$36 sps:$4 sm:$0xff]  }
 0x262   : > { %6851 = vmatprep.mubr.bf16.mxu0 %v11989_v18  ;;  %10508 = vmatpush1.bf16.msra.mxu1 %v12640_v11  ;;  %v11992_v11 = vld [vmem:[%s16484_s1 + $0x498] ss:$36 sps:$4 sm:$0xff]   ;;  %v12071_v18 = vld [vmem:[%s16484_s1 + $0x444] ss:$36 sps:$4 sm:$0xff]  }
 0x263   : > { %10493 = vmatprep.subr.bf16.mxu1 %v12548_v1 }
 0x266   : > { %10509 = vmatpush1.bf16.msra.mxu1 %v12646_v15  ;;  %v11997_v15 = vld [vmem:[%s16484_s1 + $0x98] ss:$36 sps:$4 sm:$0xff]  }
 0x267   : > { %10494 = vmatprep.subr.bf16.mxu1 %v12548_v1 }
 0x268   : > { %5628 = vmatmul.mubr.bf16.gmra.mrb[4].mxu1 %v11991_v23  ;;  %v12076_v23 = vld [vmem:[%s16484_s1 + $0x888] ss:$36 sps:$4 sm:$0xff]  }
 0x269   : > { %6852 = vmatmul.mubr.bf16.gmra.mrb[64].mxu0 %v11992_v11  ;;  %5635 = vmatprep.mubr.bf16.mxu1 %v11993_v26  ;;  %v12081_v11 = vld [vmem:[%s16484_s1 + $0x488] ss:$36 sps:$4 sm:$0xff]   ;;  %v12082_v26 = vld [vmem:[%s16484_s1 + $0x8d0] ss:$36 sps:$4 sm:$0xff]  }
 0x26a   : > { %6859 = vmatprep.mubr.bf16.mxu0 %v11995_v28  ;;  %10510 = vmatpush1.bf16.msra.mxu1 %v12655_v21  ;;  %v12001_v21 = vld [vmem:[%s16484_s1 + $0x52c] ss:$36 sps:$4 sm:$0xff]   ;;  %v12083_v28 = vld [vmem:[%s16484_s1 + $0x4d4] ss:$36 sps:$4 sm:$0xff]  }
 0x26b   : > { %10495 = vmatprep.subr.bf16.mxu1 %v12548_v1 }
 0x26e   : > { %10511 = vmatpush1.bf16.msra.mxu1 %v12664_v27  ;;  %v12005_v27 = vld [vmem:[%s16484_s1 + $0x12c] ss:$36 sps:$4 sm:$0xff]  }
 0x26f   : > { %10496 = vmatprep.subr.bf16.mxu1 %v12548_v1 }
 0x270   : > { %5636 = vmatmul.mubr.bf16.gmra.mrb[8].mxu1 %v11997_v15  ;;  %v12088_v15 = vld [vmem:[%s16484_s1 + $0x918] ss:$36 sps:$4 sm:$0xff]  }
 0x271   : > { %6860 = vmatmul.mubr.bf16.gmra.mrb[68].mxu0 %v11998_v32  ;;  %5643 = vmatprep.mubr.bf16.mxu1 %v11999_v34  ;;  %v12089_v32 = vld [vmem:[%s16484_s1 + $0x51c] ss:$36 sps:$4 sm:$0xff]   ;;  %v12091_v34 = vld [vmem:[%s16484_s1 + $0x964] ss:$36 sps:$4 sm:$0xff]  }
 0x272   : > { %6867 = vmatprep.mubr.bf16.mxu0 %v12001_v21  ;;  %10512 = vmatpush1.bf16.msra.mxu1 %v12673_v33  ;;  %v12009_v33 = vld [vmem:[%s16484_s1 + $0x128] ss:$36 sps:$4 sm:$0xff]   ;;  %v12093_v21 = vld [vmem:[%s16484_s1 + $0x518] ss:$36 sps:$4 sm:$0xff]  }
 0x273   : > { %10497 = vmatprep.subr.bf16.mxu1 %v12548_v1 }
 0x276   : > { %10513 = vmatpush1.bf16.msra.mxu1 %v12682_v39  ;;  %v12011_v39 = vld [vmem:[%s16484_s1 + $0x174] ss:$36 sps:$4 sm:$0xff]  }
 0x277   : > { %10498 = vmatprep.subr.bf16.mxu1 %v12548_v1 }
 0x278   : > { %5644 = vmatmul.mubr.bf16.gmra.mrb[12].mxu1 %v12003_v35  ;;  %v12094_v35 = vld [vmem:[%s16484_s1 + $0x960] ss:$36 sps:$4 sm:$0xff]  }
 0x279   : > { %6868 = vmatmul.mubr.bf16.gmra.mrb[72].mxu0 %v12004_v37  ;;  %5651 = vmatprep.mubr.bf16.mxu1 %v12005_v27  ;;  %v12095_v37 = vld [vmem:[%s16484_s1 + $0x564] ss:$36 sps:$4 sm:$0xff]   ;;  %v12097_v27 = vld [vmem:[%s16484_s1 + $0x9ac] ss:$36 sps:$4 sm:$0xff]  }
 0x27a   : > { %6875 = vmatprep.mubr.bf16.mxu0 %v12007_v38  ;;  %10514 = vmatpush1.bf16.msra.mxu1 %v12692_v46  ;;  %v12015_v46 = vld [vmem:[%s16484_s1 + $0x170] ss:$36 sps:$4 sm:$0xff]   ;;  %v12099_v38 = vld [vmem:[%s16484_s1 + $0x560] ss:$36 sps:$4 sm:$0xff]  }
 0x27b   : > { %10499 = vmatprep.subr.bf16.mxu1 %v12548_v1 }
 0x27e   : > { %10515 = vmatpush1.bf16.msra.mxu1 %v12700_v51  ;;  %v12017_v51 = vld [vmem:[%s16484_s1 + $0x1bc] ss:$36 sps:$4 sm:$0xff]  }
 0x27f   : > { %10500 = vmatprep.subr.bf16.mxu1 %v12548_v1 }
 0x280   : > { %5652 = vmatmul.mubr.bf16.gmra.mrb[16].mxu1 %v12009_v33  ;;  %v12100_v33 = vld [vmem:[%s16484_s1 + $0x9a8] ss:$36 sps:$4 sm:$0xff]  }
 0x281   : > { %6876 = vmatmul.mubr.bf16.gmra.mrb[76].mxu0 %v12010_v40  ;;  %5659 = vmatprep.mubr.bf16.mxu1 %v12011_v39  ;;  %v12101_v40 = vld [vmem:[%s16484_s1 + $0x5ac] ss:$36 sps:$4 sm:$0xff]   ;;  %v12103_v39 = vld [vmem:[%s16484_s1 + $0x9f4] ss:$36 sps:$4 sm:$0xff]  }
 0x282   : > { %6883 = vmatprep.mubr.bf16.mxu0 %v12013_v41  ;;  %10516 = vmatpush1.bf16.msra.mxu1 %v12710_v58  ;;  %v12021_v58 = vld [vmem:[%s16484_s1 + $0x1b8] ss:$36 sps:$4 sm:$0xff]   ;;  %v12105_v41 = vld [vmem:[%s16484_s1 + $0x5a8] ss:$36 sps:$4 sm:$0xff]  }
 0x283   : > { %10501 = vmatprep.subr.bf16.mxu1 %v12548_v1 }
 0x286   : > { %10517 = vmatpush1.bf16.msra.mxu1 %v12719_v0  ;;  %v12023_v0 = vld [vmem:[%s16484_s1 + $0x204] ss:$36 sps:$4 sm:$0xff]  }
 0x287   : > { %10502 = vmatprep.subr.bf16.mxu1 %v12548_v1 }
 0x288   : > { %5660 = vmatmul.mubr.bf16.gmra.mrb[20].mxu1 %v12015_v46  ;;  %v12106_v46 = vld [vmem:[%s16484_s1 + $0x9f0] ss:$36 sps:$4 sm:$0xff]  }
 0x289   : > { %6884 = vmatmul.mubr.bf16.gmra.mrb[80].mxu0 %v12016_v43  ;;  %5667 = vmatprep.mubr.bf16.mxu1 %v12017_v51  ;;  %v12107_v43 = vld [vmem:[%s16484_s1 + $0x5f4] ss:$36 sps:$4 sm:$0xff]   ;;  %v12109_v51 = vld [vmem:[%s16484_s1 + $0xa3c] ss:$36 sps:$4 sm:$0xff]  }
 0x28a   : > { %6891 = vmatprep.mubr.bf16.mxu0 %v12019_v44  ;;  %10518 = vmatpush1.bf16.msra.mxu1 %v12729_v8  ;;  %v12027_v8 = vld [vmem:[%s16484_s1 + $0x200] ss:$36 sps:$4 sm:$0xff]   ;;  %v12111_v44 = vld [vmem:[%s16484_s1 + $0x5f0] ss:$36 sps:$4 sm:$0xff]  }
 0x28b   : > { %10503 = vmatprep.subr.bf16.mxu1 %v12548_v1 }
 0x28e   : > { %10519 = vmatpush1.bf16.msra.mxu1 %v12737_v14  ;;  %v12029_v14 = vld [vmem:[%s16484_s1 + $0x24c] ss:$36 sps:$4 sm:$0xff]  }
 0x28f   : > { %10504 = vmatprep.subr.bf16.mxu1 %v12548_v1 }
 0x290   : > { %5668 = vmatmul.mubr.bf16.gmra.mrb[24].mxu1 %v12021_v58  ;;  %v12112_v58 = vld [vmem:[%s16484_s1 + $0xa38] ss:$36 sps:$4 sm:$0xff]  }
 0x291   : > { %6892 = vmatmul.mubr.bf16.gmra.mrb[84].mxu0 %v12022_v45  ;;  %5675 = vmatprep.mubr.bf16.mxu1 %v12023_v0  ;;  %v12113_v45 = vld [vmem:[%s16484_s1 + $0x63c] ss:$36 sps:$4 sm:$0xff]   ;;  %v12115_v0 = vld [vmem:[%s16484_s1 + $0xa84] ss:$36 sps:$4 sm:$0xff]  }
 0x292   : > { %6899 = vmatprep.mubr.bf16.mxu0 %v12025_v47  ;;  %10520 = vmatpush1.bf16.msra.mxu1 %v12745_v20  ;;  %v12033_v20 = vld [vmem:[%s16484_s1 + $0x248] ss:$36 sps:$4 sm:$0xff]   ;;  %v12117_v47 = vld [vmem:[%s16484_s1 + $0x638] ss:$36 sps:$4 sm:$0xff]  }
 0x293   : > { %10505 = vmatprep.subr.bf16.mxu1 %v12548_v1 }
 0x296   : > { %10521 = vmatpush1.bf16.msra.mxu1 %v12755_v29  ;;  %v12035_v29 = vld [vmem:[%s16484_s1 + $0x294] ss:$36 sps:$4 sm:$0xff]  }
 0x297   : > { %10506 = vmatprep.subr.bf16.mxu1 %v12548_v1 }
 0x298   : > { %5676 = vmatmul.mubr.bf16.gmra.mrb[28].mxu1 %v12027_v8  ;;  %v12118_v8 = vld [vmem:[%s16484_s1 + $0xa80] ss:$36 sps:$4 sm:$0xff]  }
 0x299   : > { %6900 = vmatmul.mubr.bf16.gmra.mrb[88].mxu0 %v12028_v48  ;;  %5683 = vmatprep.mubr.bf16.mxu1 %v12029_v14  ;;  %v12119_v48 = vld [vmem:[%s16484_s1 + $0x684] ss:$36 sps:$4 sm:$0xff]   ;;  %v12121_v14 = vld [vmem:[%s16484_s1 + $0xacc] ss:$36 sps:$4 sm:$0xff]  }
 0x29a   : > { %6907 = vmatprep.mubr.bf16.mxu0 %v12031_v49  ;;  %10522 = vmatpush1.bf16.msra.mxu1 %v12764_v36  ;;  %v12040_v36 = vld [vmem:[%s16484_s1 + $0x6d8] ss:$36 sps:$4 sm:$0xff]   ;;  %v12123_v49 = vld [vmem:[%s16484_s1 + $0x680] ss:$36 sps:$4 sm:$0xff]  }
 0x29b   : > { %10507 = vmatprep.subr.bf16.mxu1 %v12548_v1  ;;  %v12039_v1 = vld [vmem:[%s16484_s1 + $0x290] ss:$36 sps:$4 sm:$0xff]  }
 0x29e   : > { %10523 = vmatpush1.bf16.msra.mxu1 %v12772_v42  ;;  %v12043_v42 = vld [vmem:[%s16484_s1 + $0x724] ss:$36 sps:$4 sm:$0xff]  }
 0x2a0   : > { %5684 = vmatmul.mubr.bf16.gmra.mrb[32].mxu1 %v12033_v20  ;;  %v12124_v20 = vld [vmem:[%s16484_s1 + $0xac8] ss:$36 sps:$4 sm:$0xff]  }
 0x2a1   : > { %6908 = vmatmul.mubr.bf16.gmra.mrb[92].mxu0 %v12034_v50  ;;  %5691 = vmatprep.mubr.bf16.mxu1 %v12035_v29  ;;  %v12125_v50 = vld [vmem:[%s16484_s1 + $0x6cc] ss:$36 sps:$4 sm:$0xff]   ;;  %v12127_v29 = vld [vmem:[%s16484_s1 + $0xb14] ss:$36 sps:$4 sm:$0xff]  }
 0x2a2   : > { %6915 = vmatprep.mubr.bf16.mxu0 %v12037_v52  ;;  %v12129_v52 = vld [vmem:[%s16484_s1 + $0x6c8] ss:$36 sps:$4 sm:$0xff]  }
 0x2a8   : > { %5692 = vmatmul.mubr.bf16.gmra.mrb[36].mxu1 %v12039_v1  ;;  %v12130_v1 = vld [vmem:[%s16484_s1 + $0xb10] ss:$36 sps:$4 sm:$0xff]  }
 0x2a9   : > { %6916 = vmatmul.mubr.bf16.gmra.mrb[96].mxu0 %v12040_v36  ;;  %5699 = vmatprep.mubr.bf16.mxu1 %v12041_v53  ;;  %v12131_v36 = vld [vmem:[%s16484_s1 + $0x714] ss:$36 sps:$4 sm:$0xff]   ;;  %v12133_v53 = vld [vmem:[%s16484_s1 + $0xb5c] ss:$36 sps:$4 sm:$0xff]  }
 0x2aa   : > { %6923 = vmatprep.mubr.bf16.mxu0 %v12043_v42  ;;  %v12135_v42 = vld [vmem:[%s16484_s1 + $0x710] ss:$36 sps:$4 sm:$0xff]  }
 0x2b0   : > { %5700 = vmatmul.mubr.bf16.gmra.mrb[40].mxu1 %v12045_v54  ;;  %v12136_v54 = vld [vmem:[%s16484_s1 + $0xb58] ss:$36 sps:$4 sm:$0xff]  }
 0x2b1   : > { %6924 = vmatmul.mubr.bf16.gmra.mrb[100].mxu0 %v12046_v55  ;;  %5707 = vmatprep.mubr.bf16.mxu1 %v12047_v56  ;;  %v12137_v55 = vld [vmem:[%s16484_s1 + $0x75c] ss:$36 sps:$4 sm:$0xff]   ;;  %v12139_v56 = vld [vmem:[%s16484_s1 + $0xba4] ss:$36 sps:$4 sm:$0xff]  }
 0x2b2   : > { %6931 = vmatprep.mubr.bf16.mxu0 %v12049_v60  ;;  %v12141_v60 = vld [vmem:[%s16484_s1 + $0x758] ss:$36 sps:$4 sm:$0xff]  }
 0x2b8   : > { %5708 = vmatmul.mubr.bf16.gmra.mrb[44].mxu1 %v12051_v61  ;;  %v12142_v61 = vld [vmem:[%s16484_s1 + $0xba0] ss:$36 sps:$4 sm:$0xff]  }
 0x2b9   : > { %6932 = vmatmul.mubr.bf16.gmra.mrb[104].mxu0 %v12052_v62  ;;  %5715 = vmatprep.mubr.bf16.mxu1 %v12053_v63  ;;  %v12143_v62 = vld [vmem:[%s16484_s1 + $0x7a4] ss:$36 sps:$4 sm:$0xff]   ;;  %v12145_v63 = vld [vmem:[%s16484_s1 + $0xbec] ss:$36 sps:$4 sm:$0xff]  }
 0x2ba   : > { %6939 = vmatprep.mubr.bf16.mxu0 %v12055_v3 }
 0x2c0   : > { %5716 = vmatmul.mubr.bf16.gmra.mrb[48].mxu1 %v12057_v4 }
 0x2c1   : > { %6940 = vmatmul.mubr.bf16.gmra.mrb[108].mxu0 %v12058_v5  ;;  %5723 = vmatprep.mubr.bf16.mxu1 %v12059_v6  ;;  %v12147_v5 = vld [vmem:[%s16484_s1 + $0x7a0] ss:$36 sps:$4 sm:$0xff]  }
 0x2c2   : > { %6947 = vmatprep.mubr.bf16.mxu0 %v12061_v7  ;;  %v12148_v7 = vld [vmem:[%s16484_s1 + $0xbe8] ss:$36 sps:$4 sm:$0xff]  }
 0x2c8   : > { %5724 = vmatmul.mubr.bf16.gmra.mrb[52].mxu1 %v12063_v9  ;;  %v12149_v9 = vld [vmem:[%s16484_s1 + $0x7ec] ss:$36 sps:$4 sm:$0xff]  }
 0x2c9   : > { %6948 = vmatmul.mubr.bf16.gmra.mrb[112].mxu0 %v12064_v10  ;;  %5731 = vmatprep.mubr.bf16.mxu1 %v12065_v12  ;;  %v12151_v12 = vld [vmem:[%s16484_s1 + $0xc34] ss:$36 sps:$4 sm:$0xff]  }
 0x2ca   : > { %6955 = vmatprep.mubr.bf16.mxu0 %v12067_v13 }
 0x2d0   : > { %5732 = vmatmul.mubr.bf16.gmra.mrb[56].mxu1 %v12069_v16 }
 0x2d1   : > { %6956 = vmatmul.mubr.bf16.gmra.mrb[116].mxu0 %v12070_v17  ;;  %5739 = vmatprep.mubr.bf16.mxu1 %v12071_v18  ;;  %v12153_v17 = vld [vmem:[%s16484_s1 + $0x7e8] ss:$36 sps:$4 sm:$0xff]  }
 0x2d2   : > { %6963 = vmatprep.mubr.bf16.mxu0 %v12073_v19  ;;  %v12154_v19 = vld [vmem:[%s16484_s1 + $0xc30] ss:$36 sps:$4 sm:$0xff]  }
 0x2d8   : > { %5740 = vmatmul.mubr.bf16.gmra.mrb[60].mxu1 %v12075_v22  ;;  %v12155_v22 = vld [vmem:[%s16484_s1 + $0x834] ss:$36 sps:$4 sm:$0xff]  }
 0x2d9   : > { %6964 = vmatmul.mubr.bf16.gmra.mrb[120].mxu0 %v12076_v23  ;;  %5747 = vmatprep.mubr.bf16.mxu1 %v12077_v24  ;;  %v12157_v24 = vld [vmem:[%s16484_s1 + $0xc7c] ss:$36 sps:$4 sm:$0xff]  }
 0x2da   : > { %6971 = vmatprep.mubr.bf16.mxu0 %v12079_v25 }
 0x2e0   : > { %5748 = vmatmul.mubr.bf16.gmra.mrb[64].mxu1 %v12081_v11 }
 0x2e1   : > { %6972 = vmatmul.mubr.bf16.gmra.mrb[124].mxu0 %v12082_v26  ;;  %5755 = vmatprep.mubr.bf16.mxu1 %v12083_v28  ;;  %v12159_v26 = vld [vmem:[%s16484_s1 + $0x830] ss:$36 sps:$4 sm:$0xff]  }
 0x2e2   : > { %6979 = vmatprep.mubr.bf16.mxu0 %v12085_v30  ;;  %v12160_v30 = vld [vmem:[%s16484_s1 + $0xc78] ss:$36 sps:$4 sm:$0xff]  }
 0x2e8   : > { %5756 = vmatmul.mubr.bf16.gmra.mrb[68].mxu1 %v12087_v31  ;;  %v12161_v31 = vld [vmem:[%s16484_s1 + $0x87c] ss:$36 sps:$4 sm:$0xff]  }
 0x2e9   : > { %6980 = vmatmul.mubr.bf16.gmra.mrb[128].mxu0 %v12088_v15  ;;  %5763 = vmatprep.mubr.bf16.mxu1 %v12089_v32  ;;  %v12163_v32 = vld [vmem:[%s16484_s1 + $0xcc4] ss:$36 sps:$4 sm:$0xff]  }
 0x2ea   : > { %6987 = vmatprep.mubr.bf16.mxu0 %v12091_v34 }
 0x2f0   : > { %5764 = vmatmul.mubr.bf16.gmra.mrb[72].mxu1 %v12093_v21 }
 0x2f1   : > { %6988 = vmatmul.mubr.bf16.gmra.mrb[132].mxu0 %v12094_v35  ;;  %5771 = vmatprep.mubr.bf16.mxu1 %v12095_v37  ;;  %v12165_v35 = vld [vmem:[%s16484_s1 + $0x878] ss:$36 sps:$4 sm:$0xff]  }
 0x2f2   : > { %6995 = vmatprep.mubr.bf16.mxu0 %v12097_v27  ;;  %v12166_v27 = vld [vmem:[%s16484_s1 + $0xcc0] ss:$36 sps:$4 sm:$0xff]  }
 0x2f8   : > { %5772 = vmatmul.mubr.bf16.gmra.mrb[76].mxu1 %v12099_v38  ;;  %v12167_v38 = vld [vmem:[%s16484_s1 + $0x8c4] ss:$36 sps:$4 sm:$0xff]  }
 0x2f9   : > { %6996 = vmatmul.mubr.bf16.gmra.mrb[136].mxu0 %v12100_v33  ;;  %5779 = vmatprep.mubr.bf16.mxu1 %v12101_v40  ;;  %v12169_v40 = vld [vmem:[%s16484_s1 + $0xd0c] ss:$36 sps:$4 sm:$0xff]  }
 0x2fa   : > { %7003 = vmatprep.mubr.bf16.mxu0 %v12103_v39 }
 0x300   : > { %5780 = vmatmul.mubr.bf16.gmra.mrb[80].mxu1 %v12105_v41 }
 0x301   : > { %7004 = vmatmul.mubr.bf16.gmra.mrb[140].mxu0 %v12106_v46  ;;  %5787 = vmatprep.mubr.bf16.mxu1 %v12107_v43  ;;  %v12171_v46 = vld [vmem:[%s16484_s1 + $0x8c0] ss:$36 sps:$4 sm:$0xff]  }
 0x302   : > { %7011 = vmatprep.mubr.bf16.mxu0 %v12109_v51  ;;  %v12172_v51 = vld [vmem:[%s16484_s1 + $0xd08] ss:$36 sps:$4 sm:$0xff]  }
 0x308   : > { %5788 = vmatmul.mubr.bf16.gmra.mrb[84].mxu1 %v12111_v44  ;;  %v12173_v44 = vld [vmem:[%s16484_s1 + $0x90c] ss:$36 sps:$4 sm:$0xff]  }
 0x309   : > { %7012 = vmatmul.mubr.bf16.gmra.mrb[144].mxu0 %v12112_v58  ;;  %5795 = vmatprep.mubr.bf16.mxu1 %v12113_v45  ;;  %v12175_v45 = vld [vmem:[%s16484_s1 + $0xd54] ss:$36 sps:$4 sm:$0xff]  }
 0x30a   : > { %7019 = vmatprep.mubr.bf16.mxu0 %v12115_v0  ;;  %v14350_v0 = vpop.permute.xlu0 %1361 }
 0x310   : > { %5796 = vmatmul.mubr.bf16.gmra.mrb[88].mxu1 %v12117_v47 }
 0x311   : > { %7020 = vmatmul.mubr.bf16.gmra.mrb[148].mxu0 %v12118_v8  ;;  %5803 = vmatprep.mubr.bf16.mxu1 %v12119_v48  ;;  %v1240_v8 = vld [vmem:[%s16485_s2 + $0x2d0] sm:$0xff] }
 0x312   : > { %7027 = vmatprep.mubr.bf16.mxu0 %v12121_v14  ;;  %v12177_v14 = vld [vmem:[%s16484_s1 + $0x908] ss:$36 sps:$4 sm:$0xff]   ;;  %1731 = vperm.xlu0 %11590, %v1240_v8   ;;  %v12199_v8 = vld [vmem:[%s16484_s1 + $0xe74] ss:$36 sps:$4 sm:$0xff]  }
 0x318   : > { %5804 = vmatmul.mubr.bf16.gmra.mrb[92].mxu1 %v12123_v49  ;;  %v14360_v49 = vpop.permute.xlu1 %1281 }
 0x319   : > { %7028 = vmatmul.mubr.bf16.gmra.mrb[152].mxu0 %v12124_v20  ;;  %5811 = vmatprep.mubr.bf16.mxu1 %v12125_v50  ;;  %v12178_v50 = vld [vmem:[%s16484_s1 + $0xd50] ss:$36 sps:$4 sm:$0xff]  }
 0x31a   : > { %7035 = vmatprep.mubr.bf16.mxu0 %v12127_v29  ;;  %v12179_v29 = vld [vmem:[%s16484_s1 + $0x954] ss:$36 sps:$4 sm:$0xff]  }
 0x320   : > { %5812 = vmatmul.mubr.bf16.gmra.mrb[96].mxu1 %v12129_v52  ;;  %v1241_v52 = vld [vmem:[%s16485_s2 + $0x2d8] sm:$0xff] }
 0x321   : > { %7036 = vmatmul.mubr.bf16.gmra.mrb[156].mxu0 %v12130_v1  ;;  %5819 = vmatprep.mubr.bf16.mxu1 %v12131_v36  ;;  %v12181_v36 = vld [vmem:[%s16484_s1 + $0xd9c] ss:$36 sps:$4 sm:$0xff]  }
 0x322   : > { %7043 = vmatprep.mubr.bf16.mxu0 %v12133_v53  ;;  %1736 = vperm.xlu1 %11591, %v1241_v52   ;;  %v1242_v53 = vld [vmem:[%s16485_s2 + $0x2e0] sm:$0xff]  ;;  %v12201_v52 = vld [vmem:[%s16484_s1 + $0xa28] ss:$36 sps:$4 sm:$0xff]  }
 0x323   : > { %1741 = vperm.xlu0 %11590, %v1242_v53   ;;  %v12202_v53 = vld [vmem:[%s16484_s1 + $0xe70] ss:$36 sps:$4 sm:$0xff]  }
 0x328   : > { %5820 = vmatmul.mubr.bf16.gmra.mrb[100].mxu1 %v12135_v42  ;;  %v14379_v42 = vpop.permute.xlu0 %1366 }
 0x329   : > { %7044 = vmatmul.mubr.bf16.gmra.mrb[160].mxu0 %v12136_v54  ;;  %5827 = vmatprep.mubr.bf16.mxu1 %v12137_v55  ;;  %v1243_v54 = vld [vmem:[%s16485_s2 + $0x2e8] sm:$0xff]  ;;  %v14384_v55 = vpop.permute.xlu1 %1286 }
 0x32a   : > { %7051 = vmatprep.mubr.bf16.mxu0 %v12139_v56  ;;  %1746 = vperm.xlu1 %11591, %v1243_v54   ;;  %v12205_v54 = vld [vmem:[%s16484_s1 + $0xa74] ss:$36 sps:$4 sm:$0xff]  }
 0x330   : > { %5828 = vmatmul.mubr.bf16.gmra.mrb[104].mxu1 %v12141_v60 }
 0x331   : > { %7052 = vmatmul.mubr.bf16.gmra.mrb[164].mxu0 %v12142_v61  ;;  %5835 = vmatprep.mubr.bf16.mxu1 %v12143_v62  ;;  %v12183_v61 = vld [vmem:[%s16484_s1 + $0x950] ss:$36 sps:$4 sm:$0xff]   ;;  %v1226_v62 = vld [vmem:[%s16485_s2 + $0x260] sm:$0xff] }
 0x332   : > { %7059 = vmatprep.mubr.bf16.mxu0 %v12145_v63  ;;  %v14394_v63 = vpop.permute.xlu0 %1371  ;;  %1661 = vperm.xlu0 %11590, %v1226_v62  }
 0x333   : > { %v14270_v3 = vpop.f32.mrb[0].mxu1 }
 0x334   : > { %v5623_v4 = vpop.f32.mrb[1].mxu1 }
 0x335   : > { %v14275_v6 = vpop.f32.mrb[2].mxu1 }
 0x336   : > { %v5626_v10 = vpop.f32.mrb[3].mxu1 }
 0x337   : > { %v12187_v10 = vld [vmem:[%s16484_s1 + $0xde4] ss:$36 sps:$4 sm:$0xff]  }
 0x338   : > { %5836 = vmatmul.mubr.bf16.gmra.mrb[108].mxu1 %v12147_v5  ;;  %v12184_v5 = vld [vmem:[%s16484_s1 + $0xd98] ss:$36 sps:$4 sm:$0xff]  }
 0x339   : > { %7060 = vmatmul.mubr.bf16.gmra.mrb[168].mxu0 %v12148_v7  ;;  %5843 = vmatprep.mubr.bf16.mxu1 %v12149_v9  ;;  %v12185_v7 = vld [vmem:[%s16484_s1 + $0x99c] ss:$36 sps:$4 sm:$0xff]  }
 0x33a   : > { %7067 = vmatprep.mubr.bf16.mxu0 %v12151_v12  ;;  %v1227_v12 = vld [vmem:[%s16485_s2 + $0x268] sm:$0xff] }
 0x33b   : > { %v14286_v13 = vpop.f32.mrb[4].mxu1  ;;  %1666 = vperm.xlu1 %11591, %v1227_v12  }
 0x33c   : > { %v5631_v16 = vpop.f32.mrb[5].mxu1 }
 0x33d   : > { %v14291_v18 = vpop.f32.mrb[6].mxu1  ;;  %v1244_v16 = vld [vmem:[%s16485_s2 + $0x2f0] sm:$0xff] }
 0x33e   : > { %v5634_v23 = vpop.f32.mrb[7].mxu1  ;;  %1751 = vperm.xlu0 %11590, %v1244_v16   ;;  %v12208_v16 = vld [vmem:[%s16484_s1 + $0xeb8] ss:$36 sps:$4 sm:$0xff]  }
 0x340   : > { %5844 = vmatmul.mubr.bf16.gmra.mrb[112].mxu1 %v12153_v17  ;;  %v14413_v17 = vpop.permute.xlu1 %1376 }
 0x341   : > { %7068 = vmatmul.mubr.bf16.gmra.mrb[172].mxu0 %v12154_v19  ;;  %5851 = vmatprep.mubr.bf16.mxu1 %v12155_v22  ;;  %v1245_v19 = vld [vmem:[%s16485_s2 + $0x2f8] sm:$0xff]  ;;  %v14418_v22 = vpop.permute.xlu0 %1291 }
 0x342   : > { %7075 = vmatprep.mubr.bf16.mxu0 %v12157_v24  ;;  %1756 = vperm.xlu1 %11591, %v1245_v19   ;;  %v1228_v24 = vld [vmem:[%s16485_s2 + $0x270] sm:$0xff]  ;;  %v12209_v19 = vld [vmem:[%s16484_s1 + $0xabc] ss:$36 sps:$4 sm:$0xff]  }
 0x343   : > { %v14302_v25 = vpop.f32.mrb[8].mxu1  ;;  %1671 = vperm.xlu0 %11590, %v1228_v24  }
 0x344   : > { %v5639_v11 = vpop.f32.mrb[9].mxu1 }
 0x345   : > { %v14307_v28 = vpop.f32.mrb[10].mxu1 }
 0x346   : > { %v5642_v15 = vpop.f32.mrb[11].mxu1 }
 0x347   : > { %v12191_v15 = vld [vmem:[%s16484_s1 + $0x9e4] ss:$36 sps:$4 sm:$0xff]  }
 0x348   : > { %5852 = vmatmul.mubr.bf16.gmra.mrb[116].mxu1 %v12159_v26  ;;  %v12189_v26 = vld [vmem:[%s16484_s1 + $0x998] ss:$36 sps:$4 sm:$0xff]  }
 0x349   : > { %7076 = vmatmul.mubr.bf16.gmra.mrb[176].mxu0 %v12160_v30  ;;  %5859 = vmatprep.mubr.bf16.mxu1 %v12161_v31  ;;  %v12190_v31 = vld [vmem:[%s16484_s1 + $0xde0] ss:$36 sps:$4 sm:$0xff]  }
 0x34a   : > { %7083 = vmatprep.mubr.bf16.mxu0 %v12163_v32  ;;  %v1229_v32 = vld [vmem:[%s16485_s2 + $0x278] sm:$0xff] }
 0x34b   : > { %v14318_v34 = vpop.f32.mrb[12].mxu1  ;;  %1676 = vperm.xlu1 %11591, %v1229_v32  }
 0x34c   : > { %v5647_v21 = vpop.f32.mrb[13].mxu1 }
 0x34d   : > { %v14323_v37 = vpop.f32.mrb[14].mxu1 }
 0x34e   : > { %v5650_v33 = vpop.f32.mrb[15].mxu1 }
 0x350   : > { %5860 = vmatmul.mubr.bf16.gmra.mrb[120].mxu1 %v12165_v35  ;;  %v12193_v35 = vld [vmem:[%s16484_s1 + $0xe2c] ss:$36 sps:$4 sm:$0xff]  }
 0x351   : > { %7084 = vmatmul.mubr.bf16.gmra.mrb[180].mxu0 %v12166_v27  ;;  %5867 = vmatprep.mubr.bf16.mxu1 %v12167_v38  ;;  %v14442_v27 = vpop.permute.xlu1 %1296  ;;  %v14444_v38 = vpop.permute.xlu0 %1381 }
 0x352   : > { %7091 = vmatprep.mubr.bf16.mxu0 %v12169_v40 }
 0x353   : > { %v14334_v39 = vpop.f32.mrb[16].mxu1 }
 0x354   : > { %v5655_v41 = vpop.f32.mrb[17].mxu1 }
 0x355   : > { %v14339_v43 = vpop.f32.mrb[18].mxu1  ;;  %v12195_v41 = vld [vmem:[%s16484_s1 + $0x9e0] ss:$36 sps:$4 sm:$0xff]  }
 0x356   : > { %v5658_v58 = vpop.f32.mrb[19].mxu1 }
 0x357   : > { %v12197_v58 = vld [vmem:[%s16484_s1 + $0xa2c] ss:$36 sps:$4 sm:$0xff]  }
 0x358   : > { %5868 = vmatmul.mubr.bf16.gmra.mrb[124].mxu1 %v12171_v46  ;;  %v14451_v46 = vpop.permute.xlu1 %1386 }
 0x359   : > { %7092 = vmatmul.mubr.bf16.gmra.mrb[184].mxu0 %v12172_v51  ;;  %5875 = vmatprep.mubr.bf16.mxu1 %v12173_v44  ;;  %v12196_v44 = vld [vmem:[%s16484_s1 + $0xe28] ss:$36 sps:$4 sm:$0xff]  }
 0x35a   : > { %7099 = vmatprep.mubr.bf16.mxu0 %v12175_v45 }
 0x35b   : > { %v14352_v47 = vpop.f32.mrb[20].mxu1 }
 0x35c   : > { %v5663_v48 = vpop.f32.mrb[21].mxu1 }
 0x35d   : > { %v14362_v20 = vpop.f32.mrb[22].mxu1  ;;  %v14464_v48 = vpop.permute.xlu0 %1301 }
 0x35e   : > { %v5666_v1 = vpop.f32.mrb[23].mxu1 }
 0x360   : > { %5876 = vmatmul.mubr.bf16.gmra.mrb[128].mxu1 %v12177_v14  ;;  %v14466_v14 = vpop.permute.xlu1 %1306 }
 0x361   : > { %7100 = vmatmul.mubr.bf16.gmra.mrb[188].mxu0 %v12178_v50  ;;  %5883 = vmatprep.mubr.bf16.mxu1 %v12179_v29  ;;  %v14473_v1 = vpop.permute.xlu0 %1391 }
 0x362   : > { %7107 = vmatprep.mubr.bf16.mxu0 %v12181_v36 }
 0x363   : > { %v14386_v56 = vpop.f32.mrb[24].mxu1 }
 0x364   : > { %v5671_v60 = vpop.f32.mrb[25].mxu1  ;;  %v14486_v62 = vpop.permute.xlu1 %1396 }
 0x365   : > { %v14396_v4 = vpop.f32.mrb[26].mxu1  ;;  %16494 = vst [vmem:[#allocation3_spill] sm:$0xff] %v14486_v62 }
 0x366   : > { %v5674_v9 = vpop.f32.mrb[27].mxu1 }
 0x368   : > { %5884 = vmatmul.mubr.bf16.gmra.mrb[132].mxu1 %v12183_v61  ;;  %v12206_v61 = vld [vmem:[%s16484_s1 + $0xebc] ss:$36 sps:$4 sm:$0xff]  }
 0x369   : > { %7108 = vmatmul.mubr.bf16.gmra.mrb[192].mxu0 %v12184_v5  ;;  %5891 = vmatprep.mubr.bf16.mxu1 %v12185_v7  ;;  %v14488_v5 = vpop.permute.xlu0 %1311 }
 0x36a   : > { %7115 = vmatprep.mubr.bf16.mxu0 %v12187_v10  ;;  %v12203_v10 = vld [vmem:[%s16484_s1 + $0xa70] ss:$36 sps:$4 sm:$0xff]  }
 0x36b   : > { %v14420_v23 = vpop.f32.mrb[28].mxu1 }
 0x36c   : > { %v5679_v11 = vpop.f32.mrb[29].mxu1 }
 0x36d   : > { %v14428_v30 = vpop.f32.mrb[30].mxu1  ;;  %v12211_v11 = vld [vmem:[%s16484_s1 + $0xf04] ss:$36 sps:$4 sm:$0xff]  }
 0x36e   : > { %v5682_v21 = vpop.f32.mrb[31].mxu1 }
 0x36f   : > { %v12213_v21 = vld [vmem:[%s16484_s1 + $0xab8] ss:$36 sps:$4 sm:$0xff]  }
 0x370   : > { %5892 = vmatmul.mubr.bf16.gmra.mrb[136].mxu1 %v12189_v26  ;;  %v14506_v26 = vpop.permute.xlu1 %1316 }
 0x371   : > { %7116 = vmatmul.mubr.bf16.gmra.mrb[196].mxu0 %v12190_v31  ;;  %5899 = vmatprep.mubr.bf16.mxu1 %v12191_v15  ;;  %v14508_v31 = vpop.permute.xlu0 %1401 }
 0x372   : > { %7123 = vmatprep.mubr.bf16.mxu0 %v12193_v35  ;;  %16495 = vst [vmem:[#allocation4_spill] sm:$0xff] %v14508_v31 }
 0x373   : > { %v14446_v33 = vpop.f32.mrb[32].mxu1 }
 0x374   : > { %v5687_v40 = vpop.f32.mrb[33].mxu1  ;;  %v14515_v35 = vpop.permute.xlu1 %1406 }
 0x375   : > { %v14453_v51 = vpop.f32.mrb[34].mxu1  ;;  %16496 = vst [vmem:[#allocation5_spill] sm:$0xff] %v14515_v35 }
 0x376   : > { %v5690_v45 = vpop.f32.mrb[35].mxu1 }
 0x377   : > { %v12217_v45 = vld [vmem:[%s16484_s1 + $0xf4c] ss:$36 sps:$4 sm:$0xff]  }
 0x378   : > { %5900 = vmatmul.mubr.bf16.gmra.mrb[140].mxu1 %v12195_v41  ;;  %v12214_v41 = vld [vmem:[%s16484_s1 + $0xf00] ss:$36 sps:$4 sm:$0xff]  }
 0x379   : > { %7124 = vmatmul.mubr.bf16.gmra.mrb[200].mxu0 %v12196_v44  ;;  %5907 = vmatprep.mubr.bf16.mxu1 %v12197_v58  ;;  %v12215_v44 = vld [vmem:[%s16484_s1 + $0xb04] ss:$36 sps:$4 sm:$0xff]  }
 0x37a   : > { %7131 = vmatprep.mubr.bf16.mxu0 %v12199_v8  ;;  %v14528_v8 = vpop.permute.xlu0 %1321 }
 0x37b   : > { %v14468_v50 = vpop.f32.mrb[36].mxu1 }
 0x37c   : > { %v5695_v29 = vpop.f32.mrb[37].mxu1 }
 0x37d   : > { %v14475_v36 = vpop.f32.mrb[38].mxu1  ;;  %v14530_v29 = vpop.permute.xlu1 %1326 }
 0x37e   : > { %v5698_v60 = vpop.f32.mrb[39].mxu1 }
 0x37f   : > { %v14537_v60 = vpop.permute.xlu0 %1411 }
 0x380   : > { %5908 = vmatmul.mubr.bf16.gmra.mrb[144].mxu1 %v12201_v52  ;;  %16499 = vst [vmem:[#allocation8_spill] sm:$0xff] %v14537_v60 }
 0x381   : > { %7132 = vmatmul.mubr.bf16.gmra.mrb[204].mxu0 %v12202_v53  ;;  %5915 = vmatprep.mubr.bf16.mxu1 %v12205_v54  ;;  %v12219_v54 = vld [vmem:[%s16484_s1 + $0xb00] ss:$36 sps:$4 sm:$0xff]  }
 0x382   : > { %7139 = vmatprep.mubr.bf16.mxu0 %v12206_v61 }
 0x383   : > { %v14490_v7 = vpop.f32.mrb[40].mxu1 }
 0x384   : > { %v5703_v9 = vpop.f32.mrb[41].mxu1 }
 0x385   : > { %v14495_v12 = vpop.f32.mrb[42].mxu1  ;;  %v12220_v9 = vld [vmem:[%s16484_s1 + $0xf48] ss:$36 sps:$4 sm:$0xff]  }
 0x386   : > { %v5706_v24 = vpop.f32.mrb[43].mxu1 }
 0x387   : > { %v14550_v24 = vpop.permute.xlu1 %1416 }
 0x388   : > { %5916 = vmatmul.mubr.bf16.gmra.mrb[40].mxu1 %v12203_v10  ;;  %v12221_v10 = vld [vmem:[%s16484_s1 + $0xb4c] ss:$36 sps:$4 sm:$0xff]   ;;  %16501 = vst [vmem:[#allocation10_spill] sm:$0xff] %v14550_v24  ;;  %v1246_v24 = vld [vmem:[%s16485_s2 + $0x300] sm:$0xff] }
 0x389   : > { %7140 = vmatmul.mubr.bf16.gmra.mrb[208].mxu0 %v12208_v16  ;;  %5923 = vmatprep.mubr.bf16.mxu1 %v12209_v19  ;;  %v12223_v19 = vld [vmem:[%s16484_s1 + $0xf94] ss:$36 sps:$4 sm:$0xff]  }
 0x38a   : > { %7147 = vmatprep.mubr.bf16.mxu0 %v12211_v11  ;;  %v14552_v11 = vpop.permute.xlu0 %1331 }
 0x38b   : > { %v14510_v15 = vpop.f32.mrb[44].mxu1 }
 0x38c   : > { %v5711_v32 = vpop.f32.mrb[45].mxu1 }
 0x38d   : > { %v14517_v40 = vpop.f32.mrb[46].mxu1 }
 0x38e   : > { %16497 = vst [vmem:[#allocation6_spill] sm:$0xff] %v14517_v40  ;;  %v5714_v58 = vpop.f32.mrb[47].mxu1 }
 0x38f   : > { %v12226_v58 = vld [vmem:[%s16484_s1 + $0xf90] ss:$36 sps:$4 sm:$0xff]  }
 0x390   : > { %5924 = vmatmul.mubr.bf16.gmra.mrb[152].mxu1 %v12213_v21 }
 0x391   : > { %7148 = vmatmul.mubr.bf16.gmra.mrb[212].mxu0 %v12214_v41  ;;  %5931 = vmatprep.mubr.bf16.mxu1 %v12215_v44  ;;  %v12225_v41 = vld [vmem:[%s16484_s1 + $0xb48] ss:$36 sps:$4 sm:$0xff]  }
 0x392   : > { %7155 = vmatprep.mubr.bf16.mxu0 %v12217_v45  ;;  %v12227_v45 = vld [vmem:[%s16484_s1 + $0xb94] ss:$36 sps:$4 sm:$0xff]  }
 0x393   : > { %v14532_v52 = vpop.f32.mrb[48].mxu1 }
 0x394   : > { %16498 = vst [vmem:[#allocation7_spill] sm:$0xff] %v14532_v52  ;;  %v5719_v53 = vpop.f32.mrb[49].mxu1 }
 0x395   : > { %v14539_v61 = vpop.f32.mrb[50].mxu1 }
 0x396   : > { %16500 = vst [vmem:[#allocation9_spill] sm:$0xff] %v14539_v61  ;;  %v5722_v16 = vpop.f32.mrb[51].mxu1 }
 0x398   : > { %5932 = vmatmul.mubr.bf16.gmra.mrb[156].mxu1 %v12219_v54  ;;  %v12229_v54 = vld [vmem:[%s16484_s1 + $0xfdc] ss:$36 sps:$4 sm:$0xff]  }
 0x399   : > { %7156 = vmatmul.mubr.bf16.gmra.mrb[216].mxu0 %v12220_v9  ;;  %5939 = vmatprep.mubr.bf16.mxu1 %v12221_v10  ;;  %v14570_v9 = vpop.permute.xlu1 %1336  ;;  %v14572_v10 = vpop.permute.xlu0 %1421 }
 0x39a   : > { %7163 = vmatprep.mubr.bf16.mxu0 %v12223_v19  ;;  %16504 = vst [vmem:[#allocation13_spill] sm:$0xff] %v14572_v10  ;;  %v12237_v10 = vld [vmem:[%s16484_s1 + $0xbd8] ss:$36 sps:$4 sm:$0xff]  }
 0x39b   : > { %v14554_v32 = vpop.f32.mrb[52].mxu1 }
 0x39c   : > { %16502 = vst [vmem:[#allocation11_spill] sm:$0xff] %v14554_v32  ;;  %v5727_v21 = vpop.f32.mrb[53].mxu1 }
 0x39d   : > { %v14559_v44 = vpop.f32.mrb[54].mxu1  ;;  %v12231_v21 = vld [vmem:[%s16484_s1 + $0xb90] ss:$36 sps:$4 sm:$0xff]  }
 0x39e   : > { %16503 = vst [vmem:[#allocation12_spill] sm:$0xff] %v14559_v44  ;;  %v5730_v53 = vpop.f32.mrb[55].mxu1 }
 0x39f   : > { %v14579_v53 = vpop.permute.xlu1 %1426 }
 0x3a0   : > { %5940 = vmatmul.mubr.bf16.gmra.mrb[160].mxu1 %v12225_v41  ;;  %16506 = vst [vmem:[#allocation15_spill] sm:$0xff] %v14579_v53  ;;  %v12232_v41 = vld [vmem:[%s16484_s1 + $0xfd8] ss:$36 sps:$4 sm:$0xff]  }
 0x3a1   : > { %7164 = vmatmul.mubr.bf16.gmra.mrb[220].mxu0 %v12226_v58  ;;  %5947 = vmatprep.mubr.bf16.mxu1 %v12227_v45  ;;  %v12233_v58 = vld [vmem:[%s16484_s1 + $0xbdc] ss:$36 sps:$4 sm:$0xff]  }
 0x3a2   : > { %7171 = vmatprep.mubr.bf16.mxu0 %v12229_v54  ;;  %v12235_v54 = vld [vmem:[%s16484_s1 + $0x1024] ss:$36 sps:$4 sm:$0xff]  }
 0x3a3   : > { %v14574_v16 = vpop.f32.mrb[56].mxu1 }
 0x3a4   : > { %16505 = vst [vmem:[#allocation14_spill] sm:$0xff] %v14574_v16  ;;  %v5735_v19 = vpop.f32.mrb[57].mxu1 }
 0x3a5   : > { %v14581_v57 = vpop.f32.mrb[58].mxu1  ;;  %v14592_v19 = vpop.permute.xlu0 %1341 }
 0x3a6   : > { %16507 = vst [vmem:[#allocation16_spill] sm:$0xff] %v14581_v57  ;;  %v5738_v45 = vpop.f32.mrb[59].mxu1  ;;  %v14594_v57 = vpop.permute.xlu1 %1346 }
 0x3a8   : > { %5948 = vmatmul.mubr.bf16.gmra.mrb[164].mxu1 %v12231_v21  ;;  %v12238_v21 = vld [vmem:[%s16484_s1 + $0x1020] ss:$36 sps:$4 sm:$0xff]  }
 0x3a9   : > { %7172 = vmatmul.mubr.bf16.gmra.mrb[224].mxu0 %v12232_v41  ;;  %5955 = vmatprep.mubr.bf16.mxu1 %v12233_v58  ;;  %v14601_v45 = vpop.permute.xlu0 %1431  ;;  %v12239_v41 = vld [vmem:[%s16484_s1 + $0xc24] ss:$36 sps:$4 sm:$0xff]  }
 0x3aa   : > { %7179 = vmatprep.mubr.bf16.mxu0 %v12235_v54  ;;  %16509 = vst [vmem:[#allocation18_spill] sm:$0xff] %v14601_v45  ;;  %v1262_v54 = vld [vmem:[%s16485_s2 + $0x380] sm:$0xff] }
 0x3ab   : > { %v14596_v53 = vpop.f32.mrb[60].mxu1  ;;  %1841 = vperm.xlu0 %11590, %v1262_v54  }
 0x3ac   : > { %16508 = vst [vmem:[#allocation17_spill] sm:$0xff] %v14596_v53  ;;  %v5743_v16 = vpop.f32.mrb[61].mxu1  ;;  %v1263_v53 = vld [vmem:[%s16485_s2 + $0x388] sm:$0xff] }
 0x3ad   : > { %v14603_v44 = vpop.f32.mrb[62].mxu1  ;;  %v12241_v16 = vld [vmem:[%s16484_s1 + $0x106c] ss:$36 sps:$4 sm:$0xff]   ;;  %1846 = vperm.xlu1 %11591, %v1263_v53  }
 0x3ae   : > { %16510 = vst [vmem:[#allocation19_spill] sm:$0xff] %v14603_v44  ;;  %v5746_v58 = vpop.f32.mrb[63].mxu1  ;;  %v14617_v44 = vpop.permute.xlu1 %1436  ;;  %v12244_v53 = vld [vmem:[%s16484_s1 + $0x1068] ss:$36 sps:$4 sm:$0xff]  }
 0x3af   : > { %16511 = vst [vmem:[#allocation20_spill] sm:$0xff] %v14617_v44  ;;  %v14622_v58 = vpop.permute.xlu0 %1351  ;;  %1761 = vperm.xlu0 %11590, %v1246_v24   ;;  %v1264_v24 = vld [vmem:[%s16485_s2 + $0x390] sm:$0xff] }
 0x3b0   : > { %5956 = vmatmul.mubr.bf16.gmra.mrb[168].mxu1 %v12237_v10  ;;  %v12243_v10 = vld [vmem:[%s16484_s1 + $0xc20] ss:$36 sps:$4 sm:$0xff]  }
 0x3b1   : > { %7180 = vmatmul.mubr.bf16.gmra.mrb[228].mxu0 %v12238_v21  ;;  %5963 = vmatprep.mubr.bf16.mxu1 %v12239_v41  ;;  %v12245_v41 = vld [vmem:[%s16484_s1 + $0xc6c] ss:$36 sps:$4 sm:$0xff]  }
 0x3b2   : > { %7187 = vmatprep.mubr.bf16.mxu0 %v12241_v16  ;;  %v1247_v16 = vld [vmem:[%s16485_s2 + $0x308] sm:$0xff] }
 0x3b3   : > { %v14624_v45 = vpop.f32.mrb[64].mxu1  ;;  %1766 = vperm.xlu1 %11591, %v1247_v16   ;;  %1851 = vperm.xlu0 %11590, %v1264_v24   ;;  %v14651_v44 = vpop.permute.xlu0 %1521  ;;  %v1248_v16 = vld [vmem:[%s16485_s2 + $0x310] sm:$0xff] }
 0x3b4   : > { %16512 = vst [vmem:[#allocation21_spill] sm:$0xff] %v14624_v45  ;;  %v5751_v54 = vpop.f32.mrb[65].mxu1  ;;  %v12247_v45 = vld [vmem:[%s16484_s1 + $0x10b4] ss:$36 sps:$4 sm:$0xff]   ;;  %16514 = vst [vmem:[#allocation23_spill] sm:$0xff] %v14651_v44 }
 0x3b5   : > { %v14632_v21 = vpop.f32.mrb[66].mxu1  ;;  %v12251_v24 = vld [vmem:[%s16484_s1 + $0xcb4] ss:$36 sps:$4 sm:$0xff]  }
 0x3b6   : > { %16513 = vst [vmem:[#allocation22_spill] sm:$0xff] %v14632_v21  ;;  %v5754_v54 = vpop.f32.mrb[67].mxu1  ;;  %v14649_v21 = vpop.permute.xlu1 %1356 }
 0x3b7   : > { %v1265_v54 = vld [vmem:[%s16485_s2 + $0x398] sm:$0xff]  ;;  %1771 = vperm.xlu0 %11590, %v1248_v16  }
 0x3b8   : > { %5964 = vmatmul.mubr.bf16.gmra.mrb[172].mxu1 %v12243_v10  ;;  %1856 = vperm.xlu1 %11591, %v1265_v54   ;;  %v12249_v10 = vld [vmem:[%s16484_s1 + $0xc68] ss:$36 sps:$4 sm:$0xff]   ;;  %v12253_v16 = vld [vmem:[%s16484_s1 + $0x10fc] ss:$36 sps:$4 sm:$0xff]  }
 0x3b9   : > { %7188 = vmatmul.mubr.bf16.gmra.mrb[232].mxu0 %v12244_v53  ;;  %5971 = vmatprep.mubr.bf16.mxu1 %v12245_v41 }
 0x3ba   : > { %7195 = vmatprep.mubr.bf16.mxu0 %v12247_v45  ;;  %v14664_v53 = vpop.permute.xlu1 %1526  ;;  %v12250_v45 = vld [vmem:[%s16484_s1 + $0x10b0] ss:$36 sps:$4 sm:$0xff]  }
 0x3bb   : > { %v14656_v32 = vpop.f32.mrb[68].mxu1  ;;  %16516 = vst [vmem:[#allocation25_spill] sm:$0xff] %v14664_v53  ;;  %v14680_v53 = vpop.permute.xlu0 %1441 }
 0x3bc   : > { %16515 = vst [vmem:[#allocation24_spill] sm:$0xff] %v14656_v32  ;;  %v5759_v60 = vpop.f32.mrb[69].mxu1  ;;  %16518 = vst [vmem:[#allocation27_spill] sm:$0xff] %v14680_v53  ;;  %v12279_v53 = vld [vmem:[%s16484_s1 + $0xdd0] ss:$36 sps:$4 sm:$0xff]  }
 0x3bd   : > { %v14666_v41 = vpop.f32.mrb[70].mxu1  ;;  %v1249_v60 = vld [vmem:[%s16485_s2 + $0x318] sm:$0xff] }
 0x3be   : > { %16517 = vst [vmem:[#allocation26_spill] sm:$0xff] %v14666_v41  ;;  %v5762_v54 = vpop.f32.mrb[71].mxu1  ;;  %1776 = vperm.xlu1 %11591, %v1249_v60   ;;  %v14682_v44 = vpop.permute.xlu1 %1446 }
 0x3bf   : > { %16519 = vst [vmem:[#allocation28_spill] sm:$0xff] %v14682_v44  ;;  %v12255_v54 = vld [vmem:[%s16484_s1 + $0xcb0] ss:$36 sps:$4 sm:$0xff]   ;;  %v14689_v61 = vpop.permute.xlu0 %1531 }
 0x3c0   : > { %5972 = vmatmul.mubr.bf16.gmra.mrb[176].mxu1 %v12249_v10  ;;  %16521 = vst [vmem:[#allocation30_spill] sm:$0xff] %v14689_v61  ;;  %v12256_v10 = vld [vmem:[%s16484_s1 + $0x10f8] ss:$36 sps:$4 sm:$0xff]  }
 0x3c1   : > { %7196 = vmatmul.mubr.bf16.gmra.mrb[236].mxu0 %v12250_v45  ;;  %5979 = vmatprep.mubr.bf16.mxu1 %v12251_v24  ;;  %v12257_v45 = vld [vmem:[%s16484_s1 + $0xcfc] ss:$36 sps:$4 sm:$0xff]  }
 0x3c2   : > { %7203 = vmatprep.mubr.bf16.mxu0 %v12253_v16  ;;  %v14702_v60 = vpop.permute.xlu1 %1536 }
 0x3c3   : > { %v14684_v41 = vpop.f32.mrb[72].mxu1  ;;  %16523 = vst [vmem:[#allocation32_spill] sm:$0xff] %v14702_v60  ;;  %v14704_v16 = vpop.permute.xlu0 %1451 }
 0x3c4   : > { %16520 = vst [vmem:[#allocation29_spill] sm:$0xff] %v14684_v41  ;;  %v5767_v32 = vpop.f32.mrb[73].mxu1  ;;  %16524 = vst [vmem:[#allocation33_spill] sm:$0xff] %v14704_v16  ;;  %v12261_v41 = vld [vmem:[%s16484_s1 + $0xcf8] ss:$36 sps:$4 sm:$0xff]  }
 0x3c5   : > { %v14691_v35 = vpop.f32.mrb[74].mxu1  ;;  %v12259_v32 = vld [vmem:[%s16484_s1 + $0x1144] ss:$36 sps:$4 sm:$0xff]  }
 0x3c6   : > { %16522 = vst [vmem:[#allocation31_spill] sm:$0xff] %v14691_v35  ;;  %v5770_v24 = vpop.f32.mrb[75].mxu1  ;;  %v12267_v16 = vld [vmem:[%s16484_s1 + $0xd40] ss:$36 sps:$4 sm:$0xff]  }
 0x3c7   : > { %v14724_v60 = vpop.permute.xlu0 %1541 }
 0x3c8   : > { %5980 = vmatmul.mubr.bf16.gmra.mrb[180].mxu1 %v12255_v54  ;;  %v12262_v54 = vld [vmem:[%s16484_s1 + $0x1140] ss:$36 sps:$4 sm:$0xff]   ;;  %16528 = vst [vmem:[#allocation37_spill] sm:$0xff] %v14724_v60 }
 0x3c9   : > { %7204 = vmatmul.mubr.bf16.gmra.mrb[240].mxu0 %v12256_v10  ;;  %5987 = vmatprep.mubr.bf16.mxu1 %v12257_v45  ;;  %v12263_v10 = vld [vmem:[%s16484_s1 + $0xd44] ss:$36 sps:$4 sm:$0xff]  }
 0x3ca   : > { %7211 = vmatprep.mubr.bf16.mxu0 %v12259_v32  ;;  %v12265_v32 = vld [vmem:[%s16484_s1 + $0x118c] ss:$36 sps:$4 sm:$0xff]  }
 0x3cb   : > { %v14706_v61 = vpop.f32.mrb[76].mxu1 }
 0x3cc   : > { %16525 = vst [vmem:[#allocation34_spill] sm:$0xff] %v14706_v61  ;;  %v5775_v35 = vpop.f32.mrb[77].mxu1 }
 0x3cd   : > { %v14711_v24 = vpop.f32.mrb[78].mxu1  ;;  %v14722_v35 = vpop.permute.xlu1 %1456 }
 0x3ce   : > { %16526 = vst [vmem:[#allocation35_spill] sm:$0xff] %v14711_v24  ;;  %v5778_v45 = vpop.f32.mrb[79].mxu1  ;;  %16527 = vst [vmem:[#allocation36_spill] sm:$0xff] %v14722_v35 }
 0x3d0   : > { %5988 = vmatmul.mubr.bf16.gmra.mrb[184].mxu1 %v12261_v41  ;;  %v12268_v41 = vld [vmem:[%s16484_s1 + $0x1188] ss:$36 sps:$4 sm:$0xff]  }
 0x3d1   : > { %7212 = vmatmul.mubr.bf16.gmra.mrb[244].mxu0 %v12262_v54  ;;  %5995 = vmatprep.mubr.bf16.mxu1 %v12263_v10  ;;  %v14731_v45 = vpop.permute.xlu1 %1546  ;;  %v12269_v54 = vld [vmem:[%s16484_s1 + $0xd8c] ss:$36 sps:$4 sm:$0xff]  }
 0x3d2   : > { %7219 = vmatprep.mubr.bf16.mxu0 %v12265_v32  ;;  %16530 = vst [vmem:[#allocation39_spill] sm:$0xff] %v14731_v45  ;;  %v14744_v32 = vpop.permute.xlu0 %1461 }
 0x3d3   : > { %v14726_v24 = vpop.f32.mrb[80].mxu1  ;;  %16532 = vst [vmem:[#allocation41_spill] sm:$0xff] %v14744_v32 }
 0x3d4   : > { %16529 = vst [vmem:[#allocation38_spill] sm:$0xff] %v14726_v24  ;;  %v5783_v61 = vpop.f32.mrb[81].mxu1 }
 0x3d5   : > { %v14733_v44 = vpop.f32.mrb[82].mxu1  ;;  %v12271_v61 = vld [vmem:[%s16484_s1 + $0x11d4] ss:$36 sps:$4 sm:$0xff]   ;;  %v14746_v45 = vpop.permute.xlu1 %1466 }
 0x3d6   : > { %16531 = vst [vmem:[#allocation40_spill] sm:$0xff] %v14733_v44  ;;  %v5786_v10 = vpop.f32.mrb[83].mxu1  ;;  %16533 = vst [vmem:[#allocation42_spill] sm:$0xff] %v14746_v45  ;;  %v1148_v44 = vld [vmem:[%s16484_s1 + $0x1218] sm:$0x11]  ;;  %v14756_v35 = vpop.permute.xlu0 %1551 }
 0x3d7   : > { %v12273_v10 = vld [vmem:[%s16484_s1 + $0xd88] ss:$36 sps:$4 sm:$0xff]   ;;  %16535 = vst [vmem:[#allocation44_spill] sm:$0xff] %v14756_v35 }
 0x3d8   : > { %5996 = vmatmul.mubr.bf16.gmra.mrb[188].mxu1 %v12267_v16  ;;  %v12274_v16 = vld [vmem:[%s16484_s1 + $0x11d0] ss:$36 sps:$4 sm:$0xff]  }
 0x3d9   : > { %7220 = vmatmul.mubr.bf16.gmra.mrb[248].mxu0 %v12268_v41  ;;  %6003 = vmatprep.mubr.bf16.mxu1 %v12269_v54  ;;  %v12275_v41 = vld [vmem:[%s16484_s1 + $0xdd4] ss:$36 sps:$4 sm:$0xff]  }
 0x3da   : > { %7227 = vmatprep.mubr.bf16.mxu0 %v12271_v61  ;;  %v9755_v61 = vcombine.high %v1148_v44, %v1148_v44 }
 0x3db   : > { %v14748_v60 = vpop.f32.mrb[84].mxu1 }
 0x3dc   : > { %16534 = vst [vmem:[#allocation43_spill] sm:$0xff] %v14748_v60  ;;  %v5791_v24 = vpop.f32.mrb[85].mxu1  ;;  %v14768_v60 = vpop.permute.xlu0 %1471 }
 0x3dd   : > { %v14758_v32 = vpop.f32.mrb[86].mxu1  ;;  %v14766_v24 = vpop.permute.xlu1 %1556  ;;  %16538 = vst [vmem:[#allocation47_spill] sm:$0xff] %v14768_v60  ;;  %v12282_v60 = vld [vmem:[%s16484_s1 + $0xe18] ss:$36 sps:$4 sm:$0xff]  }
 0x3de   : > { %16536 = vst [vmem:[#allocation45_spill] sm:$0xff] %v14758_v32  ;;  %v5794_v54 = vpop.f32.mrb[87].mxu1  ;;  %16537 = vst [vmem:[#allocation46_spill] sm:$0xff] %v14766_v24 }
 0x3e0   : > { %6004 = vmatmul.mubr.bf16.gmra.mrb[192].mxu1 %v12273_v10  ;;  %v9754_v10 = vcombine.low %v1148_v44, %v1148_v44 }
 0x3e1   : > { %7228 = vmatmul.mubr.bf16.gmra.mrb[252].mxu0 %v12274_v16  ;;  %6011 = vmatprep.mubr.bf16.mxu1 %v12275_v41  ;;  %v12280_v16 = vld [vmem:[%s16484_s1 + $0xe1c] ss:$36 sps:$4 sm:$0xff]   ;;  %v14784_v24 = vpop.permute.xlu1 %1476 }
 0x3e2   : > { %7235 = vmatprep.mubr.bf16.mxu0 %v9755_v61  ;;  %16541 = vst [vmem:[#allocation50_spill] sm:$0xff] %v14784_v24 }
 0x3e3   : > { %v14770_v35 = vpop.f32.mrb[88].mxu1 }
 0x3e4   : > { %16539 = vst [vmem:[#allocation48_spill] sm:$0xff] %v14770_v35  ;;  %v14772_v32 = vpop.f32.mrb[148].mxu0  ;;  %v5799_v45 = vpop.f32.mrb[89].mxu1 }
 0x3e5   : > { %v7023_v52 = vpop.f32.mrb[149].mxu0  ;;  %v14777_v54 = vpop.f32.mrb[90].mxu1  ;;  %v16542_v45 = vmov 0.0  }
 0x3e6   : > { %16540 = vst [vmem:[#allocation49_spill] sm:$0xff] %v14777_v54  ;;  %v14782_v41 = vpop.f32.mrb[150].mxu0  ;;  %v5802_v61 = vpop.f32.mrb[91].mxu1 }
 0x3e7   : > { %v7026_v35 = vpop.f32.mrb[151].mxu0  ;;  %v14788_v52 = vpop.permute.xlu0 %1561 }
 0x3e8   : > { %6012 = vmatmul.mubr.bf16.gmra.mrb[196].mxu1 %v12279_v53  ;;  %16543 = vst [vmem:[#allocation51_spill] sm:$0xff] %v14788_v52  ;;  %v14795_v61 = vpop.permute.xlu1 %1566  ;;  %v12283_v53 = vld [vmem:[%s16484_s1 + $0x20] ss:$36 sps:$4 sm:$0xff]  }
 0x3e9   : > { %7236 = vmatmul.mubr.bf16.gmra.mrb[148].mxu0 %v9754_v10  ;;  %6019 = vmatprep.mubr.bf16.mxu1 %v12280_v16  ;;  %16545 = vst [vmem:[#allocation53_spill] sm:$0xff] %v14795_v61  ;;  %v12284_v35 = vld [vmem:[%s16484_s1 + $0xe64] ss:$36 sps:$4 sm:$0xff]  }
 0x3ea   : > { %10202 = vmatprep.mubr.msk.bf16.mxu0 %vm12550_vm1, %v16542_v45 }
 0x3eb   : > { %v14790_v44 = vpop.f32.mrb[92].mxu1 }
 0x3ec   : > { %16544 = vst [vmem:[#allocation52_spill] sm:$0xff] %v14790_v44  ;;  %v5807_v54 = vpop.f32.mrb[93].mxu1  ;;  %v14810_v16 = vpop.permute.xlu1 %1486 }
 0x3ed   : > { %v14797_v24 = vpop.f32.mrb[94].mxu1  ;;  %v14805_v54 = vpop.permute.xlu0 %1481  ;;  %16548 = vst [vmem:[#allocation56_spill] sm:$0xff] %v14810_v16  ;;  %v12290_v16 = vld [vmem:[%s16484_s1 + $0xea8] ss:$36 sps:$4 sm:$0xff]  }
 0x3ee   : > { %16546 = vst [vmem:[#allocation54_spill] sm:$0xff] %v14797_v24  ;;  %v5810_v10 = vpop.f32.mrb[95].mxu1  ;;  %16547 = vst [vmem:[#allocation55_spill] sm:$0xff] %v14805_v54  ;;  %v12286_v24 = vld [vmem:[%s16484_s1 + $0xe60] ss:$36 sps:$4 sm:$0xff]  }
 0x3f0   : > { %6020 = vmatmul.mubr.bf16.gmra.mrb[200].mxu1 %v12282_v60  ;;  %v12287_v60 = vld [vmem:[%s16484_s1 + $0x68] ss:$36 sps:$4 sm:$0xff]  }
 0x3f1   : > { %10203 = vmatmul.mubr.msk.bf16.vlgmr.msra.gmra.mrb[0].mxu0 %vm4835_vm2, %v12283_v53  ;;  %6027 = vmatprep.mubr.bf16.mxu1 %v12284_v35  ;;  %v12288_v53 = vld [vmem:[%s16484_s1 + $0xeac] ss:$36 sps:$4 sm:$0xff]   ;;  %v14825_v44 = vpop.permute.xlu0 %1571 }
 0x3f2   : > { %10206 = vmatprep.mubr.msk.bf16.mxu0 %vm12550_vm1, %v16542_v45  ;;  %16551 = vst [vmem:[#allocation59_spill] sm:$0xff] %v14825_v44 }
 0x3f3   : > { %v14812_v61 = vpop.f32.mrb[96].mxu1 }
 0x3f4   : > { %16549 = vst [vmem:[#allocation57_spill] sm:$0xff] %v14812_v61  ;;  %v5815_v52 = vpop.f32.mrb[97].mxu1  ;;  %v14827_v61 = vpop.permute.xlu1 %1576 }
 0x3f5   : > { %v14817_v10 = vpop.f32.mrb[98].mxu1  ;;  %16552 = vst [vmem:[#allocation60_spill] sm:$0xff] %v14827_v61  ;;  %v14837_v54 = vpop.permute.xlu0 %1491 }
 0x3f6   : > { %16550 = vst [vmem:[#allocation58_spill] sm:$0xff] %v14817_v10  ;;  %v5818_v35 = vpop.f32.mrb[99].mxu1  ;;  %16554 = vst [vmem:[#allocation62_spill] sm:$0xff] %v14837_v54 }
 0x3f8   : > { %6028 = vmatmul.mubr.bf16.gmra.mrb[204].mxu1 %v12286_v24  ;;  %v12291_v24 = vld [vmem:[%s16484_s1 + $0xb0] ss:$36 sps:$4 sm:$0xff]   ;;  %v14847_v61 = vpop.permute.xlu1 %1496 }
 0x3f9   : > { %10207 = vmatmul.mubr.msk.bf16.gmra.mrb[4].mxu0 %vm4835_vm2, %v12287_v60  ;;  %6035 = vmatprep.mubr.bf16.mxu1 %v12288_v53  ;;  %v12292_v60 = vld [vmem:[%s16484_s1 + $0xef4] ss:$36 sps:$4 sm:$0xff]   ;;  %16556 = vst [vmem:[#allocation64_spill] sm:$0xff] %v14847_v61 }
 0x3fa   : > { %10210 = vmatprep.mubr.msk.bf16.mxu0 %vm12550_vm1, %v16542_v45 }
 0x3fb   : > { %v14832_v52 = vpop.f32.mrb[100].mxu1 }
 0x3fc   : > { %16553 = vst [vmem:[#allocation61_spill] sm:$0xff] %v14832_v52  ;;  %v5823_v10 = vpop.f32.mrb[101].mxu1  ;;  %v12294_v52 = vld [vmem:[%s16484_s1 + $0xef0] ss:$36 sps:$4 sm:$0xff]   ;;  %v14859_v54 = vpop.permute.xlu1 %1586 }
 0x3fd   : > { %v14839_v35 = vpop.f32.mrb[102].mxu1  ;;  %v14852_v10 = vpop.permute.xlu0 %1581  ;;  %16559 = vst [vmem:[#allocation67_spill] sm:$0xff] %v14859_v54 }
 0x3fe   : > { %16555 = vst [vmem:[#allocation63_spill] sm:$0xff] %v14839_v35  ;;  %v5826_v53 = vpop.f32.mrb[103].mxu1  ;;  %16557 = vst [vmem:[#allocation65_spill] sm:$0xff] %v14852_v10 }
 0x400   : > { %6036 = vmatmul.mubr.bf16.gmra.mrb[208].mxu1 %v12290_v16  ;;  %v12295_v16 = vld [vmem:[%s16484_s1 + $0xf8] ss:$36 sps:$4 sm:$0xff]  }
 0x401   : > { %10211 = vmatmul.mubr.msk.bf16.gmra.mrb[8].mxu0 %vm4835_vm2, %v12291_v24  ;;  %6043 = vmatprep.mubr.bf16.mxu1 %v12292_v60  ;;  %v12296_v24 = vld [vmem:[%s16484_s1 + $0xf3c] ss:$36 sps:$4 sm:$0xff]   ;;  %v14869_v10 = vpop.permute.xlu0 %1501 }
 0x402   : > { %10214 = vmatprep.mubr.msk.bf16.mxu0 %vm12550_vm1, %v16542_v45  ;;  %16561 = vst [vmem:[#allocation69_spill] sm:$0xff] %v14869_v10 }
 0x403   : > { %v14854_v44 = vpop.f32.mrb[104].mxu1 }
 0x404   : > { %16558 = vst [vmem:[#allocation66_spill] sm:$0xff] %v14854_v44  ;;  %v5831_v35 = vpop.f32.mrb[105].mxu1  ;;  %v12298_v44 = vld [vmem:[%s16484_s1 + $0xf38] ss:$36 sps:$4 sm:$0xff]  }
 0x405   : > { %v14861_v53 = vpop.f32.mrb[106].mxu1  ;;  %v14874_v35 = vpop.permute.xlu1 %1506 }
 0x406   : > { %16560 = vst [vmem:[#allocation68_spill] sm:$0xff] %v14861_v53  ;;  %v5834_v60 = vpop.f32.mrb[107].mxu1  ;;  %16562 = vst [vmem:[#allocation70_spill] sm:$0xff] %v14874_v35  ;;  %v12302_v35 = vld [vmem:[%s16484_s1 + $0xf80] ss:$36 sps:$4 sm:$0xff]  }
 0x407   : > { %v14889_v60 = vpop.permute.xlu0 %1591 }
 0x408   : > { %6044 = vmatmul.mubr.bf16.gmra.mrb[212].mxu1 %v12294_v52  ;;  %v12299_v52 = vld [vmem:[%s16484_s1 + $0x140] ss:$36 sps:$4 sm:$0xff]   ;;  %16565 = vst [vmem:[#allocation73_spill] sm:$0xff] %v14889_v60 }
 0x409   : > { %10215 = vmatmul.mubr.msk.bf16.gmra.mrb[12].mxu0 %vm4835_vm2, %v12295_v16  ;;  %6051 = vmatprep.mubr.bf16.mxu1 %v12296_v24  ;;  %v12300_v16 = vld [vmem:[%s16484_s1 + $0xf84] ss:$36 sps:$4 sm:$0xff]  }
 0x40a   : > { %10218 = vmatprep.mubr.msk.bf16.mxu0 %vm12550_vm1, %v16542_v45 }
 0x40b   : > { %v14876_v54 = vpop.f32.mrb[108].mxu1  ;;  %v14901_v10 = vpop.permute.xlu0 %1511 }
 0x40c   : > { %16563 = vst [vmem:[#allocation71_spill] sm:$0xff] %v14876_v54  ;;  %v5839_v53 = vpop.f32.mrb[109].mxu1  ;;  %v14891_v54 = vpop.permute.xlu1 %1596  ;;  %16568 = vst [vmem:[#allocation76_spill] sm:$0xff] %v14901_v10 }
 0x40d   : > { %v14881_v61 = vpop.f32.mrb[110].mxu1  ;;  %16566 = vst [vmem:[#allocation74_spill] sm:$0xff] %v14891_v54 }
 0x40e   : > { %16564 = vst [vmem:[#allocation72_spill] sm:$0xff] %v14881_v61  ;;  %v5842_v24 = vpop.f32.mrb[111].mxu1 }
 0x410   : > { %6052 = vmatmul.mubr.bf16.gmra.mrb[216].mxu1 %v12298_v44  ;;  %v12303_v44 = vld [vmem:[%s16484_s1 + $0x188] ss:$36 sps:$4 sm:$0xff]   ;;  %v14911_v54 = vpop.permute.xlu1 %1516 }
 0x411   : > { %10219 = vmatmul.mubr.msk.bf16.gmra.mrb[16].mxu0 %vm4835_vm2, %v12299_v52  ;;  %6059 = vmatprep.mubr.bf16.mxu1 %v12300_v16  ;;  %v12304_v52 = vld [vmem:[%s16484_s1 + $0xfcc] ss:$36 sps:$4 sm:$0xff]   ;;  %16570 = vst [vmem:[#allocation78_spill] sm:$0xff] %v14911_v54 }
 0x412   : > { %10222 = vmatprep.mubr.msk.bf16.mxu0 %vm12550_vm1, %v16542_v45 }
 0x413   : > { %v14896_v53 = vpop.f32.mrb[112].mxu1 }
 0x414   : > { %16567 = vst [vmem:[#allocation75_spill] sm:$0xff] %v14896_v53  ;;  %v5847_v61 = vpop.f32.mrb[113].mxu1  ;;  %v12306_v53 = vld [vmem:[%s16484_s1 + $0xfc8] ss:$36 sps:$4 sm:$0xff]   ;;  %v14923_v10 = vpop.permute.xlu1 %1686 }
 0x415   : > { %v14903_v24 = vpop.f32.mrb[114].mxu1  ;;  %v14916_v61 = vpop.permute.xlu0 %1681  ;;  %16573 = vst [vmem:[#allocation81_spill] sm:$0xff] %v14923_v10 }
 0x416   : > { %16569 = vst [vmem:[#allocation77_spill] sm:$0xff] %v14903_v24  ;;  %v5850_v16 = vpop.f32.mrb[115].mxu1  ;;  %16571 = vst [vmem:[#allocation79_spill] sm:$0xff] %v14916_v61 }
 0x418   : > { %6060 = vmatmul.mubr.bf16.gmra.mrb[220].mxu1 %v12302_v35  ;;  %v12307_v35 = vld [vmem:[%s16484_s1 + $0x1d0] ss:$36 sps:$4 sm:$0xff]  }
 0x419   : > { %10223 = vmatmul.mubr.msk.bf16.gmra.mrb[20].mxu0 %vm4835_vm2, %v12303_v44  ;;  %6067 = vmatprep.mubr.bf16.mxu1 %v12304_v52  ;;  %v12308_v44 = vld [vmem:[%s16484_s1 + $0x1014] ss:$36 sps:$4 sm:$0xff]   ;;  %v14933_v61 = vpop.permute.xlu0 %1601 }
 0x41a   : > { %10226 = vmatprep.mubr.msk.bf16.mxu0 %vm12550_vm1, %v16542_v45  ;;  %16575 = vst [vmem:[#allocation83_spill] sm:$0xff] %v14933_v61 }
 0x41b   : > { %v14918_v60 = vpop.f32.mrb[116].mxu1 }
 0x41c   : > { %16572 = vst [vmem:[#allocation80_spill] sm:$0xff] %v14918_v60  ;;  %v5855_v24 = vpop.f32.mrb[117].mxu1  ;;  %v12310_v60 = vld [vmem:[%s16484_s1 + $0x1010] ss:$36 sps:$4 sm:$0xff]  }
 0x41d   : > { %v14925_v16 = vpop.f32.mrb[118].mxu1  ;;  %v14938_v24 = vpop.permute.xlu1 %1606 }
 0x41e   : > { %16574 = vst [vmem:[#allocation82_spill] sm:$0xff] %v14925_v16  ;;  %v5858_v52 = vpop.f32.mrb[119].mxu1  ;;  %16576 = vst [vmem:[#allocation84_spill] sm:$0xff] %v14938_v24 }
 0x41f   : > { %v14953_v52 = vpop.permute.xlu0 %1691 }
 0x420   : > { %6068 = vmatmul.mubr.bf16.gmra.mrb[224].mxu1 %v12306_v53  ;;  %v12311_v53 = vld [vmem:[%s16484_s1 + $0x218] ss:$36 sps:$4 sm:$0xff]   ;;  %16579 = vst [vmem:[#allocation87_spill] sm:$0xff] %v14953_v52 }
 0x421   : > { %10227 = vmatmul.mubr.msk.bf16.gmra.mrb[24].mxu0 %vm4835_vm2, %v12307_v35  ;;  %6075 = vmatprep.mubr.bf16.mxu1 %v12308_v44  ;;  %v12312_v35 = vld [vmem:[%s16484_s1 + $0x105c] ss:$36 sps:$4 sm:$0xff]   ;;  %v14955_v24 = vpop.permute.xlu1 %1696 }
 0x422   : > { %10230 = vmatprep.mubr.msk.bf16.mxu0 %vm12550_vm1, %v16542_v45  ;;  %16580 = vst [vmem:[#allocation88_spill] sm:$0xff] %v14955_v24 }
 0x423   : > { %v14940_v10 = vpop.f32.mrb[120].mxu1 }
 0x424   : > { %16577 = vst [vmem:[#allocation85_spill] sm:$0xff] %v14940_v10  ;;  %v5863_v16 = vpop.f32.mrb[121].mxu1  ;;  %v14965_v10 = vpop.permute.xlu0 %1611 }
 0x425   : > { %v14945_v54 = vpop.f32.mrb[122].mxu1  ;;  %16582 = vst [vmem:[#allocation90_spill] sm:$0xff] %v14965_v10  ;;  %v14975_v24 = vpop.permute.xlu1 %1616 }
 0x426   : > { %16578 = vst [vmem:[#allocation86_spill] sm:$0xff] %v14945_v54  ;;  %v5866_v44 = vpop.f32.mrb[123].mxu1  ;;  %v12314_v54 = vld [vmem:[%s16484_s1 + $0x1058] ss:$36 sps:$4 sm:$0xff]   ;;  %16584 = vst [vmem:[#allocation92_spill] sm:$0xff] %v14975_v24 }
 0x428   : > { %6076 = vmatmul.mubr.bf16.gmra.mrb[228].mxu1 %v12310_v60  ;;  %v12315_v60 = vld [vmem:[%s16484_s1 + $0x260] ss:$36 sps:$4 sm:$0xff]  }
 0x429   : > { %10231 = vmatmul.mubr.msk.bf16.gmra.mrb[28].mxu0 %vm4835_vm2, %v12311_v53  ;;  %6083 = vmatprep.mubr.bf16.mxu1 %v12312_v35  ;;  %v12316_v53 = vld [vmem:[%s16484_s1 + $0x10a4] ss:$36 sps:$4 sm:$0xff]  }
 0x42a   : > { %10234 = vmatprep.mubr.msk.bf16.mxu0 %vm12550_vm1, %v16542_v45 }
 0x42b   : > { %v14960_v16 = vpop.f32.mrb[124].mxu1 }
 0x42c   : > { %16581 = vst [vmem:[#allocation89_spill] sm:$0xff] %v14960_v16  ;;  %v5871_v61 = vpop.f32.mrb[125].mxu1  ;;  %v14987_v16 = vpop.permute.xlu1 %1706 }
 0x42d   : > { %v14967_v44 = vpop.f32.mrb[126].mxu1  ;;  %v14980_v61 = vpop.permute.xlu0 %1701  ;;  %16587 = vst [vmem:[#allocation95_spill] sm:$0xff] %v14987_v16  ;;  %v1267_v16 = vld [vmem:[%s16485_s2 + $0x3a8] sm:$0xff] }
 0x42e   : > { %16583 = vst [vmem:[#allocation91_spill] sm:$0xff] %v14967_v44  ;;  %v5874_v35 = vpop.f32.mrb[127].mxu1  ;;  %16585 = vst [vmem:[#allocation93_spill] sm:$0xff] %v14980_v61  ;;  %v12318_v44 = vld [vmem:[%s16484_s1 + $0x10a0] ss:$36 sps:$4 sm:$0xff]   ;;  %1866 = vperm.xlu1 %11591, %v1267_v16  }
 0x42f   : > { %v12324_v16 = vld [vmem:[%s16484_s1 + $0x1134] ss:$36 sps:$4 sm:$0xff]  }
 0x430   : > { %6084 = vmatmul.mubr.bf16.gmra.mrb[232].mxu1 %v12314_v54  ;;  %v12319_v54 = vld [vmem:[%s16484_s1 + $0x2a8] ss:$36 sps:$4 sm:$0xff]  }
 0x431   : > { %10235 = vmatmul.mubr.msk.bf16.gmra.mrb[32].mxu0 %vm4835_vm2, %v12315_v60  ;;  %6091 = vmatprep.mubr.bf16.mxu1 %v12316_v53  ;;  %v12320_v60 = vld [vmem:[%s16484_s1 + $0x10ec] ss:$36 sps:$4 sm:$0xff]   ;;  %v15000_v61 = vpop.permute.xlu0 %1621 }
 0x432   : > { %10238 = vmatprep.mubr.msk.bf16.mxu0 %vm12550_vm1, %v16542_v45  ;;  %16589 = vst [vmem:[#allocation97_spill] sm:$0xff] %v15000_v61 }
 0x433   : > { %v14982_v52 = vpop.f32.mrb[128].mxu1 }
 0x434   : > { %16586 = vst [vmem:[#allocation94_spill] sm:$0xff] %v14982_v52  ;;  %v5879_v10 = vpop.f32.mrb[129].mxu1 }
 0x435   : > { %v14989_v35 = vpop.f32.mrb[130].mxu1  ;;  %v1266_v10 = vld [vmem:[%s16485_s2 + $0x3a0] sm:$0xff]  ;;  %v15029_v61 = vpop.permute.xlu0 %1711 }
 0x436   : > { %16588 = vst [vmem:[#allocation96_spill] sm:$0xff] %v14989_v35  ;;  %v5882_v53 = vpop.f32.mrb[131].mxu1  ;;  %1861 = vperm.xlu0 %11590, %v1266_v10   ;;  %v12323_v10 = vld [vmem:[%s16484_s1 + $0x2f0] ss:$36 sps:$4 sm:$0xff]   ;;  %16593 = vst [vmem:[#allocation101_spill] sm:$0xff] %v15029_v61  ;;  %v1253_v61 = vld [vmem:[%s16485_s2 + $0x338] sm:$0xff] }
 0x437   : > { %v15008_v53 = vpop.permute.xlu1 %1626 }
 0x438   : > { %6092 = vmatmul.mubr.bf16.gmra.mrb[236].mxu1 %v12318_v44  ;;  %16590 = vst [vmem:[#allocation98_spill] sm:$0xff] %v15008_v53  ;;  %v12322_v44 = vld [vmem:[%s16484_s1 + $0x10e8] ss:$36 sps:$4 sm:$0xff]  }
 0x439   : > { %10239 = vmatmul.mubr.msk.bf16.gmra.mrb[36].mxu0 %vm4835_vm2, %v12319_v54  ;;  %6099 = vmatprep.mubr.bf16.mxu1 %v12320_v60  ;;  %v1250_v54 = vld [vmem:[%s16485_s2 + $0x320] sm:$0xff]  ;;  %v1251_v53 = vld [vmem:[%s16485_s2 + $0x328] sm:$0xff] }
 0x43a   : > { %10242 = vmatprep.mubr.msk.bf16.mxu0 %vm12550_vm1, %v16542_v45  ;;  %1781 = vperm.xlu0 %11590, %v1250_v54   ;;  %v1269_v54 = vld [vmem:[%s16485_s2 + $0x3b8] sm:$0xff] }
 0x43b   : > { %v15010_v24 = vpop.f32.mrb[132].mxu1  ;;  %1786 = vperm.xlu1 %11591, %v1251_v53  }
 0x43c   : > { %16591 = vst [vmem:[#allocation99_spill] sm:$0xff] %v15010_v24  ;;  %v5887_v35 = vpop.f32.mrb[133].mxu1  ;;  %v15034_v24 = vpop.permute.xlu1 %1716 }
 0x43d   : > { %v15018_v60 = vpop.f32.mrb[134].mxu1  ;;  %16594 = vst [vmem:[#allocation102_spill] sm:$0xff] %v15034_v24 }
 0x43e   : > { %16592 = vst [vmem:[#allocation100_spill] sm:$0xff] %v15018_v60  ;;  %v5890_v35 = vpop.f32.mrb[135].mxu1  ;;  %v1268_v60 = vld [vmem:[%s16485_s2 + $0x3b0] sm:$0xff] }
 0x43f   : > { %1871 = vperm.xlu0 %11590, %v1268_v60   ;;  %1876 = vperm.xlu1 %11591, %v1269_v54   ;;  %v12327_v60 = vld [vmem:[%s16484_s1 + $0x338] ss:$36 sps:$4 sm:$0xff]  }
 0x440   : > { %6100 = vmatmul.mubr.bf16.gmra.mrb[240].mxu1 %v12322_v44  ;;  %v12326_v44 = vld [vmem:[%s16484_s1 + $0x1130] ss:$36 sps:$4 sm:$0xff]   ;;  %v12328_v54 = vld [vmem:[%s16484_s1 + $0x117c] ss:$36 sps:$4 sm:$0xff]  }
 0x441   : > { %10243 = vmatmul.mubr.msk.bf16.gmra.mrb[40].mxu0 %vm4835_vm2, %v12323_v10  ;;  %6107 = vmatprep.mubr.bf16.mxu1 %v12324_v16  ;;  %v1252_v10 = vld [vmem:[%s16485_s2 + $0x330] sm:$0xff]  ;;  %v15050_v16 = vpop.permute.xlu0 %1631 }
 0x442   : > { %10246 = vmatprep.mubr.msk.bf16.mxu0 %vm12550_vm1, %v16542_v45  ;;  %16596 = vst [vmem:[#allocation104_spill] sm:$0xff] %v15050_v16  ;;  %v1270_v16 = vld [vmem:[%s16485_s2 + $0x3c0] sm:$0xff] }
 0x443   : > { %v15042_v35 = vpop.f32.mrb[136].mxu1  ;;  %1791 = vperm.xlu0 %11590, %v1252_v10   ;;  %1796 = vperm.xlu1 %11591, %v1253_v61   ;;  %v1271_v10 = vld [vmem:[%s16485_s2 + $0x3c8] sm:$0xff] }
 0x444   : > { %16595 = vst [vmem:[#allocation103_spill] sm:$0xff] %v15042_v35  ;;  %v5895_v53 = vpop.f32.mrb[137].mxu1  ;;  %v15063_v35 = vpop.permute.xlu1 %1636 }
 0x445   : > { %v15052_v24 = vpop.f32.mrb[138].mxu1  ;;  %16598 = vst [vmem:[#allocation106_spill] sm:$0xff] %v15063_v35 }
 0x446   : > { %16597 = vst [vmem:[#allocation105_spill] sm:$0xff] %v15052_v24  ;;  %v5898_v53 = vpop.f32.mrb[139].mxu1 }
 0x447   : > { %1881 = vperm.xlu0 %11590, %v1270_v16   ;;  %v15074_v53 = vpop.permute.xlu0 %1721  ;;  %1886 = vperm.xlu1 %11591, %v1271_v10   ;;  %v12332_v10 = vld [vmem:[%s16484_s1 + $0x11c4] ss:$36 sps:$4 sm:$0xff]  }
 0x448   : > { %6108 = vmatmul.mubr.bf16.gmra.mrb[244].mxu1 %v12326_v44  ;;  %16599 = vst [vmem:[#allocation107_spill] sm:$0xff] %v15074_v53  ;;  %v12330_v44 = vld [vmem:[%s16484_s1 + $0x1178] ss:$36 sps:$4 sm:$0xff]   ;;  %v12331_v53 = vld [vmem:[%s16484_s1 + $0x380] ss:$36 sps:$4 sm:$0xff]  }
 0x449   : > { %10247 = vmatmul.mubr.msk.bf16.gmra.mrb[44].mxu0 %vm4835_vm2, %v12327_v60  ;;  %6115 = vmatprep.mubr.bf16.mxu1 %v12328_v54  ;;  %v1254_v60 = vld [vmem:[%s16485_s2 + $0x340] sm:$0xff]  ;;  %v15084_v54 = vpop.permute.xlu1 %1726 }
 0x44a   : > { %10250 = vmatprep.mubr.msk.bf16.mxu0 %vm12550_vm1, %v16542_v45  ;;  %16601 = vst [vmem:[#allocation109_spill] sm:$0xff] %v15084_v54  ;;  %v1272_v54 = vld [vmem:[%s16485_s2 + $0x3d0] sm:$0xff] }
 0x44b   : > { %v15076_v35 = vpop.f32.mrb[140].mxu1  ;;  %1801 = vperm.xlu0 %11590, %v1254_v60   ;;  %v1146_v60 = vld [vmem:[%s16484_s1 + $0x1208] sm:$0x11] }
 0x44c   : > { %16600 = vst [vmem:[#allocation108_spill] sm:$0xff] %v15076_v35  ;;  %v5903_v61 = vpop.f32.mrb[141].mxu1  ;;  %v1255_v35 = vld [vmem:[%s16485_s2 + $0x348] sm:$0xff]  ;;  %v9751_v52 = vcombine.high %v1146_v60, %v1146_v60  ;;  %v9750_v62 = vcombine.low %v1146_v60, %v1146_v60 }
 0x44d   : > { %v15086_v16 = vpop.f32.mrb[142].mxu1  ;;  %1806 = vperm.xlu1 %11591, %v1255_v35   ;;  %v1273_v35 = vld [vmem:[%s16485_s2 + $0x3d8] sm:$0xff] }
 0x44e   : > { %16602 = vst [vmem:[#allocation110_spill] sm:$0xff] %v15086_v16  ;;  %v5906_v61 = vpop.f32.mrb[143].mxu1  ;;  %v15100_v16 = vpop.permute.xlu0 %1641 }
 0x44f   : > { %16603 = vst [vmem:[#allocation111_spill] sm:$0xff] %v15100_v16  ;;  %1891 = vperm.xlu0 %11590, %v1272_v54   ;;  %v12335_v54 = vld [vmem:[%s16484_s1 + $0x3c8] ss:$36 sps:$4 sm:$0xff]  }
 0x450   : > { %6116 = vmatmul.mubr.bf16.gmra.mrb[248].mxu1 %v12330_v44  ;;  %v15111_v44 = vpop.permute.xlu1 %1646 }
 0x451   : > { %10251 = vmatmul.mubr.msk.bf16.gmra.mrb[48].mxu0 %vm4835_vm2, %v12331_v53  ;;  %6123 = vmatprep.mubr.bf16.mxu1 %v12332_v10  ;;  %16604 = vst [vmem:[#allocation112_spill] sm:$0xff] %v15111_v44  ;;  %v12334_v53 = vld [vmem:[%s16484_s1 + $0x11c0] ss:$36 sps:$4 sm:$0xff]   ;;  %v1256_v10 = vld [vmem:[%s16485_s2 + $0x350] sm:$0xff] }
 0x452   : > { %10254 = vmatprep.mubr.msk.bf16.mxu0 %vm12550_vm1, %v16542_v45  ;;  %1896 = vperm.xlu1 %11591, %v1273_v35   ;;  %v1652_v35 = vpop.permute.xlu0 %1651 }
 0x453   : > { %v15113_v61 = vpop.f32.mrb[144].mxu1  ;;  %1811 = vperm.xlu0 %11590, %v1256_v10  }
 0x454   : > { %16605 = vst [vmem:[#allocation113_spill] sm:$0xff] %v15113_v61  ;;  %v5911_v16 = vpop.f32.mrb[145].mxu1  ;;  %v1274_v61 = vld [vmem:[%s16485_s2 + $0x3e0] sm:$0xff]  ;;  %v1657_v31 = vpop.permute.xlu1 %1656 }
 0x455   : > { %v15121_v24 = vpop.f32.mrb[146].mxu1  ;;  %v1257_v16 = vld [vmem:[%s16485_s2 + $0x358] sm:$0xff] }
 0x456   : > { %16606 = vst [vmem:[#allocation114_spill] sm:$0xff] %v15121_v24  ;;  %v5914_v44 = vpop.f32.mrb[147].mxu1  ;;  %1816 = vperm.xlu1 %11591, %v1257_v16   ;;  %v5366_v24 = vadd.f32 %v13866_v59, %v1652_v35 }
 0x457   : > { %1901 = vperm.xlu0 %11590, %v1274_v61   ;;  %v1275_v44 = vld [vmem:[%s16485_s2 + $0x3e8] sm:$0xff]  ;;  %v12338_v61 = vld [vmem:[%s16484_s1 + $0x410] ss:$36 sps:$4 sm:$0xff]  }
 0x458   : > { %6124 = vmatmul.mubr.bf16.gmra.mrb[252].mxu1 %v12334_v53  ;;  %v5369_v53 = vadd.f32 %v13874_v2, %v1657_v31  ;;  %v1259_v2 = vld [vmem:[%s16485_s2 + $0x368] sm:$0xff] }
 0x459   : > { %10255 = vmatmul.mubr.msk.bf16.gmra.mrb[52].mxu0 %vm4835_vm2, %v12335_v54  ;;  %6131 = vmatprep.mubr.bf16.mxu1 %v9751_v52  ;;  %v1258_v52 = vld [vmem:[%s16485_s2 + $0x360] sm:$0xff] }
 0x45a   : > { %10258 = vmatprep.mubr.msk.bf16.mxu0 %vm12550_vm1, %v16542_v45  ;;  %1906 = vperm.xlu1 %11591, %v1275_v44   ;;  %v12341_v54 = vld [vmem:[%s16484_s1 + $0xe24] ss:$36 sps:$4 sm:$0xff]  }
 0x45b   : > { %v5917_v10 = vpop.f32.mrb[40].mxu1  ;;  %1821 = vperm.xlu0 %11590, %v1258_v52   ;;  %v12343_v52 = vld [vmem:[%s16484_s1 + $0xe6c] ss:$36 sps:$4 sm:$0xff]  }
 0x45c   : > { %v5918_v16 = vadd.f32 %v5917_v10, %v5366_v24  ;;  %v5919_v40 = vpop.f32.mrb[41].mxu1  ;;  %v1260_v10 = vld [vmem:[%s16485_s2 + $0x370] sm:$0xff] }
 0x45d   : > { %v5920_v59 = vpop.f32.mrb[42].mxu1  ;;  %v1276_v40 = vld [vmem:[%s16485_s2 + $0x3f0] sm:$0xff] }
 0x45e   : > { %v5921_v35 = vadd.f32 %v5920_v59, %v5369_v53  ;;  %v5922_v44 = vpop.f32.mrb[43].mxu1  ;;  %v15153_v31 = vadd.f32 %v14772_v32, %v5918_v16  ;;  %1826 = vperm.xlu1 %11591, %v1259_v2   ;;  %v1277_v32 = vld [vmem:[%s16485_s2 + $0x3f8] sm:$0xff]  ;;  %v12345_v2 = vld [vmem:[%s16484_s1 + $0xe68] ss:$36 sps:$4 sm:$0xff]  }
 0x45f   : > { %1911 = vperm.xlu0 %11590, %v1276_v40   ;;  %v12342_v16 = vld [vmem:[%s16484_s1 + $0x458] ss:$36 sps:$4 sm:$0xff]  }
 0x460   : > { %6132 = vmatmul.mubr.bf16.gmra.mrb[148].mxu1 %v9750_v62  ;;  %v15159_v24 = vadd.f32 %v14782_v41, %v5921_v35  ;;  %v12339_v41 = vld [vmem:[%s16484_s1 + $0xe20] ss:$36 sps:$4 sm:$0xff]  }
 0x461   : > { %10259 = vmatmul.mubr.msk.bf16.gmra.mrb[56].mxu0 %vm4835_vm2, %v12338_v61  ;;  %6571 = vmatprep.mubr.bf16.mxu1 %v12341_v54  ;;  %v1261_v61 = vld [vmem:[%s16485_s2 + $0x378] sm:$0xff]  ;;  %v1278_v35 = vld [vmem:[%s16485_s2 + $0x400] sm:$0x3] }
 0x462   : > { %10262 = vmatprep.mubr.msk.bf16.mxu0 %vm12550_vm1, %v16542_v45  ;;  %1916 = vperm.xlu1 %11591, %v1277_v32   ;;  %v12346_v32 = vld [vmem:[%s16484_s1 + $0x4a0] ss:$36 sps:$4 sm:$0xff]  }
 0x463   : > { %v15167_v60 = vpop.f32.mrb[152].mxu1  ;;  %1831 = vperm.xlu0 %11590, %v1260_v10   ;;  %v8054_v10 = vld [vmem:[%s16487_s4] sm:$0xff] }
 0x464   : > { %v5927_v62 = vpop.f32.mrb[153].mxu1 }
 0x465   : > { %v15175_v53 = vpop.f32.mrb[154].mxu1  ;;  %v12347_v62 = vld [vmem:[%s16484_s1 + $0xeb4] ss:$36 sps:$4 sm:$0xff]  }
 0x466   : > { %v5930_v59 = vpop.f32.mrb[155].mxu1  ;;  %1836 = vperm.xlu1 %11591, %v1261_v61  }
 0x467   : > { %1921 = vperm.xlu0 %11590, %v1278_v35   ;;  %v8056_v59 = vld [vmem:[%s16487_s4 + $0x10] sm:$0xff] }
 0x468   : > { %6572 = vmatmul.mubr.bf16.vlgmr.msra.gmra.mrb[200].mxu1 %v12339_v41  ;;  %v12349_v35 = vld [vmem:[%s16484_s1 + $0xeb0] ss:$36 sps:$4 sm:$0xff]  }
 0x469   : > { %10263 = vmatmul.mubr.msk.bf16.gmra.mrb[60].mxu0 %vm4835_vm2, %v12342_v16  ;;  %6579 = vmatprep.mubr.bf16.mxu1 %v12343_v52  ;;  %v8055_v52 = vld [vmem:[%s16487_s4 + $0x8] sm:$0xff] }
 0x46a   : > { %10266 = vmatprep.mubr.msk.bf16.mxu0 %vm12550_vm1, %v16542_v45  ;;  %8069 = vperm.xlu1 %11591, %v8054_v10   ;;  %v8058_v10 = vld [vmem:[%s16487_s4 + $0x20] sm:$0xff] }
 0x46b   : > { %v15189_v54 = vpop.f32.mrb[156].mxu1  ;;  %8074 = vperm.xlu0 %11590, %v8055_v52  }
 0x46c   : > { %v5935_v44 = vpop.f32.mrb[157].mxu1 }
 0x46d   : > { %v15197_v40 = vpop.f32.mrb[158].mxu1 }
 0x46e   : > { %v5938_v41 = vpop.f32.mrb[159].mxu1  ;;  %8079 = vperm.xlu1 %11591, %v8056_v59   ;;  %v8059_v59 = vld [vmem:[%s16487_s4 + $0x28] sm:$0xff] }
 0x470   : > { %6580 = vmatmul.mubr.bf16.gmra.mrb[204].mxu1 %v12345_v2  ;;  %v12350_v2 = vld [vmem:[%s16484_s1 + $0x4e8] ss:$36 sps:$4 sm:$0xff]  }
 0x471   : > { %10267 = vmatmul.mubr.msk.bf16.gmra.mrb[64].mxu0 %vm4835_vm2, %v12346_v32  ;;  %6587 = vmatprep.mubr.bf16.mxu1 %v12347_v62  ;;  %v12351_v32 = vld [vmem:[%s16484_s1 + $0xefc] ss:$36 sps:$4 sm:$0xff]  }
 0x472   : > { %10270 = vmatprep.mubr.msk.bf16.mxu0 %vm12550_vm1, %v16542_v45  ;;  %v8057_v62 = vld [vmem:[%s16487_s4 + $0x18] sm:$0xff]  ;;  %8089 = vperm.xlu1 %11591, %v8058_v10  }
 0x473   : > { %v15211_v16 = vpop.f32.mrb[160].mxu1  ;;  %8084 = vperm.xlu0 %11590, %v8057_v62   ;;  %v12355_v62 = vld [vmem:[%s16484_s1 + $0xf44] ss:$36 sps:$4 sm:$0xff]   ;;  %v8061_v10 = vld [vmem:[%s16487_s4 + $0x38] sm:$0xff] }
 0x474   : > { %16607 = vst [vmem:[#allocation115_spill] sm:$0xff] %v15211_v16  ;;  %v5943_v61 = vpop.f32.mrb[161].mxu1 }
 0x475   : > { %v15222_v44 = vpop.f32.mrb[162].mxu1  ;;  %v8060_v61 = vld [vmem:[%s16487_s4 + $0x30] sm:$0xff] }
 0x476   : > { %16608 = vst [vmem:[#allocation116_spill] sm:$0xff] %v15222_v44  ;;  %v5946_v41 = vpop.f32.mrb[163].mxu1  ;;  %8099 = vperm.xlu1 %11591, %v8060_v61   ;;  %v8062_v61 = vld [vmem:[%s16487_s4 + $0x40] sm:$0xff] }
 0x477   : > { %8094 = vperm.xlu0 %11590, %v8059_v59   ;;  %v8910_v59 = vld [vmem:[%s16488_s5] sm:$0xff] }
 0x478   : > { %6588 = vmatmul.mubr.bf16.gmra.mrb[208].mxu1 %v12349_v35  ;;  %v12353_v35 = vld [vmem:[%s16484_s1 + $0xef8] ss:$36 sps:$4 sm:$0xff]  }
 0x479   : > { %10271 = vmatmul.mubr.msk.bf16.gmra.mrb[68].mxu0 %vm4835_vm2, %v12350_v2  ;;  %6595 = vmatprep.mubr.bf16.mxu1 %v12351_v32  ;;  %v12354_v32 = vld [vmem:[%s16484_s1 + $0x530] ss:$36 sps:$4 sm:$0xff]  }
 0x47a   : > { %10274 = vmatprep.mubr.msk.bf16.mxu0 %vm12550_vm1, %v16542_v45  ;;  %8925 = vperm.xlu1 %11591, %v8910_v59   ;;  %v8912_v59 = vld [vmem:[%s16488_s5 + $0x10] sm:$0xff] }
 0x47b   : > { %v15239_v52 = vpop.f32.mrb[164].mxu1  ;;  %8104 = vperm.xlu0 %11590, %v8061_v10   ;;  %v12359_v10 = vld [vmem:[%s16484_s1 + $0xf8c] ss:$36 sps:$4 sm:$0xff]  }
 0x47c   : > { %16609 = vst [vmem:[#allocation117_spill] sm:$0xff] %v15239_v52  ;;  %v5951_v41 = vpop.f32.mrb[165].mxu1 }
 0x47d   : > { %v15250_v2 = vpop.f32.mrb[166].mxu1 }
 0x47e   : > { %16610 = vst [vmem:[#allocation118_spill] sm:$0xff] %v15250_v2  ;;  %v5954_v41 = vpop.f32.mrb[167].mxu1  ;;  %8109 = vperm.xlu1 %11591, %v8062_v61   ;;  %v8064_v61 = vld [vmem:[%s16487_s4 + $0x50] sm:$0xff] }
 0x47f   : > { %v8911_v41 = vld [vmem:[%s16488_s5 + $0x8] sm:$0xff] }
 0x480   : > { %6596 = vmatmul.mubr.bf16.gmra.mrb[212].mxu1 %v12353_v35  ;;  %v12357_v35 = vld [vmem:[%s16484_s1 + $0xf40] ss:$36 sps:$4 sm:$0xff]   ;;  %8930 = vperm.xlu0 %11590, %v8911_v41   ;;  %v8063_v41 = vld [vmem:[%s16487_s4 + $0x48] sm:$0xff] }
 0x481   : > { %10275 = vmatmul.mubr.msk.bf16.gmra.mrb[72].mxu0 %vm4835_vm2, %v12354_v32  ;;  %6603 = vmatprep.mubr.bf16.mxu1 %v12355_v62  ;;  %v12358_v62 = vld [vmem:[%s16484_s1 + $0x578] ss:$36 sps:$4 sm:$0xff]  }
 0x482   : > { %10278 = vmatprep.mubr.msk.bf16.mxu0 %vm12550_vm1, %v16542_v45  ;;  %8114 = vperm.xlu1 %11591, %v8063_v41   ;;  %v8914_v41 = vld [vmem:[%s16488_s5 + $0x20] sm:$0xff] }
 0x483   : > { %v15267_v2 = vpop.f32.mrb[168].mxu1 }
 0x484   : > { %16611 = vst [vmem:[#allocation119_spill] sm:$0xff] %v15267_v2  ;;  %v5959_v52 = vpop.f32.mrb[169].mxu1  ;;  %8935 = vperm.xlu0 %11590, %v8912_v59   ;;  %v12363_v59 = vld [vmem:[%s16484_s1 + $0xfd4] ss:$36 sps:$4 sm:$0xff]  }
 0x485   : > { %v15278_v32 = vpop.f32.mrb[170].mxu1 }
 0x486   : > { %16612 = vst [vmem:[#allocation120_spill] sm:$0xff] %v15278_v32  ;;  %v5962_v52 = vpop.f32.mrb[171].mxu1  ;;  %8119 = vperm.xlu1 %11591, %v8064_v61   ;;  %v8066_v61 = vld [vmem:[%s16487_s4 + $0x60] sm:$0xf] }
 0x487   : > { %v8913_v52 = vld [vmem:[%s16488_s5 + $0x18] sm:$0xff] }
 0x488   : > { %6604 = vmatmul.mubr.bf16.gmra.mrb[216].mxu1 %v12357_v35  ;;  %v12361_v35 = vld [vmem:[%s16484_s1 + $0xf88] ss:$36 sps:$4 sm:$0xff]   ;;  %8940 = vperm.xlu0 %11590, %v8913_v52   ;;  %v8065_v52 = vld [vmem:[%s16487_s4 + $0x58] sm:$0xff] }
 0x489   : > { %10279 = vmatmul.mubr.msk.bf16.gmra.mrb[76].mxu0 %vm4835_vm2, %v12358_v62  ;;  %6611 = vmatprep.mubr.bf16.mxu1 %v12359_v10  ;;  %v12362_v10 = vld [vmem:[%s16484_s1 + $0x5c0] ss:$36 sps:$4 sm:$0xff]  }
 0x48a   : > { %10282 = vmatprep.mubr.msk.bf16.mxu0 %vm12550_vm1, %v16542_v45  ;;  %8124 = vperm.xlu1 %11591, %v8065_v52   ;;  %v8916_v52 = vld [vmem:[%s16488_s5 + $0x30] sm:$0xff] }
 0x48b   : > { %v15295_v32 = vpop.f32.mrb[172].mxu1 }
 0x48c   : > { %16613 = vst [vmem:[#allocation121_spill] sm:$0xff] %v15295_v32  ;;  %v5967_v2 = vpop.f32.mrb[173].mxu1  ;;  %8945 = vperm.xlu0 %11590, %v8914_v41   ;;  %v12367_v41 = vld [vmem:[%s16484_s1 + $0x101c] ss:$36 sps:$4 sm:$0xff]  }
 0x48d   : > { %v15306_v62 = vpop.f32.mrb[174].mxu1 }
 0x48e   : > { %16614 = vst [vmem:[#allocation122_spill] sm:$0xff] %v15306_v62  ;;  %v5970_v2 = vpop.f32.mrb[175].mxu1  ;;  %8129 = vperm.xlu1 %11591, %v8066_v61   ;;  %v8919_v61 = vld [vmem:[%s16488_s5 + $0x48] sm:$0xff] }
 0x48f   : > { %v8915_v2 = vld [vmem:[%s16488_s5 + $0x28] sm:$0xff] }
 0x490   : > { %6612 = vmatmul.mubr.bf16.gmra.mrb[220].mxu1 %v12361_v35  ;;  %v12365_v35 = vld [vmem:[%s16484_s1 + $0xfd0] ss:$36 sps:$4 sm:$0xff]   ;;  %8950 = vperm.xlu0 %11590, %v8915_v2   ;;  %v8917_v2 = vld [vmem:[%s16488_s5 + $0x38] sm:$0xff] }
 0x491   : > { %10283 = vmatmul.mubr.msk.bf16.gmra.mrb[80].mxu0 %vm4835_vm2, %v12362_v10  ;;  %6619 = vmatprep.mubr.bf16.mxu1 %v12363_v59  ;;  %v12366_v59 = vld [vmem:[%s16484_s1 + $0x608] ss:$36 sps:$4 sm:$0xff]  }
 0x492   : > { %10286 = vmatprep.mubr.msk.bf16.mxu0 %vm12550_vm1, %v16542_v45  ;;  %8960 = vperm.xlu1 %11591, %v8917_v2   ;;  %v8920_v2 = vld [vmem:[%s16488_s5 + $0x50] sm:$0xff] }
 0x493   : > { %v15323_v62 = vpop.f32.mrb[176].mxu1 }
 0x494   : > { %16615 = vst [vmem:[#allocation123_spill] sm:$0xff] %v15323_v62  ;;  %v5975_v32 = vpop.f32.mrb[177].mxu1  ;;  %8955 = vperm.xlu0 %11590, %v8916_v52   ;;  %v12371_v52 = vld [vmem:[%s16484_s1 + $0x1064] ss:$36 sps:$4 sm:$0xff]  }
 0x495   : > { %v15334_v10 = vpop.f32.mrb[178].mxu1 }
 0x496   : > { %16616 = vst [vmem:[#allocation124_spill] sm:$0xff] %v15334_v10  ;;  %v5978_v32 = vpop.f32.mrb[179].mxu1  ;;  %8970 = vperm.xlu1 %11591, %v8919_v61   ;;  %v9034_v61 = vld [vmem:[#allocation2] sm:$0x1] }
 0x497   : > { %v8918_v32 = vld [vmem:[%s16488_s5 + $0x40] sm:$0xff] }
 0x498   : > { %6620 = vmatmul.mubr.bf16.gmra.mrb[224].mxu1 %v12365_v35  ;;  %v12369_v35 = vld [vmem:[%s16484_s1 + $0x1018] ss:$36 sps:$4 sm:$0xff]   ;;  %8965 = vperm.xlu0 %11590, %v8918_v32  }
 0x499   : > { %10287 = vmatmul.mubr.msk.bf16.gmra.mrb[84].mxu0 %vm4835_vm2, %v12366_v59  ;;  %6627 = vmatprep.mubr.bf16.mxu1 %v12367_v41  ;;  %v12370_v41 = vld [vmem:[%s16484_s1 + $0x650] ss:$36 sps:$4 sm:$0xff]   ;;  %v8921_v32 = vld [vmem:[%s16488_s5 + $0x58] sm:$0xff] }
 0x49a   : > { %10290 = vmatprep.mubr.msk.bf16.mxu0 %vm12550_vm1, %v16542_v45  ;;  %8980 = vperm.xlu1 %11591, %v8921_v32  }
 0x49b   : > { %v15351_v10 = vpop.f32.mrb[180].mxu1 }
 0x49c   : > { %16617 = vst [vmem:[#allocation125_spill] sm:$0xff] %v15351_v10  ;;  %v5983_v62 = vpop.f32.mrb[181].mxu1  ;;  %8975 = vperm.xlu0 %11590, %v8920_v2  }
 0x49d   : > { %v15362_v59 = vpop.f32.mrb[182].mxu1 }
 0x49e   : > { %16618 = vst [vmem:[#allocation126_spill] sm:$0xff] %v15362_v59  ;;  %v5986_v62 = vpop.f32.mrb[183].mxu1  ;;  %9037 = vperm.xlu1 %11591, %v9034_v61   ;;  %v12378_v61 = vld [vmem:[%s16484_s1 + $0x6e0] ss:$36 sps:$4 sm:$0xff]  }
 0x49f   : > { %v8922_v62 = vld [vmem:[%s16488_s5 + $0x60] sm:$0xf] }
 0x4a0   : > { %6628 = vmatmul.mubr.bf16.gmra.mrb[228].mxu1 %v12369_v35  ;;  %v12373_v35 = vld [vmem:[%s16484_s1 + $0x1060] ss:$36 sps:$4 sm:$0xff]   ;;  %8985 = vperm.xlu0 %11590, %v8922_v62  }
 0x4a1   : > { %10291 = vmatmul.mubr.msk.bf16.gmra.mrb[88].mxu0 %vm4835_vm2, %v12370_v41  ;;  %6635 = vmatprep.mubr.bf16.mxu1 %v12371_v52  ;;  %v12374_v41 = vld [vmem:[%s16484_s1 + $0x698] ss:$36 sps:$4 sm:$0xff]   ;;  %v12375_v52 = vld [vmem:[%s16484_s1 + $0x10ac] ss:$36 sps:$4 sm:$0xff]  }
 0x4a2   : > { %10294 = vmatprep.mubr.msk.bf16.mxu0 %vm12550_vm1, %v16542_v45 }
 0x4a3   : > { %v15379_v59 = vpop.f32.mrb[184].mxu1 }
 0x4a4   : > { %16619 = vst [vmem:[#allocation127_spill] sm:$0xff] %v15379_v59  ;;  %v5991_v10 = vpop.f32.mrb[185].mxu1 }
 0x4a5   : > { %v15387_v2 = vpop.f32.mrb[186].mxu1 }
 0x4a6   : > { %16620 = vst [vmem:[#allocation128_spill] sm:$0xff] %v15387_v2  ;;  %v5994_v32 = vpop.f32.mrb[187].mxu1  ;;  %v12377_v2 = vld [vmem:[%s16484_s1 + $0x10a8] ss:$36 sps:$4 sm:$0xff]  }
 0x4a8   : > { %6636 = vmatmul.mubr.bf16.gmra.mrb[232].mxu1 %v12373_v35  ;;  %v12379_v35 = vld [vmem:[%s16484_s1 + $0x10f4] ss:$36 sps:$4 sm:$0xff]  }
 0x4a9   : > { %10295 = vmatmul.mubr.msk.bf16.gmra.mrb[92].mxu0 %vm4835_vm2, %v12374_v41  ;;  %6643 = vmatprep.mubr.bf16.mxu1 %v12375_v52 }
 0x4aa   : > { %10298 = vmatprep.mubr.msk.bf16.mxu0 %vm12550_vm1, %v16542_v45 }
 0x4ab   : > { %v15398_v10 = vpop.f32.mrb[188].mxu1 }
 0x4ac   : > { %16621 = vst [vmem:[#allocation129_spill] sm:$0xff] %v15398_v10  ;;  %v5999_v62 = vpop.f32.mrb[189].mxu1 }
 0x4ad   : > { %v15403_v59 = vpop.f32.mrb[190].mxu1  ;;  %v12381_v62 = vld [vmem:[%s16484_s1 + $0x10f0] ss:$36 sps:$4 sm:$0xff]  }
 0x4ae   : > { %16622 = vst [vmem:[#allocation130_spill] sm:$0xff] %v15403_v59  ;;  %v6002_v41 = vpop.f32.mrb[191].mxu1 }
 0x4af   : > { %v12382_v41 = vld [vmem:[%s16484_s1 + $0x728] ss:$36 sps:$4 sm:$0xff]  }
 0x4b0   : > { %6644 = vmatmul.mubr.bf16.gmra.mrb[236].mxu1 %v12377_v2  ;;  %v12383_v2 = vld [vmem:[%s16484_s1 + $0x113c] ss:$36 sps:$4 sm:$0xff]  }
 0x4b1   : > { %10299 = vmatmul.mubr.msk.bf16.gmra.mrb[96].mxu0 %vm4835_vm2, %v12378_v61  ;;  %6651 = vmatprep.mubr.bf16.mxu1 %v12379_v35 }
 0x4b2   : > { %10302 = vmatprep.mubr.msk.bf16.mxu0 %vm12550_vm1, %v16542_v45 }
 0x4b3   : > { %v15414_v52 = vpop.f32.mrb[192].mxu1 }
 0x4b4   : > { %16623 = vst [vmem:[#allocation131_spill] sm:$0xff] %v15414_v52  ;;  %v6007_v32 = vpop.f32.mrb[193].mxu1 }
 0x4b5   : > { %v15419_v59 = vpop.f32.mrb[194].mxu1 }
 0x4b6   : > { %16624 = vst [vmem:[#allocation132_spill] sm:$0xff] %v15419_v59  ;;  %v6010_v61 = vpop.f32.mrb[195].mxu1  ;;  %v12385_v59 = vld [vmem:[%s16484_s1 + $0x1138] ss:$36 sps:$4 sm:$0xff]  }
 0x4b7   : > { %v12386_v61 = vld [vmem:[%s16484_s1 + $0x770] ss:$36 sps:$4 sm:$0xff]  }
 0x4b8   : > { %6652 = vmatmul.mubr.bf16.gmra.mrb[240].mxu1 %v12381_v62  ;;  %v12387_v62 = vld [vmem:[%s16484_s1 + $0x1184] ss:$36 sps:$4 sm:$0xff]  }
 0x4b9   : > { %10303 = vmatmul.mubr.msk.bf16.gmra.mrb[100].mxu0 %vm4835_vm2, %v12382_v41  ;;  %6659 = vmatprep.mubr.bf16.mxu1 %v12383_v2  ;;  %v10524_v2 = vadd.f32 %v14270_v3, %v14360_v49 }
 0x4ba   : > { %10306 = vmatprep.mubr.msk.bf16.mxu0 %vm12550_vm1, %v16542_v45 }
 0x4bb   : > { %v15430_v35 = vpop.f32.mrb[196].mxu1 }
 0x4bc   : > { %16625 = vst [vmem:[#allocation133_spill] sm:$0xff] %v15430_v35  ;;  %v6015_v32 = vpop.f32.mrb[197].mxu1  ;;  %v10526_v35 = vadd.f32 %v14275_v6, %v14384_v55  ;;  %v1147_v6 = vld [vmem:[%s16484_s1 + $0x1210] sm:$0x11] }
 0x4bd   : > { %v15435_v52 = vpop.f32.mrb[198].mxu1 }
 0x4be   : > { %16626 = vst [vmem:[#allocation134_spill] sm:$0xff] %v15435_v52  ;;  %v6018_v41 = vpop.f32.mrb[199].mxu1  ;;  %v12389_v52 = vld [vmem:[%s16484_s1 + $0x1180] ss:$36 sps:$4 sm:$0xff]  }
 0x4c0   : > { %6660 = vmatmul.mubr.bf16.gmra.mrb[244].mxu1 %v12385_v59  ;;  %v12390_v59 = vld [vmem:[%s16484_s1 + $0x7b8] ss:$36 sps:$4 sm:$0xff]  }
 0x4c1   : > { %10307 = vmatmul.mubr.msk.bf16.gmra.mrb[104].mxu0 %vm4835_vm2, %v12386_v61  ;;  %6667 = vmatprep.mubr.bf16.mxu1 %v12387_v62  ;;  %v12391_v61 = vld [vmem:[%s16484_s1 + $0x11cc] ss:$36 sps:$4 sm:$0xff]  }
 0x4c2   : > { %10310 = vmatprep.mubr.msk.bf16.mxu0 %vm12550_vm1, %v16542_v45 }
 0x4c4   : > { %v7277_v32 = vpop.f32.mrb[0].mxu0 }
 0x4c5   : > { %v10525_v10 = vadd.f32 %v10524_v2, %v7277_v32  ;;  %v10204_v41 = vpop.f32.mrb[1].mxu0  ;;  %v10528_v2 = vadd.f32 %v14286_v13, %v14418_v22 }
 0x4c6   : > { %v7280_v62 = vpop.f32.mrb[2].mxu0  ;;  %v10530_v41 = vadd.f32 %v14291_v18, %v14442_v27  ;;  %v10532_v18 = vadd.f32 %v14302_v25, %v14464_v48 }
 0x4c7   : > { %v10527_v3 = vadd.f32 %v10526_v35, %v7280_v62  ;;  %v10205_v49 = vpop.f32.mrb[3].mxu0  ;;  %v7795_v44 = vmax.f32 %v10525_v10, 0.0  ;;  %v12393_v10 = vld [vmem:[%s16484_s1 + $0x11c8] ss:$36 sps:$4 sm:$0xff]  }
 0x4c8   : > { %6668 = vmatmul.mubr.bf16.gmra.mrb[248].mxu1 %v12389_v52  ;;  %v9752_v49 = vcombine.low %v1147_v6, %v1147_v6 }
 0x4c9   : > { %v7796_v16 = vmax.f32 %v10527_v3, 0.0  ;;  %10311 = vmatmul.mubr.msk.bf16.gmra.mrb[108].mxu0 %vm4835_vm2, %v12390_v59  ;;  %6675 = vmatprep.mubr.bf16.mxu1 %v12391_v61  ;;  %v12394_v59 = vld [vmem:[%s16484_s1 + $0x800] ss:$36 sps:$4 sm:$0xff]   ;;  %v9753_v61 = vcombine.high %v1147_v6, %v1147_v6 }
 0x4ca   : > { %10314 = vmatprep.mubr.msk.bf16.mxu0 %vm12550_vm1, %v16542_v45 }
 0x4cb   : > { %v15465_v55 = vpack.c.bf16 %v7796_v16, %v7795_v44 }
 0x4cc   : > { %v7285_v35 = vpop.f32.mrb[4].mxu0 }
 0x4cd   : > { %v10529_v52 = vadd.f32 %v10528_v2, %v7285_v35  ;;  %v10208_v32 = vpop.f32.mrb[5].mxu0 }
 0x4ce   : > { %v7288_v16 = vpop.f32.mrb[6].mxu0  ;;  %v12413_v32 = vld [vmem:[%s16486_s3 + $0x4] ss:$36 sps:$4 sm:$0xff]  }
 0x4cf   : > { %v10531_v44 = vadd.f32 %v10530_v41, %v7288_v16  ;;  %v10209_v62 = vpop.f32.mrb[7].mxu0  ;;  %v7797_v13 = vmax.f32 %v10529_v52, 0.0  ;;  %v12397_v52 = vld [vmem:[%s16484_s1 + $0x848] ss:$36 sps:$4 sm:$0xff]  }
 0x4d0   : > { %6676 = vmatmul.mubr.bf16.gmra.mrb[252].mxu1 %v12393_v10  ;;  %v10534_v10 = vadd.f32 %v14307_v28, %v14466_v14  ;;  %v10536_v14 = vadd.f32 %v14318_v34, %v14488_v5  ;;  %v10538_v62 = vadd.f32 %v14323_v37, %v14506_v26  ;;  %v10540_v5 = vadd.f32 %v14334_v39, %v14528_v8 }
 0x4d1   : > { %v7798_v22 = vmax.f32 %v10531_v44, 0.0  ;;  %10315 = vmatmul.mubr.msk.bf16.gmra.mrb[112].mxu0 %vm4835_vm2, %v12394_v59  ;;  %6683 = vmatprep.mubr.bf16.mxu1 %v9753_v61  ;;  %v10544_v8 = vadd.f32 %v14352_v47, %v14552_v11  ;;  %v10548_v11 = vadd.f32 %v14386_v56, %v14592_v19  ;;  %v10552_v19 = vadd.f32 %v14420_v23, %v14622_v58 }
 0x4d2   : > { %10318 = vmatprep.mubr.msk.bf16.mxu0 %vm12550_vm1, %v16542_v45  ;;  %v10556_v58 = vadd.f32 %v14446_v33, %v14350_v0  ;;  %v10560_v33 = vadd.f32 %v14468_v50, %v14394_v63 }
 0x4d3   : > { %v15480_v3 = vpack.c.bf16 %v7798_v22, %v7797_v13  ;;  %v12398_v13 = vld [vmem:[%s16484_s1 + $0x890] ss:$36 sps:$4 sm:$0xff]  }
 0x4d4   : > { %v7293_v27 = vpop.f32.mrb[8].mxu0 }
 0x4d5   : > { %v10533_v2 = vadd.f32 %v10532_v18, %v7293_v27  ;;  %v10212_v35 = vpop.f32.mrb[9].mxu0 }
 0x4d6   : > { %v7296_v41 = vpop.f32.mrb[10].mxu0 }
 0x4d7   : > { %v10535_v59 = vadd.f32 %v10534_v10, %v7296_v41  ;;  %v10213_v61 = vpop.f32.mrb[11].mxu0  ;;  %v7799_v25 = vmax.f32 %v10533_v2, 0.0  ;;  %v10542_v10 = vadd.f32 %v14339_v43, %v14530_v29 }
 0x4d8   : > { %6684 = vmatmul.mubr.bf16.gmra.mrb[148].mxu1 %v9752_v49 }
 0x4d9   : > { %v7800_v48 = vmax.f32 %v10535_v59, 0.0  ;;  %10319 = vmatmul.mubr.msk.bf16.gmra.mrb[116].mxu0 %vm4835_vm2, %v12397_v52  ;;  %8489 = vmatprep.mubr.bf16.mxu1 %v12413_v32  ;;  %v12399_v52 = vld [vmem:[%s16484_s1 + $0x8d8] ss:$36 sps:$4 sm:$0xff]  }
 0x4da   : > { %10322 = vmatprep.mubr.msk.bf16.mxu0 %vm12550_vm1, %v16542_v45 }
 0x4db   : > { %v15495_v28 = vpack.c.bf16 %v7800_v48, %v7799_v25 }
 0x4dc   : > { %v7301_v6 = vpop.f32.mrb[12].mxu0 }
 0x4dd   : > { %v10537_v16 = vadd.f32 %v10536_v14, %v7301_v6  ;;  %v10216_v44 = vpop.f32.mrb[13].mxu0  ;;  %v10546_v14 = vadd.f32 %v14362_v20, %v14570_v9  ;;  %v12400_v6 = vld [vmem:[%s16484_s1 + $0x920] ss:$36 sps:$4 sm:$0xff]  }
 0x4de   : > { %v7304_v22 = vpop.f32.mrb[14].mxu0 }
 0x4df   : > { %v10539_v18 = vadd.f32 %v10538_v62, %v7304_v22  ;;  %v10217_v27 = vpop.f32.mrb[15].mxu0  ;;  %v7801_v49 = vmax.f32 %v10537_v16, 0.0 }
 0x4e0   : > { %v10550_v27 = vadd.f32 %v14396_v4, %v14594_v57 }
 0x4e1   : > { %v7802_v2 = vmax.f32 %v10539_v18, 0.0  ;;  %10323 = vmatmul.mubr.msk.bf16.gmra.mrb[120].mxu0 %vm4835_vm2, %v12398_v13 }
 0x4e2   : > { %10326 = vmatprep.mubr.msk.bf16.mxu0 %vm12550_vm1, %v16542_v45 }
 0x4e3   : > { %v15507_v34 = vpack.c.bf16 %v7802_v2, %v7801_v49  ;;  %v12401_v49 = vld [vmem:[%s16484_s1 + $0x968] ss:$36 sps:$4 sm:$0xff]  }
 0x4e4   : > { %v7309_v37 = vpop.f32.mrb[16].mxu0 }
 0x4e5   : > { %v10541_v26 = vadd.f32 %v10540_v5, %v7309_v37  ;;  %v10220_v35 = vpop.f32.mrb[17].mxu0 }
 0x4e6   : > { %v7312_v32 = vpop.f32.mrb[18].mxu0 }
 0x4e7   : > { %v10543_v41 = vadd.f32 %v10542_v10, %v7312_v32  ;;  %v10221_v59 = vpop.f32.mrb[19].mxu0  ;;  %v7803_v61 = vmax.f32 %v10541_v26, 0.0  ;;  %v12402_v32 = vld [vmem:[%s16484_s1 + $0x9b0] ss:$36 sps:$4 sm:$0xff]  }
 0x4e9   : > { %v7804_v25 = vmax.f32 %v10543_v41, 0.0  ;;  %10327 = vmatmul.mubr.msk.bf16.gmra.mrb[124].mxu0 %vm4835_vm2, %v12399_v52  ;;  %v10554_v52 = vadd.f32 %v14428_v30, %v14649_v21 }
 0x4ea   : > { %10330 = vmatprep.mubr.msk.bf16.mxu0 %vm12550_vm1, %v16542_v45 }
 0x4eb   : > { %v15519_v39 = vpack.c.bf16 %v7804_v25, %v7803_v61 }
 0x4ec   : > { %v7317_v43 = vpop.f32.mrb[20].mxu0 }
 0x4ed   : > { %v10545_v29 = vadd.f32 %v10544_v8, %v7317_v43  ;;  %v10224_v48 = vpop.f32.mrb[21].mxu0 }
 0x4ee   : > { %v7320_v16 = vpop.f32.mrb[22].mxu0  ;;  %v12403_v48 = vld [vmem:[%s16484_s1 + $0x9f8] ss:$36 sps:$4 sm:$0xff]  }
 0x4ef   : > { %v10547_v44 = vadd.f32 %v10546_v14, %v7320_v16  ;;  %v10225_v62 = vpop.f32.mrb[23].mxu0  ;;  %v7805_v13 = vmax.f32 %v10545_v29, 0.0  ;;  %v10558_v29 = vadd.f32 %v14453_v51, %v14379_v42 }
 0x4f1   : > { %v7806_v22 = vmax.f32 %v10547_v44, 0.0  ;;  %10331 = vmatmul.mubr.msk.bf16.gmra.mrb[128].mxu0 %vm4835_vm2, %v12400_v6 }
 0x4f2   : > { %10334 = vmatprep.mubr.msk.bf16.mxu0 %vm12550_vm1, %v16542_v45 }
 0x4f3   : > { %v15531_v47 = vpack.c.bf16 %v7806_v22, %v7805_v13  ;;  %v10562_v22 = vadd.f32 %v14475_v36, %v14413_v17  ;;  %v10564_v17 = vadd.f32 %v14490_v7, %v14444_v38 }
 0x4f4   : > { %v7325_v20 = vpop.f32.mrb[24].mxu0 }
 0x4f5   : > { %v10549_v9 = vadd.f32 %v10548_v11, %v7325_v20  ;;  %v10228_v18 = vpop.f32.mrb[25].mxu0  ;;  %v12404_v11 = vld [vmem:[%s16484_s1 + $0xa40] ss:$36 sps:$4 sm:$0xff]  }
 0x4f6   : > { %v7328_v2 = vpop.f32.mrb[26].mxu0 }
 0x4f7   : > { %v10551_v5 = vadd.f32 %v10550_v27, %v7328_v2  ;;  %v10229_v37 = vpop.f32.mrb[27].mxu0  ;;  %v7807_v26 = vmax.f32 %v10549_v9, 0.0 }
 0x4f9   : > { %v7808_v35 = vmax.f32 %v10551_v5, 0.0  ;;  %10335 = vmatmul.mubr.msk.bf16.gmra.mrb[132].mxu0 %vm4835_vm2, %v12401_v49  ;;  %v12405_v5 = vld [vmem:[%s16484_s1 + $0xa88] ss:$36 sps:$4 sm:$0xff]  }
 0x4fa   : > { %10338 = vmatprep.mubr.msk.bf16.mxu0 %vm12550_vm1, %v16542_v45 }
 0x4fb   : > { %v15543_v56 = vpack.c.bf16 %v7808_v35, %v7807_v26 }
 0x4fc   : > { %v7333_v57 = vpop.f32.mrb[28].mxu0 }
 0x4fd   : > { %v10553_v4 = vadd.f32 %v10552_v19, %v7333_v57  ;;  %v10232_v10 = vpop.f32.mrb[29].mxu0 }
 0x4fe   : > { %v7336_v41 = vpop.f32.mrb[30].mxu0  ;;  %v16627_v10 = vld [vmem:[#allocation3_spill] sm:$0xff] }
 0x4ff   : > { %v10555_v59 = vadd.f32 %v10554_v52, %v7336_v41  ;;  %v10233_v61 = vpop.f32.mrb[31].mxu0  ;;  %v7809_v25 = vmax.f32 %v10553_v4, 0.0  ;;  %v16628_v52 = vld [vmem:[#allocation6_spill] sm:$0xff] }
 0x501   : > { %v7810_v8 = vmax.f32 %v10555_v59, 0.0  ;;  %10339 = vmatmul.mubr.msk.bf16.gmra.mrb[136].mxu0 %vm4835_vm2, %v12402_v32  ;;  %v12406_v32 = vld [vmem:[%s16484_s1 + $0xad0] ss:$36 sps:$4 sm:$0xff]  }
 0x502   : > { %10342 = vmatprep.mubr.msk.bf16.mxu0 %vm12550_vm1, %v16542_v45 }
 0x503   : > { %v15555_v23 = vpack.c.bf16 %v7810_v8, %v7809_v25 }
 0x504   : > { %v7341_v30 = vpop.f32.mrb[32].mxu0 }
 0x505   : > { %v10557_v21 = vadd.f32 %v10556_v58, %v7341_v30  ;;  %v10236_v43 = vpop.f32.mrb[33].mxu0  ;;  %v16630_v58 = vld [vmem:[#allocation7_spill] sm:$0xff] }
 0x506   : > { %v7344_v14 = vpop.f32.mrb[34].mxu0 }
 0x507   : > { %v10559_v6 = vadd.f32 %v10558_v29, %v7344_v14  ;;  %v10237_v16 = vpop.f32.mrb[35].mxu0  ;;  %v7811_v44 = vmax.f32 %v10557_v21, 0.0  ;;  %v16632_v14 = vld [vmem:[#allocation9_spill] sm:$0xff] }
 0x509   : > { %v7812_v62 = vmax.f32 %v10559_v6, 0.0  ;;  %10343 = vmatmul.mubr.msk.bf16.gmra.mrb[140].mxu0 %vm4835_vm2, %v12403_v48  ;;  %v16631_v48 = vld [vmem:[#allocation5_spill] sm:$0xff] }
 0x50a   : > { %10346 = vmatprep.mubr.msk.bf16.mxu0 %vm12550_vm1, %v16542_v45  ;;  %v12407_v6 = vld [vmem:[%s16484_s1 + $0xb18] ss:$36 sps:$4 sm:$0xff]  }
 0x50b   : > { %v7932_v0 = vpack.c.bf16 %v7812_v62, %v7811_v44 }
 0x50c   : > { %v7349_v13 = vpop.f32.mrb[36].mxu0 }
 0x50d   : > { %v10561_v42 = vadd.f32 %v10560_v33, %v7349_v13  ;;  %v10240_v51 = vpop.f32.mrb[37].mxu0  ;;  %9960 = vmatprep.subr.bf16.mxu1 %v7932_v0 }
 0x50e   : > { %v7352_v20 = vpop.f32.mrb[38].mxu0  ;;  %9961 = vmatpush3.bf16.msra.mxu1 %v15465_v55  ;;  %v10566_v55 = vadd.f32 %v14495_v12, %v14451_v46  ;;  %v10568_v46 = vadd.f32 %v14510_v15, %v14473_v1  ;;  %v16629_v15 = vld [vmem:[#allocation4_spill] sm:$0xff]  ;;  %v16634_v51 = vld [vmem:[#allocation11_spill] sm:$0xff] }
 0x50f   : > { %v10563_v9 = vadd.f32 %v10562_v22, %v7352_v20  ;;  %v10241_v18 = vpop.f32.mrb[39].mxu0  ;;  %v7813_v27 = vmax.f32 %v10561_v42, 0.0  ;;  %v10572_v30 = vadd.f32 %v16630_v58, %v16629_v15  ;;  %v16633_v42 = vld [vmem:[#allocation8_spill] sm:$0xff] }
 0x510   : > { %v10576_v22 = vadd.f32 %v16634_v51, %v16633_v42  ;;  %v16635_v18 = vld [vmem:[#allocation10_spill] sm:$0xff] }
 0x511   : > { %v7814_v49 = vmax.f32 %v10563_v9, 0.0  ;;  %10347 = vmatmul.mubr.msk.bf16.gmra.mrb[144].mxu0 %vm4835_vm2, %v12404_v11 }
 0x512   : > { %10350 = vmatprep.mubr.msk.bf16.mxu0 %vm12550_vm1, %v16542_v45 }
 0x513   : > { %v7933_v63 = vpack.c.bf16 %v7814_v49, %v7813_v27  ;;  %v16636_v27 = vld [vmem:[#allocation12_spill] sm:$0xff]  ;;  %v12408_v49 = vld [vmem:[%s16484_s1 + $0xb60] ss:$36 sps:$4 sm:$0xff]  }
 0x514   : > { %v7357_v50 = vpop.f32.mrb[40].mxu0 }
 0x515   : > { %v10565_v36 = vadd.f32 %v10564_v17, %v7357_v50  ;;  %v10244_v2 = vpop.f32.mrb[41].mxu0  ;;  %9962 = vmatprep.subr.bf16.mxu1 %v7933_v63 }
 0x516   : > { %v7360_v37 = vpop.f32.mrb[42].mxu0  ;;  %9963 = vmatpush3.bf16.msra.mxu1 %v15480_v3  ;;  %v10570_v3 = vadd.f32 %v16628_v52, %v16627_v10 }
 0x517   : > { %v10567_v26 = vadd.f32 %v10566_v55, %v7360_v37  ;;  %v10245_v35 = vpop.f32.mrb[43].mxu0  ;;  %v7815_v19 = vmax.f32 %v10565_v36, 0.0  ;;  %v16638_v37 = vld [vmem:[#allocation14_spill] sm:$0xff] }
 0x519   : > { %v7816_v57 = vmax.f32 %v10567_v26, 0.0  ;;  %10351 = vmatmul.mubr.msk.bf16.gmra.mrb[0].mxu0 %vm4835_vm2, %v12405_v5  ;;  %v16637_v5 = vld [vmem:[#allocation13_spill] sm:$0xff] }
 0x51a   : > { %10354 = vmatprep.mubr.msk.bf16.mxu0 %vm12550_vm1, %v16542_v45  ;;  %v10580_v26 = vadd.f32 %v16638_v37, %v16637_v5 }
 0x51b   : > { %v7934_v38 = vpack.c.bf16 %v7816_v57, %v7815_v19 }
 0x51c   : > { %v7365_v7 = vpop.f32.mrb[44].mxu0 }
 0x51d   : > { %v10569_v12 = vadd.f32 %v10568_v46, %v7365_v7  ;;  %v10248_v4 = vpop.f32.mrb[45].mxu0  ;;  %9964 = vmatprep.subr.bf16.mxu1 %v7934_v38  ;;  %v16639_v38 = vld [vmem:[#allocation15_spill] sm:$0xff]  ;;  %v16640_v46 = vld [vmem:[#allocation16_spill] sm:$0xff] }
 0x51e   : > { %v7368_v41 = vpop.f32.mrb[46].mxu0  ;;  %9965 = vmatpush3.bf16.msra.mxu1 %v15495_v28  ;;  %v10574_v28 = vadd.f32 %v16632_v14, %v16631_v48  ;;  %v12409_v7 = vld [vmem:[%s16484_s1 + $0xba8] ss:$36 sps:$4 sm:$0xff]  }
 0x51f   : > { %v10571_v59 = vadd.f32 %v10570_v3, %v7368_v41  ;;  %v10249_v61 = vpop.f32.mrb[47].mxu0  ;;  %v7817_v25 = vmax.f32 %v10569_v12, 0.0 }
 0x520   : > { %v16642_v61 = vld [vmem:[#allocation17_spill] sm:$0xff] }
 0x521   : > { %v7818_v8 = vmax.f32 %v10571_v59, 0.0  ;;  %10355 = vmatmul.mubr.msk.bf16.gmra.mrb[152].mxu0 %vm4835_vm2, %v12406_v32  ;;  %v16641_v59 = vld [vmem:[#allocation18_spill] sm:$0xff] }
 0x522   : > { %10358 = vmatprep.mubr.msk.bf16.mxu0 %vm12550_vm1, %v16542_v45 }
 0x523   : > { %v7935_v1 = vpack.c.bf16 %v7818_v8, %v7817_v25  ;;  %v10584_v25 = vadd.f32 %v16642_v61, %v16641_v59  ;;  %v12421_v61 = vld [vmem:[%s16486_s3 + $0x94] ss:$36 sps:$4 sm:$0xff]  }
 0x524   : > { %v7373_v21 = vpop.f32.mrb[48].mxu0 }
 0x525   : > { %v10573_v43 = vadd.f32 %v10572_v30, %v7373_v21  ;;  %v10252_v29 = vpop.f32.mrb[49].mxu0  ;;  %9966 = vmatprep.subr.bf16.mxu1 %v7935_v1  ;;  %v16643_v30 = vld [vmem:[#allocation20_spill] sm:$0xff]  ;;  %v16644_v21 = vld [vmem:[#allocation19_spill] sm:$0xff] }
 0x526   : > { %v7376_v16 = vpop.f32.mrb[50].mxu0  ;;  %9967 = vmatpush3.bf16.msra.mxu1 %v15507_v34  ;;  %v10578_v34 = vadd.f32 %v16636_v27, %v16635_v18  ;;  %v12410_v29 = vld [vmem:[%s16484_s1 + $0xbf0] ss:$36 sps:$4 sm:$0xff]   ;;  %v16648_v18 = vld [vmem:[#allocation22_spill] sm:$0xff] }
 0x527   : > { %v10575_v44 = vadd.f32 %v10574_v28, %v7376_v16  ;;  %v10253_v62 = vpop.f32.mrb[51].mxu0  ;;  %v7819_v0 = vmax.f32 %v10573_v43, 0.0  ;;  %v10586_v43 = vadd.f32 %v16644_v21, %v16643_v30  ;;  %v16653_v21 = vld [vmem:[#allocation41_spill] sm:$0xff] }
 0x529   : > { %v7820_v33 = vmax.f32 %v10575_v44, 0.0  ;;  %10359 = vmatmul.mubr.msk.bf16.gmra.mrb[156].mxu0 %vm4835_vm2, %v12407_v6 }
 0x52a   : > { %10362 = vmatprep.mubr.msk.bf16.mxu0 %vm12550_vm1, %v16542_v45 }
 0x52b   : > { %v7936_v13 = vpack.c.bf16 %v7820_v33, %v7819_v0  ;;  %v16645_v33 = vld [vmem:[#allocation27_spill] sm:$0xff] }
 0x52c   : > { %v7381_v11 = vpop.f32.mrb[52].mxu0 }
 0x52d   : > { %v10577_v20 = vadd.f32 %v10576_v22, %v7381_v11  ;;  %v10256_v9 = vpop.f32.mrb[53].mxu0  ;;  %9968 = vmatprep.subr.bf16.mxu1 %v7936_v13  ;;  %v16646_v13 = vld [vmem:[#allocation21_spill] sm:$0xff] }
 0x52e   : > { %v7384_v63 = vpop.f32.mrb[54].mxu0  ;;  %9969 = vmatpush3.bf16.msra.mxu1 %v15519_v39  ;;  %v10582_v39 = vadd.f32 %v16640_v46, %v16639_v38  ;;  %v10588_v42 = vadd.f32 %v16646_v13, %v16645_v33  ;;  %v16647_v9 = vld [vmem:[#allocation28_spill] sm:$0xff] }
 0x52f   : > { %v10579_v17 = vadd.f32 %v10578_v34, %v7384_v63  ;;  %v10257_v50 = vpop.f32.mrb[55].mxu0  ;;  %v7821_v36 = vmax.f32 %v10577_v20, 0.0  ;;  %v10590_v27 = vadd.f32 %v16648_v18, %v16647_v9  ;;  %v12411_v34 = vld [vmem:[%s16486_s3] ss:$36 sps:$4 sm:$0xff]   ;;  %v12419_v13 = vld [vmem:[%s16486_s3 + $0x90] ss:$36 sps:$4 sm:$0xff]  }
 0x530   : > { %v12417_v50 = vld [vmem:[%s16486_s3 + $0x4c] ss:$36 sps:$4 sm:$0xff]  }
 0x531   : > { %v7822_v2 = vmax.f32 %v10579_v17, 0.0  ;;  %10363 = vmatmul.mubr.msk.bf16.gmra.mrb[160].mxu0 %vm4835_vm2, %v12408_v49  ;;  %v12414_v49 = vld [vmem:[%s16484_s1 + $0xc38] ss:$36 sps:$4 sm:$0xff]  }
 0x532   : > { %10366 = vmatprep.mubr.msk.bf16.mxu0 %vm12550_vm1, %v16542_v45 }
 0x533   : > { %v7937_v55 = vpack.c.bf16 %v7822_v2, %v7821_v36 }
 0x534   : > { %v7389_v35 = vpop.f32.mrb[56].mxu0 }
 0x535   : > { %v10581_v19 = vadd.f32 %v10580_v26, %v7389_v35  ;;  %v10260_v57 = vpop.f32.mrb[57].mxu0  ;;  %9970 = vmatprep.subr.bf16.mxu1 %v7937_v55  ;;  %v16650_v35 = vld [vmem:[#allocation24_spill] sm:$0xff] }
 0x536   : > { %v7392_v12 = vpop.f32.mrb[58].mxu0  ;;  %9971 = vmatpush3.bf16.msra.mxu1 %v15531_v47 }
 0x537   : > { %v10583_v4 = vadd.f32 %v10582_v39, %v7392_v12  ;;  %v10261_v10 = vpop.f32.mrb[59].mxu0  ;;  %v7823_v52 = vmax.f32 %v10581_v19, 0.0  ;;  %v16651_v12 = vld [vmem:[#allocation36_spill] sm:$0xff] }
 0x539   : > { %v7824_v3 = vmax.f32 %v10583_v4, 0.0  ;;  %10367 = vmatmul.mubr.msk.bf16.gmra.mrb[164].mxu0 %vm4835_vm2, %v12409_v7  ;;  %v16652_v4 = vld [vmem:[#allocation26_spill] sm:$0xff] }
 0x53a   : > { %10370 = vmatprep.mubr.msk.bf16.mxu0 %vm12550_vm1, %v16542_v45  ;;  %v10594_v10 = vadd.f32 %v16652_v4, %v16651_v12  ;;  %v12429_v4 = vld [vmem:[%s16486_s3 + $0x124] ss:$36 sps:$4 sm:$0xff]  }
 0x53b   : > { %v7938_v32 = vpack.c.bf16 %v7824_v3, %v7823_v52  ;;  %v15633_v41 = vpop.f32.mrb[200].mxu1  ;;  %v12415_v52 = vld [vmem:[%s16486_s3 + $0x48] ss:$36 sps:$4 sm:$0xff]   ;;  %v12418_v3 = vld [vmem:[%s16484_s1 + $0xc80] ss:$36 sps:$4 sm:$0xff]  }
 0x53c   : > { %v7397_v8 = vpop.f32.mrb[60].mxu0  ;;  %v6575_v1 = vpop.f32.mrb[201].mxu1 }
 0x53d   : > { %v10585_v15 = vadd.f32 %v10584_v25, %v7397_v8  ;;  %v10264_v58 = vpop.f32.mrb[61].mxu0  ;;  %9972 = vmatprep.subr.bf16.mxu1 %v7938_v32  ;;  %v15637_v47 = vpop.f32.mrb[202].mxu1 }
 0x53e   : > { %v7400_v48 = vpop.f32.mrb[62].mxu0  ;;  %9973 = vmatpush3.bf16.msra.mxu1 %v15543_v56  ;;  %v6578_v14 = vpop.f32.mrb[203].mxu1 }
 0x53f   : > { %v10587_v28 = vadd.f32 %v10586_v43, %v7400_v48  ;;  %v10265_v6 = vpop.f32.mrb[63].mxu0  ;;  %v7825_v16 = vmax.f32 %v10585_v15, 0.0  ;;  %v16654_v43 = vld [vmem:[#allocation29_spill] sm:$0xff] }
 0x541   : > { %v7826_v44 = vmax.f32 %v10587_v28, 0.0  ;;  %10371 = vmatmul.mubr.msk.bf16.gmra.mrb[168].mxu0 %vm4835_vm2, %v12410_v29  ;;  %v10596_v29 = vadd.f32 %v16654_v43, %v16653_v21 }
 0x542   : > { %10374 = vmatprep.mubr.msk.bf16.mxu0 %vm12550_vm1, %v16542_v45 }
 0x543   : > { %v7939_v62 = vpack.c.bf16 %v7826_v44, %v7825_v16  ;;  %v15648_v0 = vpop.f32.mrb[204].mxu1  ;;  %v16655_v44 = vld [vmem:[#allocation42_spill] sm:$0xff] }
 0x544   : > { %v7405_v51 = vpop.f32.mrb[64].mxu0  ;;  %v6583_v22 = vpop.f32.mrb[205].mxu1 }
 0x545   : > { %v10589_v11 = vadd.f32 %v10588_v42, %v7405_v51  ;;  %v10268_v56 = vpop.f32.mrb[65].mxu0  ;;  %9974 = vmatprep.subr.bf16.mxu1 %v7939_v62  ;;  %v15652_v20 = vpop.f32.mrb[206].mxu1  ;;  %v16656_v62 = vld [vmem:[#allocation31_spill] sm:$0xff] }
 0x546   : > { %v7408_v63 = vpop.f32.mrb[66].mxu0  ;;  %9975 = vmatpush3.bf16.msra.mxu1 %v15555_v23  ;;  %v6586_v17 = vpop.f32.mrb[207].mxu1  ;;  %v16649_v23 = vld [vmem:[#allocation33_spill] sm:$0xff]  ;;  %v10598_v33 = vadd.f32 %v16656_v62, %v16655_v44  ;;  %v12422_v42 = vld [vmem:[%s16484_s1 + $0xcc8] ss:$36 sps:$4 sm:$0xff]  }
 0x547   : > { %v10591_v36 = vadd.f32 %v10590_v27, %v7408_v63  ;;  %v10269_v2 = vpop.f32.mrb[67].mxu0  ;;  %v7827_v55 = vmax.f32 %v10589_v11, 0.0  ;;  %v10592_v19 = vadd.f32 %v16650_v35, %v16649_v23  ;;  %v12425_v11 = vld [vmem:[%s16486_s3 + $0xdc] ss:$36 sps:$4 sm:$0xff]  }
 0x548   : > { %v16657_v63 = vld [vmem:[#allocation47_spill] sm:$0xff]  ;;  %v16658_v17 = vld [vmem:[#allocation34_spill] sm:$0xff] }
 0x549   : > { %v7828_v5 = vmax.f32 %v10591_v36, 0.0  ;;  %10375 = vmatmul.mubr.msk.bf16.gmra.mrb[172].mxu0 %vm4835_vm2, %v12414_v49  ;;  %8490 = vmatmul.mubr.bf16.vlgmr.msra.gmra.mrb[0].mxu1 %v12411_v34  ;;  %v16659_v35 = vld [vmem:[#allocation50_spill] sm:$0xff] }
 0x54a   : > { %10378 = vmatprep.mubr.msk.bf16.mxu0 %vm12550_vm1, %v16542_v45  ;;  %8497 = vmatprep.mubr.bf16.mxu1 %v12417_v50  ;;  %v10600_v50 = vadd.f32 %v16658_v17, %v16657_v63  ;;  %v12427_v44 = vld [vmem:[%s16486_s3 + $0x120] ss:$36 sps:$4 sm:$0xff]   ;;  %v12430_v62 = vld [vmem:[%s16484_s1 + $0xd58] ss:$36 sps:$4 sm:$0xff]  }
 0x54b   : > { %v15669_v37 = vpack.c.bf16 %v7828_v5, %v7827_v55  ;;  %v15671_v26 = vpop.f32.mrb[208].mxu1  ;;  %v16666_v63 = vld [vmem:[#allocation43_spill] sm:$0xff] }
 0x54c   : > { %v7413_v57 = vpop.f32.mrb[68].mxu0  ;;  %v6591_v38 = vpop.f32.mrb[209].mxu1 }
 0x54d   : > { %v10593_v46 = vadd.f32 %v10592_v19, %v7413_v57  ;;  %v10272_v39 = vpop.f32.mrb[69].mxu0  ;;  %v15675_v7 = vpop.f32.mrb[210].mxu1  ;;  %v16660_v19 = vld [vmem:[#allocation35_spill] sm:$0xff]  ;;  %v12423_v38 = vld [vmem:[%s16486_s3 + $0xd8] ss:$36 sps:$4 sm:$0xff]  }
 0x54e   : > { %v7416_v32 = vpop.f32.mrb[70].mxu0  ;;  %v6594_v59 = vpop.f32.mrb[211].mxu1  ;;  %v10602_v57 = vadd.f32 %v16660_v19, %v16659_v35  ;;  %v16667_v19 = vld [vmem:[#allocation64_spill] sm:$0xff] }
 0x54f   : > { %v10595_v25 = vadd.f32 %v10594_v10, %v7416_v32  ;;  %v10273_v8 = vpop.f32.mrb[71].mxu0  ;;  %v7829_v1 = vmax.f32 %v10593_v46, 0.0  ;;  %v12426_v46 = vld [vmem:[%s16484_s1 + $0xd10] ss:$36 sps:$4 sm:$0xff]  }
 0x550   : > { %v16662_v8 = vld [vmem:[#allocation38_spill] sm:$0xff] }
 0x551   : > { %v7830_v15 = vmax.f32 %v10595_v25, 0.0  ;;  %10379 = vmatmul.mubr.msk.bf16.gmra.mrb[176].mxu0 %vm4835_vm2, %v12418_v3  ;;  %8498 = vmatmul.mubr.bf16.gmra.mrb[4].mxu1 %v12415_v52  ;;  %v16661_v25 = vld [vmem:[#allocation55_spill] sm:$0xff] }
 0x552   : > { %10382 = vmatprep.mubr.msk.bf16.mxu0 %vm12550_vm1, %v16542_v45  ;;  %8505 = vmatprep.mubr.bf16.mxu1 %v12421_v61 }
 0x553   : > { %v15691_v58 = vpack.c.bf16 %v7830_v15, %v7829_v1  ;;  %v15693_v30 = vpop.f32.mrb[212].mxu1  ;;  %v10604_v1 = vadd.f32 %v16662_v8, %v16661_v25 }
 0x554   : > { %v7421_v48 = vpop.f32.mrb[72].mxu0  ;;  %v6599_v14 = vpop.f32.mrb[213].mxu1 }
 0x555   : > { %v10597_v28 = vadd.f32 %v10596_v29, %v7421_v48  ;;  %v10276_v6 = vpop.f32.mrb[73].mxu0  ;;  %v15697_v16 = vpop.f32.mrb[214].mxu1  ;;  %v16663_v14 = vld [vmem:[#allocation56_spill] sm:$0xff] }
 0x556   : > { %v7424_v51 = vpop.f32.mrb[74].mxu0  ;;  %v6602_v22 = vpop.f32.mrb[215].mxu1 }
 0x557   : > { %v10599_v56 = vadd.f32 %v10598_v33, %v7424_v51  ;;  %v10277_v9 = vpop.f32.mrb[75].mxu0  ;;  %v7831_v18 = vmax.f32 %v10597_v28, 0.0  ;;  %v16664_v28 = vld [vmem:[#allocation40_spill] sm:$0xff] }
 0x558   : > { %v10606_v6 = vadd.f32 %v16664_v28, %v16663_v14 }
 0x559   : > { %v7832_v27 = vmax.f32 %v10599_v56, 0.0  ;;  %10383 = vmatmul.mubr.msk.bf16.gmra.mrb[180].mxu0 %vm4835_vm2, %v12422_v42  ;;  %8506 = vmatmul.mubr.bf16.gmra.mrb[8].mxu1 %v12419_v13  ;;  %v12433_v42 = vld [vmem:[%s16486_s3 + $0x16c] ss:$36 sps:$4 sm:$0xff]  }
 0x55a   : > { %10386 = vmatprep.mubr.msk.bf16.mxu0 %vm12550_vm1, %v16542_v45  ;;  %8513 = vmatprep.mubr.bf16.mxu1 %v12425_v11 }
 0x55b   : > { %v15713_v34 = vpack.c.bf16 %v7832_v27, %v7831_v18  ;;  %v15715_v49 = vpop.f32.mrb[216].mxu1  ;;  %v16665_v27 = vld [vmem:[#allocation62_spill] sm:$0xff] }
 0x55c   : > { %v7429_v36 = vpop.f32.mrb[76].mxu0  ;;  %v6607_v2 = vpop.f32.mrb[217].mxu1  ;;  %v10608_v17 = vadd.f32 %v16666_v63, %v16665_v27 }
 0x55d   : > { %v10601_v55 = vadd.f32 %v10600_v50, %v7429_v36  ;;  %v10280_v5 = vpop.f32.mrb[77].mxu0  ;;  %v15719_v23 = vpop.f32.mrb[218].mxu1  ;;  %v8049_v50 = vld [vmem:[%s16486_s3 + $0x1b0] sm:$0x33] }
 0x55e   : > { %v7432_v39 = vpop.f32.mrb[78].mxu0  ;;  %v6610_v12 = vpop.f32.mrb[219].mxu1 }
 0x55f   : > { %v10603_v10 = vadd.f32 %v10602_v57, %v7432_v39  ;;  %v10281_v52 = vpop.f32.mrb[79].mxu0  ;;  %v7833_v3 = vmax.f32 %v10601_v55, 0.0  ;;  %v16668_v57 = vld [vmem:[#allocation45_spill] sm:$0xff]  ;;  %v12434_v39 = vld [vmem:[%s16484_s1 + $0xda0] ss:$36 sps:$4 sm:$0xff]  }
 0x561   : > { %v7834_v32 = vmax.f32 %v10603_v10, 0.0  ;;  %10387 = vmatmul.mubr.msk.bf16.gmra.mrb[184].mxu0 %vm4835_vm2, %v12426_v46  ;;  %8514 = vmatmul.mubr.bf16.gmra.mrb[12].mxu1 %v12423_v38  ;;  %v10610_v38 = vadd.f32 %v16668_v57, %v16667_v19  ;;  %v12431_v46 = vld [vmem:[%s16486_s3 + $0x168] ss:$36 sps:$4 sm:$0xff]   ;;  %v9877_v10 = vcombine.high %v8049_v50, %v8049_v50 }
 0x562   : > { %10390 = vmatprep.mubr.msk.bf16.mxu0 %vm12550_vm1, %v16542_v45  ;;  %8521 = vmatprep.mubr.bf16.mxu1 %v12429_v4 }
 0x563   : > { %v15735_v59 = vpack.c.bf16 %v7834_v32, %v7833_v3  ;;  %v15737_v61 = vpop.f32.mrb[220].mxu1 }
 0x564   : > { %v7437_v15 = vpop.f32.mrb[80].mxu0  ;;  %v6615_v21 = vpop.f32.mrb[221].mxu1 }
 0x565   : > { %v10605_v43 = vadd.f32 %v10604_v1, %v7437_v15  ;;  %v10284_v29 = vpop.f32.mrb[81].mxu0  ;;  %v15741_v48 = vpop.f32.mrb[222].mxu1  ;;  %v16669_v15 = vld [vmem:[#allocation69_spill] sm:$0xff]  ;;  %v16670_v21 = vld [vmem:[#allocation48_spill] sm:$0xff] }
 0x566   : > { %v7440_v33 = vpop.f32.mrb[82].mxu0  ;;  %v6618_v13 = vpop.f32.mrb[223].mxu1 }
 0x567   : > { %v10607_v51 = vadd.f32 %v10606_v6, %v7440_v33  ;;  %v10285_v22 = vpop.f32.mrb[83].mxu0  ;;  %v7835_v11 = vmax.f32 %v10605_v43, 0.0  ;;  %v10612_v43 = vadd.f32 %v16670_v21, %v16669_v15  ;;  %v16672_v33 = vld [vmem:[#allocation49_spill] sm:$0xff] }
 0x569   : > { %v7836_v56 = vmax.f32 %v10607_v51, 0.0  ;;  %10391 = vmatmul.mubr.msk.bf16.gmra.mrb[188].mxu0 %vm4835_vm2, %v12430_v62  ;;  %8522 = vmatmul.mubr.bf16.gmra.mrb[16].mxu1 %v12427_v44  ;;  %v16671_v62 = vld [vmem:[#allocation70_spill] sm:$0xff]  ;;  %v12437_v51 = vld [vmem:[%s16484_s1 + $0xde8] ss:$36 sps:$4 sm:$0xff]  }
 0x56a   : > { %10394 = vmatprep.mubr.msk.bf16.mxu0 %vm12550_vm1, %v16542_v45  ;;  %8529 = vmatprep.mubr.bf16.mxu1 %v12433_v42  ;;  %v10614_v13 = vadd.f32 %v16672_v33, %v16671_v62  ;;  %v9876_v42 = vcombine.low %v8049_v50, %v8049_v50  ;;  %v16678_v62 = vld [vmem:[#allocation57_spill] sm:$0xff] }
 0x56b   : > { %v15757_v9 = vpack.c.bf16 %v7836_v56, %v7835_v11  ;;  %v15759_v18 = vpop.f32.mrb[224].mxu1  ;;  %v12449_v56 = vld [vmem:[%s16486_s3 + $0xc] ss:$36 sps:$4 sm:$0xff]  }
 0x56c   : > { %v7445_v36 = vpop.f32.mrb[84].mxu0  ;;  %v6623_v2 = vpop.f32.mrb[225].mxu1 }
 0x56d   : > { %v10609_v55 = vadd.f32 %v10608_v17, %v7445_v36  ;;  %v10288_v5 = vpop.f32.mrb[85].mxu0  ;;  %v15766_v35 = vpop.f32.mrb[226].mxu1 }
 0x56e   : > { %v7448_v12 = vpop.f32.mrb[86].mxu0  ;;  %v6626_v4 = vpop.f32.mrb[227].mxu1  ;;  %v16674_v5 = vld [vmem:[#allocation52_spill] sm:$0xff] }
 0x56f   : > { %v10611_v52 = vadd.f32 %v10610_v38, %v7448_v12  ;;  %v10289_v3 = vpop.f32.mrb[87].mxu0  ;;  %v7837_v32 = vmax.f32 %v10609_v55, 0.0  ;;  %v16673_v55 = vld [vmem:[#allocation76_spill] sm:$0xff]  ;;  %v16675_v4 = vld [vmem:[#allocation78_spill] sm:$0xff] }
 0x570   : > { %v10616_v19 = vadd.f32 %v16674_v5, %v16673_v55  ;;  %v12438_v3 = vld [vmem:[%s16484_s1 + $0xe30] ss:$36 sps:$4 sm:$0xff]  }
 0x571   : > { %v7838_v25 = vmax.f32 %v10611_v52, 0.0  ;;  %10395 = vmatmul.mubr.msk.bf16.gmra.mrb[192].mxu0 %vm4835_vm2, %v12434_v39  ;;  %8530 = vmatmul.mubr.bf16.gmra.mrb[20].mxu1 %v12431_v46 }
 0x572   : > { %10398 = vmatprep.mubr.msk.bf16.mxu0 %vm12550_vm1, %v16542_v45  ;;  %8537 = vmatprep.mubr.bf16.mxu1 %v9877_v10  ;;  %v16676_v10 = vld [vmem:[#allocation54_spill] sm:$0xff] }
 0x573   : > { %v15779_v8 = vpack.c.bf16 %v7838_v25, %v7837_v32  ;;  %v15781_v1 = vpop.f32.mrb[228].mxu1  ;;  %v10618_v52 = vadd.f32 %v16676_v10, %v16675_v4  ;;  %v16681_v4 = vld [vmem:[#allocation30_spill] sm:$0xff]  ;;  %v16682_v10 = vld [vmem:[#allocation61_spill] sm:$0xff] }
 0x574   : > { %v7453_v29 = vpop.f32.mrb[88].mxu0  ;;  %v6631_v14 = vpop.f32.mrb[229].mxu1 }
 0x575   : > { %v10613_v28 = vadd.f32 %v10612_v43, %v7453_v29  ;;  %v10292_v6 = vpop.f32.mrb[89].mxu0  ;;  %v15785_v44 = vpop.f32.mrb[230].mxu1 }
 0x576   : > { %v7456_v22 = vpop.f32.mrb[90].mxu0  ;;  %v6634_v11 = vpop.f32.mrb[231].mxu1  ;;  %v16677_v6 = vld [vmem:[#allocation23_spill] sm:$0xff] }
 0x577   : > { %v10615_v27 = vadd.f32 %v10614_v13, %v7456_v22  ;;  %v10293_v63 = vpop.f32.mrb[91].mxu0  ;;  %v7839_v17 = vmax.f32 %v10613_v28, 0.0  ;;  %v10620_v33 = vadd.f32 %v16678_v62, %v16677_v6  ;;  %v12440_v62 = vld [vmem:[%s16484_s1 + $0xec0] ss:$36 sps:$4 sm:$0xff]  }
 0x579   : > { %v7840_v36 = vmax.f32 %v10615_v27, 0.0  ;;  %10399 = vmatmul.mubr.msk.bf16.gmra.mrb[196].mxu0 %vm4835_vm2, %v12437_v51  ;;  %8538 = vmatmul.mubr.bf16.gmra.mrb[24].mxu1 %v9876_v42  ;;  %v16680_v27 = vld [vmem:[#allocation58_spill] sm:$0xff] }
 0x57a   : > { %10402 = vmatprep.mubr.msk.bf16.mxu0 %vm12550_vm1, %v16542_v45  ;;  %8577 = vmatprep.mubr.bf16.mxu1 %v12449_v56  ;;  %v16679_v56 = vld [vmem:[#allocation25_spill] sm:$0xff] }
 0x57b   : > { %v15798_v50 = vpack.c.bf16 %v7840_v36, %v7839_v17  ;;  %v15800_v2 = vpop.f32.mrb[232].mxu1  ;;  %v10622_v63 = vadd.f32 %v16680_v27, %v16679_v56  ;;  %v12439_v17 = vld [vmem:[%s16484_s1 + $0xe78] ss:$36 sps:$4 sm:$0xff]  }
 0x57c   : > { %v7461_v57 = vpop.f32.mrb[92].mxu0  ;;  %v6639_v38 = vpop.f32.mrb[233].mxu1 }
 0x57d   : > { %v10617_v46 = vadd.f32 %v10616_v19, %v7461_v57  ;;  %v10296_v39 = vpop.f32.mrb[93].mxu0  ;;  %v15804_v12 = vpop.f32.mrb[234].mxu1 }
 0x57e   : > { %v7464_v32 = vpop.f32.mrb[94].mxu0  ;;  %v6642_v25 = vpop.f32.mrb[235].mxu1 }
 0x57f   : > { %v10619_v15 = vadd.f32 %v10618_v52, %v7464_v32  ;;  %v10297_v21 = vpop.f32.mrb[95].mxu0  ;;  %v7841_v43 = vmax.f32 %v10617_v46, 0.0  ;;  %v10624_v52 = vadd.f32 %v16682_v10, %v16681_v4  ;;  %v16689_v4 = vld [vmem:[#allocation68_spill] sm:$0xff] }
 0x581   : > { %v7842_v29 = vmax.f32 %v10619_v15, 0.0  ;;  %10403 = vmatmul.mubr.msk.bf16.gmra.mrb[200].mxu0 %vm4835_vm2, %v12438_v3 }
 0x582   : > { %10406 = vmatprep.mubr.msk.bf16.mxu0 %vm12550_vm1, %v16542_v45 }
 0x583   : > { %v15814_v14 = vpack.c.bf16 %v7842_v29, %v7841_v43  ;;  %v15816_v28 = vpop.f32.mrb[236].mxu1  ;;  %v16683_v43 = vld [vmem:[#allocation32_spill] sm:$0xff]  ;;  %v16684_v29 = vld [vmem:[#allocation63_spill] sm:$0xff] }
 0x584   : > { %v7469_v13 = vpop.f32.mrb[96].mxu0  ;;  %v6647_v42 = vpop.f32.mrb[237].mxu1  ;;  %v10626_v6 = vadd.f32 %v16684_v29, %v16683_v43 }
 0x585   : > { %v10621_v51 = vadd.f32 %v10620_v33, %v7469_v13  ;;  %v10300_v22 = vpop.f32.mrb[97].mxu0  ;;  %v15820_v11 = vpop.f32.mrb[238].mxu1 }
 0x586   : > { %v7472_v36 = vpop.f32.mrb[98].mxu0  ;;  %v6650_v55 = vpop.f32.mrb[239].mxu1 }
 0x587   : > { %v10623_v5 = vadd.f32 %v10622_v63, %v7472_v36  ;;  %v10301_v19 = vpop.f32.mrb[99].mxu0  ;;  %v7843_v57 = vmax.f32 %v10621_v51, 0.0  ;;  %v16686_v36 = vld [vmem:[#allocation66_spill] sm:$0xff] }
 0x589   : > { %v7844_v38 = vmax.f32 %v10623_v5, 0.0  ;;  %10407 = vmatmul.mubr.msk.bf16.gmra.mrb[204].mxu0 %vm4835_vm2, %v12439_v17  ;;  %v16685_v17 = vld [vmem:[#allocation37_spill] sm:$0xff] }
 0x58a   : > { %10410 = vmatprep.mubr.msk.bf16.mxu0 %vm12550_vm1, %v16542_v45  ;;  %v10628_v55 = vadd.f32 %v16686_v36, %v16685_v17  ;;  %v16694_v17 = vld [vmem:[#allocation46_spill] sm:$0xff]  ;;  %v16695_v36 = vld [vmem:[#allocation72_spill] sm:$0xff] }
 0x58b   : > { %v7948_v46 = vpack.c.bf16 %v7844_v38, %v7843_v57  ;;  %v15830_v39 = vpop.f32.mrb[240].mxu1 }
 0x58c   : > { %v7477_v3 = vpop.f32.mrb[100].mxu0  ;;  %v6655_v32 = vpop.f32.mrb[241].mxu1 }
 0x58d   : > { %v10625_v25 = vadd.f32 %v10624_v52, %v7477_v3  ;;  %v10304_v15 = vpop.f32.mrb[101].mxu0  ;;  %10018 = vmatprep.subr.bf16.mxu1 %v7948_v46  ;;  %v15834_v21 = vpop.f32.mrb[242].mxu1  ;;  %v16688_v46 = vld [vmem:[#allocation39_spill] sm:$0xff] }
 0x58e   : > { %v7480_v33 = vpop.f32.mrb[102].mxu0  ;;  %10019 = vmatpush3.bf16.msra.mxu1 %v15669_v37  ;;  %v6658_v13 = vpop.f32.mrb[243].mxu1  ;;  %v10630_v10 = vadd.f32 %v16689_v4, %v16688_v46  ;;  %v12441_v52 = vld [vmem:[%s16484_s1 + $0xf08] ss:$36 sps:$4 sm:$0xff]  }
 0x58f   : > { %v10627_v42 = vadd.f32 %v10626_v6, %v7480_v33  ;;  %v10305_v51 = vpop.f32.mrb[103].mxu0  ;;  %v7845_v22 = vmax.f32 %v10625_v25, 0.0  ;;  %v16691_v33 = vld [vmem:[#allocation44_spill] sm:$0xff]  ;;  %v16692_v13 = vld [vmem:[#allocation71_spill] sm:$0xff] }
 0x591   : > { %v7846_v56 = vmax.f32 %v10627_v42, 0.0  ;;  %10411 = vmatmul.mubr.msk.bf16.gmra.mrb[208].mxu0 %vm4835_vm2, %v12440_v62  ;;  %v10632_v42 = vadd.f32 %v16692_v13, %v16691_v33  ;;  %v16700_v13 = vld [vmem:[#allocation53_spill] sm:$0xff] }
 0x592   : > { %10414 = vmatprep.mubr.msk.bf16.mxu0 %vm12550_vm1, %v16542_v45 }
 0x593   : > { %v7949_v27 = vpack.c.bf16 %v7846_v56, %v7845_v22  ;;  %v15845_v63 = vpop.f32.mrb[244].mxu1 }
 0x594   : > { %v7485_v5 = vpop.f32.mrb[104].mxu0  ;;  %v6663_v19 = vpop.f32.mrb[245].mxu1 }
 0x595   : > { %v10629_v57 = vadd.f32 %v10628_v55, %v7485_v5  ;;  %v10308_v37 = vpop.f32.mrb[105].mxu0  ;;  %10020 = vmatprep.subr.bf16.mxu1 %v7949_v27  ;;  %v15849_v38 = vpop.f32.mrb[246].mxu1  ;;  %v10634_v55 = vadd.f32 %v16695_v36, %v16694_v17  ;;  %v12442_v5 = vld [vmem:[%s16484_s1 + $0xf50] ss:$36 sps:$4 sm:$0xff]  }
 0x596   : > { %16687 = vst [vmem:[#allocation3_spill] sm:$0xff] %v15849_v38  ;;  %v7488_v3 = vpop.f32.mrb[106].mxu0  ;;  %10021 = vmatpush3.bf16.msra.mxu1 %v15691_v58  ;;  %v6666_v32 = vpop.f32.mrb[247].mxu1  ;;  %v16758_v38 = vld [vmem:[#allocation127_spill] sm:$0xff] }
 0x597   : > { %v10631_v25 = vadd.f32 %v10630_v10, %v7488_v3  ;;  %v10309_v15 = vpop.f32.mrb[107].mxu0  ;;  %v7847_v43 = vmax.f32 %v10629_v57, 0.0  ;;  %v16697_v32 = vld [vmem:[#allocation51_spill] sm:$0xff] }
 0x599   : > { %v7848_v29 = vmax.f32 %v10631_v25, 0.0  ;;  %10415 = vmatmul.mubr.msk.bf16.gmra.mrb[212].mxu0 %vm4835_vm2, %v12441_v52  ;;  %v16698_v25 = vld [vmem:[#allocation75_spill] sm:$0xff] }
 0x59a   : > { %10418 = vmatprep.mubr.msk.bf16.mxu0 %vm12550_vm1, %v16542_v45  ;;  %v10636_v15 = vadd.f32 %v16698_v25, %v16697_v32 }
 0x59b   : > { %v7950_v6 = vpack.c.bf16 %v7848_v29, %v7847_v43  ;;  %v15860_v62 = vpop.f32.mrb[248].mxu1 }
 0x59c   : > { %16690 = vst [vmem:[#allocation6_spill] sm:$0xff] %v15860_v62  ;;  %v7493_v51 = vpop.f32.mrb[108].mxu0  ;;  %v6671_v22 = vpop.f32.mrb[249].mxu1  ;;  %v16755_v62 = vld [vmem:[#allocation125_spill] sm:$0xff] }
 0x59d   : > { %v10633_v56 = vadd.f32 %v10632_v42, %v7493_v51  ;;  %v10312_v58 = vpop.f32.mrb[109].mxu0  ;;  %10022 = vmatprep.subr.bf16.mxu1 %v7950_v6  ;;  %v15864_v27 = vpop.f32.mrb[250].mxu1  ;;  %v16701_v42 = vld [vmem:[#allocation77_spill] sm:$0xff] }
 0x59e   : > { %16693 = vst [vmem:[#allocation4_spill] sm:$0xff] %v15864_v27  ;;  %v7496_v19 = vpop.f32.mrb[110].mxu0  ;;  %10023 = vmatpush3.bf16.msra.mxu1 %v15713_v34  ;;  %v6674_v57 = vpop.f32.mrb[251].mxu1  ;;  %v10638_v51 = vadd.f32 %v16701_v42, %v16700_v13  ;;  %v12443_v22 = vld [vmem:[%s16484_s1 + $0xf98] ss:$36 sps:$4 sm:$0xff]  }
 0x59f   : > { %v10635_v37 = vadd.f32 %v10634_v55, %v7496_v19  ;;  %v10313_v46 = vpop.f32.mrb[111].mxu0  ;;  %v7849_v4 = vmax.f32 %v10633_v56, 0.0 }
 0x5a0   : > { %v16704_v46 = vld [vmem:[#allocation80_spill] sm:$0xff] }
 0x5a1   : > { %v7850_v10 = vmax.f32 %v10635_v37, 0.0  ;;  %10419 = vmatmul.mubr.msk.bf16.gmra.mrb[216].mxu0 %vm4835_vm2, %v12442_v5  ;;  %v16703_v37 = vld [vmem:[#allocation59_spill] sm:$0xff] }
 0x5a2   : > { %10422 = vmatprep.mubr.msk.bf16.mxu0 %vm12550_vm1, %v16542_v45 }
 0x5a3   : > { %v7951_v52 = vpack.c.bf16 %v7850_v10, %v7849_v4  ;;  %v15875_v3 = vpop.f32.mrb[252].mxu1  ;;  %v10640_v4 = vadd.f32 %v16704_v46, %v16703_v37  ;;  %v16709_v46 = vld [vmem:[#allocation67_spill] sm:$0xff] }
 0x5a4   : > { %16696 = vst [vmem:[#allocation7_spill] sm:$0xff] %v15875_v3  ;;  %v7501_v43 = vpop.f32.mrb[112].mxu0  ;;  %v6679_v29 = vpop.f32.mrb[253].mxu1  ;;  %v16752_v3 = vld [vmem:[#allocation123_spill] sm:$0xff] }
 0x5a5   : > { %v10637_v6 = vadd.f32 %v10636_v15, %v7501_v43  ;;  %v10316_v34 = vpop.f32.mrb[113].mxu0  ;;  %10024 = vmatprep.subr.bf16.mxu1 %v7951_v52  ;;  %v15879_v33 = vpop.f32.mrb[254].mxu1  ;;  %v16705_v15 = vld [vmem:[#allocation60_spill] sm:$0xff]  ;;  %v16706_v43 = vld [vmem:[#allocation82_spill] sm:$0xff] }
 0x5a6   : > { %16699 = vst [vmem:[#allocation5_spill] sm:$0xff] %v15879_v33  ;;  %v7504_v56 = vpop.f32.mrb[114].mxu0  ;;  %10025 = vmatpush3.bf16.msra.mxu1 %v15735_v59  ;;  %v6682_v58 = vpop.f32.mrb[255].mxu1  ;;  %v10642_v29 = vadd.f32 %v16706_v43, %v16705_v15 }
 0x5a7   : > { %v10639_v17 = vadd.f32 %v10638_v51, %v7504_v56  ;;  %v10317_v36 = vpop.f32.mrb[115].mxu0  ;;  %v7851_v55 = vmax.f32 %v10637_v6, 0.0  ;;  %v12444_v6 = vld [vmem:[%s16484_s1 + $0xfe0] ss:$36 sps:$4 sm:$0xff]  }
 0x5a8   : > { %v16708_v36 = vld [vmem:[#allocation85_spill] sm:$0xff] }
 0x5a9   : > { %v7852_v5 = vmax.f32 %v10639_v17, 0.0  ;;  %10423 = vmatmul.mubr.msk.bf16.gmra.mrb[220].mxu0 %vm4835_vm2, %v12443_v22  ;;  %v16707_v17 = vld [vmem:[#allocation65_spill] sm:$0xff] }
 0x5aa   : > { %10426 = vmatprep.mubr.msk.bf16.mxu0 %vm12550_vm1, %v16542_v45 }
 0x5ab   : > { %v7952_v19 = vpack.c.bf16 %v7852_v5, %v7851_v55  ;;  %v15890_v57 = vpop.f32.mrb[148].mxu1  ;;  %v10644_v55 = vadd.f32 %v16708_v36, %v16707_v17 }
 0x5ac   : > { %16702 = vst [vmem:[#allocation9_spill] sm:$0xff] %v15890_v57  ;;  %v7509_v10 = vpop.f32.mrb[116].mxu0  ;;  %v6687_v52 = vpop.f32.mrb[149].mxu1 }
 0x5ad   : > { %v10641_v32 = vadd.f32 %v10640_v4, %v7509_v10  ;;  %v10320_v59 = vpop.f32.mrb[117].mxu0  ;;  %10026 = vmatprep.subr.bf16.mxu1 %v7952_v19  ;;  %v6688_v25 = vpop.f32.mrb[150].mxu1  ;;  %v12445_v10 = vld [vmem:[%s16484_s1 + $0x1028] ss:$36 sps:$4 sm:$0xff]  }
 0x5ae   : > { %v7512_v34 = vpop.f32.mrb[118].mxu0  ;;  %10027 = vmatpush3.bf16.msra.mxu1 %v15757_v9  ;;  %v6689_v13 = vpop.f32.mrb[151].mxu1  ;;  %v16710_v9 = vld [vmem:[#allocation86_spill] sm:$0xff] }
 0x5af   : > { %v10643_v42 = vadd.f32 %v10642_v29, %v7512_v34  ;;  %v10321_v51 = vpop.f32.mrb[119].mxu0  ;;  %v7853_v22 = vmax.f32 %v10641_v32, 0.0  ;;  %v10646_v4 = vadd.f32 %v16710_v9, %v16709_v46  ;;  %v16711_v29 = vld [vmem:[#allocation73_spill] sm:$0xff]  ;;  %v16715_v46 = vld [vmem:[#allocation83_spill] sm:$0xff]  ;;  %v16716_v9 = vld [vmem:[#allocation94_spill] sm:$0xff] }
 0x5b1   : > { %v7854_v56 = vmax.f32 %v10643_v42, 0.0  ;;  %10427 = vmatmul.mubr.msk.bf16.gmra.mrb[224].mxu0 %vm4835_vm2, %v12444_v6  ;;  %v16712_v6 = vld [vmem:[#allocation89_spill] sm:$0xff] }
 0x5b2   : > { %10430 = vmatprep.mubr.msk.bf16.mxu0 %vm12550_vm1, %v16542_v45  ;;  %v10648_v34 = vadd.f32 %v16712_v6, %v16711_v29  ;;  %v12453_v6 = vld [vmem:[%s16486_s3 + $0x54] ss:$36 sps:$4 sm:$0xff]  }
 0x5b3   : > { %v7953_v58 = vpack.c.bf16 %v7854_v56, %v7853_v22  ;;  %v16713_v22 = vld [vmem:[#allocation74_spill] sm:$0xff]  ;;  %v16714_v56 = vld [vmem:[#allocation91_spill] sm:$0xff] }
 0x5b4   : > { %v7517_v5 = vpop.f32.mrb[120].mxu0 }
 0x5b5   : > { %v10645_v19 = vadd.f32 %v10644_v55, %v7517_v5  ;;  %v10324_v37 = vpop.f32.mrb[121].mxu0  ;;  %10028 = vmatprep.subr.bf16.mxu1 %v7953_v58  ;;  %v12446_v58 = vld [vmem:[%s16484_s1 + $0x1070] ss:$36 sps:$4 sm:$0xff]  }
 0x5b6   : > { %v7520_v52 = vpop.f32.mrb[122].mxu0  ;;  %10029 = vmatpush3.bf16.msra.mxu1 %v15779_v8  ;;  %v10650_v8 = vadd.f32 %v16714_v56, %v16713_v22  ;;  %v16719_v56 = vld [vmem:[#allocation90_spill] sm:$0xff] }
 0x5b7   : > { %v10647_v32 = vadd.f32 %v10646_v4, %v7520_v52  ;;  %v10325_v59 = vpop.f32.mrb[123].mxu0  ;;  %v7855_v25 = vmax.f32 %v10645_v19, 0.0  ;;  %v10652_v4 = vadd.f32 %v16716_v9, %v16715_v46  ;;  %v12454_v46 = vld [vmem:[%s16484_s1 + $0x1100] ss:$36 sps:$4 sm:$0xff]  }
 0x5b8   : > { %v16717_v59 = vld [vmem:[#allocation84_spill] sm:$0xff] }
 0x5b9   : > { %v7856_v15 = vmax.f32 %v10647_v32, 0.0  ;;  %10431 = vmatmul.mubr.msk.bf16.gmra.mrb[228].mxu0 %vm4835_vm2, %v12445_v10 }
 0x5ba   : > { %10434 = vmatprep.mubr.msk.bf16.mxu0 %vm12550_vm1, %v16542_v45 }
 0x5bb   : > { %v7954_v43 = vpack.c.bf16 %v7856_v15, %v7855_v25  ;;  %v16718_v25 = vld [vmem:[#allocation96_spill] sm:$0xff] }
 0x5bc   : > { %v7525_v13 = vpop.f32.mrb[124].mxu0  ;;  %v12447_v15 = vld [vmem:[%s16486_s3 + $0x8] ss:$36 sps:$4 sm:$0xff]  }
 0x5bd   : > { %v10649_v42 = vadd.f32 %v10648_v34, %v7525_v13  ;;  %v10328_v51 = vpop.f32.mrb[125].mxu0  ;;  %10030 = vmatprep.subr.bf16.mxu1 %v7954_v43  ;;  %v12450_v43 = vld [vmem:[%s16484_s1 + $0x10b8] ss:$36 sps:$4 sm:$0xff]  }
 0x5be   : > { %v7528_v17 = vpop.f32.mrb[126].mxu0  ;;  %10031 = vmatpush3.bf16.msra.mxu1 %v15798_v50  ;;  %v10654_v50 = vadd.f32 %v16718_v25, %v16717_v59 }
 0x5bf   : > { %v10651_v36 = vadd.f32 %v10650_v8, %v7528_v17  ;;  %v10329_v55 = vpop.f32.mrb[127].mxu0  ;;  %v7857_v5 = vmax.f32 %v10649_v42, 0.0  ;;  %v16720_v8 = vld [vmem:[#allocation99_spill] sm:$0xff] }
 0x5c0   : > { %v16721_v55 = vld [vmem:[#allocation92_spill] sm:$0xff] }
 0x5c1   : > { %v7858_v19 = vmax.f32 %v10651_v36, 0.0  ;;  %10435 = vmatmul.mubr.msk.bf16.gmra.mrb[232].mxu0 %vm4835_vm2, %v12446_v58 }
 0x5c2   : > { %10438 = vmatprep.mubr.msk.bf16.mxu0 %vm12550_vm1, %v16542_v45 }
 0x5c3   : > { %v7955_v37 = vpack.c.bf16 %v7858_v19, %v7857_v5  ;;  %v16722_v5 = vld [vmem:[#allocation100_spill] sm:$0xff] }
 0x5c4   : > { %v7533_v10 = vpop.f32.mrb[128].mxu0  ;;  %v10658_v19 = vadd.f32 %v16722_v5, %v16721_v55 }
 0x5c5   : > { %v10653_v52 = vadd.f32 %v10652_v4, %v7533_v10  ;;  %v10332_v32 = vpop.f32.mrb[129].mxu0  ;;  %10032 = vmatprep.subr.bf16.mxu1 %v7955_v37  ;;  %v12451_v37 = vld [vmem:[%s16486_s3 + $0x50] ss:$36 sps:$4 sm:$0xff]   ;;  %v12457_v4 = vld [vmem:[%s16486_s3 + $0x9c] ss:$36 sps:$4 sm:$0xff]  }
 0x5c6   : > { %v7536_v29 = vpop.f32.mrb[130].mxu0  ;;  %10033 = vmatpush3.bf16.msra.mxu1 %v15814_v14  ;;  %v10656_v14 = vadd.f32 %v16720_v8, %v16719_v56  ;;  %v12455_v56 = vld [vmem:[%s16486_s3 + $0x98] ss:$36 sps:$4 sm:$0xff]   ;;  %v12458_v8 = vld [vmem:[%s16484_s1 + $0x1148] ss:$36 sps:$4 sm:$0xff]  }
 0x5c7   : > { %v10655_v34 = vadd.f32 %v10654_v50, %v7536_v29  ;;  %v10333_v13 = vpop.f32.mrb[131].mxu0  ;;  %v7859_v42 = vmax.f32 %v10653_v52, 0.0  ;;  %v16723_v50 = vld [vmem:[#allocation97_spill] sm:$0xff] }
 0x5c8   : > { %v16725_v13 = vld [vmem:[#allocation98_spill] sm:$0xff] }
 0x5c9   : > { %v7860_v51 = vmax.f32 %v10655_v34, 0.0  ;;  %10439 = vmatmul.mubr.msk.bf16.gmra.mrb[236].mxu0 %vm4835_vm2, %v12450_v43  ;;  %8578 = vmatmul.mubr.bf16.vlgmr.msra.gmra.mrb[28].mxu1 %v12447_v15  ;;  %v16724_v15 = vld [vmem:[#allocation103_spill] sm:$0xff] }
 0x5ca   : > { %10442 = vmatprep.mubr.msk.bf16.mxu0 %vm12550_vm1, %v16542_v45  ;;  %8585 = vmatprep.mubr.bf16.mxu1 %v12453_v6  ;;  %v10660_v43 = vadd.f32 %v16724_v15, %v16723_v50  ;;  %v12459_v15 = vld [vmem:[%s16486_s3 + $0xe0] ss:$36 sps:$4 sm:$0xff]  }
 0x5cb   : > { %v15942_v22 = vpack.c.bf16 %v7860_v51, %v7859_v42  ;;  %v16726_v42 = vld [vmem:[#allocation105_spill] sm:$0xff] }
 0x5cc   : > { %v7541_v58 = vpop.f32.mrb[132].mxu0  ;;  %v10662_v51 = vadd.f32 %v16726_v42, %v16725_v13  ;;  %v15993_v42 = vpop.permute.xlu0 %1731 }
 0x5cd   : > { %v10657_v17 = vadd.f32 %v10656_v14, %v7541_v58  ;;  %v10336_v36 = vpop.f32.mrb[133].mxu0  ;;  %v12461_v58 = vld [vmem:[%s16486_s3 + $0xe4] ss:$36 sps:$4 sm:$0xff]  }
 0x5ce   : > { %v7544_v9 = vpop.f32.mrb[134].mxu0 }
 0x5cf   : > { %v10659_v10 = vadd.f32 %v10658_v19, %v7544_v9  ;;  %v10337_v52 = vpop.f32.mrb[135].mxu0  ;;  %v7861_v32 = vmax.f32 %v10657_v17, 0.0 }
 0x5d1   : > { %v7862_v59 = vmax.f32 %v10659_v10, 0.0  ;;  %10443 = vmatmul.mubr.msk.bf16.gmra.mrb[240].mxu0 %vm4835_vm2, %v12454_v46  ;;  %8586 = vmatmul.mubr.bf16.gmra.mrb[32].mxu1 %v12451_v37  ;;  %v16727_v37 = vld [vmem:[#allocation104_spill] sm:$0xff] }
 0x5d2   : > { %10446 = vmatprep.mubr.msk.bf16.mxu0 %vm12550_vm1, %v16542_v45  ;;  %8593 = vmatprep.mubr.bf16.mxu1 %v12457_v4  ;;  %v16728_v46 = vld [vmem:[#allocation108_spill] sm:$0xff] }
 0x5d3   : > { %v15960_v25 = vpack.c.bf16 %v7862_v59, %v7861_v32  ;;  %v10664_v9 = vadd.f32 %v16728_v46, %v16727_v37  ;;  %v16729_v32 = vld [vmem:[#allocation106_spill] sm:$0xff] }
 0x5d4   : > { %v7549_v29 = vpop.f32.mrb[136].mxu0  ;;  %v16730_v59 = vld [vmem:[#allocation110_spill] sm:$0xff] }
 0x5d5   : > { %v10661_v6 = vadd.f32 %v10660_v43, %v7549_v29  ;;  %v10340_v34 = vpop.f32.mrb[137].mxu0  ;;  %v10666_v50 = vadd.f32 %v16730_v59, %v16729_v32  ;;  %v12462_v43 = vld [vmem:[%s16484_s1 + $0x1190] ss:$36 sps:$4 sm:$0xff]   ;;  %v16734_v37 = vld [vmem:[#allocation114_spill] sm:$0xff]  ;;  %v16012_v32 = vpop.permute.xlu0 %1741 }
 0x5d6   : > { %v7552_v14 = vpop.f32.mrb[138].mxu0 }
 0x5d7   : > { %v10663_v17 = vadd.f32 %v10662_v51, %v7552_v14  ;;  %v10341_v36 = vpop.f32.mrb[139].mxu0  ;;  %v7863_v55 = vmax.f32 %v10661_v6, 0.0  ;;  %v12465_v6 = vld [vmem:[%s16486_s3 + $0x12c] ss:$36 sps:$4 sm:$0xff]   ;;  %v16731_v14 = vld [vmem:[#allocation111_spill] sm:$0xff] }
 0x5d9   : > { %v7864_v5 = vmax.f32 %v10663_v17, 0.0  ;;  %10447 = vmatmul.mubr.msk.bf16.gmra.mrb[244].mxu0 %vm4835_vm2, %v12458_v8  ;;  %8594 = vmatmul.mubr.bf16.gmra.mrb[36].mxu1 %v12455_v56  ;;  %v15996_v8 = vpop.permute.xlu1 %1736 }
 0x5da   : > { %10450 = vmatprep.mubr.msk.bf16.mxu0 %vm12550_vm1, %v16542_v45  ;;  %8601 = vmatprep.mubr.bf16.mxu1 %v12461_v58  ;;  %v16732_v58 = vld [vmem:[#allocation113_spill] sm:$0xff] }
 0x5db   : > { %v15978_v19 = vpack.c.bf16 %v7864_v5, %v7863_v55  ;;  %v10668_v17 = vadd.f32 %v16732_v58, %v16731_v14  ;;  %v16733_v5 = vld [vmem:[#allocation112_spill] sm:$0xff] }
 0x5dc   : > { %v7557_v4 = vpop.f32.mrb[140].mxu0  ;;  %v10670_v46 = vadd.f32 %v16734_v37, %v16733_v5  ;;  %v12470_v5 = vld [vmem:[%s16484_s1 + $0x1220] ss:$0 sps:$4 sm:$0x11]  }
 0x5dd   : > { %v10665_v10 = vadd.f32 %v10664_v9, %v7557_v4  ;;  %v10344_v52 = vpop.f32.mrb[141].mxu0 }
 0x5de   : > { %v7560_v29 = vpop.f32.mrb[142].mxu0  ;;  %v12466_v52 = vld [vmem:[%s16484_s1 + $0x11d8] ss:$36 sps:$4 sm:$0xff]  }
 0x5df   : > { %v10667_v34 = vadd.f32 %v10666_v50, %v7560_v29  ;;  %v10345_v13 = vpop.f32.mrb[143].mxu0  ;;  %v7865_v51 = vmax.f32 %v10665_v10, 0.0  ;;  %v12463_v10 = vld [vmem:[%s16486_s3 + $0x128] ss:$36 sps:$4 sm:$0xff]   ;;  %v12469_v50 = vld [vmem:[%s16486_s3 + $0x174] ss:$36 sps:$4 sm:$0xff]   ;;  %v16017_v29 = vpop.permute.xlu1 %1746 }
 0x5e1   : > { %v7866_v56 = vmax.f32 %v10667_v34, 0.0  ;;  %10451 = vmatmul.mubr.msk.bf16.gmra.mrb[248].mxu0 %vm4835_vm2, %v12462_v43  ;;  %8602 = vmatmul.mubr.bf16.gmra.mrb[44].mxu1 %v12459_v15 }
 0x5e2   : > { %10454 = vmatprep.mubr.msk.bf16.mxu0 %vm12550_vm1, %v16542_v45  ;;  %8609 = vmatprep.mubr.bf16.mxu1 %v12465_v6 }
 0x5e3   : > { %v16002_v36 = vpack.c.bf16 %v7866_v56, %v7865_v51  ;;  %v8050_v51 = vld [vmem:[%s16486_s3 + $0x1b8] sm:$0x33]  ;;  %v1662_v56 = vpop.permute.xlu0 %1661  ;;  %v1667_v37 = vpop.permute.xlu1 %1666 }
 0x5e4   : > { %v7565_v55 = vpop.f32.mrb[144].mxu0 }
 0x5e5   : > { %v10669_v9 = vadd.f32 %v10668_v17, %v7565_v55  ;;  %v10348_v4 = vpop.f32.mrb[145].mxu0  ;;  %v12467_v55 = vld [vmem:[%s16486_s3 + $0x170] ss:$36 sps:$4 sm:$0xff]  }
 0x5e6   : > { %v7568_v59 = vpop.f32.mrb[146].mxu0 }
 0x5e7   : > { %v10671_v15 = vadd.f32 %v10670_v46, %v7568_v59  ;;  %v10349_v43 = vpop.f32.mrb[147].mxu0  ;;  %v7867_v6 = vmax.f32 %v10669_v9, 0.0  ;;  %v9879_v9 = vcombine.high %v8050_v51, %v8050_v51 }
 0x5e8   : > { %v16041_v43 = vpop.permute.xlu1 %1756 }
 0x5e9   : > { %v7868_v34 = vmax.f32 %v10671_v15, 0.0  ;;  %10455 = vmatmul.mubr.msk.bf16.gmra.mrb[252].mxu0 %vm4835_vm2, %v12466_v52  ;;  %8610 = vmatmul.mubr.bf16.gmra.mrb[48].mxu1 %v12463_v10 }
 0x5ea   : > { %10458 = vmatprep.mubr.msk.bf16.mxu0 %vm12550_vm1, %v16542_v45  ;;  %8617 = vmatprep.mubr.bf16.mxu1 %v12469_v50  ;;  %v10680_v50 = vadd.f32 %v15167_v60, %v1662_v56  ;;  %v16737_v45 = vld [vmem:[#allocation81_spill] sm:$0xff] }
 0x5eb   : > { %v16022_v13 = vpack.c.bf16 %v7868_v34, %v7867_v6  ;;  %v10682_v34 = vadd.f32 %v15175_v53, %v1667_v37 }
 0x5ec   : > { %v7573_v14 = vpop.f32.mrb[0].mxu0  ;;  %v1677_v56 = vpop.permute.xlu1 %1676 }
 0x5ed   : > { %v10675_v58 = vadd.f32 %v15153_v31, %v7573_v14  ;;  %v10352_v17 = vpop.f32.mrb[1].mxu0  ;;  %v16036_v31 = vpop.permute.xlu0 %1751 }
 0x5ee   : > { %v7576_v46 = vpop.f32.mrb[2].mxu0  ;;  %v9878_v17 = vcombine.low %v8050_v51, %v8050_v51  ;;  %v10686_v51 = vadd.f32 %v15197_v40, %v1677_v56 }
 0x5ef   : > { %v10679_v4 = vadd.f32 %v15159_v24, %v7576_v46  ;;  %v10353_v10 = vpop.f32.mrb[3].mxu0  ;;  %v7869_v52 = vmax.f32 %v10675_v58, 0.0 }
 0x5f1   : > { %v7870_v59 = vmax.f32 %v10679_v4, 0.0  ;;  %10459 = vmatmul.mubr.msk.bf16.gmra.mrb[148].mxu0 %vm4835_vm2, %v12470_v5  ;;  %8618 = vmatmul.mubr.bf16.gmra.mrb[52].mxu1 %v12467_v55  ;;  %v12475_v55 = vld [vmem:[%s16486_s3 + $0x14] ss:$36 sps:$4 sm:$0xff]  }
 0x5f2   : > { %8625 = vmatprep.mubr.bf16.mxu1 %v9879_v9  ;;  %v1672_v9 = vpop.permute.xlu0 %1671 }
 0x5f3   : > { %v16039_v15 = vpack.c.bf16 %v7870_v59, %v7869_v52  ;;  %v10684_v10 = vadd.f32 %v15189_v54, %v1672_v9  ;;  %v16738_v54 = vld [vmem:[#allocation116_spill] sm:$0xff] }
 0x5f4   : > { %v7581_v6 = vpop.f32.mrb[152].mxu0  ;;  %v10690_v9 = vadd.f32 %v16738_v54, %v16737_v45 }
 0x5f5   : > { %v10681_v14 = vadd.f32 %v10680_v50, %v7581_v6  ;;  %v10356_v24 = vpop.f32.mrb[153].mxu0 }
 0x5f6   : > { %v7584_v58 = vpop.f32.mrb[154].mxu0  ;;  %v16062_v45 = vpop.permute.xlu0 %1841 }
 0x5f7   : > { %v10683_v5 = vadd.f32 %v10682_v34, %v7584_v58  ;;  %v10357_v46 = vpop.f32.mrb[155].mxu0  ;;  %v7871_v4 = vmax.f32 %v10681_v14, 0.0  ;;  %v16736_v14 = vld [vmem:[#allocation115_spill] sm:$0xff] }
 0x5f8   : > { %v16735_v46 = vld [vmem:[#allocation79_spill] sm:$0xff] }
 0x5f9   : > { %v7872_v60 = vmax.f32 %v10683_v5, 0.0  ;;  %8626 = vmatmul.mubr.bf16.gmra.mrb[56].mxu1 %v9878_v17  ;;  %v10688_v5 = vadd.f32 %v16736_v14, %v16735_v46  ;;  %v16742_v46 = vld [vmem:[#allocation118_spill] sm:$0xff] }
 0x5fa   : > { %8665 = vmatprep.mubr.bf16.mxu1 %v12475_v55 }
 0x5fb   : > { %v16048_v52 = vpack.c.bf16 %v7872_v60, %v7871_v4 }
 0x5fc   : > { %v7589_v53 = vpop.f32.mrb[156].mxu0 }
 0x5fd   : > { %v10685_v37 = vadd.f32 %v10684_v10, %v7589_v53  ;;  %v10360_v59 = vpop.f32.mrb[157].mxu0 }
 0x5fe   : > { %v7592_v50 = vpop.f32.mrb[158].mxu0  ;;  %v16740_v59 = vld [vmem:[#allocation117_spill] sm:$0xff] }
 0x5ff   : > { %v10687_v6 = vadd.f32 %v10686_v51, %v7592_v50  ;;  %v10361_v24 = vpop.f32.mrb[159].mxu0  ;;  %v7873_v34 = vmax.f32 %v10685_v37, 0.0  ;;  %v16739_v51 = vld [vmem:[#allocation87_spill] sm:$0xff] }
 0x600   : > { %v10692_v37 = vadd.f32 %v16740_v59, %v16739_v51  ;;  %v16741_v24 = vld [vmem:[#allocation88_spill] sm:$0xff] }
 0x601   : > { %v7874_v58 = vmax.f32 %v10687_v6, 0.0  ;;  %v16746_v51 = vld [vmem:[#allocation120_spill] sm:$0xff] }
 0x603   : > { %v16053_v17 = vpack.c.bf16 %v7874_v58, %v7873_v34  ;;  %v10694_v34 = vadd.f32 %v16742_v46, %v16741_v24 }
 0x604   : > { %v7597_v55 = vpop.f32.mrb[160].mxu0 }
 0x605   : > { %v10689_v4 = vadd.f32 %v10688_v5, %v7597_v55  ;;  %v10364_v60 = vpop.f32.mrb[161].mxu0 }
 0x606   : > { %v7600_v57 = vpop.f32.mrb[162].mxu0 }
 0x607   : > { %v10691_v40 = vadd.f32 %v10690_v9, %v7600_v57  ;;  %v10365_v56 = vpop.f32.mrb[163].mxu0  ;;  %v7875_v10 = vmax.f32 %v10689_v4, 0.0  ;;  %v16743_v9 = vld [vmem:[#allocation93_spill] sm:$0xff]  ;;  %v16744_v4 = vld [vmem:[#allocation119_spill] sm:$0xff] }
 0x608   : > { %v10696_v60 = vadd.f32 %v16744_v4, %v16743_v9  ;;  %v16066_v56 = vpop.permute.xlu1 %1846 }
 0x609   : > { %v7876_v53 = vmax.f32 %v10691_v40, 0.0 }
 0x60b   : > { %v7964_v50 = vpack.c.bf16 %v7876_v53, %v7875_v10  ;;  %v16745_v53 = vld [vmem:[#allocation95_spill] sm:$0xff] }
 0x60c   : > { %v7605_v6 = vpop.f32.mrb[164].mxu0  ;;  %v10698_v59 = vadd.f32 %v16746_v51, %v16745_v53 }
 0x60d   : > { %v10693_v58 = vadd.f32 %v10692_v37, %v7605_v6  ;;  %v10368_v14 = vpop.f32.mrb[165].mxu0  ;;  %10076 = vmatprep.subr.bf16.mxu1 %v7964_v50  ;;  %v16070_v37 = vpop.permute.xlu0 %1761 }
 0x60e   : > { %v7608_v33 = vpop.f32.mrb[166].mxu0  ;;  %10077 = vmatpush3.bf16.msra.mxu1 %v15942_v22  ;;  %v16748_v14 = vld [vmem:[#allocation121_spill] sm:$0xff] }
 0x60f   : > { %v10695_v57 = vadd.f32 %v10694_v34, %v7608_v33  ;;  %v10369_v5 = vpop.f32.mrb[167].mxu0  ;;  %v7877_v55 = vmax.f32 %v10693_v58, 0.0  ;;  %v16747_v58 = vld [vmem:[#allocation101_spill] sm:$0xff] }
 0x610   : > { %v16075_v5 = vpop.permute.xlu1 %1766 }
 0x611   : > { %v7878_v54 = vmax.f32 %v10695_v57, 0.0  ;;  %v10700_v57 = vadd.f32 %v16748_v14, %v16747_v58  ;;  %v16751_v14 = vld [vmem:[#allocation107_spill] sm:$0xff] }
 0x613   : > { %v7965_v40 = vpack.c.bf16 %v7878_v54, %v7877_v55  ;;  %v16077_v55 = vpop.permute.xlu0 %1851 }
 0x614   : > { %v7613_v10 = vpop.f32.mrb[168].mxu0 }
 0x615   : > { %v10697_v50 = vadd.f32 %v10696_v60, %v7613_v10  ;;  %v10372_v22 = vpop.f32.mrb[169].mxu0  ;;  %10078 = vmatprep.subr.bf16.mxu1 %v7965_v40  ;;  %v16749_v60 = vld [vmem:[#allocation102_spill] sm:$0xff] }
 0x616   : > { %v7616_v6 = vpop.f32.mrb[170].mxu0  ;;  %10079 = vmatpush3.bf16.msra.mxu1 %v15960_v25  ;;  %v16750_v10 = vld [vmem:[#allocation122_spill] sm:$0xff] }
 0x617   : > { %v10699_v33 = vadd.f32 %v10698_v59, %v7616_v6  ;;  %v10373_v24 = vpop.f32.mrb[171].mxu0  ;;  %v7879_v46 = vmax.f32 %v10697_v50, 0.0  ;;  %v10702_v40 = vadd.f32 %v16750_v10, %v16749_v60  ;;  %v10704_v60 = vadd.f32 %v16752_v3, %v16751_v14 }
 0x619   : > { %v7880_v34 = vmax.f32 %v10699_v33, 0.0 }
 0x61b   : > { %v7966_v54 = vpack.c.bf16 %v7880_v34, %v7879_v46 }
 0x61c   : > { %v7621_v9 = vpop.f32.mrb[172].mxu0  ;;  %v9976_v4 = vpop.f32.mrb[0].mxu1 }
 0x61d   : > { %v10701_v53 = vadd.f32 %v10700_v57, %v7621_v9  ;;  %v10376_v51 = vpop.f32.mrb[173].mxu0  ;;  %v9977_v25 = vpop.f32.mrb[1].mxu1  ;;  %10080 = vmatprep.subr.bf16.mxu1 %v7966_v54 }
 0x61e   : > { %v16081_v59 = vadd.f32 %v9977_v25, %v9976_v4  ;;  %v7624_v50 = vpop.f32.mrb[174].mxu0  ;;  %v9979_v22 = vpop.f32.mrb[2].mxu1  ;;  %10081 = vmatpush3.bf16.msra.mxu1 %v15978_v19  ;;  %v16753_v51 = vld [vmem:[#allocation109_spill] sm:$0xff]  ;;  %v16754_v25 = vld [vmem:[#allocation124_spill] sm:$0xff] }
 0x61f   : > { %v10703_v6 = vadd.f32 %v10702_v40, %v7624_v50  ;;  %v10377_v33 = vpop.f32.mrb[175].mxu0  ;;  %v9980_v24 = vpop.f32.mrb[3].mxu1  ;;  %v7881_v46 = vmax.f32 %v10701_v53, 0.0  ;;  %v10706_v19 = vadd.f32 %v16754_v25, %v16753_v51  ;;  %v10708_v51 = vadd.f32 %v16755_v62, %v15993_v42 }
 0x620   : > { %v16084_v58 = vadd.f32 %v9980_v24, %v9979_v22  ;;  %v16088_v57 = vpop.permute.xlu1 %1856  ;;  %v16090_v9 = vpop.permute.xlu0 %1771 }
 0x621   : > { %v7882_v34 = vmax.f32 %v10703_v6, 0.0 }
 0x623   : > { %v7967_v54 = vpack.c.bf16 %v7882_v34, %v7881_v46 }
 0x624   : > { %v7629_v4 = vpop.f32.mrb[176].mxu0  ;;  %v9982_v10 = vpop.f32.mrb[4].mxu1 }
 0x625   : > { %v10705_v40 = vadd.f32 %v10704_v60, %v7629_v4  ;;  %v10380_v50 = vpop.f32.mrb[177].mxu0  ;;  %v9983_v33 = vpop.f32.mrb[5].mxu1  ;;  %10082 = vmatprep.subr.bf16.mxu1 %v7967_v54 }
 0x626   : > { %v16094_v22 = vadd.f32 %v9983_v33, %v9982_v10  ;;  %v7632_v53 = vpop.f32.mrb[178].mxu0  ;;  %v9985_v6 = vpop.f32.mrb[6].mxu1  ;;  %10083 = vmatpush3.bf16.msra.mxu1 %v16002_v36  ;;  %v16756_v50 = vld [vmem:[#allocation126_spill] sm:$0xff] }
 0x627   : > { %v10707_v3 = vadd.f32 %v10706_v19, %v7632_v53  ;;  %v10381_v24 = vpop.f32.mrb[179].mxu0  ;;  %v9986_v14 = vpop.f32.mrb[7].mxu1  ;;  %v7883_v46 = vmax.f32 %v10705_v40, 0.0  ;;  %v10710_v36 = vadd.f32 %v16756_v50, %v15996_v8  ;;  %v10712_v8 = vadd.f32 %v16758_v38, %v16012_v32 }
 0x628   : > { %v16097_v27 = vadd.f32 %v9986_v14, %v9985_v6  ;;  %v16101_v60 = vpop.permute.xlu1 %1776  ;;  %v16103_v4 = vpop.permute.xlu0 %1861 }
 0x629   : > { %v7884_v34 = vmax.f32 %v10707_v3, 0.0 }
 0x62b   : > { %v7968_v54 = vpack.c.bf16 %v7884_v34, %v7883_v46 }
 0x62c   : > { %v7637_v10 = vpop.f32.mrb[180].mxu0  ;;  %v9988_v25 = vpop.f32.mrb[8].mxu1 }
 0x62d   : > { %v10709_v19 = vadd.f32 %v10708_v51, %v7637_v10  ;;  %v10384_v33 = vpop.f32.mrb[181].mxu0  ;;  %v9989_v53 = vpop.f32.mrb[9].mxu1  ;;  %10084 = vmatprep.subr.bf16.mxu1 %v7968_v54 }
 0x62e   : > { %v16107_v6 = vadd.f32 %v9989_v53, %v9988_v25  ;;  %v7640_v40 = vpop.f32.mrb[182].mxu0  ;;  %v9991_v3 = vpop.f32.mrb[10].mxu1  ;;  %10085 = vmatpush3.bf16.msra.mxu1 %v16022_v13  ;;  %v16759_v33 = vld [vmem:[#allocation128_spill] sm:$0xff] }
 0x62f   : > { %v10711_v62 = vadd.f32 %v10710_v36, %v7640_v40  ;;  %v10385_v42 = vpop.f32.mrb[183].mxu0  ;;  %v9992_v24 = vpop.f32.mrb[11].mxu1  ;;  %v7885_v46 = vmax.f32 %v10709_v19, 0.0  ;;  %v10714_v13 = vadd.f32 %v16759_v33, %v16017_v29 }
 0x630   : > { %v16110_v14 = vadd.f32 %v9992_v24, %v9991_v3  ;;  %v16114_v51 = vpop.permute.xlu1 %1866  ;;  %v16116_v10 = vpop.permute.xlu0 %1781 }
 0x631   : > { %v7886_v34 = vmax.f32 %v10711_v62, 0.0 }
 0x632   : > { %16757 = vst [vmem:[#allocation8_spill] sm:$0xff] %v16110_v14  ;;  %v16761_v14 = vld [vmem:[#allocation129_spill] sm:$0xff] }
 0x633   : > { %v7969_v54 = vpack.c.bf16 %v7886_v34, %v7885_v46  ;;  %v10716_v29 = vadd.f32 %v16761_v14, %v16036_v31 }
 0x634   : > { %v7645_v25 = vpop.f32.mrb[184].mxu0  ;;  %v9994_v50 = vpop.f32.mrb[12].mxu1 }
 0x635   : > { %v10713_v36 = vadd.f32 %v10712_v8, %v7645_v25  ;;  %v10388_v53 = vpop.f32.mrb[185].mxu0  ;;  %v9995_v40 = vpop.f32.mrb[13].mxu1  ;;  %10086 = vmatprep.subr.bf16.mxu1 %v7969_v54 }
 0x636   : > { %v16120_v3 = vadd.f32 %v9995_v40, %v9994_v50  ;;  %v7648_v19 = vpop.f32.mrb[186].mxu0  ;;  %v9997_v62 = vpop.f32.mrb[14].mxu1  ;;  %10087 = vmatpush3.bf16.msra.mxu1 %v16039_v15  ;;  %v16762_v53 = vld [vmem:[#allocation130_spill] sm:$0xff] }
 0x637   : > { %v10715_v38 = vadd.f32 %v10714_v13, %v7648_v19  ;;  %v10389_v32 = vpop.f32.mrb[187].mxu0  ;;  %v9998_v42 = vpop.f32.mrb[15].mxu1  ;;  %v7887_v46 = vmax.f32 %v10713_v36, 0.0  ;;  %v10718_v15 = vadd.f32 %v16762_v53, %v16041_v43 }
 0x638   : > { %v16123_v24 = vadd.f32 %v9998_v42, %v9997_v62  ;;  %v16127_v8 = vpop.permute.xlu1 %1786  ;;  %v16129_v25 = vpop.permute.xlu0 %1871 }
 0x639   : > { %v7888_v34 = vmax.f32 %v10715_v38, 0.0 }
 0x63a   : > { %16760 = vst [vmem:[#allocation11_spill] sm:$0xff] %v16123_v24  ;;  %v16763_v24 = vld [vmem:[#allocation131_spill] sm:$0xff] }
 0x63b   : > { %v7970_v54 = vpack.c.bf16 %v7888_v34, %v7887_v46  ;;  %v10720_v43 = vadd.f32 %v16763_v24, %v16070_v37 }
 0x63c   : > { %v7653_v50 = vpop.f32.mrb[188].mxu0  ;;  %v10000_v33 = vpop.f32.mrb[16].mxu1 }
 0x63d   : > { %v10717_v13 = vadd.f32 %v10716_v29, %v7653_v50  ;;  %v10392_v40 = vpop.f32.mrb[189].mxu0  ;;  %v10001_v19 = vpop.f32.mrb[17].mxu1  ;;  %10088 = vmatprep.subr.bf16.mxu1 %v7970_v54 }
 0x63e   : > { %v16133_v62 = vadd.f32 %v10001_v19, %v10000_v33  ;;  %v7656_v36 = vpop.f32.mrb[190].mxu0  ;;  %v10003_v38 = vpop.f32.mrb[18].mxu1  ;;  %10089 = vmatpush3.bf16.msra.mxu1 %v16048_v52  ;;  %v16764_v40 = vld [vmem:[#allocation132_spill] sm:$0xff] }
 0x63f   : > { %v10719_v31 = vadd.f32 %v10718_v15, %v7656_v36  ;;  %v10393_v14 = vpop.f32.mrb[191].mxu0  ;;  %v10004_v32 = vpop.f32.mrb[19].mxu1  ;;  %v7889_v46 = vmax.f32 %v10717_v13, 0.0  ;;  %v10722_v52 = vadd.f32 %v16764_v40, %v16075_v5  ;;  %v12473_v13 = vld [vmem:[%s16486_s3 + $0x10] ss:$36 sps:$4 sm:$0xff]  }
 0x640   : > { %v16136_v42 = vadd.f32 %v10004_v32, %v10003_v38  ;;  %v16140_v29 = vpop.permute.xlu1 %1876  ;;  %v16142_v50 = vpop.permute.xlu0 %1791 }
 0x641   : > { %v7890_v34 = vmax.f32 %v10719_v31, 0.0  ;;  %v12478_v31 = vld [vmem:[%s16486_s3 + $0x5c] ss:$36 sps:$4 sm:$0xff]  }
 0x643   : > { %v7971_v54 = vpack.c.bf16 %v7890_v34, %v7889_v46 }
 0x644   : > { %v7661_v33 = vpop.f32.mrb[192].mxu0  ;;  %v10006_v53 = vpop.f32.mrb[20].mxu1 }
 0x645   : > { %v10721_v15 = vadd.f32 %v10720_v43, %v7661_v33  ;;  %v10396_v19 = vpop.f32.mrb[193].mxu0  ;;  %v10007_v36 = vpop.f32.mrb[21].mxu1  ;;  %10090 = vmatprep.subr.bf16.mxu1 %v7971_v54  ;;  %v16766_v33 = vld [vmem:[#allocation133_spill] sm:$0xff] }
 0x646   : > { %v16149_v38 = vadd.f32 %v10007_v36, %v10006_v53  ;;  %v7664_v37 = vpop.f32.mrb[194].mxu0  ;;  %v10009_v24 = vpop.f32.mrb[22].mxu1  ;;  %10091 = vmatpush3.bf16.msra.mxu1 %v16053_v17  ;;  %v10724_v53 = vadd.f32 %v16766_v33, %v16090_v9  ;;  %v12481_v9 = vld [vmem:[%s16486_s3 + $0xa4] ss:$36 sps:$4 sm:$0xff]  }
 0x647   : > { %v10723_v14 = vadd.f32 %v10722_v52, %v7664_v37  ;;  %v10397_v5 = vpop.f32.mrb[195].mxu0  ;;  %v10010_v32 = vpop.f32.mrb[23].mxu1  ;;  %v7891_v34 = vmax.f32 %v10721_v15, 0.0  ;;  %v16767_v52 = vld [vmem:[#allocation134_spill] sm:$0xff] }
 0x648   : > { %v16155_v46 = vadd.f32 %v10010_v32, %v10009_v24  ;;  %v1797_v54 = vpop.permute.xlu1 %1796  ;;  %v16159_v40 = vpop.permute.xlu0 %1881  ;;  %v10726_v37 = vadd.f32 %v16767_v52, %v16101_v60  ;;  %v12476_v15 = vld [vmem:[%s16486_s3 + $0x58] ss:$36 sps:$4 sm:$0xff]  }
 0x649   : > { %v7892_v43 = vmax.f32 %v10723_v14, 0.0  ;;  %8666 = vmatmul.mubr.bf16.vlgmr.msra.gmra.mrb[60].mxu1 %v12473_v13 }
 0x64a   : > { %16765 = vst [vmem:[#allocation10_spill] sm:$0xff] %v16155_v46  ;;  %8673 = vmatprep.mubr.bf16.mxu1 %v12478_v31 }
 0x64b   : > { %v16161_v17 = vpack.c.bf16 %v7892_v43, %v7891_v34 }
 0x64c   : > { %v7669_v19 = vpop.f32.mrb[196].mxu0  ;;  %v10012_v36 = vpop.f32.mrb[24].mxu1 }
 0x64d   : > { %v10725_v5 = vadd.f32 %v10724_v53, %v7669_v19  ;;  %v10400_v24 = vpop.f32.mrb[197].mxu0  ;;  %v10013_v32 = vpop.f32.mrb[25].mxu1  ;;  %v10728_v19 = vadd.f32 %v15633_v41, %v16116_v10 }
 0x64e   : > { %v16168_v13 = vadd.f32 %v10013_v32, %v10012_v36  ;;  %v7672_v31 = vpop.f32.mrb[198].mxu0  ;;  %v10015_v14 = vpop.f32.mrb[26].mxu1  ;;  %v10730_v32 = vadd.f32 %v15637_v47, %v16127_v8  ;;  %v10732_v47 = vadd.f32 %v15648_v0, %v16142_v50 }
 0x64f   : > { %v10727_v34 = vadd.f32 %v10726_v37, %v7672_v31  ;;  %v10401_v43 = vpop.f32.mrb[199].mxu0  ;;  %v10016_v33 = vpop.f32.mrb[27].mxu1  ;;  %v7893_v60 = vmax.f32 %v10725_v5, 0.0  ;;  %v12479_v31 = vld [vmem:[%s16486_s3 + $0xa0] ss:$36 sps:$4 sm:$0xff]  }
 0x650   : > { %16768 = vst [vmem:[#allocation12_spill] sm:$0xff] %v16168_v13  ;;  %v16173_v46 = vpop.permute.xlu1 %1886  ;;  %v1802_v52 = vpop.permute.xlu0 %1801 }
 0x651   : > { %v7894_v53 = vmax.f32 %v10727_v34, 0.0  ;;  %8674 = vmatmul.mubr.bf16.gmra.mrb[64].mxu1 %v12476_v15  ;;  %v12484_v15 = vld [vmem:[%s16486_s3 + $0xec] ss:$36 sps:$4 sm:$0xff]  }
 0x652   : > { %8681 = vmatprep.mubr.bf16.mxu1 %v12481_v9 }
 0x653   : > { %v16177_v36 = vpack.c.bf16 %v7894_v53, %v7893_v60 }
 0x654   : > { %v7677_v24 = vpop.f32.mrb[200].mxu0  ;;  %v1807_v5 = vpop.permute.xlu1 %1806 }
 0x655   : > { %v10729_v14 = vadd.f32 %v10728_v19, %v7677_v24  ;;  %v10404_v37 = vpop.f32.mrb[201].mxu0  ;;  %v16187_v33 = vpop.permute.xlu0 %1891  ;;  %v10734_v19 = vadd.f32 %v15652_v20, %v1797_v54  ;;  %v10736_v20 = vadd.f32 %v15671_v26, %v1802_v52 }
 0x656   : > { %v7680_v34 = vpop.f32.mrb[202].mxu0 }
 0x657   : > { %v10731_v41 = vadd.f32 %v10730_v32, %v7680_v34  ;;  %v10405_v10 = vpop.f32.mrb[203].mxu0  ;;  %v7895_v9 = vmax.f32 %v10729_v14, 0.0  ;;  %v12482_v32 = vld [vmem:[%s16486_s3 + $0xe8] ss:$36 sps:$4 sm:$0xff]  }
 0x658   : > { %v16193_v60 = vpop.permute.xlu1 %1896 }
 0x659   : > { %v7896_v43 = vmax.f32 %v10731_v41, 0.0  ;;  %8682 = vmatmul.mubr.bf16.gmra.mrb[68].mxu1 %v12479_v31  ;;  %v12487_v31 = vld [vmem:[%s16486_s3 + $0x134] ss:$36 sps:$4 sm:$0xff]   ;;  %v1812_v50 = vpop.permute.xlu0 %1811 }
 0x65a   : > { %8689 = vmatprep.mubr.bf16.mxu1 %v12484_v15 }
 0x65b   : > { %v16191_v8 = vpack.c.bf16 %v7896_v43, %v7895_v9  ;;  %v10738_v43 = vadd.f32 %v15675_v7, %v1807_v5  ;;  %v10740_v7 = vadd.f32 %v15693_v30, %v1812_v50 }
 0x65c   : > { %v7685_v53 = vpop.f32.mrb[204].mxu0  ;;  %v1817_v10 = vpop.permute.xlu1 %1816 }
 0x65d   : > { %v10733_v24 = vadd.f32 %v10732_v47, %v7685_v53  ;;  %v10408_v37 = vpop.f32.mrb[205].mxu0 }
 0x65e   : > { %v7688_v14 = vpop.f32.mrb[206].mxu0  ;;  %v16209_v37 = vpop.permute.xlu0 %1901 }
 0x65f   : > { %v10735_v34 = vadd.f32 %v10734_v19, %v7688_v14  ;;  %v10409_v0 = vpop.f32.mrb[207].mxu0  ;;  %v7897_v15 = vmax.f32 %v10733_v24, 0.0  ;;  %v12485_v19 = vld [vmem:[%s16486_s3 + $0x130] ss:$36 sps:$4 sm:$0xff]  }
 0x660   : > { %v16214_v52 = vpop.permute.xlu1 %1906  ;;  %v8051_v0 = vld [vmem:[%s16486_s3 + $0x1c0] sm:$0x33] }
 0x661   : > { %v7898_v41 = vmax.f32 %v10735_v34, 0.0  ;;  %8690 = vmatmul.mubr.bf16.gmra.mrb[72].mxu1 %v12482_v32  ;;  %v12490_v32 = vld [vmem:[%s16486_s3 + $0x17c] ss:$36 sps:$4 sm:$0xff]   ;;  %v9880_v13 = vcombine.low %v8051_v0, %v8051_v0 }
 0x662   : > { %8697 = vmatprep.mubr.bf16.mxu1 %v12487_v31 }
 0x663   : > { %v16203_v54 = vpack.c.bf16 %v7898_v41, %v7897_v15  ;;  %v1822_v15 = vpop.permute.xlu0 %1821 }
 0x664   : > { %v7693_v9 = vpop.f32.mrb[208].mxu0 }
 0x665   : > { %v10737_v47 = vadd.f32 %v10736_v20, %v7693_v9  ;;  %v10412_v53 = vpop.f32.mrb[209].mxu0  ;;  %v10742_v20 = vadd.f32 %v15697_v16, %v1817_v10 }
 0x666   : > { %v7696_v24 = vpop.f32.mrb[210].mxu0  ;;  %v1827_v53 = vpop.permute.xlu1 %1826 }
 0x667   : > { %v10739_v14 = vadd.f32 %v10738_v43, %v7696_v24  ;;  %v10413_v26 = vpop.f32.mrb[211].mxu0  ;;  %v7899_v31 = vmax.f32 %v10737_v47, 0.0  ;;  %v12488_v47 = vld [vmem:[%s16486_s3 + $0x178] ss:$36 sps:$4 sm:$0xff]   ;;  %v9881_v24 = vcombine.high %v8051_v0, %v8051_v0 }
 0x668   : > { %v16226_v26 = vpop.permute.xlu0 %1911 }
 0x669   : > { %v7900_v34 = vmax.f32 %v10739_v14, 0.0  ;;  %8698 = vmatmul.mubr.bf16.gmra.mrb[76].mxu1 %v12485_v19 }
 0x66a   : > { %8705 = vmatprep.mubr.bf16.mxu1 %v12490_v32  ;;  %v16231_v10 = vpop.permute.xlu1 %1916 }
 0x66b   : > { %v16217_v5 = vpack.c.bf16 %v7900_v34, %v7899_v31  ;;  %v10744_v31 = vadd.f32 %v15715_v49, %v1822_v15 }
 0x66c   : > { %v7701_v41 = vpop.f32.mrb[212].mxu0 }
 0x66d   : > { %v10741_v9 = vadd.f32 %v10740_v7, %v7701_v41  ;;  %v10416_v43 = vpop.f32.mrb[213].mxu0  ;;  %v10746_v7 = vadd.f32 %v15719_v23, %v1827_v53 }
 0x66e   : > { %v7704_v19 = vpop.f32.mrb[214].mxu0  ;;  %v1837_v15 = vpop.permute.xlu1 %1836 }
 0x66f   : > { %v10743_v30 = vadd.f32 %v10742_v20, %v7704_v19  ;;  %v10417_v50 = vpop.f32.mrb[215].mxu0  ;;  %v7901_v32 = vmax.f32 %v10741_v9, 0.0  ;;  %v12495_v9 = vld [vmem:[%s16486_s3 + $0x1c] ss:$36 sps:$4 sm:$0xff]   ;;  %v10750_v0 = vadd.f32 %v15741_v48, %v1837_v15 }
 0x671   : > { %v7902_v14 = vmax.f32 %v10743_v30, 0.0  ;;  %8706 = vmatmul.mubr.bf16.gmra.mrb[80].mxu1 %v12488_v47 }
 0x672   : > { %8713 = vmatprep.mubr.bf16.mxu1 %v9881_v24  ;;  %v1832_v24 = vpop.permute.xlu0 %1831 }
 0x673   : > { %v16229_v16 = vpack.c.bf16 %v7902_v14, %v7901_v32  ;;  %v10748_v50 = vadd.f32 %v15737_v61, %v1832_v24  ;;  %v10754_v61 = vadd.f32 %v15766_v35, %v16066_v56 }
 0x674   : > { %v7709_v34 = vpop.f32.mrb[216].mxu0 }
 0x675   : > { %v10745_v41 = vadd.f32 %v10744_v31, %v7709_v34  ;;  %v10420_v43 = vpop.f32.mrb[217].mxu0 }
 0x676   : > { %v7712_v20 = vpop.f32.mrb[218].mxu0 }
 0x677   : > { %v10747_v47 = vadd.f32 %v10746_v7, %v7712_v20  ;;  %v10421_v19 = vpop.f32.mrb[219].mxu0  ;;  %v7903_v30 = vmax.f32 %v10745_v41, 0.0  ;;  %v10752_v41 = vadd.f32 %v15759_v18, %v16062_v45  ;;  %v10758_v18 = vadd.f32 %v15785_v44, %v16088_v57 }
 0x678   : > { %v10762_v44 = vadd.f32 %v15804_v12, %v16114_v51  ;;  %v10766_v12 = vadd.f32 %v15820_v11, %v16140_v29 }
 0x679   : > { %v7904_v49 = vmax.f32 %v10747_v47, 0.0  ;;  %8714 = vmatmul.mubr.bf16.gmra.mrb[84].mxu1 %v9880_v13 }
 0x67a   : > { %8753 = vmatprep.mubr.bf16.mxu1 %v12495_v9 }
 0x67b   : > { %v16238_v32 = vpack.c.bf16 %v7904_v49, %v7903_v30  ;;  %v8070_v49 = vpop.permute.xlu1 %8069 }
 0x67c   : > { %v7717_v23 = vpop.f32.mrb[220].mxu0 }
 0x67d   : > { %v10749_v53 = vadd.f32 %v10748_v50, %v7717_v23  ;;  %v10424_v14 = vpop.f32.mrb[221].mxu0  ;;  %v10756_v23 = vadd.f32 %v15781_v1, %v16077_v55  ;;  %v16254_v55 = vpop.permute.xlu0 %1921 }
 0x67e   : > { %v7720_v31 = vpop.f32.mrb[222].mxu0 }
 0x67f   : > { %v10751_v34 = vadd.f32 %v10750_v0, %v7720_v31  ;;  %v10425_v43 = vpop.f32.mrb[223].mxu0  ;;  %v7905_v7 = vmax.f32 %v10749_v53, 0.0  ;;  %v8080_v56 = vpop.permute.xlu1 %8079 }
 0x681   : > { %v7906_v20 = vmax.f32 %v10751_v34, 0.0 }
 0x683   : > { %v16243_v13 = vpack.c.bf16 %v7906_v20, %v7905_v7  ;;  %v10760_v20 = vadd.f32 %v15800_v2, %v16103_v4  ;;  %v8075_v2 = vpop.permute.xlu0 %8074 }
 0x684   : > { %v7725_v9 = vpop.f32.mrb[224].mxu0 }
 0x685   : > { %v10753_v47 = vadd.f32 %v10752_v41, %v7725_v9  ;;  %v10428_v19 = vpop.f32.mrb[225].mxu0  ;;  %v16256_v9 = vpop.permute.xlu1 %8089 }
 0x686   : > { %v7728_v24 = vpop.f32.mrb[226].mxu0 }
 0x687   : > { %v10755_v48 = vadd.f32 %v10754_v61, %v7728_v24  ;;  %v10429_v30 = vpop.f32.mrb[227].mxu0  ;;  %v7907_v15 = vmax.f32 %v10753_v47, 0.0 }
 0x688   : > { %v10764_v30 = vadd.f32 %v15816_v28, %v16129_v25  ;;  %v8495_v25 = vadd.f32 %v16084_v58, %v8075_v2 }
 0x689   : > { %v7908_v50 = vmax.f32 %v10755_v48, 0.0  ;;  %v16261_v4 = vpop.permute.xlu1 %8099 }
 0x68b   : > { %v7980_v0 = vpack.c.bf16 %v7908_v50, %v7907_v15 }
 0x68c   : > { %v7733_v53 = vpop.f32.mrb[228].mxu0 }
 0x68d   : > { %v10757_v45 = vadd.f32 %v10756_v23, %v7733_v53  ;;  %v10432_v14 = vpop.f32.mrb[229].mxu0  ;;  %10134 = vmatprep.subr.bf16.mxu1 %v7980_v0 }
 0x68e   : > { %v7736_v35 = vpop.f32.mrb[230].mxu0  ;;  %10135 = vmatpush3.bf16.msra.mxu1 %v16161_v17 }
 0x68f   : > { %v10759_v31 = vadd.f32 %v10758_v18, %v7736_v35  ;;  %v10433_v34 = vpop.f32.mrb[231].mxu0  ;;  %v7909_v43 = vmax.f32 %v10757_v45, 0.0 }
 0x691   : > { %v7910_v7 = vmax.f32 %v10759_v31, 0.0 }
 0x693   : > { %v7981_v1 = vpack.c.bf16 %v7910_v7, %v7909_v43 }
 0x694   : > { %v7741_v41 = vpop.f32.mrb[232].mxu0 }
 0x695   : > { %v10761_v57 = vadd.f32 %v10760_v20, %v7741_v41  ;;  %v10436_v61 = vpop.f32.mrb[233].mxu0  ;;  %10136 = vmatprep.subr.bf16.mxu1 %v7981_v1  ;;  %v8085_v20 = vpop.permute.xlu0 %8084 }
 0x696   : > { %v7744_v17 = vpop.f32.mrb[234].mxu0  ;;  %10137 = vmatpush3.bf16.msra.mxu1 %v16177_v36  ;;  %v8492_v36 = vadd.f32 %v16081_v59, %v8070_v49  ;;  %v16274_v1 = vpop.permute.xlu1 %8925  ;;  %v10768_v59 = vadd.f32 %v15830_v39, %v16159_v40  ;;  %v8503_v40 = vadd.f32 %v16097_v27, %v8085_v20 }
 0x697   : > { %v10763_v47 = vadd.f32 %v10762_v44, %v7744_v17  ;;  %v10437_v19 = vpop.f32.mrb[235].mxu0  ;;  %v7911_v24 = vmax.f32 %v10761_v57, 0.0  ;;  %v10770_v44 = vadd.f32 %v15834_v21, %v16173_v46  ;;  %v8500_v17 = vadd.f32 %v16094_v22, %v8080_v56 }
 0x698   : > { %v10772_v22 = vadd.f32 %v15845_v63, %v16187_v33 }
 0x699   : > { %v7912_v48 = vmax.f32 %v10763_v47, 0.0 }
 0x69b   : > { %v7982_v15 = vpack.c.bf16 %v7912_v48, %v7911_v24 }
 0x69c   : > { %v7749_v50 = vpop.f32.mrb[236].mxu0  ;;  %v10034_v23 = vpop.f32.mrb[28].mxu1 }
 0x69d   : > { %v10765_v51 = vadd.f32 %v10764_v30, %v7749_v50  ;;  %v10440_v0 = vpop.f32.mrb[237].mxu0  ;;  %v10035_v53 = vpop.f32.mrb[29].mxu1  ;;  %10138 = vmatprep.subr.bf16.mxu1 %v7982_v15 }
 0x69e   : > { %v10036_v18 = vadd.f32 %v10035_v53, %v10034_v23  ;;  %v7752_v45 = vpop.f32.mrb[238].mxu0  ;;  %v10037_v14 = vpop.f32.mrb[30].mxu1  ;;  %10139 = vmatpush3.bf16.msra.mxu1 %v16191_v8  ;;  %v16769_v0 = vld [vmem:[#allocation3_spill] sm:$0xff] }
 0x69f   : > { %v10767_v35 = vadd.f32 %v10766_v12, %v7752_v45  ;;  %v10441_v31 = vpop.f32.mrb[239].mxu0  ;;  %v10038_v28 = vpop.f32.mrb[31].mxu1  ;;  %v7913_v11 = vmax.f32 %v10765_v51, 0.0  ;;  %v10774_v53 = vadd.f32 %v16769_v0, %v16193_v60  ;;  %v8508_v45 = vadd.f32 %v16107_v6, %v16256_v9  ;;  %v16771_v6 = vld [vmem:[#allocation6_spill] sm:$0xff] }
 0x6a0   : > { %v16270_v34 = vadd.f32 %v10036_v18, %v8492_v36  ;;  %v10039_v43 = vadd.f32 %v10038_v28, %v10037_v14  ;;  %v8095_v23 = vpop.permute.xlu0 %8094  ;;  %v8110_v12 = vpop.permute.xlu1 %8109  ;;  %v10776_v9 = vadd.f32 %v16771_v6, %v16209_v37 }
 0x6a1   : > { %v7914_v29 = vmax.f32 %v10767_v35, 0.0 }
 0x6a2   : > { %v16272_v7 = vadd.f32 %v10039_v43, %v8495_v25  ;;  %v16770_v25 = vld [vmem:[#allocation8_spill] sm:$0xff] }
 0x6a3   : > { %v7983_v49 = vpack.c.bf16 %v7914_v29, %v7913_v11  ;;  %v8511_v43 = vadd.f32 %v16770_v25, %v8095_v23 }
 0x6a4   : > { %v7757_v8 = vpop.f32.mrb[240].mxu0  ;;  %v10040_v41 = vpop.f32.mrb[32].mxu1 }
 0x6a5   : > { %v10769_v58 = vadd.f32 %v10768_v59, %v7757_v8  ;;  %v10444_v57 = vpop.f32.mrb[241].mxu0  ;;  %v10041_v61 = vpop.f32.mrb[33].mxu1  ;;  %10140 = vmatprep.subr.bf16.mxu1 %v7983_v49 }
 0x6a6   : > { %v10042_v47 = vadd.f32 %v10041_v61, %v10040_v41  ;;  %v7760_v19 = vpop.f32.mrb[242].mxu0  ;;  %v10043_v24 = vpop.f32.mrb[34].mxu1  ;;  %10141 = vmatpush3.bf16.msra.mxu1 %v16203_v54 }
 0x6a7   : > { %v10771_v48 = vadd.f32 %v10770_v44, %v7760_v19  ;;  %v10445_v2 = vpop.f32.mrb[243].mxu0  ;;  %v10044_v39 = vpop.f32.mrb[35].mxu1  ;;  %v7915_v21 = vmax.f32 %v10769_v58, 0.0  ;;  %v16772_v58 = vld [vmem:[#allocation4_spill] sm:$0xff]  ;;  %v8516_v19 = vadd.f32 %v16120_v3, %v16261_v4  ;;  %v16774_v3 = vld [vmem:[#allocation7_spill] sm:$0xff] }
 0x6a8   : > { %v16283_v30 = vadd.f32 %v10042_v47, %v8500_v17  ;;  %v10045_v15 = vadd.f32 %v10044_v39, %v10043_v24  ;;  %v8105_v49 = vpop.permute.xlu0 %8104  ;;  %v8115_v8 = vpop.permute.xlu1 %8114  ;;  %v10778_v57 = vadd.f32 %v16772_v58, %v16214_v52  ;;  %v10780_v4 = vadd.f32 %v16774_v3, %v16226_v26 }
 0x6a9   : > { %v7916_v46 = vmax.f32 %v10771_v48, 0.0  ;;  %v8527_v25 = vadd.f32 %v16136_v42, %v8115_v8  ;;  %v12493_v42 = vld [vmem:[%s16486_s3 + $0x18] ss:$36 sps:$4 sm:$0xff]  }
 0x6aa   : > { %v16285_v50 = vadd.f32 %v10045_v15, %v8503_v40  ;;  %v16773_v15 = vld [vmem:[#allocation11_spill] sm:$0xff] }
 0x6ab   : > { %v7984_v56 = vpack.c.bf16 %v7916_v46, %v7915_v21  ;;  %v8519_v21 = vadd.f32 %v16773_v15, %v8105_v49 }
 0x6ac   : > { %v7765_v51 = vpop.f32.mrb[244].mxu0  ;;  %v10046_v54 = vpop.f32.mrb[36].mxu1 }
 0x6ad   : > { %v10773_v36 = vadd.f32 %v10772_v22, %v7765_v51  ;;  %v10448_v27 = vpop.f32.mrb[245].mxu0  ;;  %v10047_v18 = vpop.f32.mrb[37].mxu1  ;;  %10142 = vmatprep.subr.bf16.mxu1 %v7984_v56 }
 0x6ae   : > { %v10048_v14 = vadd.f32 %v10047_v18, %v10046_v54  ;;  %v7768_v35 = vpop.f32.mrb[246].mxu0  ;;  %v10049_v31 = vpop.f32.mrb[38].mxu1  ;;  %10143 = vmatpush3.bf16.msra.mxu1 %v16217_v5 }
 0x6af   : > { %v10775_v28 = vadd.f32 %v10774_v53, %v7768_v35  ;;  %v10449_v63 = vpop.f32.mrb[247].mxu0  ;;  %v10050_v33 = vpop.f32.mrb[39].mxu1  ;;  %v7917_v29 = vmax.f32 %v10773_v36, 0.0 }
 0x6b0   : > { %v16295_v11 = vadd.f32 %v10048_v14, %v8508_v45  ;;  %v10051_v60 = vadd.f32 %v10050_v33, %v10049_v31  ;;  %v8120_v51 = vpop.permute.xlu1 %8119  ;;  %v8524_v14 = vadd.f32 %v16133_v62, %v8110_v12  ;;  %v16776_v62 = vld [vmem:[#allocation9_spill] sm:$0xff] }
 0x6b1   : > { %v7918_v20 = vmax.f32 %v10775_v28, 0.0  ;;  %v10784_v12 = vadd.f32 %v16776_v62, %v16254_v55  ;;  %v8532_v8 = vadd.f32 %v16149_v38, %v8120_v51  ;;  %v12498_v55 = vld [vmem:[%s16486_s3 + $0x64] ss:$36 sps:$4 sm:$0xff]  }
 0x6b2   : > { %v16297_v59 = vadd.f32 %v10051_v60, %v8511_v43 }
 0x6b3   : > { %v7985_v41 = vpack.c.bf16 %v7918_v20, %v7917_v29 }
 0x6b4   : > { %v7773_v44 = vpop.f32.mrb[248].mxu0  ;;  %v10052_v5 = vpop.f32.mrb[44].mxu1 }
 0x6b5   : > { %v10777_v61 = vadd.f32 %v10776_v9, %v7773_v44  ;;  %v10452_v17 = vpop.f32.mrb[249].mxu0  ;;  %v10053_v47 = vpop.f32.mrb[45].mxu1  ;;  %10144 = vmatprep.subr.bf16.mxu1 %v7985_v41 }
 0x6b6   : > { %v10054_v24 = vadd.f32 %v10053_v47, %v10052_v5  ;;  %v7776_v48 = vpop.f32.mrb[250].mxu0  ;;  %v10055_v2 = vpop.f32.mrb[46].mxu1  ;;  %10145 = vmatpush3.bf16.msra.mxu1 %v16229_v16  ;;  %v16775_v16 = vld [vmem:[#allocation5_spill] sm:$0xff] }
 0x6b7   : > { %v10779_v39 = vadd.f32 %v10778_v57, %v7776_v48  ;;  %v10453_v37 = vpop.f32.mrb[251].mxu0  ;;  %v10056_v40 = vpop.f32.mrb[47].mxu1  ;;  %v7919_v23 = vmax.f32 %v10777_v61, 0.0  ;;  %v10782_v36 = vadd.f32 %v16775_v16, %v16231_v10  ;;  %v16778_v48 = vld [vmem:[#allocation10_spill] sm:$0xff]  ;;  %v12499_v16 = vld [vmem:[%s16486_s3 + $0xa8] ss:$36 sps:$4 sm:$0xff]  }
 0x6b8   : > { %v16307_v46 = vadd.f32 %v10054_v24, %v8516_v19  ;;  %v10057_v52 = vadd.f32 %v10056_v40, %v10055_v2  ;;  %v8125_v49 = vpop.permute.xlu1 %8124  ;;  %v16777_v24 = vmov 0.0  }
 0x6b9   : > { %v7920_v22 = vmax.f32 %v10779_v39, 0.0  ;;  %v8535_v2 = vadd.f32 %v16778_v48, %v8125_v49  ;;  %v12517_v49 = vld [vmem:[%s16486_s3 + $0x140] ss:$36 sps:$4 sm:$0xff]  }
 0x6ba   : > { %v16309_v56 = vadd.f32 %v10057_v52, %v8519_v21 }
 0x6bb   : > { %v7986_v54 = vpack.c.bf16 %v7920_v22, %v7919_v23  ;;  %v12496_v23 = vld [vmem:[%s16486_s3 + $0x60] ss:$36 sps:$4 sm:$0xff]   ;;  %v16779_v22 = vld [vmem:[#allocation12_spill] sm:$0xff] }
 0x6bc   : > { %v7781_v0 = vpop.f32.mrb[252].mxu0  ;;  %v10058_v53 = vpop.f32.mrb[48].mxu1 }
 0x6bd   : > { %v10781_v27 = vadd.f32 %v10780_v4, %v7781_v0  ;;  %v10456_v18 = vpop.f32.mrb[253].mxu0  ;;  %v10059_v45 = vpop.f32.mrb[49].mxu1  ;;  %10146 = vmatprep.subr.bf16.mxu1 %v7986_v54  ;;  %v12501_v4 = vld [vmem:[%s16486_s3 + $0xac] ss:$36 sps:$4 sm:$0xff]  }
 0x6be   : > { %v10060_v35 = vadd.f32 %v10059_v45, %v10058_v53  ;;  %v7784_v31 = vpop.f32.mrb[254].mxu0  ;;  %v10061_v28 = vpop.f32.mrb[50].mxu1  ;;  %10147 = vmatpush3.bf16.msra.mxu1 %v16238_v32  ;;  %v12507_v18 = vld [vmem:[%s16486_s3 + $0x13c] ss:$36 sps:$4 sm:$0xff]  }
 0x6bf   : > { %v10783_v63 = vadd.f32 %v10782_v36, %v7784_v31  ;;  %v10457_v33 = vpop.f32.mrb[255].mxu0  ;;  %v10062_v26 = vpop.f32.mrb[51].mxu1  ;;  %v7921_v10 = vmax.f32 %v10781_v27, 0.0  ;;  %v12504_v36 = vld [vmem:[%s16486_s3 + $0xf4] ss:$36 sps:$4 sm:$0xff]  }
 0x6c0   : > { %v16318_v43 = vadd.f32 %v10060_v35, %v8524_v14  ;;  %v10063_v60 = vadd.f32 %v10062_v26, %v10061_v28  ;;  %v8130_v21 = vpop.permute.xlu1 %8129  ;;  %v12502_v27 = vld [vmem:[%s16486_s3 + $0xf0] ss:$36 sps:$4 sm:$0xff]   ;;  %v12505_v45 = vld [vmem:[%s16486_s3 + $0x138] ss:$36 sps:$4 sm:$0xff]   ;;  %v12510_v14 = vld [vmem:[%s16486_s3 + $0x184] ss:$36 sps:$4 sm:$0xff]  }
 0x6c1   : > { %v7922_v29 = vmax.f32 %v10783_v63, 0.0  ;;  %v8540_v51 = vadd.f32 %v16779_v22, %v8130_v21  ;;  %v8052_v35 = vld [vmem:[%s16486_s3 + $0x1c8] sm:$0x33]  ;;  %v12508_v31 = vld [vmem:[%s16486_s3 + $0x180] ss:$36 sps:$4 sm:$0xff]  }
 0x6c2   : > { %v16320_v20 = vadd.f32 %v10063_v60, %v8527_v25  ;;  %v9883_v28 = vcombine.high %v8052_v35, %v8052_v35  ;;  %v9882_v63 = vcombine.low %v8052_v35, %v8052_v35  ;;  %v12513_v33 = vld [vmem:[%s16486_s3 + $0x20] ss:$36 sps:$4 sm:$0xff]   ;;  %v12514_v26 = vld [vmem:[%s16486_s3 + $0x68] ss:$36 sps:$4 sm:$0xff]   ;;  %v12515_v25 = vld [vmem:[%s16486_s3 + $0xb0] ss:$36 sps:$4 sm:$0xff]  }
 0x6c3   : > { %v7987_v6 = vpack.c.bf16 %v7922_v29, %v7921_v10  ;;  %v12516_v60 = vld [vmem:[%s16486_s3 + $0xf8] ss:$36 sps:$4 sm:$0xff]  }
 0x6c4   : > { %v7789_v9 = vpop.f32.mrb[148].mxu0  ;;  %v10064_v41 = vpop.f32.mrb[52].mxu1 }
 0x6c5   : > { %v10785_v32 = vadd.f32 %v10784_v12, %v7789_v9  ;;  %v10460_v44 = vpop.f32.mrb[149].mxu0  ;;  %v10065_v5 = vpop.f32.mrb[53].mxu1  ;;  %10148 = vmatprep.subr.bf16.mxu1 %v7987_v6 }
 0x6c6   : > { %v10066_v58 = vadd.f32 %v10065_v5, %v10064_v41  ;;  %v7792_v57 = vpop.f32.mrb[150].mxu0  ;;  %v10067_v61 = vpop.f32.mrb[54].mxu1  ;;  %10149 = vmatpush3.bf16.msra.mxu1 %v16243_v13 }
 0x6c7   : > { %v7923_v17 = vmax.f32 %v10785_v32, 0.0  ;;  %v10461_v47 = vpop.f32.mrb[151].mxu0  ;;  %v10068_v19 = vpop.f32.mrb[55].mxu1  ;;  %10462 = vmatprep.subr.bf16.mxu1 %v16777_v24 }
 0x6c8   : > { %v16334_v39 = vadd.f32 %v10066_v58, %v8532_v8  ;;  %v10069_v37 = vadd.f32 %v10068_v19, %v10067_v61  ;;  %v12519_v47 = vld [vmem:[%s16486_s3 + $0x1d0] ss:$0 sps:$4 sm:$0x33]  }
 0x6c9   : > { %v7988_v38 = vpack.c.bf16 %v7923_v17, %v7923_v17  ;;  %8754 = vmatmul.mubr.bf16.vlgmr.msra.gmra.mrb[88].mxu1 %v12493_v42  ;;  %v12518_v42 = vld [vmem:[%s16486_s3 + $0x188] ss:$36 sps:$4 sm:$0xff]  }
 0x6ca   : > { %v16336_v40 = vadd.f32 %v10069_v37, %v8535_v2  ;;  %8761 = vmatprep.mubr.bf16.mxu1 %v12498_v55 }
 0x6cb   : > { %v8455_v13 = vsel %vm5031_vm0, %v7988_v38, 0 }
 0x6cc   : > { %v10070_v15 = vpop.f32.mrb[56].mxu1  ;;  %10463 = vmatpush3.bf16.msra.mxu1 %v8455_v13 }
 0x6cd   : > { %v10071_v52 = vpop.f32.mrb[57].mxu1 }
 0x6ce   : > { %v10072_v3 = vadd.f32 %v10071_v52, %v10070_v15  ;;  %v10073_v54 = vpop.f32.mrb[58].mxu1 }
 0x6cf   : > { %v10074_v0 = vpop.f32.mrb[59].mxu1 }
 0x6d0   : > { %v16346_v53 = vadd.f32 %v10072_v3, %v8540_v51 }
 0x6d1   : > { %8762 = vmatmul.mubr.bf16.gmra.mrb[92].mxu1 %v12496_v23 }
 0x6d2   : > { %8769 = vmatprep.mubr.bf16.mxu1 %v12501_v4 }
 0x6d9   : > { %8770 = vmatmul.mubr.bf16.gmra.mrb[96].mxu1 %v12499_v16 }
 0x6da   : > { %8777 = vmatprep.mubr.bf16.mxu1 %v12504_v36 }
 0x6e1   : > { %8778 = vmatmul.mubr.bf16.gmra.mrb[100].mxu1 %v12502_v27 }
 0x6e2   : > { %8785 = vmatprep.mubr.bf16.mxu1 %v12507_v18 }
 0x6e9   : > { %8786 = vmatmul.mubr.bf16.gmra.mrb[104].mxu1 %v12505_v45 }
 0x6ea   : > { %8793 = vmatprep.mubr.bf16.mxu1 %v12510_v14 }
 0x6f1   : > { %8794 = vmatmul.mubr.bf16.gmra.mrb[108].mxu1 %v12508_v31 }
 0x6f2   : > { %8801 = vmatprep.mubr.bf16.mxu1 %v9883_v28 }
 0x6f9   : > { %8802 = vmatmul.mubr.bf16.gmra.mrb[112].mxu1 %v9882_v63 }
 0x6fa   : > { %10464 = vmatprep.mubr.msk.bf16.mxu1 %vm12550_vm1, %v16777_v24 }
 0x701   : > { %10465 = vmatmul.mubr.msk.bf16.vlgmr.msra.gmra.mrb[116].mxu1 %vm4835_vm2, %v12513_v33 }
 0x702   : > { %10468 = vmatprep.mubr.msk.bf16.mxu1 %vm12550_vm1, %v16777_v24 }
 0x709   : > { %10469 = vmatmul.mubr.msk.bf16.gmra.mrb[120].mxu1 %vm4835_vm2, %v12514_v26 }
 0x70a   : > { %10472 = vmatprep.mubr.msk.bf16.mxu1 %vm12550_vm1, %v16777_v24 }
 0x711   : > { %10473 = vmatmul.mubr.msk.bf16.gmra.mrb[124].mxu1 %vm4835_vm2, %v12515_v25 }
 0x712   : > { %10476 = vmatprep.mubr.msk.bf16.mxu1 %vm12550_vm1, %v16777_v24 }
 0x719   : > { %10477 = vmatmul.mubr.msk.bf16.gmra.mrb[128].mxu1 %vm4835_vm2, %v12516_v60 }
 0x71a   : > { %10480 = vmatprep.mubr.msk.bf16.mxu1 %vm12550_vm1, %v16777_v24 }
 0x71c   : > { %v10092_v10 = vpop.f32.mrb[60].mxu1 }
 0x71d   : > { %v10093_v29 = vpop.f32.mrb[61].mxu1 }
 0x71e   : > { %v10094_v62 = vadd.f32 %v10093_v29, %v10092_v10  ;;  %v10095_v12 = vpop.f32.mrb[62].mxu1 }
 0x71f   : > { %v10096_v6 = vpop.f32.mrb[63].mxu1 }
 0x720   : > { %v8668_v9 = vadd.f32 %v10094_v62, %v16270_v34  ;;  %v10097_v41 = vadd.f32 %v10096_v6, %v10095_v12 }
 0x721   : > { %10481 = vmatmul.mubr.msk.bf16.gmra.mrb[132].mxu1 %vm4835_vm2, %v12517_v49 }
 0x722   : > { %v8671_v32 = vadd.f32 %v10097_v41, %v16272_v7  ;;  %10484 = vmatprep.mubr.msk.bf16.mxu1 %vm12550_vm1, %v16777_v24 }
 0x724   : > { %v10098_v44 = vpop.f32.mrb[64].mxu1 }
 0x725   : > { %v10099_v5 = vpop.f32.mrb[65].mxu1 }
 0x726   : > { %v10100_v8 = vadd.f32 %v10099_v5, %v10098_v44  ;;  %v10101_v58 = vpop.f32.mrb[66].mxu1 }
 0x727   : > { %v10102_v57 = vpop.f32.mrb[67].mxu1 }
 0x728   : > { %v8676_v61 = vadd.f32 %v10100_v8, %v16283_v30  ;;  %v10103_v34 = vadd.f32 %v10102_v57, %v10101_v58 }
 0x729   : > { %10485 = vmatmul.mubr.msk.bf16.gmra.mrb[136].mxu1 %vm4835_vm2, %v12518_v42 }
 0x72a   : > { %v8679_v55 = vadd.f32 %v10103_v34, %v16285_v50  ;;  %10488 = vmatprep.mubr.msk.bf16.mxu1 %vm12550_vm1, %v16777_v24 }
 0x72c   : > { %v10104_v7 = vpop.f32.mrb[68].mxu1 }
 0x72d   : > { %v10105_v17 = vpop.f32.mrb[69].mxu1 }
 0x72e   : > { %v10106_v19 = vadd.f32 %v10105_v17, %v10104_v7  ;;  %v10107_v48 = vpop.f32.mrb[70].mxu1 }
 0x72f   : > { %v10108_v2 = vpop.f32.mrb[71].mxu1 }
 0x730   : > { %v8684_v37 = vadd.f32 %v10106_v19, %v16295_v11  ;;  %v10109_v30 = vadd.f32 %v10108_v2, %v10107_v48 }
 0x731   : > { %10489 = vmatmul.mubr.msk.bf16.gmra.mrb[140].mxu1 %vm4835_vm2, %v12519_v47 }
 0x732   : > { %v8687_v38 = vadd.f32 %v10109_v30, %v16297_v59 }
 0x734   : > { %v10110_v50 = vpop.f32.mrb[72].mxu1 }
 0x735   : > { %v10111_v13 = vpop.f32.mrb[73].mxu1 }
 0x736   : > { %v10112_v15 = vadd.f32 %v10111_v13, %v10110_v50  ;;  %v10113_v24 = vpop.f32.mrb[74].mxu1 }
 0x737   : > { %v10114_v21 = vpop.f32.mrb[75].mxu1 }
 0x738   : > { %v8692_v52 = vadd.f32 %v10112_v15, %v16307_v46  ;;  %v10115_v23 = vadd.f32 %v10114_v21, %v10113_v24 }
 0x73a   : > { %v8695_v22 = vadd.f32 %v10115_v23, %v16309_v56 }
 0x73c   : > { %v10116_v51 = vpop.f32.mrb[76].mxu1 }
 0x73d   : > { %v10117_v3 = vpop.f32.mrb[77].mxu1 }
 0x73e   : > { %v10118_v4 = vadd.f32 %v10117_v3, %v10116_v51  ;;  %v10119_v54 = vpop.f32.mrb[78].mxu1 }
 0x73f   : > { %v10120_v11 = vpop.f32.mrb[79].mxu1 }
 0x740   : > { %v8700_v0 = vadd.f32 %v10118_v4, %v16318_v43  ;;  %v10121_v16 = vadd.f32 %v10120_v11, %v10119_v54 }
 0x742   : > { %v8703_v59 = vadd.f32 %v10121_v16, %v16320_v20 }
 0x744   : > { %v10122_v36 = vpop.f32.mrb[80].mxu1 }
 0x745   : > { %v10123_v27 = vpop.f32.mrb[81].mxu1 }
 0x746   : > { %v10124_v18 = vadd.f32 %v10123_v27, %v10122_v36  ;;  %v10125_v45 = vpop.f32.mrb[82].mxu1 }
 0x747   : > { %v10126_v14 = vpop.f32.mrb[83].mxu1 }
 0x748   : > { %v8708_v46 = vadd.f32 %v10124_v18, %v16334_v39  ;;  %v10127_v35 = vadd.f32 %v10126_v14, %v10125_v45 }
 0x74a   : > { %v8711_v56 = vadd.f32 %v10127_v35, %v16336_v40 }
 0x74c   : > { %v10128_v31 = vpop.f32.mrb[84].mxu1 }
 0x74d   : > { %v10129_v28 = vpop.f32.mrb[85].mxu1 }
 0x74e   : > { %v10130_v63 = vadd.f32 %v10129_v28, %v10128_v31  ;;  %v10131_v33 = vpop.f32.mrb[86].mxu1 }
 0x74f   : > { %v10132_v26 = vpop.f32.mrb[87].mxu1 }
 0x750   : > { %v8716_v43 = vadd.f32 %v10130_v63, %v16346_v53 }
 0x79c   : > { %v10150_v25 = vpop.f32.mrb[88].mxu1 }
 0x79d   : > { %v10151_v60 = vpop.f32.mrb[89].mxu1 }
 0x79e   : > { %v10152_v20 = vadd.f32 %v10151_v60, %v10150_v25  ;;  %v10153_v10 = vpop.f32.mrb[90].mxu1 }
 0x79f   : > { %v10154_v29 = vpop.f32.mrb[91].mxu1 }
 0x7a0   : > { %v10155_v49 = vadd.f32 %v10154_v29, %v10153_v10  ;;  %v8756_v62 = vadd.f32 %v10152_v20, %v8668_v9 }
 0x7a2   : > { %v8759_v12 = vadd.f32 %v10155_v49, %v8671_v32 }
 0x7a4   : > { %v10156_v6 = vpop.f32.mrb[92].mxu1 }
 0x7a5   : > { %v10157_v39 = vpop.f32.mrb[93].mxu1 }
 0x7a6   : > { %v10158_v41 = vadd.f32 %v10157_v39, %v10156_v6  ;;  %v10159_v44 = vpop.f32.mrb[94].mxu1 }
 0x7a7   : > { %v10160_v40 = vpop.f32.mrb[95].mxu1 }
 0x7a8   : > { %v10161_v5 = vadd.f32 %v10160_v40, %v10159_v44  ;;  %v8764_v42 = vadd.f32 %v10158_v41, %v8676_v61 }
 0x7aa   : > { %v8767_v8 = vadd.f32 %v10161_v5, %v8679_v55 }
 0x7ac   : > { %v10162_v58 = vpop.f32.mrb[96].mxu1 }
 0x7ad   : > { %v10163_v57 = vpop.f32.mrb[97].mxu1 }
 0x7ae   : > { %v10164_v34 = vadd.f32 %v10163_v57, %v10162_v58  ;;  %v10165_v53 = vpop.f32.mrb[98].mxu1 }
 0x7af   : > { %v10166_v7 = vpop.f32.mrb[99].mxu1 }
 0x7b0   : > { %v10167_v17 = vadd.f32 %v10166_v7, %v10165_v53  ;;  %v16427_v47 = vadd.f32 %v10164_v34, %v8684_v37 }
 0x7b2   : > { %v16429_v19 = vadd.f32 %v10167_v17, %v8687_v38 }
 0x7b4   : > { %v10168_v9 = vpop.f32.mrb[100].mxu1 }
 0x7b5   : > { %v10169_v32 = vpop.f32.mrb[101].mxu1 }
 0x7b6   : > { %v10170_v48 = vadd.f32 %v10169_v32, %v10168_v9  ;;  %v10171_v2 = vpop.f32.mrb[102].mxu1 }
 0x7b7   : > { %v10172_v30 = vpop.f32.mrb[103].mxu1 }
 0x7b8   : > { %v10173_v50 = vadd.f32 %v10172_v30, %v10171_v2  ;;  %v16431_v13 = vadd.f32 %v10170_v48, %v8692_v52 }
 0x7ba   : > { %v16433_v61 = vadd.f32 %v10173_v50, %v8695_v22 }
 0x7bc   : > { %v10174_v55 = vpop.f32.mrb[104].mxu1 }
 0x7bd   : > { %v10175_v15 = vpop.f32.mrb[105].mxu1 }
 0x7be   : > { %v10176_v24 = vadd.f32 %v10175_v15, %v10174_v55  ;;  %v10177_v21 = vpop.f32.mrb[106].mxu1 }
 0x7bf   : > { %v10178_v23 = vpop.f32.mrb[107].mxu1 }
 0x7c0   : > { %v10179_v51 = vadd.f32 %v10178_v23, %v10177_v21  ;;  %v16435_v37 = vadd.f32 %v10176_v24, %v8700_v0  ;;  %v8931_v0 = vpop.permute.xlu0 %8930 }
 0x7c2   : > { %v16437_v38 = vadd.f32 %v10179_v51, %v8703_v59 }
 0x7c4   : > { %v10180_v3 = vpop.f32.mrb[108].mxu1  ;;  %v8936_v20 = vpop.permute.xlu0 %8935 }
 0x7c5   : > { %v10181_v4 = vpop.f32.mrb[109].mxu1 }
 0x7c6   : > { %v10182_v54 = vadd.f32 %v10181_v4, %v10180_v3  ;;  %v10183_v11 = vpop.f32.mrb[110].mxu1 }
 0x7c7   : > { %v10184_v16 = vpop.f32.mrb[111].mxu1 }
 0x7c8   : > { %v10185_v36 = vadd.f32 %v10184_v16, %v10183_v11  ;;  %v16439_v52 = vadd.f32 %v10182_v54, %v8708_v46  ;;  %v8941_v41 = vpop.permute.xlu0 %8940 }
 0x7ca   : > { %v16441_v22 = vadd.f32 %v10185_v36, %v8711_v56 }
 0x7cc   : > { %v10186_v27 = vpop.f32.mrb[112].mxu1  ;;  %v8946_v53 = vpop.permute.xlu0 %8945 }
 0x7cd   : > { %v10187_v18 = vpop.f32.mrb[113].mxu1 }
 0x7ce   : > { %v10188_v45 = vadd.f32 %v10187_v18, %v10186_v27  ;;  %v10189_v14 = vpop.f32.mrb[114].mxu1 }
 0x7cf   : > { %v10190_v35 = vpop.f32.mrb[115].mxu1 }
 0x7d0   : > { %v16443_v31 = vadd.f32 %v10188_v45, %v8716_v43  ;;  %v8951_v24 = vpop.permute.xlu0 %8950  ;;  %v8961_v35 = vpop.permute.xlu1 %8960 }
 0x7d4   : > { %v8843_v59 = vpop.f32.mrb[116].mxu1  ;;  %v8956_v18 = vpop.permute.xlu0 %8955 }
 0x7d5   : > { %v8844_v28 = vadd.f32 %v8843_v59, %v8756_v62  ;;  %v10466_v63 = vpop.f32.mrb[117].mxu1 }
 0x7d6   : > { %v8846_v33 = vpop.f32.mrb[118].mxu1 }
 0x7d7   : > { %v8897_v26 = vmax.f32 %v8844_v28, 0.0  ;;  %v8847_v25 = vadd.f32 %v8846_v33, %v8759_v12  ;;  %v10467_v60 = vpop.f32.mrb[119].mxu1 }
 0x7d9   : > { %v8988_v46 = vmul.f32 %v16274_v1, %v8897_v26  ;;  %v8898_v56 = vmax.f32 %v8847_v25, 0.0 }
 0x7db   : > { %v8989_v10 = vmul.f32 %v8931_v0, %v8898_v56  ;;  %v9002_v49 = vsel %vm9001_vm3, %v8988_v46, 0.0  ;;  %v8966_v56 = vpop.permute.xlu0 %8965 }
 0x7dc   : > { %v8851_v29 = vpop.f32.mrb[120].mxu1 }
 0x7dd   : > { %v9003_v43 = vsel %vm9001_vm3, %v8989_v10, 0.0  ;;  %v8852_v6 = vadd.f32 %v8851_v29, %v8764_v42  ;;  %v10470_v39 = vpop.f32.mrb[121].mxu1 }
 0x7de   : > { %v9004_v62 = vadd.f32 %v9003_v43, %v9002_v49  ;;  %v8854_v44 = vpop.f32.mrb[122].mxu1  ;;  %v8971_v49 = vpop.permute.xlu1 %8970 }
 0x7df   : > { %v8899_v40 = vmax.f32 %v8852_v6, 0.0  ;;  %v8855_v5 = vadd.f32 %v8854_v44, %v8767_v8  ;;  %v10471_v12 = vpop.f32.mrb[123].mxu1 }
 0x7e1   : > { %v8990_v58 = vmul.f32 %v8936_v20, %v8899_v40  ;;  %v8900_v57 = vmax.f32 %v8855_v5, 0.0 }
 0x7e3   : > { %v9005_v1 = vsel %vm9001_vm3, %v8990_v58, 0.0  ;;  %v8991_v34 = vmul.f32 %v8941_v41, %v8900_v57  ;;  %v8976_v57 = vpop.permute.xlu0 %8975 }
 0x7e4   : > { %v9006_v7 = vadd.f32 %v9005_v1, %v9004_v62  ;;  %v8859_v17 = vpop.f32.mrb[124].mxu1 }
 0x7e5   : > { %v9007_v9 = vsel %vm9001_vm3, %v8991_v34, 0.0  ;;  %v8860_v32 = vadd.f32 %v8859_v17, %v16427_v47  ;;  %v10474_v42 = vpop.f32.mrb[125].mxu1 }
 0x7e6   : > { %v9008_v48 = vadd.f32 %v9007_v9, %v9006_v7  ;;  %v8862_v2 = vpop.f32.mrb[126].mxu1 }
 0x7e7   : > { %v8901_v30 = vmax.f32 %v8860_v32, 0.0  ;;  %v8863_v50 = vadd.f32 %v8862_v2, %v16429_v19  ;;  %v10475_v8 = vpop.f32.mrb[127].mxu1 }
 0x7e9   : > { %v8992_v55 = vmul.f32 %v8946_v53, %v8901_v30  ;;  %v8902_v15 = vmax.f32 %v8863_v50, 0.0  ;;  %v8981_v53 = vpop.permute.xlu1 %8980 }
 0x7eb   : > { %v9009_v21 = vsel %vm9001_vm3, %v8992_v55, 0.0  ;;  %v8993_v23 = vmul.f32 %v8951_v24, %v8902_v15  ;;  %v9040_v24 = vlaneseq }
 0x7ec   : > { %v9010_v51 = vadd.f32 %v9009_v21, %v9008_v48  ;;  %v8867_v3 = vpop.f32.mrb[128].mxu1 }
 0x7ed   : > { %v9011_v4 = vsel %vm9001_vm3, %v8993_v23, 0.0  ;;  %v8868_v54 = vadd.f32 %v8867_v3, %v16431_v13  ;;  %v10478_v47 = vpop.f32.mrb[129].mxu1 }
 0x7ee   : > { %v9012_v11 = vadd.f32 %v9011_v4, %v9010_v51  ;;  %v8870_v16 = vpop.f32.mrb[130].mxu1  ;;  %v9041_v51 = vshrl.u32 %v9040_v24, 7 }
 0x7ef   : > { %v8903_v36 = vmax.f32 %v8868_v54, 0.0  ;;  %v8871_v27 = vadd.f32 %v8870_v16, %v16433_v61  ;;  %v10479_v19 = vpop.f32.mrb[131].mxu1 }
 0x7f0   : > { %v9042_v54 = vsub.s32 0, %v9041_v51 }
 0x7f1   : > { %v8994_v45 = vmul.f32 %v8956_v18, %v8903_v36  ;;  %v8904_v14 = vmax.f32 %v8871_v27, 0.0 }
 0x7f3   : > { %v9013_v0 = vsel %vm9001_vm3, %v8994_v45, 0.0  ;;  %v8995_v59 = vmul.f32 %v8961_v35, %v8904_v14 }
 0x7f4   : > { %v9014_v28 = vadd.f32 %v9013_v0, %v9012_v11  ;;  %v8875_v63 = vpop.f32.mrb[132].mxu1  ;;  %v9038_v11 = vpop.permute.xlu1 %9037 }
 0x7f5   : > { %v9015_v33 = vsel %vm9001_vm3, %v8995_v59, 0.0  ;;  %v8876_v13 = vadd.f32 %v8875_v63, %v16435_v37  ;;  %v10482_v26 = vpop.f32.mrb[133].mxu1 }
 0x7f6   : > { %v9016_v25 = vadd.f32 %v9015_v33, %v9014_v28  ;;  %v8878_v60 = vpop.f32.mrb[134].mxu1 }
 0x7f7   : > { %v8905_v20 = vmax.f32 %v8876_v13, 0.0  ;;  %v8879_v61 = vadd.f32 %v8878_v60, %v16437_v38  ;;  %v10483_v46 = vpop.f32.mrb[135].mxu1 }
 0x7f9   : > { %v8996_v10 = vmul.f32 %v8966_v56, %v8905_v20  ;;  %v8906_v29 = vmax.f32 %v8879_v61, 0.0 }
 0x7fb   : > { %v9017_v43 = vsel %vm9001_vm3, %v8996_v10, 0.0  ;;  %v8997_v6 = vmul.f32 %v8971_v49, %v8906_v29 }
 0x7fc   : > { %v9018_v39 = vadd.f32 %v9017_v43, %v9016_v25  ;;  %v8883_v41 = vpop.f32.mrb[136].mxu1 }
 0x7fd   : > { %v9019_v62 = vsel %vm9001_vm3, %v8997_v6, 0.0  ;;  %v8884_v37 = vadd.f32 %v8883_v41, %v16439_v52  ;;  %v10486_v44 = vpop.f32.mrb[137].mxu1 }
 0x7fe   : > { %v9020_v40 = vadd.f32 %v9019_v62, %v9018_v39  ;;  %v8886_v5 = vpop.f32.mrb[138].mxu1 }
 0x7ff   : > { %v8907_v12 = vmax.f32 %v8884_v37, 0.0  ;;  %v8887_v38 = vadd.f32 %v8886_v5, %v16441_v22  ;;  %v10487_v58 = vpop.f32.mrb[139].mxu1  ;;  %v8986_v22 = vpop.permute.xlu0 %8985 }
 0x801   : > { %v8998_v1 = vmul.f32 %v8976_v57, %v8907_v12  ;;  %v8908_v34 = vmax.f32 %v8887_v38, 0.0 }
 0x803   : > { %v9021_v7 = vsel %vm9001_vm3, %v8998_v1, 0.0  ;;  %v8999_v17 = vmul.f32 %v8981_v53, %v8908_v34 }
 0x804   : > { %v9022_v9 = vadd.f32 %v9021_v7, %v9020_v40  ;;  %v8891_v32 = vpop.f32.mrb[140].mxu1 }
 0x805   : > { %v9023_v42 = vsel %vm9001_vm3, %v8999_v17, 0.0  ;;  %v8892_v52 = vadd.f32 %v8891_v32, %v16443_v31  ;;  %v10490_v48 = vpop.f32.mrb[141].mxu1  ;;  %v9043_v31 = vrot.slane %v9038_v11, %v9042_v54 }
 0x806   : > { %v9024_v2 = vadd.f32 %v9023_v42, %v9022_v9  ;;  %v8894_v30 = vpop.f32.mrb[142].mxu1 }
 0x807   : > { %v8909_v50 = vmax.f32 %v8892_v52, 0.0  ;;  %v10491_v8 = vpop.f32.mrb[143].mxu1 }
 0x809   : > { %v9000_v55 = vmul.f32 %v8986_v22, %v8909_v50 }
 0x80b   : > { %v9026_v15 = vsel %vm9025_vm4, %v9000_v55, 0.0 }
 0x80c   : > { %v9027_v21 = vadd.f32 %v9026_v15, %v9024_v2 }
 0x80e   : > { %v9028_v23 = vrot.slane %v9027_v21, 4 }
 0x810   : > { %v9029_v3 = vadd.f32 %v9028_v23, %v9027_v21 }
 0x812   : > { %v9030_v4 = vrot.slane %v9029_v3, 2 }
 0x814   : > { %v9031_v47 = vadd.f32 %v9030_v4, %v9029_v3 }
 0x816   : > { %v9032_v16 = vrot.slane %v9031_v47, 1 }
 0x818   : > { %v9033_v36 = vadd.f32 %v9032_v16, %v9031_v47 }
 0x81a   : > { %v9044_v27 = vadd.f32 %v9043_v31, %v9033_v36 }
 0x81c   : > { %v9073_v19 = vsel %vm9062_vm5, %v9044_v27, 0.0  ;;  %v9047_v18 = vand.u32 2147483647, %v9044_v27  ;;  %v9045_v63 = vsub.f32 0.0, %v9044_v27 }
 0x81d   : > { %9074 = vadd.xlane.f32.xlu1 %v9073_v19 }
 0x81e   : > { %v9048_v45 = vsub.f32 0.0, %v9047_v18  ;;  %v9046_v60 = vmax.f32 %v9045_v63, 0.0 }
 0x820   : > { %v9049_v14 = vmul.f32 1.442695, %v9048_v45 }
 0x822   : > { %12520 = vpow2.f32 %v9049_v14 }
 0x82c   : > { %v12521_v35 = vpop.eup %12520 }
 0x82d   : > { %v9051_v0 = vadd.f32 1.0, %v12521_v35  ;;  %v9054_v59 = vmul.f32 -0.5, %v12521_v35  ;;  %v9057_v33 = vand.u32 2147483647, %v12521_v35 }
 0x82f   : > { %12522 = vlog2.f32 %v9051_v0  ;;  %v9055_v28 = vadd.f32 1.0, %v9054_v59  ;;  %vm9058_vm6 = vcmp.lt.f32.partialorder %v9057_v33, 0.0004427343 }
 0x831   : > { %v9056_v25 = vmul.f32 %v12521_v35, %v9055_v28 }
 0x839   : > { %v12523_v13 = vpop.eup %12522 }
 0x83a   : > { %v9053_v26 = vmul.f32 0.6931472, %v12523_v13 }
 0x83c   : > { %v9059_v20 = vsel %vm9058_vm6, %v9056_v25, %v9053_v26 }
 0x83d   : > { %v9060_v61 = vadd.f32 %v9059_v20, %v9046_v60 }
 0x83f   : > { %v9061_v46 = vsub.f32 0.6931472, %v9060_v61 }
 0x841   : > { %v9063_v56 = vsel %vm9062_vm5, %v9061_v46, 0.0 }
 0x842   : > { %9064 = vadd.xlane.f32.xlu0 %v9063_v56 }
 0x8aa   : > { %v9075_v10 = vpop.xlane.xlu1 %9074 }
 0x8ab   : > { %v9076_v29 = vrot.slane %v9075_v10, 4 }
 0x8ad   : > { %v9077_v49 = vadd.f32 %v9076_v29, %v9075_v10 }
 0x8af   : > { %v9078_v43 = vrot.slane %v9077_v49, 2 }
 0x8b1   : > { %v9079_v62 = vadd.f32 %v9078_v43, %v9077_v49 }
 0x8b3   : > { %v9080_v40 = vrot.slane %v9079_v62, 1 }
 0x8b5   : > { %v9081_v38 = vadd.f32 %v9080_v40, %v9079_v62 }
 0x8cf   : > { %v9065_v6 = vpop.xlane.xlu0 %9064 }
 0x8d0   : > { %v9066_v39 = vrot.slane %v9065_v6, 4 }
 0x8d2   : > { %v9067_v41 = vadd.f32 %v9066_v39, %v9065_v6 }
 0x8d4   : > { %v9068_v37 = vrot.slane %v9067_v41, 2 }
 0x8d6   : > { %v9069_v44 = vadd.f32 %v9068_v37, %v9067_v41 }
 0x8d8   : > { %v9070_v5 = vrot.slane %v9069_v44, 1 }
 0x8da   : > { %v9071_v12 = vadd.f32 %v9070_v5, %v9069_v44 }
 0x8dc   : > { %11559 = vpush %v9071_v12 }
 0x8dd   : > { %11561 = vpush %v9081_v38 }
 0x90d   : > { %s11560_s9 = spop %11559 }
 0x90e   : > { %s11562_s11 = spop %11561 }
 0x90f   : > { %s16785_s11 = smov (!%p9083_p5, %s11562_s11), 0.0 }
 0x910   : > { %s9085_s16 = ssub.f32 %s11560_s9, %s16785_s11 }
 0x912   : > { %v9086_v58 = vstv %s9085_s16 }
 0x913   : > { %9087 = vst [vmem:[%s309_s15] sm:$0xff] %v9086_v58 }
 0x914 PF: > { %s19_s28 = sadd.s32 1, %s12546_s28   ;;  %s16780_s26 = smov %s12542_s27 }
 0x915   : > { %p16_p6 = scmp.ge.s32.totalorder %s19_s28, 6   ;;  %s16781_s27 = smov %s16783_s6 }
 0x917   :  { %18 = sbr.rel (!%p16_p6) target bundleno = 3 (0x3), region = 78 }

</bundles_post_ra>
